<compile_context>
chip_gen: v7x
topology: tpu7x:2x2x1
jax: 0.10.0
libtpu: 0.0.40
codegen_flags: <defaults>
</compile_context>

<pallas_src>
import functools

import jax
import jax.numpy as jnp
from jax import lax
from jax.experimental import pallas as pl
from jax.experimental.pallas import tpu as pltpu

_VMEM_LIMIT = 48 * 1024 * 1024  # explicit scoped-VMEM limit (safe on v5e/v6e/v7x)


# ----------------------------------------------------------------------------
# Shared helper: dilated 3x3 conv as ONE im2col matmul (K = 9*Cin) against a
# zero-padded VMEM scratch.  Returns (H, W, Cout) float32.
# ----------------------------------------------------------------------------
def _im2col_conv(xpad_ref, col_ref, w_flat, *, H, W, C, P, d):
    xp = xpad_ref[...]                                  # (H+2P, W+2P, C)
    for t in range(9):
        ky, kx = t // 3, t % 3
        y0 = P + (ky - 1) * d
        x0 = P + (kx - 1) * d
        col_ref[:, :, t * C:(t + 1) * C] = xp[y0:y0 + H, x0:x0 + W, :]
    col = col_ref[...].reshape(H * W, 9 * C)            # benign leading-dim merge
    cout = w_flat.shape[-1]
    return jnp.dot(col, w_flat,
                   preferred_element_type=jnp.float32).reshape(H, W, cout)


# ----------------------------------------------------------------------------
# Fused dilated-conv chain + channel concat:
#   out = concat([x, d1, d2, d4, d8], channel) with d_{k} = conv3x3(d_{k/2}, dil=k)
# One grid step per batch element; intermediates never leave VMEM.
# ----------------------------------------------------------------------------
def _dam_chain_kernel(x_ref, w_ref, o_ref, xpad_ref, col_ref, *, H, W, C, P):
    xpad_ref[...] = jnp.zeros_like(xpad_ref)            # zero border once
    cur = x_ref[0].astype(jnp.float32)                  # (H, W, C)
    o_ref[0, :, :, 0:C] = cur.astype(o_ref.dtype)
    for idx, d in enumerate((1, 2, 4, 8)):
        xpad_ref[P:P + H, P:P + W, :] = cur             # interior overwrite; border stays 0
        cur = _im2col_conv(xpad_ref, col_ref, w_ref[idx], H=H, W=W, C=C, P=P, d=d)
        o_ref[0, :, :, (idx + 1) * C:(idx + 2) * C] = cur.astype(o_ref.dtype)


def dam_chain(x, w_stack):
    """x: (N,H,W,C); w_stack: (4, 9*C, C) -> (N,H,W,5C) = [x,d1,d2,d4,d8]."""
    N, H, W, C = x.shape
    P = 8                                               # max dilation / padding
    return pl.pallas_call(
        functools.partial(_dam_chain_kernel, H=H, W=W, C=C, P=P),
        out_shape=jax.ShapeDtypeStruct((N, H, W, 5 * C), x.dtype),
        grid=(N,),
        in_specs=[
            pl.BlockSpec((1, H, W, C), lambda b: (b, 0, 0, 0)),
            pl.BlockSpec((4, 9 * C, C), lambda b: (0, 0, 0)),
        ],
        out_specs=pl.BlockSpec((1, H, W, 5 * C), lambda b: (b, 0, 0, 0)),
        scratch_shapes=[
            pltpu.VMEM((H + 2 * P, W + 2 * P, C), jnp.float32),
            pltpu.VMEM((H, W, 9 * C), jnp.float32),
        ],
        compiler_params=pltpu.CompilerParams(
            dimension_semantics=("parallel",),
            vmem_limit_bytes=_VMEM_LIMIT,
        ),
    )(x, w_stack)


# ----------------------------------------------------------------------------
# Final block: conv3x3 + folded eval-mode BatchNorm + ReLU, fused.
# ----------------------------------------------------------------------------
def _block_kernel(x_ref, w_ref, scale_ref, shift_ref, o_ref, xpad_ref, col_ref,
                  *, H, W, Cin, P):
    xpad_ref[...] = jnp.zeros_like(xpad_ref)
    xpad_ref[P:P + H, P:P + W, :] = x_ref[0].astype(jnp.float32)
    y = _im2col_conv(xpad_ref, col_ref, w_ref[...], H=H, W=W, C=Cin, P=P, d=1)
    y = y * scale_ref[0] + shift_ref[0]                 # folded eval-mode BN
    o_ref[0] = jnp.maximum(y, 0.0).astype(o_ref.dtype)


def conv3x3_bn_relu(x, w_flat, scale, shift):
    """x: (N,H,W,Cin); w_flat: (9*Cin, Cout); scale/shift: (1, Cout)."""
    N, H, W, Cin = x.shape
    Cout = w_flat.shape[-1]
    P = 8                                               # aligned interior store
    return pl.pallas_call(
        functools.partial(_block_kernel, H=H, W=W, Cin=Cin, P=P),
        out_shape=jax.ShapeDtypeStruct((N, H, W, Cout), x.dtype),
        grid=(N,),
        in_specs=[
            pl.BlockSpec((1, H, W, Cin), lambda b: (b, 0, 0, 0)),
            pl.BlockSpec((9 * Cin, Cout), lambda b: (0, 0)),
            pl.BlockSpec((1, Cout), lambda b: (0, 0)),
            pl.BlockSpec((1, Cout), lambda b: (0, 0)),
        ],
        out_specs=pl.BlockSpec((1, H, W, Cout), lambda b: (b, 0, 0, 0)),
        scratch_shapes=[
            pltpu.VMEM((H + 2 * P, W + 2 * P, Cin), jnp.float32),
            pltpu.VMEM((H, W, 9 * Cin), jnp.float32),
        ],
        compiler_params=pltpu.CompilerParams(
            dimension_semantics=("parallel",),
            vmem_limit_bytes=_VMEM_LIMIT,
        ),
    )(x, w_flat, scale, shift)


# ----------------------------------------------------------------------------
# CrissCrossAttention: single q/k/v projections, batched MXU matmuls for the
# column/row energies and aggregation, joint softmax over the H+W axis
# (with -inf self-diagonal on the column part), gamma-scaled residual.
# ----------------------------------------------------------------------------
def _cca_kernel(x_ref, wq_ref, bq_ref, wk_ref, bk_ref, wv_ref, bv_ref,
                gamma_ref, o_ref, *, H, W):
    C = x_ref.shape[-1]
    Cq = wq_ref.shape[-1]

    x = x_ref[0].astype(jnp.float32)                    # (H, W, C)
    xf = x.reshape(H * W, C)

    def proj(w_ref, b_ref, d):
        return (jnp.dot(xf, w_ref[...], preferred_element_type=jnp.float32)
                + b_ref[0]).reshape(H, W, d)

    q = proj(wq_ref, bq_ref, Cq)                        # (H, W, Cq)
    k = proj(wk_ref, bk_ref, Cq)                        # (H, W, Cq)
    v = proj(wv_ref, bv_ref, C)                         # (H, W, C)

    # w-major views for the column ("H") branch (lane-layout-aware transpose).
    qT = pltpu.einshape("hwc->whc", q)                  # (W, H, Cq)
    kT = pltpu.einshape("hwc->whc", k)                  # (W, H, Cq)
    vT = pltpu.einshape("hwc->whc", v)                  # (W, H, C)

    # Column energies (batched over w): e_hT[w,h,j] = <q(h,w), k(j,w)>,
    # -inf on the self position h == j (as in CCNet's INF mask).
    e_hT = jnp.einsum("whc,wjc->whj", qT, kT,
                      preferred_element_type=jnp.float32)          # (W, H, H)
    diag = (lax.broadcasted_iota(jnp.int32, (H, H), 0)
            == lax.broadcasted_iota(jnp.int32, (H, H), 1))
    e_hT = jnp.where(diag[None, :, :], -jnp.inf, e_hT)

    # Row energies (batched over h): e_w[h,w,j] = <q(h,w), k(h,j)>.
    e_w = jnp.einsum("hwc,hjc->hwj", q, k,
                     preferred_element_type=jnp.float32)           # (H, W, W)

    # Joint softmax over the concatenated (H + W) axis, without a concat.
    m_hT = jnp.max(e_hT, axis=-1)                       # (W, H)
    m_w = jnp.max(e_w, axis=-1)                         # (H, W)
    m = jnp.maximum(jnp.swapaxes(m_hT, 0, 1), m_w)      # (H, W)
    mT = jnp.swapaxes(m, 0, 1)                          # (W, H)

    p_hT = jnp.exp(e_hT - mT[:, :, None])               # (W, H, H)
    p_w = jnp.exp(e_w - m[:, :, None])                  # (H, W, W)

    denom = jnp.swapaxes(jnp.sum(p_hT, axis=-1), 0, 1) + jnp.sum(p_w, axis=-1)
    inv = pl.reciprocal(denom, approx=True)             # (H, W), EUP divide
    invT = jnp.swapaxes(inv, 0, 1)                      # (W, H)

    att_hT = p_hT * invT[:, :, None]                    # (W, H, H)
    att_w = p_w * inv[:, :, None]                       # (H, W, W)

    # out_h[h,w,c] = sum_j att_h[h,w,j] * v[j,w,c]   (computed w-major)
    out_hT = jnp.einsum("whj,wjc->whc", att_hT, vT,
                        preferred_element_type=jnp.float32)        # (W, H, C)
    # out_w[h,w,c] = sum_j att_w[h,w,j] * v[h,j,c]
    out_w = jnp.einsum("hwj,hjc->hwc", att_w, v,
                       preferred_element_type=jnp.float32)         # (H, W, C)
    out_h = pltpu.einshape("whc->hwc", out_hT)          # (H, W, C)

    gamma = gamma_ref[0]
    o_ref[0] = (gamma * (out_h + out_w) + x).astype(o_ref.dtype)


def criss_cross_attention(x, p):
    """x: (N, H, W, C) NHWC. Returns gamma*(out_H + out_W) + x."""
    N, H, W, C = x.shape
    Cq = p["wq"].shape[-1]
    return pl.pallas_call(
        functools.partial(_cca_kernel, H=H, W=W),
        out_shape=jax.ShapeDtypeStruct((N, H, W, C), x.dtype),
        grid=(N,),
        in_specs=[
            pl.BlockSpec((1, H, W, C), lambda b: (b, 0, 0, 0)),
            pl.BlockSpec((C, Cq), lambda b: (0, 0)),
            pl.BlockSpec((1, Cq), lambda b: (0, 0)),
            pl.BlockSpec((C, Cq), lambda b: (0, 0)),
            pl.BlockSpec((1, Cq), lambda b: (0, 0)),
            pl.BlockSpec((C, C), lambda b: (0, 0)),
            pl.BlockSpec((1, C), lambda b: (0, 0)),
            pl.BlockSpec(memory_space=pltpu.MemorySpace.SMEM),
        ],
        out_specs=pl.BlockSpec((1, H, W, C), lambda b: (b, 0, 0, 0)),
        compiler_params=pltpu.CompilerParams(
            dimension_semantics=("parallel",),
            vmem_limit_bytes=_VMEM_LIMIT,
        ),
    )(x, p["wq"], p["bq"], p["wk"], p["bk"], p["wv"], p["bv"], p["gamma"])


# ----------------------------------------------------------------------------
# Full DAM_criss forward (NCHW in / NCHW out).
# ----------------------------------------------------------------------------
def dam_criss_forward(x_nchw, params):
    x = jnp.transpose(x_nchw, (0, 2, 3, 1))             # NCHW -> NHWC
    cat = dam_chain(x, params["dam_w"])                 # (N, H, W, 5C)
    c = criss_cross_attention(cat, params["cca1"])
    c = criss_cross_attention(c, params["cca2"])
    out = conv3x3_bn_relu(c, params["block_w"], params["bn_scale"], params["bn_shift"])
    return jnp.transpose(out, (0, 3, 1, 2))             # NHWC -> NCHW


if __name__ == "__main__":
    # Small, self-consistent shapes (PyTorch default is in_channels=512).
    N, C, H, W = 2, 8, 8, 8
    C5, Cq = 5 * C, (5 * C) // 8

    key = jax.random.PRNGKey(0)
    ks = jax.random.split(key, 16)

    def nrm(k, shape, s=0.1):
        return (s * jax.random.normal(k, shape)).astype(jnp.float32)

    def cca_params(k0):
        kk = jax.random.split(k0, 6)
        return dict(
            wq=nrm(kk[0], (C5, Cq)), bq=nrm(kk[1], (1, Cq)),
            wk=nrm(kk[2], (C5, Cq)), bk=nrm(kk[3], (1, Cq)),
            wv=nrm(kk[4], (C5, C5)), bv=nrm(kk[5], (1, C5)),
            gamma=jnp.full((1,), 0.1, jnp.float32),     # PyTorch init is 0.0
        )

    params = dict(
        dam_w=nrm(ks[0], (4, 9 * C, C)),                # [dam1, dam2, dam4, dam8], im2col layout
        cca1=cca_params(ks[4]),
        cca2=cca_params(ks[5]),
        block_w=nrm(ks[6], (9 * C5, C)),                # im2col layout (tap-major, cin-minor)
    )

    # Eval-mode BatchNorm folded into per-channel scale/shift.
    bn_w = 1.0 + nrm(ks[7], (C,))
    bn_b = nrm(ks[8], (C,))
    r_mean = nrm(ks[9], (C,))
    r_var = 1.0 + jnp.abs(nrm(ks[10], (C,)))
    eps = 1e-5
    inv_std = bn_w / jnp.sqrt(r_var + eps)
    params["bn_scale"] = inv_std.reshape(1, C).astype(jnp.float32)
    params["bn_shift"] = (bn_b - r_mean * inv_std).reshape(1, C).astype(jnp.float32)

    x = jax.random.normal(ks[11], (N, C, H, W), jnp.float32)   # NCHW input

    out = jax.jit(dam_criss_forward)(x, params)
    jax.block_until_ready(out)
    assert out.shape == (N, C, H, W)
    assert bool(jnp.all(jnp.isfinite(out)))
    print("KERNEL_OK")
</pallas_src>

<mosaic_0001>
module attributes {stable_mosaic.version = 11 : i64} {
  func.func @_dam_chain_kernel(%arg0: i32, %arg1: memref<1x8x8x8xf32, #tpu.memory_space<vmem>>, %arg2: memref<4x72x8xf32, #tpu.memory_space<vmem>>, %arg3: memref<1x8x8x40xf32, #tpu.memory_space<vmem>>, %arg4: memref<24x24x8xf32, #tpu.memory_space<vmem>>, %arg5: memref<8x8x72xf32, #tpu.memory_space<vmem>>) attributes {dimension_semantics = [#tpu.dimension_semantics<parallel>], iteration_bounds = array<i64: 2>, scalar_prefetch = 0 : i64, scratch_operands = 2 : i64, tpu.core_type = #tpu.core_type<tc>, window_params = [{transform_indices = @transform_0, window_bounds = array<i64: 1, 8, 8, 8>}, {pipeline_mode = #tpu.pipeline_mode<synchronous>, transform_indices = @transform_1, window_bounds = array<i64: 4, 72, 8>}, {transform_indices = @transform_2, window_bounds = array<i64: 1, 8, 8, 40>}]} {
    %cst = arith.constant 0.000000e+00 : f32
    %0 = vector.broadcast %cst : f32 to vector<24x24x8xf32>
    %c0 = arith.constant 0 : index
    %c0_0 = arith.constant 0 : index
    %c0_1 = arith.constant 0 : index
    %1 = vector.load %arg4[%c0, %c0_0, %c0_1] : memref<24x24x8xf32, #tpu.memory_space<vmem>>, vector<24x24x8xf32>
    tpu.vector_store %arg4[%c0, %c0_0, %c0_1], %0 {strides = array<i32>} : memref<24x24x8xf32, #tpu.memory_space<vmem>>, vector<24x24x8xf32>,
    %c0_2 = arith.constant 0 : index
    %c0_3 = arith.constant 0 : index
    %c0_4 = arith.constant 0 : index
    %c0_5 = arith.constant 0 : index
    %2 = vector.load %arg1[%c0_2, %c0_3, %c0_4, %c0_5] : memref<1x8x8x8xf32, #tpu.memory_space<vmem>>, vector<1x8x8x8xf32>
    %3 = vector.shape_cast %2 : vector<1x8x8x8xf32> to vector<8x8x8xf32>
    %c0_6 = arith.constant 0 : index
    %c0_7 = arith.constant 0 : index
    %c0_8 = arith.constant 0 : index
    %c0_9 = arith.constant 0 : index
    %4 = vector.load %arg3[%c0_6, %c0_7, %c0_8, %c0_9] : memref<1x8x8x40xf32, #tpu.memory_space<vmem>>, vector<1x8x8x8xf32>
    %5 = vector.shape_cast %4 : vector<1x8x8x8xf32> to vector<8x8x8xf32>
    %6 = vector.shape_cast %3 : vector<8x8x8xf32> to vector<1x8x8x8xf32>
    tpu.vector_store %arg3[%c0_6, %c0_7, %c0_8, %c0_9], %6 {strides = array<i32>} : memref<1x8x8x40xf32, #tpu.memory_space<vmem>>, vector<1x8x8x8xf32>,
    %c8 = arith.constant 8 : index
    %c8_10 = arith.constant 8 : index
    %c0_11 = arith.constant 0 : index
    %7 = vector.load %arg4[%c8, %c8_10, %c0_11] : memref<24x24x8xf32, #tpu.memory_space<vmem>>, vector<8x8x8xf32>
    tpu.vector_store %arg4[%c8, %c8_10, %c0_11], %3 {strides = array<i32>} : memref<24x24x8xf32, #tpu.memory_space<vmem>>, vector<8x8x8xf32>,
    %c0_12 = arith.constant 0 : index
    %c0_13 = arith.constant 0 : index
    %c0_14 = arith.constant 0 : index
    %8 = vector.load %arg2[%c0_12, %c0_13, %c0_14] : memref<4x72x8xf32, #tpu.memory_space<vmem>>, vector<1x72x8xf32>
    %9 = vector.shape_cast %8 : vector<1x72x8xf32> to vector<72x8xf32>
    %c0_15 = arith.constant 0 : index
    %c0_16 = arith.constant 0 : index
    %c0_17 = arith.constant 0 : index
    %10 = vector.load %arg4[%c0_15, %c0_16, %c0_17] : memref<24x24x8xf32, #tpu.memory_space<vmem>>, vector<24x24x8xf32>
    %11 = vector.extract_strided_slice %10 {offsets = [7, 7, 0], sizes = [8, 8, 8], strides = [1, 1, 1]} : vector<24x24x8xf32> to vector<8x8x8xf32>
    %c0_18 = arith.constant 0 : index
    %c0_19 = arith.constant 0 : index
    %c0_20 = arith.constant 0 : index
    %12 = vector.load %arg5[%c0_18, %c0_19, %c0_20] : memref<8x8x72xf32, #tpu.memory_space<vmem>>, vector<8x8x8xf32>
    tpu.vector_store %arg5[%c0_18, %c0_19, %c0_20], %11 {strides = array<i32>} : memref<8x8x72xf32, #tpu.memory_space<vmem>>, vector<8x8x8xf32>,
    %13 = vector.extract_strided_slice %10 {offsets = [7, 8, 0], sizes = [8, 8, 8], strides = [1, 1, 1]} : vector<24x24x8xf32> to vector<8x8x8xf32>
    %c0_21 = arith.constant 0 : index
    %c0_22 = arith.constant 0 : index
    %c8_23 = arith.constant 8 : index
    %14 = vector.load %arg5[%c0_21, %c0_22, %c8_23] : memref<8x8x72xf32, #tpu.memory_space<vmem>>, vector<8x8x8xf32>
    tpu.vector_store %arg5[%c0_21, %c0_22, %c8_23], %13 {strides = array<i32>} : memref<8x8x72xf32, #tpu.memory_space<vmem>>, vector<8x8x8xf32>,
    %15 = vector.extract_strided_slice %10 {offsets = [7, 9, 0], sizes = [8, 8, 8], strides = [1, 1, 1]} : vector<24x24x8xf32> to vector<8x8x8xf32>
    %c0_24 = arith.constant 0 : index
    %c0_25 = arith.constant 0 : index
    %c16 = arith.constant 16 : index
    %16 = vector.load %arg5[%c0_24, %c0_25, %c16] : memref<8x8x72xf32, #tpu.memory_space<vmem>>, vector<8x8x8xf32>
    tpu.vector_store %arg5[%c0_24, %c0_25, %c16], %15 {strides = array<i32>} : memref<8x8x72xf32, #tpu.memory_space<vmem>>, vector<8x8x8xf32>,
    %17 = vector.extract_strided_slice %10 {offsets = [8, 7, 0], sizes = [8, 8, 8], strides = [1, 1, 1]} : vector<24x24x8xf32> to vector<8x8x8xf32>
    %c0_26 = arith.constant 0 : index
    %c0_27 = arith.constant 0 : index
    %c24 = arith.constant 24 : index
    %18 = vector.load %arg5[%c0_26, %c0_27, %c24] : memref<8x8x72xf32, #tpu.memory_space<vmem>>, vector<8x8x8xf32>
    tpu.vector_store %arg5[%c0_26, %c0_27, %c24], %17 {strides = array<i32>} : memref<8x8x72xf32, #tpu.memory_space<vmem>>, vector<8x8x8xf32>,
    %19 = vector.extract_strided_slice %10 {offsets = [8, 8, 0], sizes = [8, 8, 8], strides = [1, 1, 1]} : vector<24x24x8xf32> to vector<8x8x8xf32>
    %c0_28 = arith.constant 0 : index
    %c0_29 = arith.constant 0 : index
    %c32 = arith.constant 32 : index
    %20 = vector.load %arg5[%c0_28, %c0_29, %c32] : memref<8x8x72xf32, #tpu.memory_space<vmem>>, vector<8x8x8xf32>
    tpu.vector_store %arg5[%c0_28, %c0_29, %c32], %19 {strides = array<i32>} : memref<8x8x72xf32, #tpu.memory_space<vmem>>, vector<8x8x8xf32>,
    %21 = vector.extract_strided_slice %10 {offsets = [8, 9, 0], sizes = [8, 8, 8], strides = [1, 1, 1]} : vector<24x24x8xf32> to vector<8x8x8xf32>
    %c0_30 = arith.constant 0 : index
    %c0_31 = arith.constant 0 : index
    %c40 = arith.constant 40 : index
    %22 = vector.load %arg5[%c0_30, %c0_31, %c40] : memref<8x8x72xf32, #tpu.memory_space<vmem>>, vector<8x8x8xf32>
    tpu.vector_store %arg5[%c0_30, %c0_31, %c40], %21 {strides = array<i32>} : memref<8x8x72xf32, #tpu.memory_space<vmem>>, vector<8x8x8xf32>,
    %23 = vector.extract_strided_slice %10 {offsets = [9, 7, 0], sizes = [8, 8, 8], strides = [1, 1, 1]} : vector<24x24x8xf32> to vector<8x8x8xf32>
    %c0_32 = arith.constant 0 : index
    %c0_33 = arith.constant 0 : index
    %c48 = arith.constant 48 : index
    %24 = vector.load %arg5[%c0_32, %c0_33, %c48] : memref<8x8x72xf32, #tpu.memory_space<vmem>>, vector<8x8x8xf32>
    tpu.vector_store %arg5[%c0_32, %c0_33, %c48], %23 {strides = array<i32>} : memref<8x8x72xf32, #tpu.memory_space<vmem>>, vector<8x8x8xf32>,
    %25 = vector.extract_strided_slice %10 {offsets = [9, 8, 0], sizes = [8, 8, 8], strides = [1, 1, 1]} : vector<24x24x8xf32> to vector<8x8x8xf32>
    %c0_34 = arith.constant 0 : index
    %c0_35 = arith.constant 0 : index
    %c56 = arith.constant 56 : index
    %26 = vector.load %arg5[%c0_34, %c0_35, %c56] : memref<8x8x72xf32, #tpu.memory_space<vmem>>, vector<8x8x8xf32>
    tpu.vector_store %arg5[%c0_34, %c0_35, %c56], %25 {strides = array<i32>} : memref<8x8x72xf32, #tpu.memory_space<vmem>>, vector<8x8x8xf32>,
    %27 = vector.extract_strided_slice %10 {offsets = [9, 9, 0], sizes = [8, 8, 8], strides = [1, 1, 1]} : vector<24x24x8xf32> to vector<8x8x8xf32>
    %c0_36 = arith.constant 0 : index
    %c0_37 = arith.constant 0 : index
    %c64 = arith.constant 64 : index
    %28 = vector.load %arg5[%c0_36, %c0_37, %c64] : memref<8x8x72xf32, #tpu.memory_space<vmem>>, vector<8x8x8xf32>
    tpu.vector_store %arg5[%c0_36, %c0_37, %c64], %27 {strides = array<i32>} : memref<8x8x72xf32, #tpu.memory_space<vmem>>, vector<8x8x8xf32>,
    %c0_38 = arith.constant 0 : index
    %c0_39 = arith.constant 0 : index
    %c0_40 = arith.constant 0 : index
    %29 = vector.load %arg5[%c0_38, %c0_39, %c0_40] : memref<8x8x72xf32, #tpu.memory_space<vmem>>, vector<8x8x72xf32>
    %30 = vector.shape_cast %29 : vector<8x8x72xf32> to vector<64x72xf32>
    %cst_41 = arith.constant dense<0.000000e+00> : vector<64x8xf32>
    %31 = tpu.matmul %30, %9, %cst_41 {dimension_numbers = #tpu.dot_dimension_numbers<[1], [0], [0], [1], [0, 0, 1, 1], [], []>} : vector<64x72xf32>, vector<72x8xf32>, vector<64x8xf32> -> vector<64x8xf32>
    %32 = vector.shape_cast %31 : vector<64x8xf32> to vector<8x8x8xf32>
    %c0_42 = arith.constant 0 : index
    %c0_43 = arith.constant 0 : index
    %c0_44 = arith.constant 0 : index
    %c8_45 = arith.constant 8 : index
    %33 = vector.load %arg3[%c0_42, %c0_43, %c0_44, %c8_45] : memref<1x8x8x40xf32, #tpu.memory_space<vmem>>, vector<1x8x8x8xf32>
    %34 = vector.shape_cast %33 : vector<1x8x8x8xf32> to vector<8x8x8xf32>
    %35 = vector.shape_cast %32 : vector<8x8x8xf32> to vector<1x8x8x8xf32>
    tpu.vector_store %arg3[%c0_42, %c0_43, %c0_44, %c8_45], %35 {strides = array<i32>} : memref<1x8x8x40xf32, #tpu.memory_space<vmem>>, vector<1x8x8x8xf32>,
    %c8_46 = arith.constant 8 : index
    %c8_47 = arith.constant 8 : index
    %c0_48 = arith.constant 0 : index
    %36 = vector.load %arg4[%c8_46, %c8_47, %c0_48] : memref<24x24x8xf32, #tpu.memory_space<vmem>>, vector<8x8x8xf32>
    tpu.vector_store %arg4[%c8_46, %c8_47, %c0_48], %32 {strides = array<i32>} : memref<24x24x8xf32, #tpu.memory_space<vmem>>, vector<8x8x8xf32>,
    %c1 = arith.constant 1 : index
    %c0_49 = arith.constant 0 : index
    %c0_50 = arith.constant 0 : index
    %37 = vector.load %arg2[%c1, %c0_49, %c0_50] : memref<4x72x8xf32, #tpu.memory_space<vmem>>, vector<1x72x8xf32>
    %38 = vector.shape_cast %37 : vector<1x72x8xf32> to vector<72x8xf32>
    %c0_51 = arith.constant 0 : index
    %c0_52 = arith.constant 0 : index
    %c0_53 = arith.constant 0 : index
    %39 = vector.load %arg4[%c0_51, %c0_52, %c0_53] : memref<24x24x8xf32, #tpu.memory_space<vmem>>, vector<24x24x8xf32>
    %40 = vector.extract_strided_slice %39 {offsets = [6, 6, 0], sizes = [8, 8, 8], strides = [1, 1, 1]} : vector<24x24x8xf32> to vector<8x8x8xf32>
    %c0_54 = arith.constant 0 : index
    %c0_55 = arith.constant 0 : index
    %c0_56 = arith.constant 0 : index
    %41 = vector.load %arg5[%c0_54, %c0_55, %c0_56] : memref<8x8x72xf32, #tpu.memory_space<vmem>>, vector<8x8x8xf32>
    tpu.vector_store %arg5[%c0_54, %c0_55, %c0_56], %40 {strides = array<i32>} : memref<8x8x72xf32, #tpu.memory_space<vmem>>, vector<8x8x8xf32>,
    %42 = vector.extract_strided_slice %39 {offsets = [6, 8, 0], sizes = [8, 8, 8], strides = [1, 1, 1]} : vector<24x24x8xf32> to vector<8x8x8xf32>
    %c0_57 = arith.constant 0 : index
    %c0_58 = arith.constant 0 : index
    %c8_59 = arith.constant 8 : index
    %43 = vector.load %arg5[%c0_57, %c0_58, %c8_59] : memref<8x8x72xf32, #tpu.memory_space<vmem>>, vector<8x8x8xf32>
    tpu.vector_store %arg5[%c0_57, %c0_58, %c8_59], %42 {strides = array<i32>} : memref<8x8x72xf32, #tpu.memory_space<vmem>>, vector<8x8x8xf32>,
    %44 = vector.extract_strided_slice %39 {offsets = [6, 10, 0], sizes = [8, 8, 8], strides = [1, 1, 1]} : vector<24x24x8xf32> to vector<8x8x8xf32>
    %c0_60 = arith.constant 0 : index
    %c0_61 = arith.constant 0 : index
    %c16_62 = arith.constant 16 : index
    %45 = vector.load %arg5[%c0_60, %c0_61, %c16_62] : memref<8x8x72xf32, #tpu.memory_space<vmem>>, vector<8x8x8xf32>
    tpu.vector_store %arg5[%c0_60, %c0_61, %c16_62], %44 {strides = array<i32>} : memref<8x8x72xf32, #tpu.memory_space<vmem>>, vector<8x8x8xf32>,
    %46 = vector.extract_strided_slice %39 {offsets = [8, 6, 0], sizes = [8, 8, 8], strides = [1, 1, 1]} : vector<24x24x8xf32> to vector<8x8x8xf32>
    %c0_63 = arith.constant 0 : index
    %c0_64 = arith.constant 0 : index
    %c24_65 = arith.constant 24 : index
    %47 = vector.load %arg5[%c0_63, %c0_64, %c24_65] : memref<8x8x72xf32, #tpu.memory_space<vmem>>, vector<8x8x8xf32>
    tpu.vector_store %arg5[%c0_63, %c0_64, %c24_65], %46 {strides = array<i32>} : memref<8x8x72xf32, #tpu.memory_space<vmem>>, vector<8x8x8xf32>,
    %48 = vector.extract_strided_slice %39 {offsets = [8, 8, 0], sizes = [8, 8, 8], strides = [1, 1, 1]} : vector<24x24x8xf32> to vector<8x8x8xf32>
    %c0_66 = arith.constant 0 : index
    %c0_67 = arith.constant 0 : index
    %c32_68 = arith.constant 32 : index
    %49 = vector.load %arg5[%c0_66, %c0_67, %c32_68] : memref<8x8x72xf32, #tpu.memory_space<vmem>>, vector<8x8x8xf32>
    tpu.vector_store %arg5[%c0_66, %c0_67, %c32_68], %48 {strides = array<i32>} : memref<8x8x72xf32, #tpu.memory_space<vmem>>, vector<8x8x8xf32>,
    %50 = vector.extract_strided_slice %39 {offsets = [8, 10, 0], sizes = [8, 8, 8], strides = [1, 1, 1]} : vector<24x24x8xf32> to vector<8x8x8xf32>
    %c0_69 = arith.constant 0 : index
    %c0_70 = arith.constant 0 : index
    %c40_71 = arith.constant 40 : index
    %51 = vector.load %arg5[%c0_69, %c0_70, %c40_71] : memref<8x8x72xf32, #tpu.memory_space<vmem>>, vector<8x8x8xf32>
    tpu.vector_store %arg5[%c0_69, %c0_70, %c40_71], %50 {strides = array<i32>} : memref<8x8x72xf32, #tpu.memory_space<vmem>>, vector<8x8x8xf32>,
    %52 = vector.extract_strided_slice %39 {offsets = [10, 6, 0], sizes = [8, 8, 8], strides = [1, 1, 1]} : vector<24x24x8xf32> to vector<8x8x8xf32>
    %c0_72 = arith.constant 0 : index
    %c0_73 = arith.constant 0 : index
    %c48_74 = arith.constant 48 : index
    %53 = vector.load %arg5[%c0_72, %c0_73, %c48_74] : memref<8x8x72xf32, #tpu.memory_space<vmem>>, vector<8x8x8xf32>
    tpu.vector_store %arg5[%c0_72, %c0_73, %c48_74], %52 {strides = array<i32>} : memref<8x8x72xf32, #tpu.memory_space<vmem>>, vector<8x8x8xf32>,
    %54 = vector.extract_strided_slice %39 {offsets = [10, 8, 0], sizes = [8, 8, 8], strides = [1, 1, 1]} : vector<24x24x8xf32> to vector<8x8x8xf32>
    %c0_75 = arith.constant 0 : index
    %c0_76 = arith.constant 0 : index
    %c56_77 = arith.constant 56 : index
    %55 = vector.load %arg5[%c0_75, %c0_76, %c56_77] : memref<8x8x72xf32, #tpu.memory_space<vmem>>, vector<8x8x8xf32>
    tpu.vector_store %arg5[%c0_75, %c0_76, %c56_77], %54 {strides = array<i32>} : memref<8x8x72xf32, #tpu.memory_space<vmem>>, vector<8x8x8xf32>,
    %56 = vector.extract_strided_slice %39 {offsets = [10, 10, 0], sizes = [8, 8, 8], strides = [1, 1, 1]} : vector<24x24x8xf32> to vector<8x8x8xf32>
    %c0_78 = arith.constant 0 : index
    %c0_79 = arith.constant 0 : index
    %c64_80 = arith.constant 64 : index
    %57 = vector.load %arg5[%c0_78, %c0_79, %c64_80] : memref<8x8x72xf32, #tpu.memory_space<vmem>>, vector<8x8x8xf32>
    tpu.vector_store %arg5[%c0_78, %c0_79, %c64_80], %56 {strides = array<i32>} : memref<8x8x72xf32, #tpu.memory_space<vmem>>, vector<8x8x8xf32>,
    %c0_81 = arith.constant 0 : index
    %c0_82 = arith.constant 0 : index
    %c0_83 = arith.constant 0 : index
    %58 = vector.load %arg5[%c0_81, %c0_82, %c0_83] : memref<8x8x72xf32, #tpu.memory_space<vmem>>, vector<8x8x72xf32>
    %59 = vector.shape_cast %58 : vector<8x8x72xf32> to vector<64x72xf32>
    %cst_84 = arith.constant dense<0.000000e+00> : vector<64x8xf32>
    %60 = tpu.matmul %59, %38, %cst_84 {dimension_numbers = #tpu.dot_dimension_numbers<[1], [0], [0], [1], [0, 0, 1, 1], [], []>} : vector<64x72xf32>, vector<72x8xf32>, vector<64x8xf32> -> vector<64x8xf32>
    %61 = vector.shape_cast %60 : vector<64x8xf32> to vector<8x8x8xf32>
    %c0_85 = arith.constant 0 : index
    %c0_86 = arith.constant 0 : index
    %c0_87 = arith.constant 0 : index
    %c16_88 = arith.constant 16 : index
    %62 = vector.load %arg3[%c0_85, %c0_86, %c0_87, %c16_88] : memref<1x8x8x40xf32, #tpu.memory_space<vmem>>, vector<1x8x8x8xf32>
    %63 = vector.shape_cast %62 : vector<1x8x8x8xf32> to vector<8x8x8xf32>
    %64 = vector.shape_cast %61 : vector<8x8x8xf32> to vector<1x8x8x8xf32>
    tpu.vector_store %arg3[%c0_85, %c0_86, %c0_87, %c16_88], %64 {strides = array<i32>} : memref<1x8x8x40xf32, #tpu.memory_space<vmem>>, vector<1x8x8x8xf32>,
    %c8_89 = arith.constant 8 : index
    %c8_90 = arith.constant 8 : index
    %c0_91 = arith.constant 0 : index
    %65 = vector.load %arg4[%c8_89, %c8_90, %c0_91] : memref<24x24x8xf32, #tpu.memory_space<vmem>>, vector<8x8x8xf32>
    tpu.vector_store %arg4[%c8_89, %c8_90, %c0_91], %61 {strides = array<i32>} : memref<24x24x8xf32, #tpu.memory_space<vmem>>, vector<8x8x8xf32>,
    %c2 = arith.constant 2 : index
    %c0_92 = arith.constant 0 : index
    %c0_93 = arith.constant 0 : index
    %66 = vector.load %arg2[%c2, %c0_92, %c0_93] : memref<4x72x8xf32, #tpu.memory_space<vmem>>, vector<1x72x8xf32>
    %67 = vector.shape_cast %66 : vector<1x72x8xf32> to vector<72x8xf32>
    %c0_94 = arith.constant 0 : index
    %c0_95 = arith.constant 0 : index
    %c0_96 = arith.constant 0 : index
    %68 = vector.load %arg4[%c0_94, %c0_95, %c0_96] : memref<24x24x8xf32, #tpu.memory_space<vmem>>, vector<24x24x8xf32>
    %69 = vector.extract_strided_slice %68 {offsets = [4, 4, 0], sizes = [8, 8, 8], strides = [1, 1, 1]} : vector<24x24x8xf32> to vector<8x8x8xf32>
    %c0_97 = arith.constant 0 : index
    %c0_98 = arith.constant 0 : index
    %c0_99 = arith.constant 0 : index
    %70 = vector.load %arg5[%c0_97, %c0_98, %c0_99] : memref<8x8x72xf32, #tpu.memory_space<vmem>>, vector<8x8x8xf32>
    tpu.vector_store %arg5[%c0_97, %c0_98, %c0_99], %69 {strides = array<i32>} : memref<8x8x72xf32, #tpu.memory_space<vmem>>, vector<8x8x8xf32>,
    %71 = vector.extract_strided_slice %68 {offsets = [4, 8, 0], sizes = [8, 8, 8], strides = [1, 1, 1]} : vector<24x24x8xf32> to vector<8x8x8xf32>
    %c0_100 = arith.constant 0 : index
    %c0_101 = arith.constant 0 : index
    %c8_102 = arith.constant 8 : index
    %72 = vector.load %arg5[%c0_100, %c0_101, %c8_102] : memref<8x8x72xf32, #tpu.memory_space<vmem>>, vector<8x8x8xf32>
    tpu.vector_store %arg5[%c0_100, %c0_101, %c8_102], %71 {strides = array<i32>} : memref<8x8x72xf32, #tpu.memory_space<vmem>>, vector<8x8x8xf32>,
    %73 = vector.extract_strided_slice %68 {offsets = [4, 12, 0], sizes = [8, 8, 8], strides = [1, 1, 1]} : vector<24x24x8xf32> to vector<8x8x8xf32>
    %c0_103 = arith.constant 0 : index
    %c0_104 = arith.constant 0 : index
    %c16_105 = arith.constant 16 : index
    %74 = vector.load %arg5[%c0_103, %c0_104, %c16_105] : memref<8x8x72xf32, #tpu.memory_space<vmem>>, vector<8x8x8xf32>
    tpu.vector_store %arg5[%c0_103, %c0_104, %c16_105], %73 {strides = array<i32>} : memref<8x8x72xf32, #tpu.memory_space<vmem>>, vector<8x8x8xf32>,
    %75 = vector.extract_strided_slice %68 {offsets = [8, 4, 0], sizes = [8, 8, 8], strides = [1, 1, 1]} : vector<24x24x8xf32> to vector<8x8x8xf32>
    %c0_106 = arith.constant 0 : index
    %c0_107 = arith.constant 0 : index
    %c24_108 = arith.constant 24 : index
    %76 = vector.load %arg5[%c0_106, %c0_107, %c24_108] : memref<8x8x72xf32, #tpu.memory_space<vmem>>, vector<8x8x8xf32>
    tpu.vector_store %arg5[%c0_106, %c0_107, %c24_108], %75 {strides = array<i32>} : memref<8x8x72xf32, #tpu.memory_space<vmem>>, vector<8x8x8xf32>,
    %77 = vector.extract_strided_slice %68 {offsets = [8, 8, 0], sizes = [8, 8, 8], strides = [1, 1, 1]} : vector<24x24x8xf32> to vector<8x8x8xf32>
    %c0_109 = arith.constant 0 : index
    %c0_110 = arith.constant 0 : index
    %c32_111 = arith.constant 32 : index
    %78 = vector.load %arg5[%c0_109, %c0_110, %c32_111] : memref<8x8x72xf32, #tpu.memory_space<vmem>>, vector<8x8x8xf32>
    tpu.vector_store %arg5[%c0_109, %c0_110, %c32_111], %77 {strides = array<i32>} : memref<8x8x72xf32, #tpu.memory_space<vmem>>, vector<8x8x8xf32>,
    %79 = vector.extract_strided_slice %68 {offsets = [8, 12, 0], sizes = [8, 8, 8], strides = [1, 1, 1]} : vector<24x24x8xf32> to vector<8x8x8xf32>
    %c0_112 = arith.constant 0 : index
    %c0_113 = arith.constant 0 : index
    %c40_114 = arith.constant 40 : index
    %80 = vector.load %arg5[%c0_112, %c0_113, %c40_114] : memref<8x8x72xf32, #tpu.memory_space<vmem>>, vector<8x8x8xf32>
    tpu.vector_store %arg5[%c0_112, %c0_113, %c40_114], %79 {strides = array<i32>} : memref<8x8x72xf32, #tpu.memory_space<vmem>>, vector<8x8x8xf32>,
    %81 = vector.extract_strided_slice %68 {offsets = [12, 4, 0], sizes = [8, 8, 8], strides = [1, 1, 1]} : vector<24x24x8xf32> to vector<8x8x8xf32>
    %c0_115 = arith.constant 0 : index
    %c0_116 = arith.constant 0 : index
    %c48_117 = arith.constant 48 : index
    %82 = vector.load %arg5[%c0_115, %c0_116, %c48_117] : memref<8x8x72xf32, #tpu.memory_space<vmem>>, vector<8x8x8xf32>
    tpu.vector_store %arg5[%c0_115, %c0_116, %c48_117], %81 {strides = array<i32>} : memref<8x8x72xf32, #tpu.memory_space<vmem>>, vector<8x8x8xf32>,
    %83 = vector.extract_strided_slice %68 {offsets = [12, 8, 0], sizes = [8, 8, 8], strides = [1, 1, 1]} : vector<24x24x8xf32> to vector<8x8x8xf32>
    %c0_118 = arith.constant 0 : index
    %c0_119 = arith.constant 0 : index
    %c56_120 = arith.constant 56 : index
    %84 = vector.load %arg5[%c0_118, %c0_119, %c56_120] : memref<8x8x72xf32, #tpu.memory_space<vmem>>, vector<8x8x8xf32>
    tpu.vector_store %arg5[%c0_118, %c0_119, %c56_120], %83 {strides = array<i32>} : memref<8x8x72xf32, #tpu.memory_space<vmem>>, vector<8x8x8xf32>,
    %85 = vector.extract_strided_slice %68 {offsets = [12, 12, 0], sizes = [8, 8, 8], strides = [1, 1, 1]} : vector<24x24x8xf32> to vector<8x8x8xf32>
    %c0_121 = arith.constant 0 : index
    %c0_122 = arith.constant 0 : index
    %c64_123 = arith.constant 64 : index
    %86 = vector.load %arg5[%c0_121, %c0_122, %c64_123] : memref<8x8x72xf32, #tpu.memory_space<vmem>>, vector<8x8x8xf32>
    tpu.vector_store %arg5[%c0_121, %c0_122, %c64_123], %85 {strides = array<i32>} : memref<8x8x72xf32, #tpu.memory_space<vmem>>, vector<8x8x8xf32>,
    %c0_124 = arith.constant 0 : index
    %c0_125 = arith.constant 0 : index
    %c0_126 = arith.constant 0 : index
    %87 = vector.load %arg5[%c0_124, %c0_125, %c0_126] : memref<8x8x72xf32, #tpu.memory_space<vmem>>, vector<8x8x72xf32>
    %88 = vector.shape_cast %87 : vector<8x8x72xf32> to vector<64x72xf32>
    %cst_127 = arith.constant dense<0.000000e+00> : vector<64x8xf32>
    %89 = tpu.matmul %88, %67, %cst_127 {dimension_numbers = #tpu.dot_dimension_numbers<[1], [0], [0], [1], [0, 0, 1, 1], [], []>} : vector<64x72xf32>, vector<72x8xf32>, vector<64x8xf32> -> vector<64x8xf32>
    %90 = vector.shape_cast %89 : vector<64x8xf32> to vector<8x8x8xf32>
    %c0_128 = arith.constant 0 : index
    %c0_129 = arith.constant 0 : index
    %c0_130 = arith.constant 0 : index
    %c24_131 = arith.constant 24 : index
    %91 = vector.load %arg3[%c0_128, %c0_129, %c0_130, %c24_131] : memref<1x8x8x40xf32, #tpu.memory_space<vmem>>, vector<1x8x8x8xf32>
    %92 = vector.shape_cast %91 : vector<1x8x8x8xf32> to vector<8x8x8xf32>
    %93 = vector.shape_cast %90 : vector<8x8x8xf32> to vector<1x8x8x8xf32>
    tpu.vector_store %arg3[%c0_128, %c0_129, %c0_130, %c24_131], %93 {strides = array<i32>} : memref<1x8x8x40xf32, #tpu.memory_space<vmem>>, vector<1x8x8x8xf32>,
    %c8_132 = arith.constant 8 : index
    %c8_133 = arith.constant 8 : index
    %c0_134 = arith.constant 0 : index
    %94 = vector.load %arg4[%c8_132, %c8_133, %c0_134] : memref<24x24x8xf32, #tpu.memory_space<vmem>>, vector<8x8x8xf32>
    tpu.vector_store %arg4[%c8_132, %c8_133, %c0_134], %90 {strides = array<i32>} : memref<24x24x8xf32, #tpu.memory_space<vmem>>, vector<8x8x8xf32>,
    %c3 = arith.constant 3 : index
    %c0_135 = arith.constant 0 : index
    %c0_136 = arith.constant 0 : index
    %95 = vector.load %arg2[%c3, %c0_135, %c0_136] : memref<4x72x8xf32, #tpu.memory_space<vmem>>, vector<1x72x8xf32>
    %96 = vector.shape_cast %95 : vector<1x72x8xf32> to vector<72x8xf32>
    %c0_137 = arith.constant 0 : index
    %c0_138 = arith.constant 0 : index
    %c0_139 = arith.constant 0 : index
    %97 = vector.load %arg4[%c0_137, %c0_138, %c0_139] : memref<24x24x8xf32, #tpu.memory_space<vmem>>, vector<24x24x8xf32>
    %98 = vector.extract_strided_slice %97 {offsets = [0, 0, 0], sizes = [8, 8, 8], strides = [1, 1, 1]} : vector<24x24x8xf32> to vector<8x8x8xf32>
    %c0_140 = arith.constant 0 : index
    %c0_141 = arith.constant 0 : index
    %c0_142 = arith.constant 0 : index
    %99 = vector.load %arg5[%c0_140, %c0_141, %c0_142] : memref<8x8x72xf32, #tpu.memory_space<vmem>>, vector<8x8x8xf32>
    tpu.vector_store %arg5[%c0_140, %c0_141, %c0_142], %98 {strides = array<i32>} : memref<8x8x72xf32, #tpu.memory_space<vmem>>, vector<8x8x8xf32>,
    %100 = vector.extract_strided_slice %97 {offsets = [0, 8, 0], sizes = [8, 8, 8], strides = [1, 1, 1]} : vector<24x24x8xf32> to vector<8x8x8xf32>
    %c0_143 = arith.constant 0 : index
    %c0_144 = arith.constant 0 : index
    %c8_145 = arith.constant 8 : index
    %101 = vector.load %arg5[%c0_143, %c0_144, %c8_145] : memref<8x8x72xf32, #tpu.memory_space<vmem>>, vector<8x8x8xf32>
    tpu.vector_store %arg5[%c0_143, %c0_144, %c8_145], %100 {strides = array<i32>} : memref<8x8x72xf32, #tpu.memory_space<vmem>>, vector<8x8x8xf32>,
    %102 = vector.extract_strided_slice %97 {offsets = [0, 16, 0], sizes = [8, 8, 8], strides = [1, 1, 1]} : vector<24x24x8xf32> to vector<8x8x8xf32>
    %c0_146 = arith.constant 0 : index
    %c0_147 = arith.constant 0 : index
    %c16_148 = arith.constant 16 : index
    %103 = vector.load %arg5[%c0_146, %c0_147, %c16_148] : memref<8x8x72xf32, #tpu.memory_space<vmem>>, vector<8x8x8xf32>
    tpu.vector_store %arg5[%c0_146, %c0_147, %c16_148], %102 {strides = array<i32>} : memref<8x8x72xf32, #tpu.memory_space<vmem>>, vector<8x8x8xf32>,
    %104 = vector.extract_strided_slice %97 {offsets = [8, 0, 0], sizes = [8, 8, 8], strides = [1, 1, 1]} : vector<24x24x8xf32> to vector<8x8x8xf32>
    %c0_149 = arith.constant 0 : index
    %c0_150 = arith.constant 0 : index
    %c24_151 = arith.constant 24 : index
    %105 = vector.load %arg5[%c0_149, %c0_150, %c24_151] : memref<8x8x72xf32, #tpu.memory_space<vmem>>, vector<8x8x8xf32>
    tpu.vector_store %arg5[%c0_149, %c0_150, %c24_151], %104 {strides = array<i32>} : memref<8x8x72xf32, #tpu.memory_space<vmem>>, vector<8x8x8xf32>,
    %106 = vector.extract_strided_slice %97 {offsets = [8, 8, 0], sizes = [8, 8, 8], strides = [1, 1, 1]} : vector<24x24x8xf32> to vector<8x8x8xf32>
    %c0_152 = arith.constant 0 : index
    %c0_153 = arith.constant 0 : index
    %c32_154 = arith.constant 32 : index
    %107 = vector.load %arg5[%c0_152, %c0_153, %c32_154] : memref<8x8x72xf32, #tpu.memory_space<vmem>>, vector<8x8x8xf32>
    tpu.vector_store %arg5[%c0_152, %c0_153, %c32_154], %106 {strides = array<i32>} : memref<8x8x72xf32, #tpu.memory_space<vmem>>, vector<8x8x8xf32>,
    %108 = vector.extract_strided_slice %97 {offsets = [8, 16, 0], sizes = [8, 8, 8], strides = [1, 1, 1]} : vector<24x24x8xf32> to vector<8x8x8xf32>
    %c0_155 = arith.constant 0 : index
    %c0_156 = arith.constant 0 : index
    %c40_157 = arith.constant 40 : index
    %109 = vector.load %arg5[%c0_155, %c0_156, %c40_157] : memref<8x8x72xf32, #tpu.memory_space<vmem>>, vector<8x8x8xf32>
    tpu.vector_store %arg5[%c0_155, %c0_156, %c40_157], %108 {strides = array<i32>} : memref<8x8x72xf32, #tpu.memory_space<vmem>>, vector<8x8x8xf32>,
    %110 = vector.extract_strided_slice %97 {offsets = [16, 0, 0], sizes = [8, 8, 8], strides = [1, 1, 1]} : vector<24x24x8xf32> to vector<8x8x8xf32>
    %c0_158 = arith.constant 0 : index
    %c0_159 = arith.constant 0 : index
    %c48_160 = arith.constant 48 : index
    %111 = vector.load %arg5[%c0_158, %c0_159, %c48_160] : memref<8x8x72xf32, #tpu.memory_space<vmem>>, vector<8x8x8xf32>
    tpu.vector_store %arg5[%c0_158, %c0_159, %c48_160], %110 {strides = array<i32>} : memref<8x8x72xf32, #tpu.memory_space<vmem>>, vector<8x8x8xf32>,
    %112 = vector.extract_strided_slice %97 {offsets = [16, 8, 0], sizes = [8, 8, 8], strides = [1, 1, 1]} : vector<24x24x8xf32> to vector<8x8x8xf32>
    %c0_161 = arith.constant 0 : index
    %c0_162 = arith.constant 0 : index
    %c56_163 = arith.constant 56 : index
    %113 = vector.load %arg5[%c0_161, %c0_162, %c56_163] : memref<8x8x72xf32, #tpu.memory_space<vmem>>, vector<8x8x8xf32>
    tpu.vector_store %arg5[%c0_161, %c0_162, %c56_163], %112 {strides = array<i32>} : memref<8x8x72xf32, #tpu.memory_space<vmem>>, vector<8x8x8xf32>,
    %114 = vector.extract_strided_slice %97 {offsets = [16, 16, 0], sizes = [8, 8, 8], strides = [1, 1, 1]} : vector<24x24x8xf32> to vector<8x8x8xf32>
    %c0_164 = arith.constant 0 : index
    %c0_165 = arith.constant 0 : index
    %c64_166 = arith.constant 64 : index
    %115 = vector.load %arg5[%c0_164, %c0_165, %c64_166] : memref<8x8x72xf32, #tpu.memory_space<vmem>>, vector<8x8x8xf32>
    tpu.vector_store %arg5[%c0_164, %c0_165, %c64_166], %114 {strides = array<i32>} : memref<8x8x72xf32, #tpu.memory_space<vmem>>, vector<8x8x8xf32>,
    %c0_167 = arith.constant 0 : index
    %c0_168 = arith.constant 0 : index
    %c0_169 = arith.constant 0 : index
    %116 = vector.load %arg5[%c0_167, %c0_168, %c0_169] : memref<8x8x72xf32, #tpu.memory_space<vmem>>, vector<8x8x72xf32>
    %117 = vector.shape_cast %116 : vector<8x8x72xf32> to vector<64x72xf32>
    %cst_170 = arith.constant dense<0.000000e+00> : vector<64x8xf32>
    %118 = tpu.matmul %117, %96, %cst_170 {dimension_numbers = #tpu.dot_dimension_numbers<[1], [0], [0], [1], [0, 0, 1, 1], [], []>} : vector<64x72xf32>, vector<72x8xf32>, vector<64x8xf32> -> vector<64x8xf32>
    %119 = vector.shape_cast %118 : vector<64x8xf32> to vector<8x8x8xf32>
    %c0_171 = arith.constant 0 : index
    %c0_172 = arith.constant 0 : index
    %c0_173 = arith.constant 0 : index
    %c32_174 = arith.constant 32 : index
    %120 = vector.load %arg3[%c0_171, %c0_172, %c0_173, %c32_174] : memref<1x8x8x40xf32, #tpu.memory_space<vmem>>, vector<1x8x8x8xf32>
    %121 = vector.shape_cast %120 : vector<1x8x8x8xf32> to vector<8x8x8xf32>
    %122 = vector.shape_cast %119 : vector<8x8x8xf32> to vector<1x8x8x8xf32>
    tpu.vector_store %arg3[%c0_171, %c0_172, %c0_173, %c32_174], %122 {strides = array<i32>} : memref<1x8x8x40xf32, #tpu.memory_space<vmem>>, vector<1x8x8x8xf32>,
    return
  }
  func.func @transform_0(%arg0: i32) -> (i32, i32, i32, i32) {
    %c0_i32 = arith.constant 0 : i32
    %c0_i32_0 = arith.constant 0 : i32
    %c0_i32_1 = arith.constant 0 : i32
    %c0_i32_2 = arith.constant 0 : i32
    return %arg0, %c0_i32, %c0_i32_0, %c0_i32_1 : i32, i32, i32, i32
  }
  func.func @transform_1(%arg0: i32) -> (i32, i32, i32) {
    %c0_i32 = arith.constant 0 : i32
    %c0_i32_0 = arith.constant 0 : i32
    %c0_i32_1 = arith.constant 0 : i32
    %c0_i32_2 = arith.constant 0 : i32
    return %c0_i32, %c0_i32_0, %c0_i32_1 : i32, i32, i32
  }
  func.func @transform_2(%arg0: i32) -> (i32, i32, i32, i32) {
    %c0_i32 = arith.constant 0 : i32
    %c0_i32_0 = arith.constant 0 : i32
    %c0_i32_1 = arith.constant 0 : i32
    %c0_i32_2 = arith.constant 0 : i32
    return %arg0, %c0_i32, %c0_i32_0, %c0_i32_1 : i32, i32, i32, i32
  }
}

module attributes {stable_mosaic.version = 11 : i64} {
  func.func @_block_kernel(%arg0: i32, %arg1: memref<1x8x8x40xf32, #tpu.memory_space<vmem>>, %arg2: memref<360x8xf32, #tpu.memory_space<vmem>>, %arg3: memref<1x8xf32, #tpu.memory_space<vmem>>, %arg4: memref<1x8xf32, #tpu.memory_space<vmem>>, %arg5: memref<1x8x8x8xf32, #tpu.memory_space<vmem>>, %arg6: memref<24x24x40xf32, #tpu.memory_space<vmem>>, %arg7: memref<8x8x360xf32, #tpu.memory_space<vmem>>) attributes {dimension_semantics = [#tpu.dimension_semantics<parallel>], iteration_bounds = array<i64: 2>, scalar_prefetch = 0 : i64, scratch_operands = 2 : i64, tpu.core_type = #tpu.core_type<tc>, window_params = [{transform_indices = @transform_0, window_bounds = array<i64: 1, 8, 8, 40>}, {pipeline_mode = #tpu.pipeline_mode<synchronous>, transform_indices = @transform_1, window_bounds = array<i64: 360, 8>}, {pipeline_mode = #tpu.pipeline_mode<synchronous>, transform_indices = @transform_2, window_bounds = array<i64: 1, 8>}, {pipeline_mode = #tpu.pipeline_mode<synchronous>, transform_indices = @transform_3, window_bounds = array<i64: 1, 8>}, {transform_indices = @transform_4, window_bounds = array<i64: 1, 8, 8, 8>}]} {
    %cst = arith.constant 0.000000e+00 : f32
    %0 = vector.broadcast %cst : f32 to vector<24x24x40xf32>
    %c0 = arith.constant 0 : index
    %c0_0 = arith.constant 0 : index
    %c0_1 = arith.constant 0 : index
    %1 = vector.load %arg6[%c0, %c0_0, %c0_1] : memref<24x24x40xf32, #tpu.memory_space<vmem>>, vector<24x24x40xf32>
    tpu.vector_store %arg6[%c0, %c0_0, %c0_1], %0 {strides = array<i32>} : memref<24x24x40xf32, #tpu.memory_space<vmem>>, vector<24x24x40xf32>,
    %c0_2 = arith.constant 0 : index
    %c0_3 = arith.constant 0 : index
    %c0_4 = arith.constant 0 : index
    %c0_5 = arith.constant 0 : index
    %2 = vector.load %arg1[%c0_2, %c0_3, %c0_4, %c0_5] : memref<1x8x8x40xf32, #tpu.memory_space<vmem>>, vector<1x8x8x40xf32>
    %3 = vector.shape_cast %2 : vector<1x8x8x40xf32> to vector<8x8x40xf32>
    %c8 = arith.constant 8 : index
    %c8_6 = arith.constant 8 : index
    %c0_7 = arith.constant 0 : index
    %4 = vector.load %arg6[%c8, %c8_6, %c0_7] : memref<24x24x40xf32, #tpu.memory_space<vmem>>, vector<8x8x40xf32>
    tpu.vector_store %arg6[%c8, %c8_6, %c0_7], %3 {strides = array<i32>} : memref<24x24x40xf32, #tpu.memory_space<vmem>>, vector<8x8x40xf32>,
    %c0_8 = arith.constant 0 : index
    %c0_9 = arith.constant 0 : index
    %5 = vector.load %arg2[%c0_8, %c0_9] : memref<360x8xf32, #tpu.memory_space<vmem>>, vector<360x8xf32>
    %c0_10 = arith.constant 0 : index
    %c0_11 = arith.constant 0 : index
    %c0_12 = arith.constant 0 : index
    %6 = vector.load %arg6[%c0_10, %c0_11, %c0_12] : memref<24x24x40xf32, #tpu.memory_space<vmem>>, vector<24x24x40xf32>
    %7 = vector.extract_strided_slice %6 {offsets = [7, 7, 0], sizes = [8, 8, 40], strides = [1, 1, 1]} : vector<24x24x40xf32> to vector<8x8x40xf32>
    %c0_13 = arith.constant 0 : index
    %c0_14 = arith.constant 0 : index
    %c0_15 = arith.constant 0 : index
    %8 = vector.load %arg7[%c0_13, %c0_14, %c0_15] : memref<8x8x360xf32, #tpu.memory_space<vmem>>, vector<8x8x40xf32>
    tpu.vector_store %arg7[%c0_13, %c0_14, %c0_15], %7 {strides = array<i32>} : memref<8x8x360xf32, #tpu.memory_space<vmem>>, vector<8x8x40xf32>,
    %9 = vector.extract_strided_slice %6 {offsets = [7, 8, 0], sizes = [8, 8, 40], strides = [1, 1, 1]} : vector<24x24x40xf32> to vector<8x8x40xf32>
    %c0_16 = arith.constant 0 : index
    %c0_17 = arith.constant 0 : index
    %c40 = arith.constant 40 : index
    %10 = vector.load %arg7[%c0_16, %c0_17, %c40] : memref<8x8x360xf32, #tpu.memory_space<vmem>>, vector<8x8x40xf32>
    tpu.vector_store %arg7[%c0_16, %c0_17, %c40], %9 {strides = array<i32>} : memref<8x8x360xf32, #tpu.memory_space<vmem>>, vector<8x8x40xf32>,
    %11 = vector.extract_strided_slice %6 {offsets = [7, 9, 0], sizes = [8, 8, 40], strides = [1, 1, 1]} : vector<24x24x40xf32> to vector<8x8x40xf32>
    %c0_18 = arith.constant 0 : index
    %c0_19 = arith.constant 0 : index
    %c80 = arith.constant 80 : index
    %12 = vector.load %arg7[%c0_18, %c0_19, %c80] : memref<8x8x360xf32, #tpu.memory_space<vmem>>, vector<8x8x40xf32>
    tpu.vector_store %arg7[%c0_18, %c0_19, %c80], %11 {strides = array<i32>} : memref<8x8x360xf32, #tpu.memory_space<vmem>>, vector<8x8x40xf32>,
    %13 = vector.extract_strided_slice %6 {offsets = [8, 7, 0], sizes = [8, 8, 40], strides = [1, 1, 1]} : vector<24x24x40xf32> to vector<8x8x40xf32>
    %c0_20 = arith.constant 0 : index
    %c0_21 = arith.constant 0 : index
    %c120 = arith.constant 120 : index
    %14 = vector.load %arg7[%c0_20, %c0_21, %c120] : memref<8x8x360xf32, #tpu.memory_space<vmem>>, vector<8x8x40xf32>
    tpu.vector_store %arg7[%c0_20, %c0_21, %c120], %13 {strides = array<i32>} : memref<8x8x360xf32, #tpu.memory_space<vmem>>, vector<8x8x40xf32>,
    %15 = vector.extract_strided_slice %6 {offsets = [8, 8, 0], sizes = [8, 8, 40], strides = [1, 1, 1]} : vector<24x24x40xf32> to vector<8x8x40xf32>
    %c0_22 = arith.constant 0 : index
    %c0_23 = arith.constant 0 : index
    %c160 = arith.constant 160 : index
    %16 = vector.load %arg7[%c0_22, %c0_23, %c160] : memref<8x8x360xf32, #tpu.memory_space<vmem>>, vector<8x8x40xf32>
    tpu.vector_store %arg7[%c0_22, %c0_23, %c160], %15 {strides = array<i32>} : memref<8x8x360xf32, #tpu.memory_space<vmem>>, vector<8x8x40xf32>,
    %17 = vector.extract_strided_slice %6 {offsets = [8, 9, 0], sizes = [8, 8, 40], strides = [1, 1, 1]} : vector<24x24x40xf32> to vector<8x8x40xf32>
    %c0_24 = arith.constant 0 : index
    %c0_25 = arith.constant 0 : index
    %c200 = arith.constant 200 : index
    %18 = vector.load %arg7[%c0_24, %c0_25, %c200] : memref<8x8x360xf32, #tpu.memory_space<vmem>>, vector<8x8x40xf32>
    tpu.vector_store %arg7[%c0_24, %c0_25, %c200], %17 {strides = array<i32>} : memref<8x8x360xf32, #tpu.memory_space<vmem>>, vector<8x8x40xf32>,
    %19 = vector.extract_strided_slice %6 {offsets = [9, 7, 0], sizes = [8, 8, 40], strides = [1, 1, 1]} : vector<24x24x40xf32> to vector<8x8x40xf32>
    %c0_26 = arith.constant 0 : index
    %c0_27 = arith.constant 0 : index
    %c240 = arith.constant 240 : index
    %20 = vector.load %arg7[%c0_26, %c0_27, %c240] : memref<8x8x360xf32, #tpu.memory_space<vmem>>, vector<8x8x40xf32>
    tpu.vector_store %arg7[%c0_26, %c0_27, %c240], %19 {strides = array<i32>} : memref<8x8x360xf32, #tpu.memory_space<vmem>>, vector<8x8x40xf32>,
    %21 = vector.extract_strided_slice %6 {offsets = [9, 8, 0], sizes = [8, 8, 40], strides = [1, 1, 1]} : vector<24x24x40xf32> to vector<8x8x40xf32>
    %c0_28 = arith.constant 0 : index
    %c0_29 = arith.constant 0 : index
    %c280 = arith.constant 280 : index
    %22 = vector.load %arg7[%c0_28, %c0_29, %c280] : memref<8x8x360xf32, #tpu.memory_space<vmem>>, vector<8x8x40xf32>
    tpu.vector_store %arg7[%c0_28, %c0_29, %c280], %21 {strides = array<i32>} : memref<8x8x360xf32, #tpu.memory_space<vmem>>, vector<8x8x40xf32>,
    %23 = vector.extract_strided_slice %6 {offsets = [9, 9, 0], sizes = [8, 8, 40], strides = [1, 1, 1]} : vector<24x24x40xf32> to vector<8x8x40xf32>
    %c0_30 = arith.constant 0 : index
    %c0_31 = arith.constant 0 : index
    %c320 = arith.constant 320 : index
    %24 = vector.load %arg7[%c0_30, %c0_31, %c320] : memref<8x8x360xf32, #tpu.memory_space<vmem>>, vector<8x8x40xf32>
    tpu.vector_store %arg7[%c0_30, %c0_31, %c320], %23 {strides = array<i32>} : memref<8x8x360xf32, #tpu.memory_space<vmem>>, vector<8x8x40xf32>,
    %c0_32 = arith.constant 0 : index
    %c0_33 = arith.constant 0 : index
    %c0_34 = arith.constant 0 : index
    %25 = vector.load %arg7[%c0_32, %c0_33, %c0_34] : memref<8x8x360xf32, #tpu.memory_space<vmem>>, vector<8x8x360xf32>
    %26 = vector.shape_cast %25 : vector<8x8x360xf32> to vector<64x360xf32>
    %cst_35 = arith.constant dense<0.000000e+00> : vector<64x8xf32>
    %27 = tpu.matmul %26, %5, %cst_35 {dimension_numbers = #tpu.dot_dimension_numbers<[1], [0], [0], [1], [0, 0, 1, 1], [], []>} : vector<64x360xf32>, vector<360x8xf32>, vector<64x8xf32> -> vector<64x8xf32>
    %28 = vector.shape_cast %27 : vector<64x8xf32> to vector<8x8x8xf32>
    %c0_36 = arith.constant 0 : index
    %c0_37 = arith.constant 0 : index
    %29 = vector.load %arg3[%c0_36, %c0_37] : memref<1x8xf32, #tpu.memory_space<vmem>>, vector<1x8xf32>
    %30 = vector.shape_cast %29 : vector<1x8xf32> to vector<8xf32>
    %31 = vector.shape_cast %30 : vector<8xf32> to vector<1x1x8xf32>
    %32 = vector.broadcast %31 : vector<1x1x8xf32> to vector<8x8x8xf32>
    %33 = arith.mulf %28, %32 : vector<8x8x8xf32>
    %c0_38 = arith.constant 0 : index
    %c0_39 = arith.constant 0 : index
    %34 = vector.load %arg4[%c0_38, %c0_39] : memref<1x8xf32, #tpu.memory_space<vmem>>, vector<1x8xf32>
    %35 = vector.shape_cast %34 : vector<1x8xf32> to vector<8xf32>
    %36 = vector.shape_cast %35 : vector<8xf32> to vector<1x1x8xf32>
    %37 = vector.broadcast %36 : vector<1x1x8xf32> to vector<8x8x8xf32>
    %38 = arith.addf %33, %37 : vector<8x8x8xf32>
    %cst_40 = arith.constant 0.000000e+00 : f32
    %39 = vector.broadcast %cst_40 : f32 to vector<8x8x8xf32>
    %40 = arith.maximumf %38, %39 : vector<8x8x8xf32>
    %c0_41 = arith.constant 0 : index
    %c0_42 = arith.constant 0 : index
    %c0_43 = arith.constant 0 : index
    %c0_44 = arith.constant 0 : index
    %41 = vector.load %arg5[%c0_41, %c0_42, %c0_43, %c0_44] : memref<1x8x8x8xf32, #tpu.memory_space<vmem>>, vector<1x8x8x8xf32>
    %42 = vector.shape_cast %41 : vector<1x8x8x8xf32> to vector<8x8x8xf32>
    %43 = vector.shape_cast %40 : vector<8x8x8xf32> to vector<1x8x8x8xf32>
    tpu.vector_store %arg5[%c0_41, %c0_42, %c0_43, %c0_44], %43 {strides = array<i32>} : memref<1x8x8x8xf32, #tpu.memory_space<vmem>>, vector<1x8x8x8xf32>,
    return
  }
  func.func @transform_0(%arg0: i32) -> (i32, i32, i32, i32) {
    %c0_i32 = arith.constant 0 : i32
    %c0_i32_0 = arith.constant 0 : i32
    %c0_i32_1 = arith.constant 0 : i32
    %c0_i32_2 = arith.constant 0 : i32
    return %arg0, %c0_i32, %c0_i32_0, %c0_i32_1 : i32, i32, i32, i32
  }
  func.func @transform_1(%arg0: i32) -> (i32, i32) {
    %c0_i32 = arith.constant 0 : i32
    %c0_i32_0 = arith.constant 0 : i32
    %c0_i32_1 = arith.constant 0 : i32
    return %c0_i32, %c0_i32_0 : i32, i32
  }
  func.func @transform_2(%arg0: i32) -> (i32, i32) {
    %c0_i32 = arith.constant 0 : i32
    %c0_i32_0 = arith.constant 0 : i32
    %c0_i32_1 = arith.constant 0 : i32
    return %c0_i32, %c0_i32_0 : i32, i32
  }
  func.func @transform_3(%arg0: i32) -> (i32, i32) {
    %c0_i32 = arith.constant 0 : i32
    %c0_i32_0 = arith.constant 0 : i32
    %c0_i32_1 = arith.constant 0 : i32
    return %c0_i32, %c0_i32_0 : i32, i32
  }
  func.func @transform_4(%arg0: i32) -> (i32, i32, i32, i32) {
    %c0_i32 = arith.constant 0 : i32
    %c0_i32_0 = arith.constant 0 : i32
    %c0_i32_1 = arith.constant 0 : i32
    %c0_i32_2 = arith.constant 0 : i32
    return %arg0, %c0_i32, %c0_i32_0, %c0_i32_1 : i32, i32, i32, i32
  }
}

module attributes {stable_mosaic.version = 11 : i64} {
  func.func @_cca_kernel(%arg0: i32, %arg1: memref<1x8x8x40xf32, #tpu.memory_space<vmem>>, %arg2: memref<40x5xf32, #tpu.memory_space<vmem>>, %arg3: memref<1x5xf32, #tpu.memory_space<vmem>>, %arg4: memref<40x5xf32, #tpu.memory_space<vmem>>, %arg5: memref<1x5xf32, #tpu.memory_space<vmem>>, %arg6: memref<40x40xf32, #tpu.memory_space<vmem>>, %arg7: memref<1x40xf32, #tpu.memory_space<vmem>>, %arg8: memref<1xf32, #tpu.memory_space<smem>>, %arg9: memref<1x8x8x40xf32, #tpu.memory_space<vmem>>) attributes {dimension_semantics = [#tpu.dimension_semantics<parallel>], iteration_bounds = array<i64: 2>, scalar_prefetch = 0 : i64, scratch_operands = 0 : i64, tpu.core_type = #tpu.core_type<tc>, window_params = [{transform_indices = @transform_0, window_bounds = array<i64: 1, 8, 8, 40>}, {pipeline_mode = #tpu.pipeline_mode<synchronous>, transform_indices = @transform_1, window_bounds = array<i64: 40, 5>}, {pipeline_mode = #tpu.pipeline_mode<synchronous>, transform_indices = @transform_2, window_bounds = array<i64: 1, 5>}, {pipeline_mode = #tpu.pipeline_mode<synchronous>, transform_indices = @transform_3, window_bounds = array<i64: 40, 5>}, {pipeline_mode = #tpu.pipeline_mode<synchronous>, transform_indices = @transform_4, window_bounds = array<i64: 1, 5>}, {pipeline_mode = #tpu.pipeline_mode<synchronous>, transform_indices = @transform_5, window_bounds = array<i64: 40, 40>}, {pipeline_mode = #tpu.pipeline_mode<synchronous>, transform_indices = @transform_6, window_bounds = array<i64: 1, 40>}, {transform_indices = @transform_7, window_bounds = array<i64: 1>}, {transform_indices = @transform_8, window_bounds = array<i64: 1, 8, 8, 40>}]} {
    %c0 = arith.constant 0 : index
    %c0_0 = arith.constant 0 : index
    %c0_1 = arith.constant 0 : index
    %c0_2 = arith.constant 0 : index
    %0 = vector.load %arg1[%c0, %c0_0, %c0_1, %c0_2] : memref<1x8x8x40xf32, #tpu.memory_space<vmem>>, vector<1x8x8x40xf32>
    %1 = vector.shape_cast %0 : vector<1x8x8x40xf32> to vector<8x8x40xf32>
    %2 = vector.shape_cast %1 : vector<8x8x40xf32> to vector<64x40xf32>
    %c0_3 = arith.constant 0 : index
    %c0_4 = arith.constant 0 : index
    %3 = vector.load %arg2[%c0_3, %c0_4] : memref<40x5xf32, #tpu.memory_space<vmem>>, vector<40x5xf32>
    %cst = arith.constant dense<0.000000e+00> : vector<64x5xf32>
    %4 = tpu.matmul %2, %3, %cst {dimension_numbers = #tpu.dot_dimension_numbers<[1], [0], [0], [1], [0, 0, 1, 1], [], []>} : vector<64x40xf32>, vector<40x5xf32>, vector<64x5xf32> -> vector<64x5xf32>
    %c0_5 = arith.constant 0 : index
    %c0_6 = arith.constant 0 : index
    %5 = vector.load %arg3[%c0_5, %c0_6] : memref<1x5xf32, #tpu.memory_space<vmem>>, vector<1x5xf32>
    %6 = vector.shape_cast %5 : vector<1x5xf32> to vector<5xf32>
    %7 = vector.shape_cast %6 : vector<5xf32> to vector<1x5xf32>
    %8 = vector.broadcast %7 : vector<1x5xf32> to vector<64x5xf32>
    %9 = arith.addf %4, %8 : vector<64x5xf32>
    %10 = vector.shape_cast %9 : vector<64x5xf32> to vector<8x8x5xf32>
    %c0_7 = arith.constant 0 : index
    %c0_8 = arith.constant 0 : index
    %11 = vector.load %arg4[%c0_7, %c0_8] : memref<40x5xf32, #tpu.memory_space<vmem>>, vector<40x5xf32>
    %cst_9 = arith.constant dense<0.000000e+00> : vector<64x5xf32>
    %12 = tpu.matmul %2, %11, %cst_9 {dimension_numbers = #tpu.dot_dimension_numbers<[1], [0], [0], [1], [0, 0, 1, 1], [], []>} : vector<64x40xf32>, vector<40x5xf32>, vector<64x5xf32> -> vector<64x5xf32>
    %c0_10 = arith.constant 0 : index
    %c0_11 = arith.constant 0 : index
    %13 = vector.load %arg5[%c0_10, %c0_11] : memref<1x5xf32, #tpu.memory_space<vmem>>, vector<1x5xf32>
    %14 = vector.shape_cast %13 : vector<1x5xf32> to vector<5xf32>
    %15 = vector.shape_cast %14 : vector<5xf32> to vector<1x5xf32>
    %16 = vector.broadcast %15 : vector<1x5xf32> to vector<64x5xf32>
    %17 = arith.addf %12, %16 : vector<64x5xf32>
    %18 = vector.shape_cast %17 : vector<64x5xf32> to vector<8x8x5xf32>
    %c0_12 = arith.constant 0 : index
    %c0_13 = arith.constant 0 : index
    %19 = vector.load %arg6[%c0_12, %c0_13] : memref<40x40xf32, #tpu.memory_space<vmem>>, vector<40x40xf32>
    %cst_14 = arith.constant dense<0.000000e+00> : vector<64x40xf32>
    %20 = tpu.matmul %2, %19, %cst_14 {dimension_numbers = #tpu.dot_dimension_numbers<[1], [0], [0], [1], [0, 0, 1, 1], [], []>} : vector<64x40xf32>, vector<40x40xf32>, vector<64x40xf32> -> vector<64x40xf32>
    %c0_15 = arith.constant 0 : index
    %c0_16 = arith.constant 0 : index
    %21 = vector.load %arg7[%c0_15, %c0_16] : memref<1x40xf32, #tpu.memory_space<vmem>>, vector<1x40xf32>
    %22 = vector.shape_cast %21 : vector<1x40xf32> to vector<40xf32>
    %23 = vector.shape_cast %22 : vector<40xf32> to vector<1x40xf32>
    %24 = vector.broadcast %23 : vector<1x40xf32> to vector<64x40xf32>
    %25 = arith.addf %20, %24 : vector<64x40xf32>
    %26 = vector.shape_cast %25 : vector<64x40xf32> to vector<8x8x40xf32>
    %27 = tpu.transpose %10, [1, 0, 2] : vector<8x8x5xf32> -> vector<8x8x5xf32>
    %28 = tpu.transpose %18, [1, 0, 2] : vector<8x8x5xf32> -> vector<8x8x5xf32>
    %29 = tpu.transpose %26, [1, 0, 2] : vector<8x8x40xf32> -> vector<8x8x40xf32>
    "tpu.trace_start"() <{level = 10 : i32, message = "whc,wjc->whj"}> : () -> ()
    %cst_17 = arith.constant dense<0.000000e+00> : vector<8x8x8xf32>
    %30 = tpu.matmul %27, %28, %cst_17 {dimension_numbers = #tpu.dot_dimension_numbers<[2], [2], [1], [1], [0, 0, 0, 1, 1, 1], [0], [0]>} : vector<8x8x5xf32>, vector<8x8x5xf32>, vector<8x8x8xf32> -> vector<8x8x8xf32>
    "tpu.trace_stop"() : () -> ()
    %31 = tpu.iota {dimensions = array<i32: 0>} : vector<8x8xi32>
    %32 = tpu.iota {dimensions = array<i32: 1>} : vector<8x8xi32>
    %33 = arith.cmpi eq, %31, %32 : vector<8x8xi32>
    %34 = vector.shape_cast %33 : vector<8x8xi1> to vector<1x8x8xi1>
    %cst_18 = arith.constant 0xFF800000 : f32
    %35 = vector.shape_cast %34 : vector<1x8x8xi1> to vector<1x8x8xi1>
    %36 = vector.broadcast %35 : vector<1x8x8xi1> to vector<8x8x8xi1>
    %37 = vector.broadcast %cst_18 : f32 to vector<8x8x8xf32>
    %38 = arith.select %36, %37, %30 : vector<8x8x8xi1>, vector<8x8x8xf32>
    "tpu.trace_start"() <{level = 10 : i32, message = "hwc,hjc->hwj"}> : () -> ()
    %cst_19 = arith.constant dense<0.000000e+00> : vector<8x8x8xf32>
    %39 = tpu.matmul %10, %18, %cst_19 {dimension_numbers = #tpu.dot_dimension_numbers<[2], [2], [1], [1], [0, 0, 0, 1, 1, 1], [0], [0]>} : vector<8x8x5xf32>, vector<8x8x5xf32>, vector<8x8x8xf32> -> vector<8x8x8xf32>
    "tpu.trace_stop"() : () -> ()
    %cst_20 = arith.constant dense<0xFF800000> : vector<8x8xf32>
    %40 = vector.multi_reduction <maximumf>, %38, %cst_20 [2] : vector<8x8x8xf32> to vector<8x8xf32>
    %cst_21 = arith.constant dense<0xFF800000> : vector<8x8xf32>
    %41 = vector.multi_reduction <maximumf>, %39, %cst_21 [2] : vector<8x8x8xf32> to vector<8x8xf32>
    %42 = tpu.transpose %40, [1, 0] : vector<8x8xf32> -> vector<8x8xf32>
    %43 = arith.maximumf %42, %41 : vector<8x8xf32>
    %44 = tpu.transpose %43, [1, 0] : vector<8x8xf32> -> vector<8x8xf32>
    %45 = vector.shape_cast %44 : vector<8x8xf32> to vector<8x8x1xf32>
    %46 = vector.broadcast %45 : vector<8x8x1xf32> to vector<8x8x8xf32>
    %47 = arith.subf %38, %46 : vector<8x8x8xf32>
    %48 = math.exp %47 : vector<8x8x8xf32>
    %49 = vector.shape_cast %43 : vector<8x8xf32> to vector<8x8x1xf32>
    %50 = vector.broadcast %49 : vector<8x8x1xf32> to vector<8x8x8xf32>
    %51 = arith.subf %39, %50 : vector<8x8x8xf32>
    %52 = math.exp %51 : vector<8x8x8xf32>
    %cst_22 = arith.constant dense<0.000000e+00> : vector<8x8xf32>
    %53 = vector.multi_reduction <add>, %48, %cst_22 [2] : vector<8x8x8xf32> to vector<8x8xf32>
    %54 = tpu.transpose %53, [1, 0] : vector<8x8xf32> -> vector<8x8xf32>
    %cst_23 = arith.constant dense<0.000000e+00> : vector<8x8xf32>
    %55 = vector.multi_reduction <add>, %52, %cst_23 [2] : vector<8x8x8xf32> to vector<8x8xf32>
    %56 = arith.addf %54, %55 : vector<8x8xf32>
    %57 = tpu.reciprocal %56 {approx = true} : vector<8x8xf32> -> vector<8x8xf32>
    %58 = tpu.transpose %57, [1, 0] : vector<8x8xf32> -> vector<8x8xf32>
    %59 = vector.shape_cast %58 : vector<8x8xf32> to vector<8x8x1xf32>
    %60 = vector.broadcast %59 : vector<8x8x1xf32> to vector<8x8x8xf32>
    %61 = arith.mulf %48, %60 : vector<8x8x8xf32>
    %62 = vector.shape_cast %57 : vector<8x8xf32> to vector<8x8x1xf32>
    %63 = vector.broadcast %62 : vector<8x8x1xf32> to vector<8x8x8xf32>
    %64 = arith.mulf %52, %63 : vector<8x8x8xf32>
    "tpu.trace_start"() <{level = 10 : i32, message = "whj,wjc->whc"}> : () -> ()
    %cst_24 = arith.constant dense<0.000000e+00> : vector<8x8x40xf32>
    %65 = tpu.matmul %61, %29, %cst_24 {dimension_numbers = #tpu.dot_dimension_numbers<[2], [1], [1], [2], [0, 0, 0, 1, 1, 2], [0], [0]>} : vector<8x8x8xf32>, vector<8x8x40xf32>, vector<8x8x40xf32> -> vector<8x8x40xf32>
    "tpu.trace_stop"() : () -> ()
    "tpu.trace_start"() <{level = 10 : i32, message = "hwj,hjc->hwc"}> : () -> ()
    %cst_25 = arith.constant dense<0.000000e+00> : vector<8x8x40xf32>
    %66 = tpu.matmul %64, %26, %cst_25 {dimension_numbers = #tpu.dot_dimension_numbers<[2], [1], [1], [2], [0, 0, 0, 1, 1, 2], [0], [0]>} : vector<8x8x8xf32>, vector<8x8x40xf32>, vector<8x8x40xf32> -> vector<8x8x40xf32>
    "tpu.trace_stop"() : () -> ()
    %67 = tpu.transpose %65, [1, 0, 2] : vector<8x8x40xf32> -> vector<8x8x40xf32>
    %c0_26 = arith.constant 0 : index
    %68 = memref.load %arg8[%c0_26] : memref<1xf32, #tpu.memory_space<smem>>
    %69 = arith.addf %67, %66 : vector<8x8x40xf32>
    %70 = vector.broadcast %68 : f32 to vector<8x8x40xf32>
    %71 = arith.mulf %70, %69 : vector<8x8x40xf32>
    %72 = arith.addf %71, %1 : vector<8x8x40xf32>
    %c0_27 = arith.constant 0 : index
    %c0_28 = arith.constant 0 : index
    %c0_29 = arith.constant 0 : index
    %c0_30 = arith.constant 0 : index
    %73 = vector.load %arg9[%c0_27, %c0_28, %c0_29, %c0_30] : memref<1x8x8x40xf32, #tpu.memory_space<vmem>>, vector<1x8x8x40xf32>
    %74 = vector.shape_cast %73 : vector<1x8x8x40xf32> to vector<8x8x40xf32>
    %75 = vector.shape_cast %72 : vector<8x8x40xf32> to vector<1x8x8x40xf32>
    tpu.vector_store %arg9[%c0_27, %c0_28, %c0_29, %c0_30], %75 {strides = array<i32>} : memref<1x8x8x40xf32, #tpu.memory_space<vmem>>, vector<1x8x8x40xf32>,
    return
  }
  func.func @transform_0(%arg0: i32) -> (i32, i32, i32, i32) {
    %c0_i32 = arith.constant 0 : i32
    %c0_i32_0 = arith.constant 0 : i32
    %c0_i32_1 = arith.constant 0 : i32
    %c0_i32_2 = arith.constant 0 : i32
    return %arg0, %c0_i32, %c0_i32_0, %c0_i32_1 : i32, i32, i32, i32
  }
  func.func @transform_1(%arg0: i32) -> (i32, i32) {
    %c0_i32 = arith.constant 0 : i32
    %c0_i32_0 = arith.constant 0 : i32
    %c0_i32_1 = arith.constant 0 : i32
    return %c0_i32, %c0_i32_0 : i32, i32
  }
  func.func @transform_2(%arg0: i32) -> (i32, i32) {
    %c0_i32 = arith.constant 0 : i32
    %c0_i32_0 = arith.constant 0 : i32
    %c0_i32_1 = arith.constant 0 : i32
    return %c0_i32, %c0_i32_0 : i32, i32
  }
  func.func @transform_3(%arg0: i32) -> (i32, i32) {
    %c0_i32 = arith.constant 0 : i32
    %c0_i32_0 = arith.constant 0 : i32
    %c0_i32_1 = arith.constant 0 : i32
    return %c0_i32, %c0_i32_0 : i32, i32
  }
  func.func @transform_4(%arg0: i32) -> (i32, i32) {
    %c0_i32 = arith.constant 0 : i32
    %c0_i32_0 = arith.constant 0 : i32
    %c0_i32_1 = arith.constant 0 : i32
    return %c0_i32, %c0_i32_0 : i32, i32
  }
  func.func @transform_5(%arg0: i32) -> (i32, i32) {
    %c0_i32 = arith.constant 0 : i32
    %c0_i32_0 = arith.constant 0 : i32
    %c0_i32_1 = arith.constant 0 : i32
    return %c0_i32, %c0_i32_0 : i32, i32
  }
  func.func @transform_6(%arg0: i32) -> (i32, i32) {
    %c0_i32 = arith.constant 0 : i32
    %c0_i32_0 = arith.constant 0 : i32
    %c0_i32_1 = arith.constant 0 : i32
    return %c0_i32, %c0_i32_0 : i32, i32
  }
  func.func @transform_7(%arg0: i32) -> i32 {
    %c0_i32 = arith.constant 0 : i32
    %c0_i32_0 = arith.constant 0 : i32
    return %c0_i32 : i32
  }
  func.func @transform_8(%arg0: i32) -> (i32, i32, i32, i32) {
    %c0_i32 = arith.constant 0 : i32
    %c0_i32_0 = arith.constant 0 : i32
    %c0_i32_1 = arith.constant 0 : i32
    %c0_i32_2 = arith.constant 0 : i32
    return %arg0, %c0_i32, %c0_i32_0, %c0_i32_1 : i32, i32, i32, i32
  }
}

</mosaic_0001>

<bundles_post_ra>
// kernel: dam_criss_forward.7
= control target key start
LH: loop header
LB: loop body
LE: loop exit
PB: predicated region body
PF: predicated region fallthrough
CT: control target
= control target key end

     0   :  { %s1367_s15 = smov 0   ;;  %s1868_s0 = inlined_call_operand.vmem [shape: f32[2,8,8,40], index: 0, kind: input, shape index: {}]   ;;  %s1869_s1 = inlined_call_operand.vmem [shape: f32[360,8], index: 1, kind: input, shape index: {}]   ;;  %s1870_s2 = inlined_call_operand.vmem [shape: f32[1,8], index: 2, kind: input, shape index: {}]   ;;  %s1871_s3 = inlined_call_operand.vmem [shape: f32[1,8], index: 3, kind: input, shape index: {}]   ;;  %s1872_s4 = inlined_call_operand.vmem [shape: f32[2,8,8,8], index: 4, kind: output, shape index: {}]  }
   0x1 LB: > { %s1114_s16 = sadd.s32 4294967295, %s1331_s15   ;;  %p1118_p0 = scmp.ge.s32.totalorder %s1331_s15, 1  ;;  %s1331_s15 = sphi %s1367_s15, %s14_s15  }
   0x2   : > { %p162_p1 = scmp.lt.s32.totalorder %s1331_s15, 3 }
   0x4   : > { %p163_p2 = pnand %p1118_p0, %p162_p1 }
   0x5   : > { %vm198_vm0 = vcmask (!%p163_p2), 326656   ;;  %v1333_v0 = vmov (!%p163_p2), 0.0   ;;  %p188_p3 = scmp.lt.s32.totalorder (!%p163_p2), %s1114_s16, 1  ;;  %v304_v1 = vld [vmem:[%s1869_s1 + $0x80] sm:$0xff] (!%p163_p2)  ;;  %v305_v2 = vld [vmem:[%s1869_s1 + $0x88] sm:$0xff] (!%p163_p2)  ;;  %v306_v6 = vld [vmem:[%s1869_s1 + $0x90] sm:$0xff] (!%p163_p2) }
   0x6   : > { %166 = sbr.rel (%p163_p2) target bundleno = 495 (0x1ef), region = 36  ;;  %221 = vst.msk [vmem:[#allocation2 + $0xb0] sm:$0xff] (!%p163_p2), %vm198_vm0, %v1333_v0  ;;  %220 = vst.msk [vmem:[#allocation2 + $0xa8] sm:$0xff] (!%p163_p2), %vm198_vm0, %v1333_v0  ;;  %v288_v3 = vld [vmem:[%s1869_s1] sm:$0xff] (!%p163_p2)  ;;  %v1252_v4 = vpack.c.bf16 (!%p163_p2), %v305_v2, %v304_v1  ;;  %v289_v5 = vld [vmem:[%s1869_s1 + $0x8] sm:$0xff] (!%p163_p2)  ;;  %vm461_vm1 = vcmask (!%p163_p2), 1046528  }
   0x7   : > { %222 = vst.msk [vmem:[#allocation2 + $0xb8] sm:$0xff] (!%p163_p2), %vm198_vm0, %v1333_v0  ;;  %223 = vst.msk [vmem:[#allocation2 + $0xc0] sm:$0xff] (!%p163_p2), %vm198_vm0, %v1333_v0  ;;  %v307_v7 = vld [vmem:[%s1869_s1 + $0x98] sm:$0xff] (!%p163_p2)  ;;  %v1254_v8 = vpack.c.bf16 (!%p163_p2), %v289_v5, %v288_v3  ;;  %v290_v10 = vld [vmem:[%s1869_s1 + $0x10] sm:$0xff] (!%p163_p2)  ;;  %s1334_s25 = smov (!%p163_p2), 40   ;;  %s1335_s8 = smov (!%p163_p2), 80  }
   0x8   : > { %224 = vst.msk [vmem:[#allocation2 + $0xc8] sm:$0xff] (!%p163_p2), %vm198_vm0, %v1333_v0  ;;  %225 = vst.msk [vmem:[#allocation2 + $0xd0] sm:$0xff] (!%p163_p2), %vm198_vm0, %v1333_v0  ;;  %v1256_v9 = vpack.c.bf16 (!%p163_p2), %v307_v7, %v306_v6  ;;  %v291_v11 = vld [vmem:[%s1869_s1 + $0x18] sm:$0xff] (!%p163_p2)  ;;  %v308_v12 = vld [vmem:[%s1869_s1 + $0xa0] sm:$0xff] (!%p163_p2)  ;;  %1253 = vmatprep.subr.bf16.mxu0 (!%p163_p2), %v1252_v4  ;;  %vm379_vm2 = vcmask (!%p163_p2), 1040384   ;;  %s1336_s9 = smov (!%p163_p2), 32  }
   0x9   : > { %226 = vst.msk [vmem:[#allocation2 + $0xd8] sm:$0xff] (!%p163_p2), %vm198_vm0, %v1333_v0  ;;  %227 = vst.msk [vmem:[#allocation2 + $0xe0] sm:$0xff] (!%p163_p2), %vm198_vm0, %v1333_v0  ;;  %v309_v13 = vld [vmem:[%s1869_s1 + $0xa8] sm:$0xff] (!%p163_p2)  ;;  %1255 = vmatpush3.bf16.msra.mxu0 (!%p163_p2), %v1254_v8  ;;  %v1258_v14 = vpack.c.bf16 (!%p163_p2), %v291_v11, %v290_v10  ;;  %v292_v15 = vld [vmem:[%s1869_s1 + $0x20] sm:$0xff] (!%p163_p2)  ;;  %s1337_s17 = smov (!%p163_p2), 72   ;;  %s1338_s27 = smov (!%p163_p2), 112  }
   0xa   : > { %228 = vst.msk [vmem:[#allocation2 + $0xe8] sm:$0xff] (!%p163_p2), %vm198_vm0, %v1333_v0  ;;  %229 = vst.msk [vmem:[#allocation2 + $0xf0] sm:$0xff] (!%p163_p2), %vm198_vm0, %v1333_v0  ;;  %1257 = vmatprep.subr.bf16.mxu0 (!%p163_p2), %v1256_v9  ;;  %v1260_v16 = vpack.c.bf16 (!%p163_p2), %v309_v13, %v308_v12  ;;  %v293_v17 = vld [vmem:[%s1869_s1 + $0x28] sm:$0xff] (!%p163_p2)  ;;  %v310_v18 = vld [vmem:[%s1869_s1 + $0xb0] sm:$0xff] (!%p163_p2)  ;;  %s1339_s28 = smov (!%p163_p2), 120   ;;  %s1340_s12 = smov (!%p163_p2), 24  }
   0xb   : > { %230 = vst.msk [vmem:[#allocation2 + $0xf8] sm:$0xff] (!%p163_p2), %vm198_vm0, %v1333_v0  ;;  %231 = vst.msk [vmem:[#allocation2 + $0x100] sm:$0xff] (!%p163_p2), %vm198_vm0, %v1333_v0  ;;  %v311_v19 = vld [vmem:[%s1869_s1 + $0xb8] sm:$0xff] (!%p163_p2)  ;;  %v1262_v27 = vpack.c.bf16 (!%p163_p2), %v293_v17, %v292_v15  ;;  %v294_v28 = vld [vmem:[%s1869_s1 + $0x30] sm:$0xff] (!%p163_p2)  ;;  %vm444_vm3 = vcmask (!%p163_p2), 654656   ;;  %vm510_vm4 = vcmask (!%p163_p2), 982656  }
   0xc   : > { %232 = vst.msk [vmem:[#allocation2 + $0x108] sm:$0xff] (!%p163_p2), %vm198_vm0, %v1333_v0  ;;  %233 = vst.msk [vmem:[#allocation2 + $0x110] sm:$0xff] (!%p163_p2), %vm198_vm0, %v1333_v0  ;;  %v295_v29 = vld [vmem:[%s1869_s1 + $0x38] sm:$0xff] (!%p163_p2)  ;;  %v1264_v31 = vpack.c.bf16 (!%p163_p2), %v311_v19, %v310_v18  ;;  %v312_v32 = vld [vmem:[%s1869_s1 + $0xc0] sm:$0xff] (!%p163_p2)  ;;  %vm667_vm5 = vcmask (!%p163_p2), 195584   ;;  %vm548_vm6 = vcmask (!%p163_p2), 1048512  }
   0xd   : > { %234 = vst.msk [vmem:[#allocation2 + $0x118] sm:$0xff] %vm198_vm0, %v1333_v0  ;;  %235 = vst.msk [vmem:[#allocation2 + $0x120] sm:$0xff] %vm198_vm0, %v1333_v0  ;;  %s1874_s16 = smov (!%p188_p3, %s1114_s16), 1  ;;  %v1464_v23 = vld [vmem:[#allocation2 + $0xb0] sm:$0xff]  ;;  %1259 = vmatpush3.bf16.msra.mxu0 %v1258_v14  ;;  %v313_v33 = vld [vmem:[%s1869_s1 + $0xc8] sm:$0xff]  ;;  %v1266_v41 = vpack.c.bf16 %v295_v29, %v294_v28  ;;  %vm550_vm7 = vcmask 261120  }
   0xe   : > { %236 = vst.msk [vmem:[#allocation2 + $0x128] sm:$0xff] %vm198_vm0, %v1333_v0  ;;  %237 = vst.msk [vmem:[#allocation2 + $0x130] sm:$0xff] %vm198_vm0, %v1333_v0  ;;  %s1135_s11 = sshll.u32 %s1874_s16, 6  ;;  %v335_v24 = vld [vmem:[#allocation2 + $0xb8] sm:$0xff]  ;;  %420 = vrot.lane.b32.xlu1 %v1464_v23, %s1334_s25  ;;  %v462_v25 = vrot.slane %v1464_v23, 1  ;;  %1261 = vmatprep.subr.bf16.mxu0 %v1260_v16  ;;  %v336_v36 = vld [vmem:[#allocation2 + $0xc0] sm:$0xff]  ;;  %v1268_v47 = vpack.c.bf16 %v313_v33, %v312_v32 }
   0xf   : > { %238 = vst.msk [vmem:[#allocation2 + $0x138] sm:$0xff] %vm198_vm0, %v1333_v0  ;;  %239 = vst.msk [vmem:[#allocation2 + $0x140] sm:$0xff] %vm198_vm0, %v1333_v0  ;;  %s1450_s18 = scalar_lea.vmem %s1868_s0, %s1135_s11  ;;  %v463_v26 = vrot.slane %v335_v24, 1  ;;  %v338_v30 = vld [vmem:[#allocation2 + $0xd0] sm:$0xff]  ;;  %v383_v44 = vrot.slane %v336_v36, 7  ;;  %v381_v58 = vrot.slane %v1464_v23, 7  ;;  %s1847_s19 = scalar_lea.vmem %s1872_s4, %s1135_s11 }
  0x10   : > { %240 = vst.msk [vmem:[#allocation2 + $0x148] sm:$0xff] %vm198_vm0, %v1333_v0  ;;  %241 = vst.msk [vmem:[#allocation2 + $0x150] sm:$0xff] %vm198_vm0, %v1333_v0  ;;  %v272_v20 = vld [vmem:[%s1450_s18 + $0x8] sm:$0xff]  ;;  %v271_v21 = vld [vmem:[%s1450_s18] sm:$0xff]  ;;  %v466_v42 = vrot.slane %v338_v30, 1  ;;  %vm590_vm8 = vcmask 589056  }
  0x11   : > { %242 = vst.msk [vmem:[#allocation2 + $0x158] sm:$0xff] %vm198_vm0, %v1333_v0  ;;  %243 = vst.msk [vmem:[#allocation2 + $0x160] sm:$0xff] %vm198_vm0, %v1333_v0  ;;  %v273_v22 = vld [vmem:[%s1450_s18 + $0x10] sm:$0xff]  ;;  %v464_v34 = vsel %vm461_vm1, %v462_v25, %v463_v26  ;;  %v339_v35 = vld [vmem:[#allocation2 + $0xd8] sm:$0xff]  ;;  %1263 = vmatpush3.bf16.msra.mxu0 %v1262_v27  ;;  %vm627_vm9 = vcmask 917056   ;;  %vm665_vm10 = vcmask 1048448  }
  0x12   : > { %244 = vst.msk [vmem:[#allocation2 + $0x168] sm:$0xff] %vm198_vm0, %v1333_v0  ;;  %245 = vst.msk [vmem:[#allocation2 + $0x170] sm:$0xff] %vm198_vm0, %v1333_v0  ;;  %v274_v37 = vld [vmem:[%s1450_s18 + $0x18] sm:$0xff]  ;;  %486 = vrot.lane.b32.xlu0 %v464_v34, %s1335_s8  ;;  %v342_v38 = vld [vmem:[#allocation2 + $0xf0] sm:$0xff]  ;;  %v386_v43 = vrot.slane %v339_v35, 7  ;;  %1265 = vmatprep.subr.bf16.mxu0 %v1264_v31  ;;  %vm707_vm11 = vcmask 523456  }
  0x13   : > { %246 = vst.msk [vmem:[#allocation2 + $0x178] sm:$0xff] %vm198_vm0, %v1333_v0  ;;  %247 = vst.msk [vmem:[#allocation2 + $0x180] sm:$0xff] %vm198_vm0, %v1333_v0  ;;  %v275_v39 = vld [vmem:[%s1450_s18 + $0x20] sm:$0xff]  ;;  %v276_v40 = vld [vmem:[%s1450_s18 + $0x28] sm:$0xff]  ;;  %v389_v51 = vrot.slane %v342_v38, 7  ;;  %vm744_vm12 = vcmask 851456  }
  0x14   : > { %248 = vst.msk [vmem:[#allocation2 + $0x188] sm:$0xff] %vm198_vm0, %v1333_v0  ;;  %249 = vst.msk [vmem:[#allocation2 + $0x190] sm:$0xff] %vm198_vm0, %v1333_v0  ;;  %v345_v45 = vld [vmem:[#allocation2 + $0x108] sm:$0xff]  ;;  %v277_v46 = vld [vmem:[%s1450_s18 + $0x30] sm:$0xff]  ;;  %vm777_vm13 = vcmask 850944   ;;  %vm1050_vm14 = vcmask 64512  }
  0x15   : > { %281 = vst.msk [vmem:[#allocation2 + $0xe0] sm:$0xff] %vm198_vm0, %v272_v20  ;;  %280 = vst.msk [vmem:[#allocation2 + $0xc8] sm:$0xff] %vm198_vm0, %v271_v21  ;;  %v341_v55 = vld [vmem:[#allocation2 + $0xe8] sm:$0xff]  ;;  %v348_v56 = vld [vmem:[#allocation2 + $0x120] sm:$0xff]  ;;  %1267 = vmatpush3.bf16.msra.mxu0 %v1266_v41  ;;  %v392_v2 = vrot.slane %v345_v45, 7 }
  0x16   : > { %282 = vst.msk [vmem:[#allocation2 + $0xf8] sm:$0xff] %vm198_vm0, %v273_v22  ;;  %283 = vst.msk [vmem:[#allocation2 + $0x110] sm:$0xff] %vm198_vm0, %v274_v37  ;;  %v278_v57 = vld [vmem:[%s1450_s18 + $0x38] sm:$0xff]  ;;  %v333_v62 = vld [vmem:[#allocation2 + $0xa8] sm:$0xff]  ;;  %1269 = vmatprep.subr.bf16.mxu0 %v1268_v47  ;;  %v395_v7 = vrot.slane %v348_v56, 7  ;;  %v469_v9 = vrot.slane %v341_v55, 1 }
  0x17   : > { %284 = vst.msk [vmem:[#allocation2 + $0x128] sm:$0xff] %vm198_vm0, %v275_v39  ;;  %285 = vst.msk [vmem:[#allocation2 + $0x140] sm:$0xff] %vm198_vm0, %v276_v40  ;;  %v351_v60 = vld [vmem:[#allocation2 + $0x138] sm:$0xff]  ;;  %v354_v61 = vld [vmem:[#allocation2 + $0x150] sm:$0xff]  ;;  %v380_v8 = vrot.slane %v333_v62, 7  ;;  %s1341_s18 = smov 64  }
  0x18   : > { %286 = vst.msk [vmem:[#allocation2 + $0x158] sm:$0xff] %vm198_vm0, %v277_v46  ;;  %287 = vst.msk [vmem:[#allocation2 + $0x170] sm:$0xff] %vm198_vm0, %v278_v57  ;;  %v296_v3 = vld [vmem:[%s1869_s1 + $0x40] sm:$0xff]  ;;  %v297_v4 = vld [vmem:[%s1869_s1 + $0x48] sm:$0xff]  ;;  %v398_v12 = vrot.slane %v351_v60, 7  ;;  %v401_v13 = vrot.slane %v354_v61, 7 }
  0x19   : > { %v382_v17 = vsel %vm379_vm2, %v380_v8, %v381_v58  ;;  %v1270_v18 = vpack.c.bf16 %v297_v4, %v296_v3  ;;  %v314_v22 = vld [vmem:[%s1869_s1 + $0xd0] sm:$0xff]  ;;  %v315_v25 = vld [vmem:[%s1869_s1 + $0xd8] sm:$0xff]  ;;  %v316_v29 = vld [vmem:[%s1869_s1 + $0xe0] sm:$0xff] }
  0x1a   : > { %412 = vst.msk [vmem:[#allocation3] sm:$0xff] %vm198_vm0, %v382_v17  ;;  %v298_v26 = vld [vmem:[%s1869_s1 + $0x50] sm:$0xff]  ;;  %v299_v27 = vld [vmem:[%s1869_s1 + $0x58] sm:$0xff]  ;;  %v317_v30 = vld [vmem:[%s1869_s1 + $0xe8] sm:$0xff]  ;;  %v1272_v33 = vpack.c.bf16 %v315_v25, %v314_v22 }
  0x1b   : > { %1271 = vmatpush3.bf16.msra.mxu0 %v1270_v18  ;;  %v1274_v34 = vpack.c.bf16 %v299_v27, %v298_v26  ;;  %v1276_v35 = vpack.c.bf16 %v317_v30, %v316_v29  ;;  %v300_v36 = vld [vmem:[%s1869_s1 + $0x60] sm:$0xff]  ;;  %v301_v37 = vld [vmem:[%s1869_s1 + $0x68] sm:$0xff]  ;;  %v318_v38 = vld [vmem:[%s1869_s1 + $0xf0] sm:$0xff] }
  0x1c   : > { %v1493_v48 = vld [vmem:[#allocation2 + $0xe0] sm:$0xff]  ;;  %v337_v49 = vld [vmem:[#allocation2 + $0xc8] sm:$0xff]  ;;  %v319_v39 = vld [vmem:[%s1869_s1 + $0xf8] sm:$0xff]  ;;  %1273 = vmatprep.subr.bf16.mxu0 %v1272_v33  ;;  %v1278_v41 = vpack.c.bf16 %v301_v37, %v300_v36 }
  0x1d   : > { %v1495_v50 = vld [vmem:[#allocation2 + $0xf8] sm:$0xff]  ;;  %568 = vrot.lane.b32.xlu1 %v1493_v48, %s1336_s9  ;;  %566 = vrot.lane.b32.xlu0 %v337_v49, %s1336_s9  ;;  %v465_v52 = vrot.slane %v337_v49, 1  ;;  %v387_v53 = vrot.slane %v1493_v48, 7  ;;  %v384_v54 = vrot.slane %v337_v49, 7  ;;  %v1522_v6 = vld [vmem:[#allocation2 + $0x110] sm:$0xff]  ;;  %v468_v14 = vrot.slane %v1493_v48, 1 }
  0x1e   : > { %v390_v59 = vrot.slane %v1495_v50, 7  ;;  %v393_v10 = vrot.slane %v1522_v6, 7  ;;  %v1530_v11 = vld [vmem:[#allocation2 + $0x128] sm:$0xff]  ;;  %v1534_v16 = vld [vmem:[#allocation2 + $0x140] sm:$0xff]  ;;  %v471_v45 = vrot.slane %v1495_v50, 1  ;;  %v350_v58 = vld [vmem:[#allocation2 + $0x130] sm:$0xff] }
  0x1f   : > { %v1507_v63 = vsel %vm461_vm1, %v465_v52, %v466_v42  ;;  %v388_v0 = vsel %vm379_vm2, %v386_v43, %v387_v53  ;;  %v385_v1 = vsel %vm379_vm2, %v383_v44, %v384_v54  ;;  %v396_v15 = vrot.slane %v1530_v11, 7  ;;  %v1539_v21 = vld [vmem:[#allocation2 + $0x158] sm:$0xff]  ;;  %v344_v40 = vld [vmem:[#allocation2 + $0x100] sm:$0xff]  ;;  %1275 = vmatpush3.bf16.msra.mxu0 %v1274_v34  ;;  %v302_v43 = vld [vmem:[%s1869_s1 + $0x70] sm:$0xff] }
  0x20   : > { %414 = vst.msk [vmem:[#allocation3 + $0x30] sm:$0xff] %vm198_vm0, %v388_v0  ;;  %413 = vst.msk [vmem:[#allocation3 + $0x18] sm:$0xff] %vm198_vm0, %v385_v1  ;;  %v1520_v5 = vsel %vm379_vm2, %v389_v51, %v390_v59  ;;  %v394_v19 = vsel %vm379_vm2, %v392_v2, %v393_v10  ;;  %v399_v20 = vrot.slane %v1534_v16, 7  ;;  %v402_v24 = vrot.slane %v1539_v21, 7  ;;  %1277 = vmatprep.subr.bf16.mxu0 %v1276_v35  ;;  %v303_v44 = vld [vmem:[%s1869_s1 + $0x78] sm:$0xff]  ;;  %v320_v55 = vld [vmem:[%s1869_s1 + $0x100] sm:$0xff] }
  0x21   : > { %603 = vrot.lane.b32.xlu1 %v1507_v63, %s1337_s17  ;;  %422 = vrot.lane.b32.xlu0 %v337_v49, %s1334_s25  ;;  %415 = vst.msk [vmem:[#allocation3 + $0x48] sm:$0xff] %vm198_vm0, %v1520_v5  ;;  %416 = vst.msk [vmem:[#allocation3 + $0x60] sm:$0xff] %vm198_vm0, %v394_v19  ;;  %v1547_v23 = vsel %vm379_vm2, %v395_v7, %v396_v15  ;;  %v1573_v31 = vsel %vm461_vm1, %v468_v14, %v469_v9  ;;  %v472_v46 = vrot.slane %v344_v40, 1  ;;  %v347_v51 = vld [vmem:[#allocation2 + $0x118] sm:$0xff]  ;;  %v321_v56 = vld [vmem:[%s1869_s1 + $0x108] sm:$0xff] }
  0x22   : > { %417 = vst.msk [vmem:[#allocation3 + $0x78] sm:$0xff] %vm198_vm0, %v1547_v23  ;;  %v1564_v28 = vsel %vm379_vm2, %v398_v12, %v399_v20  ;;  %v1578_v32 = vsel %vm379_vm2, %v401_v13, %v402_v24  ;;  %v1280_v42 = vpack.c.bf16 %v319_v39, %v318_v38  ;;  %v1282_v47 = vpack.c.bf16 %v303_v44, %v302_v43  ;;  %v322_v59 = vld [vmem:[%s1869_s1 + $0x110] sm:$0xff]  ;;  %v323_v60 = vld [vmem:[%s1869_s1 + $0x118] sm:$0xff]  ;;  %v328_v8 = vld [vmem:[%s1869_s1 + $0x140] sm:$0xff] }
  0x23   : > { %418 = vst.msk [vmem:[#allocation3 + $0x90] sm:$0xff] %vm198_vm0, %v1564_v28  ;;  %419 = vst.msk [vmem:[#allocation3 + $0xa8] sm:$0xff] %vm198_vm0, %v1578_v32  ;;  %1279 = vmatpush3.bf16.msra.mxu0 %v1278_v41  ;;  %v1613_v49 = vsel %vm461_vm1, %v471_v45, %v472_v46  ;;  %v474_v52 = vrot.slane %v1522_v6, 1  ;;  %v475_v53 = vrot.slane %v347_v51, 1  ;;  %v1284_v57 = vpack.c.bf16 %v321_v56, %v320_v55  ;;  %v326_v4 = vld [vmem:[%s1869_s1 + $0x130] sm:$0xff]  ;;  %v329_v9 = vld [vmem:[%s1869_s1 + $0x148] sm:$0xff] }
  0x24   : > { %1281 = vmatprep.subr.bf16.mxu0 %v1280_v42  ;;  %v1288_v61 = vpack.c.bf16 %v323_v60, %v322_v59  ;;  %v477_v62 = vrot.slane %v1530_v11, 1  ;;  %v1300_v10 = vpack.c.bf16 %v329_v9, %v328_v8  ;;  %v330_v12 = vld [vmem:[%s1869_s1 + $0x150] sm:$0xff]  ;;  %v331_v13 = vld [vmem:[%s1869_s1 + $0x158] sm:$0xff]  ;;  %v353_v15 = vld [vmem:[#allocation2 + $0x148] sm:$0xff]  ;;  %v480_v18 = vrot.slane %v1534_v16, 1 }
  0x25   : > { %641 = vrot.lane.b32.xlu1 %v388_v0, %s1338_s27  ;;  %524 = vrot.lane.b32.xlu0 %v385_v1, %s1339_s28  ;;  %v1627_v54 = vsel %vm461_vm1, %v474_v52, %v475_v53  ;;  %v325_v1 = vld [vmem:[%s1869_s1 + $0x128] sm:$0xff]  ;;  %v1304_v14 = vpack.c.bf16 %v331_v13, %v330_v12  ;;  %v332_v17 = vld [vmem:[%s1869_s1 + $0x160] sm:$0xff]  ;;  %v483_v20 = vrot.slane %v1539_v21, 1  ;;  %v358_v24 = vld [vmem:[#allocation2 + $0x170] sm:$0xff] }
  0x26   : > { %1285 = vmatprep.subr.bf16.mxu1 %v1284_v57  ;;  %v522_v26 = vrot.slane %v358_v24, 7  ;;  %v359_v27 = vld [vmem:[#allocation2 + $0x178] sm:$0xff]  ;;  %v360_v30 = vld [vmem:[#allocation2 + $0x180] sm:$0xff]  ;;  %v362_v37 = vld [vmem:[#allocation2 + $0x190] sm:$0xff] }
  0x27   : > { %1283 = vmatpush3.bf16.msra.mxu0 %v1282_v47  ;;  %1287 = vmatpush3.bf16.msra.mxu1 %v1284_v57  ;;  %v601_v29 = vrot.slane %v359_v27, 1  ;;  %v718_v38 = vrot.slane %v362_v37, 1 }
  0x28   : > { %1289 = vmatprep.subr.bf16.mxu1 %v1288_v61 }
  0x29   : > { %605 = vrot.lane.b32.xlu1 %v1573_v31, %s1337_s17  ;;  %526 = vrot.lane.b32.xlu0 %v388_v0, %s1339_s28  ;;  %v324_v0 = vld [vmem:[%s1869_s1 + $0x120] sm:$0xff] }
  0x2a   : > { %v1292_v2 = vpack.c.bf16 %v325_v1, %v324_v0 }
  0x2b   : > { %1291 = vmatpush3.bf16.msra.mxu1 %v1288_v61 }
  0x2c   : > { %1293 = vmatprep.subr.bf16.mxu1 %v1292_v2 }
  0x2d   : > { %643 = vrot.lane.b32.xlu1 %v1520_v5, %s1338_s27  ;;  %488 = vrot.lane.b32.xlu0 %v1507_v63, %s1335_s8  ;;  %v478_v63 = vrot.slane %v350_v58, 1 }
  0x2f   : > { %v479_v3 = vsel %vm461_vm1, %v477_v62, %v478_v63  ;;  %1295 = vmatpush3.bf16.msra.mxu1 %v1292_v2 }
  0x31   : > { %570 = vrot.lane.b32.xlu1 %v1495_v50, %s1336_s9  ;;  %528 = vrot.lane.b32.xlu0 %v1520_v5, %s1339_s28  ;;  %v327_v5 = vld [vmem:[%s1869_s1 + $0x138] sm:$0xff] }
  0x32   : > { %v1296_v7 = vpack.c.bf16 %v327_v5, %v326_v4 }
  0x34   : > { %1297 = vmatprep.subr.bf16.mxu1 %v1296_v7 }
  0x35   : > { %607 = vrot.lane.b32.xlu1 %v1613_v49, %s1337_s17  ;;  %424 = vrot.lane.b32.xlu0 %v1493_v48, %s1334_s25 }
  0x36   : > { %1299 = vmatpush3.bf16.msra.mxu1 %v1296_v7 }
  0x37   : > { %1301 = vmatprep.subr.bf16.mxu1 %v1300_v10 }
  0x39   : > { %645 = vrot.lane.b32.xlu1 %v394_v19, %s1338_s27  ;;  %490 = vrot.lane.b32.xlu0 %v1573_v31, %s1335_s8 }
  0x3a   : > { %1303 = vmatpush3.bf16.msra.mxu1 %v1300_v10 }
  0x3b   : > { %1305 = vmatprep.subr.bf16.mxu1 %v1304_v14 }
  0x3d   : > { %572 = vrot.lane.b32.xlu1 %v1522_v6, %s1336_s9  ;;  %530 = vrot.lane.b32.xlu0 %v394_v19, %s1339_s28  ;;  %v481_v19 = vrot.slane %v353_v15, 1 }
  0x3e   : > { %1307 = vmatpush3.bf16.msra.mxu1 %v1304_v14 }
  0x3f   : > { %1238 = vmatprep.subr.mxu1 %v332_v17 }
  0x41   : > { %609 = vrot.lane.b32.xlu1 %v1627_v54, %s1337_s17  ;;  %426 = vrot.lane.b32.xlu0 %v1495_v50, %s1334_s25 }
  0x42   : > { %1239 = vmatpush3.msra.mxu1 %v332_v17 }
  0x45   : > { %647 = vrot.lane.b32.xlu1 %v1547_v23, %s1338_s27  ;;  %492 = vrot.lane.b32.xlu0 %v1613_v49, %s1335_s8 }
  0x49   : > { %574 = vrot.lane.b32.xlu1 %v1530_v11, %s1336_s9  ;;  %532 = vrot.lane.b32.xlu0 %v1547_v23, %s1339_s28  ;;  %v357_v23 = vld [vmem:[#allocation2 + $0x168] sm:$0xff] }
  0x4a   : > { %v521_v25 = vrot.slane %v357_v23, 7 }
  0x4d   : > { %611 = vrot.lane.b32.xlu1 %v479_v3, %s1337_s17  ;;  %428 = vrot.lane.b32.xlu0 %v1522_v6, %s1334_s25 }
  0x51   : > { %649 = vrot.lane.b32.xlu1 %v1564_v28, %s1338_s27  ;;  %494 = vrot.lane.b32.xlu0 %v1627_v54, %s1335_s8 }
  0x55   : > { %683 = vrot.lane.b32.xlu1 %v1493_v48, %s1340_s12  ;;  %534 = vrot.lane.b32.xlu0 %v1564_v28, %s1339_s28  ;;  %v482_v48 = vsel %vm461_vm1, %v480_v18, %v481_v19  ;;  %v600_v28 = vrot.slane %v358_v24, 1 }
  0x59   : > { %685 = vrot.lane.b32.xlu1 %v1495_v50, %s1340_s12  ;;  %576 = vrot.lane.b32.xlu0 %v1534_v16, %s1336_s9  ;;  %v356_v50 = vld [vmem:[#allocation2 + $0x160] sm:$0xff] }
  0x5a   : > { %v484_v22 = vrot.slane %v356_v50, 1 }
  0x5d   : > { %430 = vrot.lane.b32.xlu1 %v1530_v11, %s1334_s25  ;;  %720 = vrot.lane.b32.xlu0 %v1573_v31, %s1341_s18  ;;  %v361_v31 = vld [vmem:[#allocation2 + $0x188] sm:$0xff] }
  0x5e   : > { %v639_v33 = vrot.slane %v361_v31, 7 }
  0x61   : > { %722 = vrot.lane.b32.xlu1 %v1613_v49, %s1341_s18  ;;  %613 = vrot.lane.b32.xlu0 %v482_v48, %s1337_s17 }
  0x65   : > { %651 = vrot.lane.b32.xlu1 %v1578_v32, %s1338_s27  ;;  %496 = vrot.lane.b32.xlu0 %v479_v3, %s1335_s8 }
  0x69   : > { %687 = vrot.lane.b32.xlu1 %v1522_v6, %s1340_s12  ;;  %536 = vrot.lane.b32.xlu0 %v1578_v32, %s1339_s28  ;;  %v485_v6 = vsel %vm461_vm1, %v483_v20, %v484_v22  ;;  %v602_v32 = vsel %vm461_vm1, %v600_v28, %v601_v29 }
  0x6d   : > { %689 = vrot.lane.b32.xlu1 %v1530_v11, %s1340_s12  ;;  %578 = vrot.lane.b32.xlu0 %v1539_v21, %s1336_s9  ;;  %v523_v11 = vsel %vm379_vm2, %v521_v25, %v522_v26 }
  0x71   : > { %432 = vrot.lane.b32.xlu1 %v1534_v16, %s1334_s25  ;;  %724 = vrot.lane.b32.xlu0 %v1627_v54, %s1341_s18 }
  0x75   : > { %726 = vrot.lane.b32.xlu1 %v479_v3, %s1341_s18  ;;  %615 = vrot.lane.b32.xlu0 %v485_v6, %s1337_s17 }
  0x79   : > { %653 = vrot.lane.b32.xlu1 %v523_v11, %s1338_s27  ;;  %498 = vrot.lane.b32.xlu0 %v482_v48, %s1335_s8 }
  0x7d   : > { %691 = vrot.lane.b32.xlu1 %v1534_v16, %s1340_s12  ;;  %538 = vrot.lane.b32.xlu0 %v523_v11, %s1339_s28  ;;  %v638_v16 = vrot.slane %v360_v30, 7 }
  0x7f   : > { %v640_v35 = vsel %vm379_vm2, %v638_v16, %v639_v33 }
  0x80   : > { %v421_v34 = vpop.permute.xlu1 %420 }
  0x81   : > { %693 = vrot.lane.b32.xlu1 %v1539_v21, %s1340_s12  ;;  %580 = vrot.lane.b32.xlu0 %v358_v24, %s1336_s9  ;;  %445 = vst.msk [vmem:[#allocation3] sm:$0xff] %vm444_vm3, %v421_v34 }
  0x84   : > { %v487_v36 = vpop.permute.xlu0 %486 }
  0x85   : > { %434 = vrot.lane.b32.xlu1 %v1539_v21, %s1334_s25  ;;  %728 = vrot.lane.b32.xlu0 %v482_v48, %s1341_s18  ;;  %511 = vst.msk [vmem:[#allocation3] sm:$0xff] %vm510_vm4, %v487_v36  ;;  %v717_v21 = vrot.slane %v361_v31, 1 }
  0x87   : > { %v719_v41 = vsel %vm461_vm1, %v717_v21, %v718_v38 }
  0x89   : > { %730 = vrot.lane.b32.xlu1 %v485_v6, %s1341_s18  ;;  %617 = vrot.lane.b32.xlu0 %v602_v32, %s1337_s17 }
  0x8d   : > { %655 = vrot.lane.b32.xlu1 %v640_v35, %s1338_s27  ;;  %500 = vrot.lane.b32.xlu0 %v485_v6, %s1335_s8 }
  0x8f   : > { %v569_v39 = vpop.permute.xlu1 %568  ;;  %v567_v40 = vpop.permute.xlu0 %566 }
  0x91   : > { %695 = vrot.lane.b32.xlu0 %v358_v24, %s1340_s12  ;;  %697 = vrot.lane.b32.xlu1 %v361_v31, %s1340_s12 }
  0x93   : > { %v604_v42 = vpop.permute.xlu1 %603  ;;  %v423_v43 = vpop.permute.xlu0 %422 }
  0x94   : > { %446 = vst.msk [vmem:[#allocation3 + $0x18] sm:$0xff] %vm444_vm3, %v423_v43 }
  0x95   : > { %732 = vrot.lane.b32.xlu0 %v602_v32, %s1341_s18  ;;  %734 = vrot.lane.b32.xlu1 %v719_v41, %s1341_s18 }
  0x97   : > { %v642_v44 = vpop.permute.xlu1 %641  ;;  %v525_v45 = vpop.permute.xlu0 %524 }
  0x98   : > { %668 = vst.msk [vmem:[#allocation3 + $0x10] sm:$0xff] %vm667_vm5, %v642_v44 }
  0x99   : > { %549 = vst.msk [vmem:[#allocation3] sm:$0xff] %vm548_vm6, %v525_v45 }
  0x9a   : > { %551 = vst.msk [vmem:[#allocation3 + $0x8] sm:$0xff] %vm550_vm7, %v525_v45 }
  0x9b   : > { %591 = vst.msk [vmem:[#allocation3 + $0x8] sm:$0xff] %vm590_vm8, %v567_v40  ;;  %v606_v46 = vpop.permute.xlu1 %605  ;;  %v527_v47 = vpop.permute.xlu0 %526 }
  0x9c   : > { %628 = vst.msk [vmem:[#allocation3 + $0x8] sm:$0xff] %vm627_vm9, %v604_v42 }
  0x9d   : > { %666 = vst.msk [vmem:[#allocation3 + $0x8] sm:$0xff] %vm665_vm10, %v642_v44 }
  0x9e   : > { %553 = vst.msk [vmem:[#allocation3 + $0x20] sm:$0xff] %vm550_vm7, %v527_v47 }
  0x9f   : > { %592 = vst.msk [vmem:[#allocation3 + $0x20] sm:$0xff] %vm590_vm8, %v569_v39  ;;  %v644_v49 = vpop.permute.xlu1 %643  ;;  %v489_v51 = vpop.permute.xlu0 %488 }
  0xa0   : > { %629 = vst.msk [vmem:[#allocation3 + $0x20] sm:$0xff] %vm627_vm9, %v606_v46  ;;  %v753_v55 = vld [vmem:[#allocation3] sm:$0xff] }
  0xa1   : > { %669 = vst.msk [vmem:[#allocation3 + $0x20] sm:$0xff] %vm665_vm10, %v644_v49 }
  0xa2   : > { %670 = vst.msk [vmem:[#allocation3 + $0x28] sm:$0xff] %vm667_vm5, %v644_v49 }
  0xa3   : > { %512 = vst.msk [vmem:[#allocation3 + $0x18] sm:$0xff] %vm510_vm4, %v489_v51  ;;  %v571_v53 = vpop.permute.xlu1 %570  ;;  %v529_v54 = vpop.permute.xlu0 %528 }
  0xa4   : > { %552 = vst.msk [vmem:[#allocation3 + $0x18] sm:$0xff] %vm548_vm6, %v527_v47  ;;  %v754_v52 = vld [vmem:[#allocation3 + $0x8] sm:$0xff] }
  0xa5   : > { %866 = vmatprep.mubr.f32.mxu0 %v754_v52  ;;  %555 = vst.msk [vmem:[#allocation3 + $0x38] sm:$0xff] %vm550_vm7, %v529_v54 }
  0xa6   : > { %867 = vmatmul.mubr.f32.vlgmr.msra.gmra.mrb[0].mxu0 %v753_v55  ;;  %593 = vst.msk [vmem:[#allocation3 + $0x38] sm:$0xff] %vm590_vm8, %v571_v53 }
  0xa7   : > { %v608_v56 = vpop.permute.xlu1 %607  ;;  %v425_v57 = vpop.permute.xlu0 %424 }
  0xa8   : > { %v757_v58 = vld [vmem:[#allocation3 + $0x20] sm:$0xff]  ;;  %630 = vst.msk [vmem:[#allocation3 + $0x38] sm:$0xff] %vm627_vm9, %v608_v56 }
  0xa9   : > { %447 = vst.msk [vmem:[#allocation3 + $0x30] sm:$0xff] %vm444_vm3, %v425_v57  ;;  %871 = vmatprep.mubr.f32.mxu0 %v757_v58 }
  0xab   : > { %v756_v59 = vld [vmem:[#allocation3 + $0x18] sm:$0xff]  ;;  %v646_v60 = vpop.permute.xlu1 %645  ;;  %v491_v61 = vpop.permute.xlu0 %490 }
  0xac   : > { %872 = vmatmul.mubr.f32.gmra.mrb[2].mxu0 %v756_v59  ;;  %671 = vst.msk [vmem:[#allocation3 + $0x38] sm:$0xff] %vm665_vm10, %v646_v60 }
  0xad   : > { %672 = vst.msk [vmem:[#allocation3 + $0x40] sm:$0xff] %vm667_vm5, %v646_v60 }
  0xae   : > { %513 = vst.msk [vmem:[#allocation3 + $0x30] sm:$0xff] %vm510_vm4, %v491_v61 }
  0xaf   : > { %554 = vst.msk [vmem:[#allocation3 + $0x30] sm:$0xff] %vm548_vm6, %v529_v54  ;;  %v573_v62 = vpop.permute.xlu1 %572  ;;  %v531_v63 = vpop.permute.xlu0 %530 }
  0xb0   : > { %557 = vst.msk [vmem:[#allocation3 + $0x50] sm:$0xff] %vm550_vm7, %v531_v63 }
  0xb1   : > { %594 = vst.msk [vmem:[#allocation3 + $0x50] sm:$0xff] %vm590_vm8, %v573_v62 }
  0xb3   : > { %v610_v0 = vpop.permute.xlu1 %609  ;;  %v427_v1 = vpop.permute.xlu0 %426  ;;  %v760_v2 = vld [vmem:[#allocation3 + $0x38] sm:$0xff] }
  0xb4   : > { %631 = vst.msk [vmem:[#allocation3 + $0x50] sm:$0xff] %vm627_vm9, %v610_v0  ;;  %876 = vmatprep.mubr.f32.mxu0 %v760_v2 }
  0xb5   : > { %448 = vst.msk [vmem:[#allocation3 + $0x48] sm:$0xff] %vm444_vm3, %v427_v1 }
  0xb6   : > { %v759_v3 = vld [vmem:[#allocation3 + $0x30] sm:$0xff] }
  0xb7   : > { %877 = vmatmul.mubr.f32.gmra.mrb[4].mxu0 %v759_v3  ;;  %v648_v4 = vpop.permute.xlu1 %647  ;;  %v493_v5 = vpop.permute.xlu0 %492 }
  0xb8   : > { %673 = vst.msk [vmem:[#allocation3 + $0x50] sm:$0xff] %vm665_vm10, %v648_v4 }
  0xb9   : > { %674 = vst.msk [vmem:[#allocation3 + $0x58] sm:$0xff] %vm667_vm5, %v648_v4 }
  0xba   : > { %514 = vst.msk [vmem:[#allocation3 + $0x48] sm:$0xff] %vm510_vm4, %v493_v5 }
  0xbb   : > { %556 = vst.msk [vmem:[#allocation3 + $0x48] sm:$0xff] %vm548_vm6, %v531_v63  ;;  %v575_v7 = vpop.permute.xlu1 %574  ;;  %v533_v8 = vpop.permute.xlu0 %532 }
  0xbc   : > { %559 = vst.msk [vmem:[#allocation3 + $0x68] sm:$0xff] %vm550_vm7, %v533_v8 }
  0xbd   : > { %595 = vst.msk [vmem:[#allocation3 + $0x68] sm:$0xff] %vm590_vm8, %v575_v7 }
  0xbf   : > { %v612_v9 = vpop.permute.xlu1 %611  ;;  %v429_v10 = vpop.permute.xlu0 %428  ;;  %v763_v12 = vld [vmem:[#allocation3 + $0x50] sm:$0xff] }
  0xc0   : > { %632 = vst.msk [vmem:[#allocation3 + $0x68] sm:$0xff] %vm627_vm9, %v612_v9  ;;  %881 = vmatprep.mubr.f32.mxu0 %v763_v12 }
  0xc1   : > { %449 = vst.msk [vmem:[#allocation3 + $0x60] sm:$0xff] %vm444_vm3, %v429_v10 }
  0xc2   : > { %v762_v13 = vld [vmem:[#allocation3 + $0x48] sm:$0xff] }
  0xc3   : > { %882 = vmatmul.mubr.f32.gmra.mrb[6].mxu0 %v762_v13  ;;  %v650_v14 = vpop.permute.xlu1 %649  ;;  %v495_v15 = vpop.permute.xlu0 %494 }
  0xc4   : > { %675 = vst.msk [vmem:[#allocation3 + $0x68] sm:$0xff] %vm665_vm10, %v650_v14 }
  0xc5   : > { %676 = vst.msk [vmem:[#allocation3 + $0x70] sm:$0xff] %vm667_vm5, %v650_v14 }
  0xc6   : > { %515 = vst.msk [vmem:[#allocation3 + $0x60] sm:$0xff] %vm510_vm4, %v495_v15 }
  0xc7   : > { %558 = vst.msk [vmem:[#allocation3 + $0x60] sm:$0xff] %vm548_vm6, %v533_v8  ;;  %v684_v17 = vpop.permute.xlu1 %683  ;;  %v535_v18 = vpop.permute.xlu0 %534 }
  0xc8   : > { %708 = vst.msk [vmem:[#allocation3 + $0x10] sm:$0xff] %vm707_vm11, %v684_v17 }
  0xc9   : > { %561 = vst.msk [vmem:[#allocation3 + $0x80] sm:$0xff] %vm550_vm7, %v535_v18 }
  0xcb   : > { %v686_v19 = vpop.permute.xlu1 %685  ;;  %v577_v48 = vpop.permute.xlu0 %576  ;;  %v766_v50 = vld [vmem:[#allocation3 + $0x68] sm:$0xff] }
  0xcc   : > { %709 = vst.msk [vmem:[#allocation3 + $0x28] sm:$0xff] %vm707_vm11, %v686_v19  ;;  %886 = vmatprep.mubr.f32.mxu0 %v766_v50  ;;  %v1131_v19 = vld [vmem:[%s1870_s2] ss:$0 sm:$0xff] }
  0xcd   : > { %596 = vst.msk [vmem:[#allocation3 + $0x80] sm:$0xff] %vm590_vm8, %v577_v48 }
  0xce   : > { %v765_v20 = vld [vmem:[#allocation3 + $0x60] sm:$0xff] }
  0xcf   : > { %887 = vmatmul.mubr.f32.gmra.mrb[8].mxu0 %v765_v20  ;;  %v431_v22 = vpop.permute.xlu1 %430  ;;  %v721_v23 = vpop.permute.xlu0 %720  ;;  %v1132_v20 = vld [vmem:[%s1871_s3] ss:$0 sm:$0xff] }
  0xd0   : > { %450 = vst.msk [vmem:[#allocation3 + $0x78] sm:$0xff] %vm444_vm3, %v431_v22 }
  0xd1   : > { %745 = vst.msk [vmem:[#allocation3 + $0x10] sm:$0xff] %vm744_vm12, %v721_v23 }
  0xd3   : > { %v723_v24 = vpop.permute.xlu1 %722  ;;  %v614_v6 = vpop.permute.xlu0 %613 }
  0xd4   : > { %746 = vst.msk [vmem:[#allocation3 + $0x28] sm:$0xff] %vm744_vm12, %v723_v24 }
  0xd5   : > { %633 = vst.msk [vmem:[#allocation3 + $0x80] sm:$0xff] %vm627_vm9, %v614_v6 }
  0xd7   : > { %v652_v25 = vpop.permute.xlu1 %651  ;;  %v497_v26 = vpop.permute.xlu0 %496 }
  0xd8   : > { %v755_v11 = vld [vmem:[#allocation3 + $0x10] sm:$0xff]  ;;  %677 = vst.msk [vmem:[#allocation3 + $0x80] sm:$0xff] %vm665_vm10, %v652_v25 }
  0xd9   : > { %678 = vst.msk [vmem:[#allocation3 + $0x88] sm:$0xff] %vm667_vm5, %v652_v25  ;;  %1240 = vmatprep.mubr.msk.f32.mxu1 %vm777_vm13, %v755_v11 }
  0xda   : > { %516 = vst.msk [vmem:[#allocation3 + $0x78] sm:$0xff] %vm510_vm4, %v497_v26 }
  0xdb   : > { %560 = vst.msk [vmem:[#allocation3 + $0x78] sm:$0xff] %vm548_vm6, %v535_v18  ;;  %v688_v27 = vpop.permute.xlu1 %687  ;;  %v758_v28 = vld [vmem:[#allocation3 + $0x28] sm:$0xff]  ;;  %v537_v29 = vpop.permute.xlu0 %536 }
  0xdc   : > { %710 = vst.msk [vmem:[#allocation3 + $0x40] sm:$0xff] %vm707_vm11, %v688_v27  ;;  %1241 = vmatmul.mubr.msk.f32.vlgmr.msra.gmra.mrb[0].mxu1 %vm777_vm13, %v758_v28 }
  0xdd   : > { %563 = vst.msk [vmem:[#allocation3 + $0x98] sm:$0xff] %vm550_vm7, %v537_v29 }
  0xdf   : > { %v690_v30 = vpop.permute.xlu1 %689  ;;  %v579_v31 = vpop.permute.xlu0 %578  ;;  %v769_v32 = vld [vmem:[#allocation3 + $0x80] sm:$0xff] }
  0xe0   : > { %711 = vst.msk [vmem:[#allocation3 + $0x58] sm:$0xff] %vm707_vm11, %v690_v30  ;;  %891 = vmatprep.mubr.f32.mxu0 %v769_v32 }
  0xe1   : > { %597 = vst.msk [vmem:[#allocation3 + $0x98] sm:$0xff] %vm590_vm8, %v579_v31 }
  0xe2   : > { %v768_v16 = vld [vmem:[#allocation3 + $0x78] sm:$0xff] }
  0xe3   : > { %892 = vmatmul.mubr.f32.gmra.mrb[10].mxu0 %v768_v16  ;;  %v433_v33 = vpop.permute.xlu1 %432  ;;  %v725_v34 = vpop.permute.xlu0 %724 }
  0xe4   : > { %451 = vst.msk [vmem:[#allocation3 + $0x90] sm:$0xff] %vm444_vm3, %v433_v33 }
  0xe5   : > { %747 = vst.msk [vmem:[#allocation3 + $0x40] sm:$0xff] %vm744_vm12, %v725_v34 }
  0xe7   : > { %v727_v35 = vpop.permute.xlu1 %726  ;;  %v616_v36 = vpop.permute.xlu0 %615 }
  0xe8   : > { %748 = vst.msk [vmem:[#allocation3 + $0x58] sm:$0xff] %vm744_vm12, %v727_v35 }
  0xe9   : > { %634 = vst.msk [vmem:[#allocation3 + $0x98] sm:$0xff] %vm627_vm9, %v616_v36 }
  0xeb   : > { %v654_v37 = vpop.permute.xlu1 %653  ;;  %v499_v21 = vpop.permute.xlu0 %498 }
  0xec   : > { %v761_v38 = vld [vmem:[#allocation3 + $0x40] sm:$0xff]  ;;  %679 = vst.msk [vmem:[#allocation3 + $0x98] sm:$0xff] %vm665_vm10, %v654_v37 }
  0xed   : > { %680 = vst.msk [vmem:[#allocation3 + $0xa0] sm:$0xff] %vm667_vm5, %v654_v37  ;;  %1243 = vmatprep.mubr.msk.f32.mxu1 %vm777_vm13, %v761_v38 }
  0xee   : > { %517 = vst.msk [vmem:[#allocation3 + $0x90] sm:$0xff] %vm510_vm4, %v499_v21 }
  0xef   : > { %562 = vst.msk [vmem:[#allocation3 + $0x90] sm:$0xff] %vm548_vm6, %v537_v29  ;;  %v692_v39 = vpop.permute.xlu1 %691  ;;  %v764_v40 = vld [vmem:[#allocation3 + $0x58] sm:$0xff]  ;;  %v539_v41 = vpop.permute.xlu0 %538 }
  0xf0   : > { %712 = vst.msk [vmem:[#allocation3 + $0x70] sm:$0xff] %vm707_vm11, %v692_v39  ;;  %1244 = vmatmul.mubr.msk.f32.gmra.mrb[2].mxu1 %vm777_vm13, %v764_v40 }
  0xf1   : > { %565 = vst.msk [vmem:[#allocation3 + $0xb0] sm:$0xff] %vm550_vm7, %v539_v41 }
  0xf3   : > { %v694_v42 = vpop.permute.xlu1 %693  ;;  %v581_v43 = vpop.permute.xlu0 %580  ;;  %v772_v44 = vld [vmem:[#allocation3 + $0x98] sm:$0xff] }
  0xf4   : > { %713 = vst.msk [vmem:[#allocation3 + $0x88] sm:$0xff] %vm707_vm11, %v694_v42  ;;  %896 = vmatprep.mubr.f32.mxu0 %v772_v44 }
  0xf5   : > { %598 = vst.msk [vmem:[#allocation3 + $0xb0] sm:$0xff] %vm590_vm8, %v581_v43 }
  0xf6   : > { %v771_v45 = vld [vmem:[#allocation3 + $0x90] sm:$0xff] }
  0xf7   : > { %897 = vmatmul.mubr.f32.gmra.mrb[12].mxu0 %v771_v45  ;;  %v435_v46 = vpop.permute.xlu1 %434  ;;  %v729_v47 = vpop.permute.xlu0 %728 }
  0xf8   : > { %452 = vst.msk [vmem:[#allocation3 + $0xa8] sm:$0xff] %vm444_vm3, %v435_v46 }
  0xf9   : > { %749 = vst.msk [vmem:[#allocation3 + $0x70] sm:$0xff] %vm744_vm12, %v729_v47 }
  0xfb   : > { %v731_v49 = vpop.permute.xlu1 %730  ;;  %v618_v51 = vpop.permute.xlu0 %617 }
  0xfc   : > { %750 = vst.msk [vmem:[#allocation3 + $0x88] sm:$0xff] %vm744_vm12, %v731_v49 }
  0xfd   : > { %635 = vst.msk [vmem:[#allocation3 + $0xb0] sm:$0xff] %vm627_vm9, %v618_v51 }
  0xff   : > { %v656_v52 = vpop.permute.xlu1 %655  ;;  %v501_v53 = vpop.permute.xlu0 %500 }
 0x100   : > { %v767_v54 = vld [vmem:[#allocation3 + $0x70] sm:$0xff]  ;;  %681 = vst.msk [vmem:[#allocation3 + $0xb0] sm:$0xff] %vm665_vm10, %v656_v52 }
 0x101   : > { %682 = vst.msk [vmem:[#allocation3 + $0xb8] sm:$0xff] %vm667_vm5, %v656_v52  ;;  %1246 = vmatprep.mubr.msk.f32.mxu1 %vm777_vm13, %v767_v54 }
 0x102   : > { %518 = vst.msk [vmem:[#allocation3 + $0xa8] sm:$0xff] %vm510_vm4, %v501_v53 }
 0x103   : > { %564 = vst.msk [vmem:[#allocation3 + $0xa8] sm:$0xff] %vm548_vm6, %v539_v41  ;;  %v770_v55 = vld [vmem:[#allocation3 + $0x88] sm:$0xff]  ;;  %v696_v56 = vpop.permute.xlu0 %695  ;;  %v698_v57 = vpop.permute.xlu1 %697 }
 0x104   : > { %1247 = vmatmul.mubr.msk.f32.gmra.mrb[4].mxu1 %vm777_vm13, %v770_v55  ;;  %714 = vst.msk [vmem:[#allocation3 + $0xa0] sm:$0xff] %vm707_vm11, %v696_v56  ;;  %715 = vst.msk [vmem:[#allocation3 + $0xb8] sm:$0xff] %vm707_vm11, %v698_v57 }
 0x107   : > { %v733_v58 = vpop.permute.xlu0 %732  ;;  %v735_v59 = vpop.permute.xlu1 %734  ;;  %v775_v60 = vld [vmem:[#allocation3 + $0xb0] sm:$0xff] }
 0x108   : > { %751 = vst.msk [vmem:[#allocation3 + $0xa0] sm:$0xff] %vm744_vm12, %v733_v58  ;;  %752 = vst.msk [vmem:[#allocation3 + $0xb8] sm:$0xff] %vm744_vm12, %v735_v59  ;;  %901 = vmatprep.mubr.f32.mxu0 %v775_v60 }
 0x10a   : > { %v774_v61 = vld [vmem:[#allocation3 + $0xa8] sm:$0xff] }
 0x10b   : > { %902 = vmatmul.mubr.f32.gmra.mrb[14].mxu0 %v774_v61 }
 0x10f   : > { %v773_v62 = vld [vmem:[#allocation3 + $0xa0] sm:$0xff]  ;;  %v776_v63 = vld [vmem:[#allocation3 + $0xb8] sm:$0xff] }
 0x110   : > { %1249 = vmatprep.mubr.msk.f32.mxu1 %vm777_vm13, %v773_v62 }
 0x111   : > { %1250 = vmatmul.mubr.msk.f32.gmra.mrb[6].mxu1 %vm777_vm13, %v776_v63 }
 0x179   : > { %v1169_v0 = vpop.f32.mrb[0].mxu0 }
 0x17a   : > { %v1170_v1 = vpop.f32.mrb[1].mxu0 }
 0x17b   : > { %v1171_v2 = vadd.f32 %v1170_v1, %v1169_v0 }
 0x17f   : > { %v1172_v3 = vpop.f32.mrb[2].mxu0 }
 0x180   : > { %v1173_v4 = vpop.f32.mrb[3].mxu0 }
 0x181   : > { %v1174_v5 = vadd.f32 %v1173_v4, %v1172_v3 }
 0x18a   : > { %v1175_v7 = vpop.f32.mrb[4].mxu0 }
 0x18b   : > { %v1176_v8 = vpop.f32.mrb[5].mxu0 }
 0x18c   : > { %v1177_v9 = vadd.f32 %v1176_v8, %v1175_v7 }
 0x196   : > { %v1178_v10 = vpop.f32.mrb[6].mxu0 }
 0x197   : > { %v1179_v12 = vpop.f32.mrb[7].mxu0 }
 0x198   : > { %v1180_v13 = vadd.f32 %v1179_v12, %v1178_v10 }
 0x1a2   : > { %v1181_v14 = vpop.f32.mrb[8].mxu0 }
 0x1a3   : > { %v1182_v15 = vpop.f32.mrb[9].mxu0 }
 0x1a4   : > { %v1183_v17 = vadd.f32 %v1182_v15, %v1181_v14 }
 0x1af   : > { %v1242_v18 = vpop.f32.mrb[0].mxu1 }
 0x1b0   : > { %v979_v48 = vadd.f32 %v1242_v18, %v1174_v5  ;;  %v973_v50 = vpop.f32.mrb[1].mxu1 }
 0x1b1   : > { %v974_v22 = vadd.f32 %v1171_v2, %v973_v50 }
 0x1b2   : > { %v1020_v23 = vmul.f32 %v1131_v19, %v979_v48 }
 0x1b3   : > { %v1019_v24 = vmul.f32 %v1131_v19, %v974_v22 }
 0x1b4   : > { %v1035_v6 = vadd.f32 %v1132_v20, %v1020_v23 }
 0x1b5   : > { %v1034_v26 = vadd.f32 %v1132_v20, %v1019_v24 }
 0x1b6   : > { %v1184_v25 = vpop.f32.mrb[10].mxu0  ;;  %v1043_v27 = vmax.f32 %v1035_v6, 0.0 }
 0x1b7   : > { %v1185_v11 = vpop.f32.mrb[11].mxu0  ;;  %v1042_v29 = vmax.f32 %v1034_v26, 0.0 }
 0x1b8   : > { %v1186_v28 = vadd.f32 %v1185_v11, %v1184_v25  ;;  %1052 = vst.msk [vmem:[%s1847_s19 + $0x8] sm:$0xff] %vm1050_vm14, %v1043_v27 }
 0x1b9   : > { %1051 = vst.msk [vmem:[%s1847_s19] sm:$0xff] %vm1050_vm14, %v1042_v29 }
 0x1c3   : > { %v1245_v30 = vpop.f32.mrb[2].mxu1 }
 0x1c4   : > { %v989_v31 = vadd.f32 %v1245_v30, %v1180_v13  ;;  %v983_v32 = vpop.f32.mrb[3].mxu1 }
 0x1c5   : > { %v984_v16 = vadd.f32 %v1177_v9, %v983_v32 }
 0x1c6   : > { %v1022_v33 = vmul.f32 %v1131_v19, %v989_v31 }
 0x1c7   : > { %v1021_v34 = vmul.f32 %v1131_v19, %v984_v16 }
 0x1c8   : > { %v1037_v35 = vadd.f32 %v1132_v20, %v1022_v33 }
 0x1c9   : > { %v1036_v37 = vadd.f32 %v1132_v20, %v1021_v34 }
 0x1ca   : > { %v1187_v36 = vpop.f32.mrb[12].mxu0  ;;  %v1045_v38 = vmax.f32 %v1037_v35, 0.0 }
 0x1cb   : > { %v1188_v21 = vpop.f32.mrb[13].mxu0  ;;  %v1044_v40 = vmax.f32 %v1036_v37, 0.0 }
 0x1cc   : > { %v1189_v39 = vadd.f32 %v1188_v21, %v1187_v36  ;;  %1054 = vst.msk [vmem:[%s1847_s19 + $0x18] sm:$0xff] %vm1050_vm14, %v1045_v38 }
 0x1cd   : > { %1053 = vst.msk [vmem:[%s1847_s19 + $0x10] sm:$0xff] %vm1050_vm14, %v1044_v40 }
 0x1d7   : > { %v1248_v41 = vpop.f32.mrb[4].mxu1 }
 0x1d8   : > { %v999_v42 = vadd.f32 %v1248_v41, %v1186_v28  ;;  %v993_v43 = vpop.f32.mrb[5].mxu1 }
 0x1d9   : > { %v994_v44 = vadd.f32 %v1183_v17, %v993_v43 }
 0x1da   : > { %v1024_v45 = vmul.f32 %v1131_v19, %v999_v42 }
 0x1db   : > { %v1023_v46 = vmul.f32 %v1131_v19, %v994_v44 }
 0x1dc   : > { %v1039_v47 = vadd.f32 %v1132_v20, %v1024_v45 }
 0x1dd   : > { %v1038_v51 = vadd.f32 %v1132_v20, %v1023_v46 }
 0x1de   : > { %v1190_v49 = vpop.f32.mrb[14].mxu0  ;;  %v1047_v53 = vmax.f32 %v1039_v47, 0.0 }
 0x1df   : > { %v1191_v52 = vpop.f32.mrb[15].mxu0  ;;  %v1046_v55 = vmax.f32 %v1038_v51, 0.0 }
 0x1e0   : > { %v1192_v54 = vadd.f32 %v1191_v52, %v1190_v49  ;;  %1056 = vst.msk [vmem:[%s1847_s19 + $0x28] sm:$0xff] %vm1050_vm14, %v1047_v53 }
 0x1e1   : > { %1055 = vst.msk [vmem:[%s1847_s19 + $0x20] sm:$0xff] %vm1050_vm14, %v1046_v55 }
 0x1e4   : > { %v1251_v56 = vpop.f32.mrb[6].mxu1 }
 0x1e5   : > { %v1009_v57 = vadd.f32 %v1251_v56, %v1192_v54  ;;  %v1003_v58 = vpop.f32.mrb[7].mxu1 }
 0x1e6   : > { %v1004_v59 = vadd.f32 %v1189_v39, %v1003_v58 }
 0x1e7   : > { %v1026_v60 = vmul.f32 %v1131_v19, %v1009_v57 }
 0x1e8   : > { %v1025_v61 = vmul.f32 %v1131_v19, %v1004_v59 }
 0x1e9   : > { %v1041_v62 = vadd.f32 %v1132_v20, %v1026_v60 }
 0x1ea   : > { %v1040_v63 = vadd.f32 %v1132_v20, %v1025_v61 }
 0x1eb   : > { %v1049_v0 = vmax.f32 %v1041_v62, 0.0 }
 0x1ec   : > { %v1048_v1 = vmax.f32 %v1040_v63, 0.0 }
 0x1ed   : > { %1058 = vst.msk [vmem:[%s1847_s19 + $0x38] sm:$0xff] %vm1050_vm14, %v1049_v0 }
 0x1ee   : > { %1057 = vst.msk [vmem:[%s1847_s19 + $0x30] sm:$0xff] %vm1050_vm14, %v1048_v1 }
 0x1ef PF: > { %s14_s15 = sadd.s32 1, %s1331_s15  }
 0x1f0   : > { %p11_p4 = scmp.ge.s32.totalorder %s14_s15, 4  }
 0x1f2   :  { %13 = sbr.rel (!%p11_p4) target bundleno = 1 (0x1), region = 67 }

// kernel: dam_criss_forward.4
= control target key start
LH: loop header
LB: loop body
LE: loop exit
PB: predicated region body
PF: predicated region fallthrough
CT: control target
= control target key end

     0   :  { %s3405_s9 = smov 0   ;;  %s5400_s0 = inlined_call_operand.vmem [shape: f32[2,8,8,8], index: 0, kind: input, shape index: {}]   ;;  %s5401_s1 = inlined_call_operand.vmem [shape: f32[4,72,8], index: 1, kind: input, shape index: {}]   ;;  %s5402_s2 = inlined_call_operand.vmem [shape: f32[2,8,8,40], index: 2, kind: output, shape index: {}]  }
   0x1 LB: > { %s3030_s10 = sadd.s32 4294967295, %s3379_s9   ;;  %p3034_p0 = scmp.ge.s32.totalorder %s3379_s9, 1  ;;  %s3379_s9 = sphi %s3405_s9, %s12_s9  }
   0x2   : > { %p112_p1 = scmp.lt.s32.totalorder %s3379_s9, 3 }
   0x4   : > { %p113_p2 = pnand %p3034_p0, %p112_p1 }
   0x6   : > { %116 = sbr.rel (%p113_p2) target bundleno = 1845 (0x735), region = 28 }
   0xd   : > { %vm5403_vm0 = vcmask 64512   ;;  %v3381_v0 = vmov 0.0   ;;  %p134_p3 = scmp.lt.s32.totalorder %s3030_s10, 1  ;;  %vm283_vm1 = vcmask 63488   ;;  %vm281_vm2 = vcmask 64519   ;;  %s3382_s18 = smov 16  }
   0xe   : > { %167 = vst.msk [vmem:[#allocation2 + $0xb0] sm:$0xff] %vm5403_vm0, %v3381_v0  ;;  %145 = vst.msk [vmem:[#allocation2] sm:$0xff] %vm5403_vm0, %v3381_v0  ;;  %s3383_s19 = smov 8   ;;  %s3384_s20 = smov 24   ;;  %v242_v29 = vld [vmem:[%s5401_s1] sm:$0xff]  ;;  %v243_v30 = vld [vmem:[%s5401_s1 + $0x8] sm:$0xff] }
   0xf   : > { %146 = vst.msk [vmem:[#allocation2 + $0x8] sm:$0xff] %vm5403_vm0, %v3381_v0  ;;  %147 = vst.msk [vmem:[#allocation2 + $0x10] sm:$0xff] %vm5403_vm0, %v3381_v0  ;;  %s5500_s10 = smov (!%p134_p3, %s3030_s10), 1  ;;  %s3385_s21 = smov 32   ;;  %v3290_v31 = vpack.c.bf16 %v243_v30, %v242_v29  ;;  %v244_v32 = vld [vmem:[%s5401_s1 + $0x10] sm:$0xff]  ;;  %v245_v33 = vld [vmem:[%s5401_s1 + $0x18] sm:$0xff] }
  0x10   : > { %148 = vst.msk [vmem:[#allocation2 + $0x18] sm:$0xff] %vm5403_vm0, %v3381_v0  ;;  %149 = vst.msk [vmem:[#allocation2 + $0x20] sm:$0xff] %vm5403_vm0, %v3381_v0  ;;  %s3100_s11 = sshll.u32 %s5500_s10, 6  ;;  %s3386_s22 = smov 40   ;;  %v3294_v34 = vpack.c.bf16 %v245_v33, %v244_v32  ;;  %v246_v35 = vld [vmem:[%s5401_s1 + $0x20] sm:$0xff]  ;;  %v247_v36 = vld [vmem:[%s5401_s1 + $0x28] sm:$0xff] }
  0x11   : > { %150 = vst.msk [vmem:[#allocation2 + $0x28] sm:$0xff] %vm5403_vm0, %v3381_v0  ;;  %151 = vst.msk [vmem:[#allocation2 + $0x30] sm:$0xff] %vm5403_vm0, %v3381_v0  ;;  %s3564_s14 = scalar_lea.vmem %s5400_s0, %s3100_s11  ;;  %s3569_s17 = scalar_lea.vmem %s5402_s2, %s3100_s11  ;;  %3291 = vmatprep.subr.bf16.mxu0 %v3290_v31  ;;  %v3298_v37 = vpack.c.bf16 %v247_v36, %v246_v35  ;;  %v248_v38 = vld [vmem:[%s5401_s1 + $0x30] sm:$0xff]  ;;  %v249_v39 = vld [vmem:[%s5401_s1 + $0x38] sm:$0xff]  ;;  %vm331_vm3 = vcmask 130112   ;;  %vm396_vm4 = vcmask 195713  }
  0x12   : > { %152 = vst.msk [vmem:[#allocation2 + $0x38] sm:$0xff] %vm5403_vm0, %v3381_v0  ;;  %153 = vst.msk [vmem:[#allocation2 + $0x40] sm:$0xff] %vm5403_vm0, %v3381_v0  ;;  %v217_v1 = vld [vmem:[%s3564_s14] sm:$0xff]  ;;  %v218_v2 = vld [vmem:[%s3564_s14 + $0x8] sm:$0xff]  ;;  %s3387_s23 = smov 48   ;;  %s3388_s28 = smov 56   ;;  %3293 = vmatpush3.bf16.msra.mxu0 %v3290_v31  ;;  %v3302_v40 = vpack.c.bf16 %v249_v39, %v248_v38 }
  0x13   : > { %154 = vst.msk [vmem:[#allocation2 + $0x48] sm:$0xff] %vm5403_vm0, %v3381_v0  ;;  %155 = vst.msk [vmem:[#allocation2 + $0x50] sm:$0xff] %vm5403_vm0, %v3381_v0  ;;  %v219_v3 = vld [vmem:[%s3564_s14 + $0x10] sm:$0xff]  ;;  %v220_v10 = vld [vmem:[%s3564_s14 + $0x18] sm:$0xff]  ;;  %3295 = vmatprep.subr.bf16.mxu0 %v3294_v34  ;;  %s3389_s10 = smov 64   ;;  %vm398_vm5 = vcmask 188544  }
  0x14   : > { %156 = vst.msk [vmem:[#allocation2 + $0x58] sm:$0xff] %vm5403_vm0, %v3381_v0  ;;  %157 = vst.msk [vmem:[#allocation2 + $0x60] sm:$0xff] %vm5403_vm0, %v3381_v0  ;;  %v221_v11 = vld [vmem:[%s3564_s14 + $0x20] sm:$0xff]  ;;  %v222_v14 = vld [vmem:[%s3564_s14 + $0x28] sm:$0xff]  ;;  %vm471_vm6 = vcmask 261319   ;;  %vm473_vm7 = vcmask 260288  }
  0x15   : > { %158 = vst.msk [vmem:[#allocation2 + $0x68] sm:$0xff] %vm5403_vm0, %v3381_v0  ;;  %159 = vst.msk [vmem:[#allocation2 + $0x70] sm:$0xff] %vm5403_vm0, %v3381_v0  ;;  %v252_v4 = vld [vmem:[#allocation2 + $0xb0] sm:$0xff]  ;;  %v224_v26 = vld [vmem:[%s3564_s14 + $0x38] sm:$0xff]  ;;  %vm513_vm8 = vcmask 326912   ;;  %vm571_vm9 = vcmask 392513  }
  0x16   : > { %160 = vst.msk [vmem:[#allocation2 + $0x78] sm:$0xff] %vm5403_vm0, %v3381_v0  ;;  %161 = vst.msk [vmem:[#allocation2 + $0x80] sm:$0xff] %vm5403_vm0, %v3381_v0  ;;  %348 = vrot.lane.b32.xlu1 %v252_v4, %s3382_s18  ;;  %307 = vrot.lane.b32.xlu0 %v252_v4, %s3383_s19  ;;  %v223_v16 = vld [vmem:[%s3564_s14 + $0x30] sm:$0xff]  ;;  %v250_v41 = vld [vmem:[%s5401_s1 + $0x40] sm:$0xff]  ;;  %vm573_vm10 = vcmask 385344   ;;  %vm641_vm11 = vcmask 457088  }
  0x17   : > { %162 = vst.msk [vmem:[#allocation2 + $0x88] sm:$0xff] %vm5403_vm0, %v3381_v0  ;;  %163 = vst.msk [vmem:[#allocation2 + $0x90] sm:$0xff] %vm5403_vm0, %v3381_v0  ;;  %3297 = vmatpush3.bf16.msra.mxu0 %v3294_v34  ;;  %vm639_vm12 = vcmask 458119   ;;  %vm681_vm13 = vcmask 523712   ;;  %vm739_vm14 = vcmask 589313   ;;  %vm741_vm15 = vcmask 582144  }
  0x18   : > { %164 = vst.msk [vmem:[#allocation2 + $0x98] sm:$0xff] %vm5403_vm0, %v3381_v0  ;;  %165 = vst.msk [vmem:[#allocation2 + $0xa0] sm:$0xff] %vm5403_vm0, %v3381_v0  ;;  %3299 = vmatprep.subr.bf16.mxu0 %v3298_v37 }
  0x19   : > { %166 = vst.msk [vmem:[#allocation2 + $0xa8] sm:$0xff] %vm5403_vm0, %v3381_v0  ;;  %168 = vst.msk [vmem:[#allocation2 + $0xb8] sm:$0xff] %vm5403_vm0, %v3381_v0 }
  0x1a   : > { %169 = vst.msk [vmem:[#allocation2 + $0xc0] sm:$0xff] %vm5403_vm0, %v3381_v0  ;;  %170 = vst.msk [vmem:[#allocation2 + $0xc8] sm:$0xff] %vm5403_vm0, %v3381_v0 }
  0x1b   : > { %171 = vst.msk [vmem:[#allocation2 + $0xd0] sm:$0xff] %vm5403_vm0, %v3381_v0  ;;  %172 = vst.msk [vmem:[#allocation2 + $0xd8] sm:$0xff] %vm5403_vm0, %v3381_v0  ;;  %3301 = vmatpush3.bf16.msra.mxu0 %v3298_v37 }
  0x1c   : > { %173 = vst.msk [vmem:[#allocation2 + $0xe0] sm:$0xff] %vm5403_vm0, %v3381_v0  ;;  %174 = vst.msk [vmem:[#allocation2 + $0xe8] sm:$0xff] %vm5403_vm0, %v3381_v0  ;;  %3303 = vmatprep.subr.bf16.mxu0 %v3302_v40 }
  0x1d   : > { %175 = vst.msk [vmem:[#allocation2 + $0xf0] sm:$0xff] %vm5403_vm0, %v3381_v0  ;;  %176 = vst.msk [vmem:[#allocation2 + $0xf8] sm:$0xff] %vm5403_vm0, %v3381_v0 }
  0x1e   : > { %177 = vst.msk [vmem:[#allocation2 + $0x100] sm:$0xff] %vm5403_vm0, %v3381_v0  ;;  %178 = vst.msk [vmem:[#allocation2 + $0x108] sm:$0xff] %vm5403_vm0, %v3381_v0 }
  0x1f   : > { %179 = vst.msk [vmem:[#allocation2 + $0x110] sm:$0xff] %vm5403_vm0, %v3381_v0  ;;  %180 = vst.msk [vmem:[#allocation2 + $0x118] sm:$0xff] %vm5403_vm0, %v3381_v0  ;;  %3305 = vmatpush3.bf16.msra.mxu0 %v3302_v40 }
  0x20   : > { %181 = vst.msk [vmem:[#allocation2 + $0x120] sm:$0xff] %vm5403_vm0, %v3381_v0  ;;  %182 = vst.msk [vmem:[#allocation2 + $0x128] sm:$0xff] %vm5403_vm0, %v3381_v0  ;;  %v3592_v7 = vld [vmem:[#allocation2 + $0xb8] sm:$0xff]  ;;  %v3625_v15 = vld [vmem:[#allocation2 + $0xa8] sm:$0xff]  ;;  %3186 = vmatprep.subr.mxu0 %v250_v41 }
  0x21   : > { %183 = vst.msk [vmem:[#allocation2 + $0x130] sm:$0xff] %vm5403_vm0, %v3381_v0  ;;  %184 = vst.msk [vmem:[#allocation2 + $0x138] sm:$0xff] %vm5403_vm0, %v3381_v0  ;;  %v3574_v5 = vld [vmem:[#allocation2 + $0xc0] sm:$0xff]  ;;  %350 = vrot.lane.b32.xlu1 %v3592_v7, %s3382_s18 }
  0x22   : > { %185 = vst.msk [vmem:[#allocation2 + $0x140] sm:$0xff] %vm5403_vm0, %v3381_v0  ;;  %186 = vst.msk [vmem:[#allocation2 + $0x148] sm:$0xff] %vm5403_vm0, %v3381_v0  ;;  %v3590_v6 = vld [vmem:[#allocation2 + $0xd8] sm:$0xff]  ;;  %423 = vrot.lane.b32.xlu0 %v3574_v5, %s3384_s20  ;;  %v3628_v17 = vld [vmem:[#allocation2 + $0xd0] sm:$0xff] }
  0x23   : > { %187 = vst.msk [vmem:[#allocation2 + $0x150] sm:$0xff] %vm5403_vm0, %v3381_v0  ;;  %188 = vst.msk [vmem:[#allocation2 + $0x158] sm:$0xff] %vm5403_vm0, %v3381_v0  ;;  %v3690_v27 = vld [vmem:[#allocation2 + $0xe8] sm:$0xff]  ;;  %3187 = vmatpush3.msra.mxu0 %v250_v41 }
  0x24   : > { %189 = vst.msk [vmem:[#allocation2 + $0x160] sm:$0xff] %vm5403_vm0, %v3381_v0  ;;  %190 = vst.msk [vmem:[#allocation2 + $0x168] sm:$0xff] %vm5403_vm0, %v3381_v0  ;;  %v3596_v8 = vld [vmem:[#allocation2 + $0xf0] sm:$0xff] }
  0x25   : > { %191 = vst.msk [vmem:[#allocation2 + $0x170] sm:$0xff] %vm5403_vm0, %v3381_v0  ;;  %192 = vst.msk [vmem:[#allocation2 + $0x178] sm:$0xff] %vm5403_vm0, %v3381_v0  ;;  %v3598_v9 = vld [vmem:[#allocation2 + $0x108] sm:$0xff]  ;;  %354 = vrot.lane.b32.xlu1 %v3628_v17, %s3382_s18  ;;  %v3704_v28 = vld [vmem:[#allocation2 + $0x100] sm:$0xff] }
  0x26   : > { %193 = vst.msk [vmem:[#allocation2 + $0x180] sm:$0xff] %vm5403_vm0, %v3381_v0  ;;  %194 = vst.msk [vmem:[#allocation2 + $0x188] sm:$0xff] %vm5403_vm0, %v3381_v0  ;;  %v3773_v42 = vld [vmem:[#allocation2 + $0x118] sm:$0xff] }
  0x27   : > { %195 = vst.msk [vmem:[#allocation2 + $0x190] sm:$0xff] %vm5403_vm0, %v3381_v0  ;;  %196 = vst.msk [vmem:[#allocation2 + $0x198] sm:$0xff] %vm5403_vm0, %v3381_v0  ;;  %v3612_v12 = vld [vmem:[#allocation2 + $0x120] sm:$0xff] }
  0x28   : > { %197 = vst.msk [vmem:[#allocation2 + $0x1a0] sm:$0xff] %vm5403_vm0, %v3381_v0  ;;  %198 = vst.msk [vmem:[#allocation2 + $0x1a8] sm:$0xff] %vm5403_vm0, %v3381_v0  ;;  %v3614_v13 = vld [vmem:[#allocation2 + $0x138] sm:$0xff]  ;;  %v3787_v43 = vld [vmem:[#allocation2 + $0x130] sm:$0xff] }
  0x29   : > { %199 = vst.msk [vmem:[#allocation2 + $0x1b0] sm:$0xff] %vm5403_vm0, %v3381_v0  ;;  %200 = vst.msk [vmem:[#allocation2 + $0x1b8] sm:$0xff] %vm5403_vm0, %v3381_v0  ;;  %v3839_v54 = vld [vmem:[#allocation2 + $0x148] sm:$0xff] }
  0x2a   : > { %201 = vst.msk [vmem:[#allocation2 + $0x1c0] sm:$0xff] %vm5403_vm0, %v3381_v0  ;;  %202 = vst.msk [vmem:[#allocation2 + $0x1c8] sm:$0xff] %vm5403_vm0, %v3381_v0  ;;  %v3675_v25 = vld [vmem:[#allocation2 + $0x150] sm:$0xff] }
  0x2b   : > { %203 = vst.msk [vmem:[#allocation2 + $0x1d0] sm:$0xff] %vm5403_vm0, %v3381_v0  ;;  %204 = vst.msk [vmem:[#allocation2 + $0x1d8] sm:$0xff] %vm5403_vm0, %v3381_v0  ;;  %v3859_v61 = vld [vmem:[#allocation2 + $0x160] sm:$0xff] }
  0x2c   : > { %205 = vst.msk [vmem:[#allocation2 + $0x1e0] sm:$0xff] %vm5403_vm0, %v3381_v0  ;;  %206 = vst.msk [vmem:[#allocation2 + $0x1e8] sm:$0xff] %vm5403_vm0, %v3381_v0  ;;  %v3919_v31 = vld [vmem:[#allocation2 + $0x178] sm:$0xff] }
  0x2d   : > { %207 = vst.msk [vmem:[#allocation2 + $0x1f0] sm:$0xff] %vm5403_vm0, %v3381_v0  ;;  %208 = vst.msk [vmem:[#allocation2 + $0x1f8] sm:$0xff] %vm5403_vm0, %v3381_v0  ;;  %v3933_v36 = vld [vmem:[#allocation2 + $0x188] sm:$0xff]  ;;  %v3935_v37 = vld [vmem:[#allocation2 + $0x180] sm:$0xff] }
  0x2e   : > { %209 = vst.msk [vmem:[#allocation2 + $0x200] sm:$0xff] %vm5403_vm0, %v3381_v0  ;;  %210 = vst.msk [vmem:[#allocation2 + $0x208] sm:$0xff] %vm5403_vm0, %v3381_v0 }
  0x2f   : > { %211 = vst.msk [vmem:[#allocation2 + $0x210] sm:$0xff] %vm5403_vm0, %v3381_v0  ;;  %212 = vst.msk [vmem:[#allocation2 + $0x218] sm:$0xff] %vm5403_vm0, %v3381_v0 }
  0x30   : > { %213 = vst.msk [vmem:[#allocation2 + $0x220] sm:$0xff] %vm5403_vm0, %v3381_v0  ;;  %214 = vst.msk [vmem:[#allocation2 + $0x228] sm:$0xff] %vm5403_vm0, %v3381_v0 }
  0x31   : > { %215 = vst.msk [vmem:[#allocation2 + $0x230] sm:$0xff] %vm5403_vm0, %v3381_v0  ;;  %216 = vst.msk [vmem:[#allocation2 + $0x238] sm:$0xff] %vm5403_vm0, %v3381_v0 }
  0x32   : > { %234 = vst.msk [vmem:[#allocation2 + $0xc8] sm:$0xff] %vm5403_vm0, %v217_v1  ;;  %225 = vst.msk [vmem:[%s3569_s17] sm:$0xff] %vm5403_vm0, %v217_v1 }
  0x33   : > { %235 = vst.msk [vmem:[#allocation2 + $0xe0] sm:$0xff] %vm5403_vm0, %v218_v2  ;;  %226 = vst.msk [vmem:[%s3569_s17 + $0x8] sm:$0xff] %vm5403_vm0, %v218_v2 }
  0x34   : > { %236 = vst.msk [vmem:[#allocation2 + $0xf8] sm:$0xff] %vm5403_vm0, %v219_v3  ;;  %227 = vst.msk [vmem:[%s3569_s17 + $0x10] sm:$0xff] %vm5403_vm0, %v219_v3 }
  0x35   : > { %284 = vst.msk [vmem:[#allocation3 + $0x1] sm:$0x7f] %vm283_vm1, %v252_v4  ;;  %v3879_v4 = vld [vmem:[#allocation2 + $0x168] sm:$0xff] }
  0x36   : > { %285 = vst.msk [vmem:[#allocation3 + $0x1] sm:$0x80] %vm281_vm2, %v3574_v5  ;;  %287 = vst.msk [vmem:[#allocation3 + $0x9] sm:$0x80] %vm281_vm2, %v3590_v6 }
  0x37   : > { %289 = vst.msk [vmem:[#allocation3 + $0x11] sm:$0x80] %vm281_vm2, %v3596_v8  ;;  %291 = vst.msk [vmem:[#allocation3 + $0x19] sm:$0x80] %vm281_vm2, %v3598_v9 }
  0x38   : > { %237 = vst.msk [vmem:[#allocation2 + $0x110] sm:$0xff] %vm5403_vm0, %v220_v10  ;;  %228 = vst.msk [vmem:[%s3569_s17 + $0x18] sm:$0xff] %vm5403_vm0, %v220_v10 }
  0x39   : > { %238 = vst.msk [vmem:[#allocation2 + $0x128] sm:$0xff] %vm5403_vm0, %v221_v11  ;;  %229 = vst.msk [vmem:[%s3569_s17 + $0x20] sm:$0xff] %vm5403_vm0, %v221_v11  ;;  %v255_v18 = vld [vmem:[#allocation2 + $0xc8] sm:$0xff] }
  0x3a   : > { %293 = vst.msk [vmem:[#allocation3 + $0x21] sm:$0x80] %vm281_vm2, %v3612_v12  ;;  %295 = vst.msk [vmem:[#allocation3 + $0x29] sm:$0x80] %vm281_vm2, %v3614_v13  ;;  %v3638_v19 = vld [vmem:[#allocation2 + $0xe0] sm:$0xff]  ;;  %309 = vrot.lane.b32.xlu0 %v255_v18, %s3383_s19  ;;  %425 = vrot.lane.b32.xlu1 %v255_v18, %s3384_s20 }
  0x3b   : > { %239 = vst.msk [vmem:[#allocation2 + $0x140] sm:$0xff] %vm5403_vm0, %v222_v14  ;;  %230 = vst.msk [vmem:[%s3569_s17 + $0x28] sm:$0xff] %vm5403_vm0, %v222_v14  ;;  %v3640_v20 = vld [vmem:[#allocation2 + $0xf8] sm:$0xff] }
  0x3c   : > { %282 = vst.msk [vmem:[#allocation3 - $0x7] sm:$0x80] %vm281_vm2, %v3625_v15  ;;  %297 = vst.msk [vmem:[#allocation3 + $0x31] sm:$0x80] %vm281_vm2, %v3675_v25  ;;  %vm989_vm2 = vcmask 64518  }
  0x3d   : > { %240 = vst.msk [vmem:[#allocation2 + $0x158] sm:$0xff] %vm5403_vm0, %v223_v16  ;;  %231 = vst.msk [vmem:[%s3569_s17 + $0x30] sm:$0xff] %vm5403_vm0, %v223_v16 }
  0x3e   : > { %286 = vst.msk [vmem:[#allocation3 + $0x9] sm:$0x7f] %vm283_vm1, %v255_v18  ;;  %288 = vst.msk [vmem:[#allocation3 + $0x11] sm:$0x7f] %vm283_vm1, %v3638_v19  ;;  %352 = vrot.lane.b32.xlu0 %v255_v18, %s3382_s18  ;;  %429 = vrot.lane.b32.xlu1 %v3638_v19, %s3384_s20 }
  0x3f   : > { %290 = vst.msk [vmem:[#allocation3 + $0x19] sm:$0x7f] %vm283_vm1, %v3640_v20  ;;  %v3650_v21 = vld [vmem:[#allocation2 + $0x110] sm:$0xff] }
  0x40   : > { %v3652_v22 = vld [vmem:[#allocation2 + $0x128] sm:$0xff]  ;;  %292 = vst.msk [vmem:[#allocation3 + $0x21] sm:$0x7f] %vm283_vm1, %v3650_v21 }
  0x41   : > { %294 = vst.msk [vmem:[#allocation3 + $0x29] sm:$0x7f] %vm283_vm1, %v3652_v22 }
  0x42   : > { %v3660_v23 = vld [vmem:[#allocation2 + $0x140] sm:$0xff]  ;;  %427 = vrot.lane.b32.xlu0 %v3590_v6, %s3384_s20  ;;  %311 = vrot.lane.b32.xlu1 %v3638_v19, %s3383_s19  ;;  %241 = vst.msk [vmem:[#allocation2 + $0x170] sm:$0xff] %vm5403_vm0, %v224_v26  ;;  %232 = vst.msk [vmem:[%s3569_s17 + $0x38] sm:$0xff] %vm5403_vm0, %v224_v26  ;;  %vm991_vm0 = vcmask 62464  }
  0x43   : > { %296 = vst.msk [vmem:[#allocation3 + $0x31] sm:$0x7f] %vm283_vm1, %v3660_v23 }
  0x44   : > { %v3662_v24 = vld [vmem:[#allocation2 + $0x158] sm:$0xff] }
  0x45   : > { %298 = vst.msk [vmem:[#allocation3 + $0x39] sm:$0x7f] %vm283_vm1, %v3662_v24  ;;  %vm765_vm1 = vcmask 588800  }
  0x46   : > { %489 = vrot.lane.b32.xlu0 %v255_v18, %s3385_s21  ;;  %523 = vrot.lane.b32.xlu1 %v255_v18, %s3386_s22 }
  0x49   : > { %v3887_v14 = vld [vmem:[#allocation2 + $0x170] sm:$0xff] }
  0x4a   : > { %491 = vrot.lane.b32.xlu0 %v3638_v19, %s3385_s21  ;;  %313 = vrot.lane.b32.xlu1 %v3640_v20, %s3383_s19 }
  0x4e   : > { %525 = vrot.lane.b32.xlu0 %v3628_v17, %s3386_s22  ;;  %358 = vrot.lane.b32.xlu1 %v3690_v27, %s3382_s18 }
  0x52   : > { %356 = vrot.lane.b32.xlu0 %v3638_v19, %s3382_s18  ;;  %529 = vrot.lane.b32.xlu1 %v3690_v27, %s3386_s22 }
  0x56   : > { %527 = vrot.lane.b32.xlu0 %v3638_v19, %s3386_s22  ;;  %593 = vrot.lane.b32.xlu1 %v3638_v19, %s3387_s23 }
  0x5a   : > { %591 = vrot.lane.b32.xlu0 %v3590_v6, %s3387_s23  ;;  %362 = vrot.lane.b32.xlu1 %v3704_v28, %s3382_s18 }
  0x5e   : > { %360 = vrot.lane.b32.xlu0 %v3640_v20, %s3382_s18  ;;  %433 = vrot.lane.b32.xlu1 %v3640_v20, %s3384_s20 }
  0x62   : > { %431 = vrot.lane.b32.xlu0 %v3596_v8, %s3384_s20  ;;  %597 = vrot.lane.b32.xlu1 %v3640_v20, %s3387_s23 }
  0x66   : > { %595 = vrot.lane.b32.xlu0 %v3596_v8, %s3387_s23  ;;  %435 = vrot.lane.b32.xlu1 %v3598_v9, %s3384_s20 }
  0x6a   : > { %657 = vrot.lane.b32.xlu0 %v3638_v19, %s3388_s28  ;;  %493 = vrot.lane.b32.xlu1 %v3640_v20, %s3385_s21 }
  0x6e   : > { %437 = vrot.lane.b32.xlu0 %v3650_v21, %s3384_s20  ;;  %691 = vrot.lane.b32.xlu1 %v3638_v19, %s3389_s10 }
  0x72   : > { %659 = vrot.lane.b32.xlu0 %v3640_v20, %s3388_s28  ;;  %315 = vrot.lane.b32.xlu1 %v3650_v21, %s3383_s19 }
  0x76   : > { %693 = vrot.lane.b32.xlu0 %v3690_v27, %s3389_s10  ;;  %531 = vrot.lane.b32.xlu1 %v3640_v20, %s3386_s22 }
  0x7a   : > { %495 = vrot.lane.b32.xlu0 %v3650_v21, %s3385_s21  ;;  %695 = vrot.lane.b32.xlu1 %v3640_v20, %s3389_s10 }
  0x7e   : > { %533 = vrot.lane.b32.xlu0 %v3704_v28, %s3386_s22  ;;  %317 = vrot.lane.b32.xlu1 %v3652_v22, %s3383_s19 }
  0x82   : > { %697 = vrot.lane.b32.xlu0 %v3704_v28, %s3389_s10  ;;  %366 = vrot.lane.b32.xlu1 %v3773_v42, %s3382_s18 }
  0x86   : > { %364 = vrot.lane.b32.xlu0 %v3650_v21, %s3382_s18  ;;  %537 = vrot.lane.b32.xlu1 %v3773_v42, %s3386_s22 }
  0x88   : > { %v349_v44 = vpop.permute.xlu1 %348  ;;  %v308_v45 = vpop.permute.xlu0 %307 }
  0x89   : > { %332 = vst.msk [vmem:[#allocation3] sm:$0xff] %vm331_vm3, %v308_v45 }
  0x8a   : > { %535 = vrot.lane.b32.xlu0 %v3650_v21, %s3386_s22  ;;  %601 = vrot.lane.b32.xlu1 %v3650_v21, %s3387_s23  ;;  %397 = vst.msk [vmem:[#allocation3 - $0x1] sm:$0xfe] %vm396_vm4, %v349_v44 }
  0x8e   : > { %599 = vrot.lane.b32.xlu0 %v3598_v9, %s3387_s23  ;;  %370 = vrot.lane.b32.xlu1 %v3787_v43, %s3382_s18 }
  0x92   : > { %368 = vrot.lane.b32.xlu0 %v3652_v22, %s3382_s18  ;;  %441 = vrot.lane.b32.xlu1 %v3652_v22, %s3384_s20 }
  0x93   : > { %v351_v46 = vpop.permute.xlu1 %350 }
  0x94   : > { %v424_v47 = vpop.permute.xlu0 %423  ;;  %399 = vst.msk [vmem:[#allocation3 + $0x7] sm:$0x1] %vm398_vm5, %v351_v46 }
  0x95   : > { %472 = vst.msk [vmem:[#allocation3 - $0x7] sm:$0x80] %vm471_vm6, %v424_v47  ;;  %v3953_v47 = vld [vmem:[#allocation2 + $0x98] sm:$0xff] }
  0x96   : > { %439 = vrot.lane.b32.xlu0 %v3612_v12, %s3384_s20  ;;  %605 = vrot.lane.b32.xlu1 %v3652_v22, %s3387_s23 }
  0x97   : > { %v355_v48 = vpop.permute.xlu1 %354 }
  0x9a   : > { %603 = vrot.lane.b32.xlu0 %v3612_v12, %s3387_s23  ;;  %443 = vrot.lane.b32.xlu1 %v3614_v13, %s3384_s20 }
  0x9e   : > { %661 = vrot.lane.b32.xlu0 %v3650_v21, %s3388_s28  ;;  %497 = vrot.lane.b32.xlu1 %v3652_v22, %s3385_s21 }
  0xa2   : > { %445 = vrot.lane.b32.xlu0 %v3660_v23, %s3384_s20  ;;  %699 = vrot.lane.b32.xlu1 %v3650_v21, %s3389_s10 }
  0xa6   : > { %663 = vrot.lane.b32.xlu0 %v3652_v22, %s3388_s28  ;;  %319 = vrot.lane.b32.xlu1 %v3660_v23, %s3383_s19 }
  0xaa   : > { %701 = vrot.lane.b32.xlu0 %v3773_v42, %s3389_s10  ;;  %539 = vrot.lane.b32.xlu1 %v3652_v22, %s3386_s22 }
  0xac   : > { %v310_v49 = vpop.permute.xlu0 %309  ;;  %v426_v50 = vpop.permute.xlu1 %425 }
  0xad   : > { %333 = vst.msk [vmem:[#allocation3 + $0x8] sm:$0xff] %vm331_vm3, %v310_v49 }
  0xae   : > { %401 = vst.msk [vmem:[#allocation3 + $0xf] sm:$0x1] %vm398_vm5, %v355_v48  ;;  %499 = vrot.lane.b32.xlu0 %v3660_v23, %s3385_s21  ;;  %703 = vrot.lane.b32.xlu1 %v3652_v22, %s3389_s10  ;;  %v3961_v48 = vld [vmem:[#allocation2 + $0x190] sm:$0xff] }
  0xaf   : > { %474 = vst.msk [vmem:[#allocation3 + $0x1] sm:$0x7f] %vm473_vm7, %v426_v50 }
  0xb0   : > { %v353_v51 = vpop.permute.xlu0 %352  ;;  %v430_v52 = vpop.permute.xlu1 %429 }
  0xb1   : > { %400 = vst.msk [vmem:[#allocation3 + $0x7] sm:$0xfe] %vm396_vm4, %v353_v51 }
  0xb2   : > { %541 = vrot.lane.b32.xlu0 %v3787_v43, %s3386_s22  ;;  %476 = vst.msk [vmem:[#allocation3 + $0x9] sm:$0x7f] %vm473_vm7, %v430_v52  ;;  %321 = vrot.lane.b32.xlu1 %v3662_v24, %s3383_s19  ;;  %v3963_v52 = vld [vmem:[#allocation2 + $0xb0] sm:$0xff] }
  0xb4   : > { %v428_v53 = vpop.permute.xlu0 %427  ;;  %v312_v55 = vpop.permute.xlu1 %311 }
  0xb5   : > { %475 = vst.msk [vmem:[#allocation3 + $0x1] sm:$0x80] %vm471_vm6, %v428_v53 }
  0xb6   : > { %705 = vrot.lane.b32.xlu0 %v3787_v43, %s3389_s10  ;;  %334 = vst.msk [vmem:[#allocation3 + $0x10] sm:$0xff] %vm331_vm3, %v312_v55  ;;  %374 = vrot.lane.b32.xlu1 %v3839_v54, %s3382_s18 }
  0xb8   : > { %v490_v56 = vpop.permute.xlu0 %489  ;;  %v524_v57 = vpop.permute.xlu1 %523 }
  0xb9   : > { %514 = vst.msk [vmem:[#allocation3] sm:$0xff] %vm513_vm8, %v490_v56 }
  0xba   : > { %372 = vrot.lane.b32.xlu0 %v3660_v23, %s3382_s18  ;;  %572 = vst.msk [vmem:[#allocation3 - $0x1] sm:$0xfe] %vm571_vm9, %v524_v57  ;;  %545 = vrot.lane.b32.xlu1 %v3839_v54, %s3386_s22 }
  0xbc   : > { %v492_v58 = vpop.permute.xlu0 %491  ;;  %v314_v59 = vpop.permute.xlu1 %313 }
  0xbd   : > { %515 = vst.msk [vmem:[#allocation3 + $0x8] sm:$0xff] %vm513_vm8, %v492_v58 }
  0xbe   : > { %543 = vrot.lane.b32.xlu0 %v3660_v23, %s3386_s22  ;;  %335 = vst.msk [vmem:[#allocation3 + $0x18] sm:$0xff] %vm331_vm3, %v314_v59  ;;  %609 = vrot.lane.b32.xlu1 %v3660_v23, %s3387_s23 }
  0xc0   : > { %v526_v60 = vpop.permute.xlu0 %525  ;;  %v359_v62 = vpop.permute.xlu1 %358 }
  0xc1   : > { %574 = vst.msk [vmem:[#allocation3 + $0x7] sm:$0x1] %vm573_vm10, %v526_v60 }
  0xc2   : > { %607 = vrot.lane.b32.xlu0 %v3614_v13, %s3387_s23  ;;  %403 = vst.msk [vmem:[#allocation3 + $0x17] sm:$0x1] %vm398_vm5, %v359_v62  ;;  %378 = vrot.lane.b32.xlu1 %v3859_v61, %s3382_s18 }
  0xc4   : > { %v357_v63 = vpop.permute.xlu0 %356  ;;  %v530_v0 = vpop.permute.xlu1 %529 }
  0xc5   : > { %402 = vst.msk [vmem:[#allocation3 + $0xf] sm:$0xfe] %vm396_vm4, %v357_v63 }
  0xc6   : > { %376 = vrot.lane.b32.xlu0 %v3662_v24, %s3382_s18  ;;  %576 = vst.msk [vmem:[#allocation3 + $0xf] sm:$0x1] %vm573_vm10, %v530_v0  ;;  %449 = vrot.lane.b32.xlu1 %v3662_v24, %s3384_s20 }
  0xc8   : > { %v528_v1 = vpop.permute.xlu0 %527  ;;  %v594_v2 = vpop.permute.xlu1 %593 }
  0xc9   : > { %575 = vst.msk [vmem:[#allocation3 + $0x7] sm:$0xfe] %vm571_vm9, %v528_v1 }
  0xca   : > { %447 = vrot.lane.b32.xlu0 %v3675_v25, %s3384_s20  ;;  %642 = vst.msk [vmem:[#allocation3 + $0x1] sm:$0x7f] %vm641_vm11, %v594_v2  ;;  %613 = vrot.lane.b32.xlu1 %v3662_v24, %s3387_s23 }
  0xcc   : > { %v592_v3 = vpop.permute.xlu0 %591  ;;  %v363_v10 = vpop.permute.xlu1 %362 }
  0xcd   : > { %640 = vst.msk [vmem:[#allocation3 - $0x7] sm:$0x80] %vm639_vm12, %v592_v3 }
  0xce   : > { %611 = vrot.lane.b32.xlu0 %v3675_v25, %s3387_s23  ;;  %405 = vst.msk [vmem:[#allocation3 + $0x1f] sm:$0x1] %vm398_vm5, %v363_v10  ;;  %451 = vrot.lane.b32.xlu1 %v3879_v4, %s3384_s20 }
  0xd0   : > { %v361_v11 = vpop.permute.xlu0 %360  ;;  %v434_v16 = vpop.permute.xlu1 %433 }
  0xd1   : > { %404 = vst.msk [vmem:[#allocation3 + $0x17] sm:$0xfe] %vm396_vm4, %v361_v11 }
  0xd2   : > { %665 = vrot.lane.b32.xlu0 %v3660_v23, %s3388_s28  ;;  %478 = vst.msk [vmem:[#allocation3 + $0x11] sm:$0x7f] %vm473_vm7, %v434_v16  ;;  %501 = vrot.lane.b32.xlu1 %v3662_v24, %s3385_s21 }
  0xd4   : > { %v432_v18 = vpop.permute.xlu0 %431  ;;  %v598_v19 = vpop.permute.xlu1 %597 }
  0xd5   : > { %477 = vst.msk [vmem:[#allocation3 + $0x9] sm:$0x80] %vm471_vm6, %v432_v18 }
  0xd6   : > { %453 = vrot.lane.b32.xlu0 %v3887_v14, %s3384_s20  ;;  %644 = vst.msk [vmem:[#allocation3 + $0x9] sm:$0x7f] %vm641_vm11, %v598_v19  ;;  %707 = vrot.lane.b32.xlu1 %v3660_v23, %s3389_s10 }
  0xd8   : > { %v596_v20 = vpop.permute.xlu0 %595  ;;  %v436_v21 = vpop.permute.xlu1 %435 }
  0xd9   : > { %643 = vst.msk [vmem:[#allocation3 + $0x1] sm:$0x80] %vm639_vm12, %v596_v20 }
  0xda   : > { %667 = vrot.lane.b32.xlu0 %v3662_v24, %s3388_s28  ;;  %479 = vst.msk [vmem:[#allocation3 + $0x11] sm:$0x80] %vm471_vm6, %v436_v21  ;;  %503 = vrot.lane.b32.xlu1 %v3887_v14, %s3385_s21 }
  0xdc   : > { %v658_v22 = vpop.permute.xlu0 %657  ;;  %v494_v26 = vpop.permute.xlu1 %493 }
  0xdd   : > { %682 = vst.msk [vmem:[#allocation3] sm:$0xff] %vm681_vm13, %v658_v22 }
  0xde   : > { %709 = vrot.lane.b32.xlu0 %v3839_v54, %s3389_s10  ;;  %516 = vst.msk [vmem:[#allocation3 + $0x10] sm:$0xff] %vm513_vm8, %v494_v26  ;;  %549 = vrot.lane.b32.xlu1 %v3859_v61, %s3386_s22 }
  0xe0   : > { %v438_v29 = vpop.permute.xlu0 %437  ;;  %v692_v23 = vpop.permute.xlu1 %691 }
  0xe1   : > { %480 = vst.msk [vmem:[#allocation3 + $0x19] sm:$0x7f] %vm473_vm7, %v438_v29 }
  0xe2   : > { %547 = vrot.lane.b32.xlu0 %v3662_v24, %s3386_s22  ;;  %740 = vst.msk [vmem:[#allocation3 - $0x1] sm:$0xfe] %vm739_vm14, %v692_v23  ;;  %713 = vrot.lane.b32.xlu1 %v3859_v61, %s3389_s10 }
  0xe4   : > { %v660_v30 = vpop.permute.xlu0 %659  ;;  %v316_v32 = vpop.permute.xlu1 %315 }
  0xe5   : > { %683 = vst.msk [vmem:[#allocation3 + $0x8] sm:$0xff] %vm681_vm13, %v660_v30 }
  0xe6   : > { %711 = vrot.lane.b32.xlu0 %v3662_v24, %s3389_s10  ;;  %336 = vst.msk [vmem:[#allocation3 + $0x20] sm:$0xff] %vm331_vm3, %v316_v32  ;;  %553 = vrot.lane.b32.xlu1 %v3919_v31, %s3386_s22  ;;  %v953_v24 = vld [vmem:[#allocation2 + $0x90] sm:$0xff] }
  0xe8   : > { %v694_v33 = vpop.permute.xlu0 %693  ;;  %v532_v34 = vpop.permute.xlu1 %531 }
  0xe9   : > { %742 = vst.msk [vmem:[#allocation3 + $0x7] sm:$0x1] %vm741_vm15, %v694_v33 }
  0xea   : > { %551 = vrot.lane.b32.xlu0 %v3887_v14, %s3386_s22  ;;  %577 = vst.msk [vmem:[#allocation3 + $0xf] sm:$0xfe] %vm571_vm9, %v532_v34  ;;  %617 = vrot.lane.b32.xlu1 %v3887_v14, %s3387_s23 }
  0xec   : > { %v496_v35 = vpop.permute.xlu0 %495  ;;  %v696_v38 = vpop.permute.xlu1 %695 }
  0xed   : > { %517 = vst.msk [vmem:[#allocation3 + $0x18] sm:$0xff] %vm513_vm8, %v496_v35 }
  0xee   : > { %615 = vrot.lane.b32.xlu0 %v3879_v4, %s3387_s23  ;;  %743 = vst.msk [vmem:[#allocation3 + $0x7] sm:$0xfe] %vm739_vm14, %v696_v38  ;;  %621 = vrot.lane.b32.xlu1 %v3933_v36, %s3387_s23 }
  0xf0   : > { %v534_v39 = vpop.permute.xlu0 %533  ;;  %v757_v40 = vld [vmem:[#allocation3] sm:$0xff]  ;;  %v318_v41 = vpop.permute.xlu1 %317 }
  0xf1   : > { %578 = vst.msk [vmem:[#allocation3 + $0x17] sm:$0x1] %vm573_vm10, %v534_v39  ;;  %3188 = vmatprep.mubr.msk.f32.mxu0 %vm765_vm1, %v757_v40 }
  0xf2   : > { %990 = vst.msk [vmem:[#allocation3 - $0x6] sm:$0xc0] %vm989_vm2, %v953_v24  ;;  %619 = vrot.lane.b32.xlu0 %v3935_v37, %s3387_s23  ;;  %671 = vrot.lane.b32.xlu1 %v3933_v36, %s3388_s28 }
  0xf3   : > { %337 = vst.msk [vmem:[#allocation3 + $0x28] sm:$0xff] %vm331_vm3, %v318_v41 }
  0xf4   : > { %v698_v44 = vpop.permute.xlu0 %697  ;;  %v367_v45 = vpop.permute.xlu1 %366  ;;  %992 = vst.msk [vmem:[#allocation3 + $0x2] sm:$0x3f] %vm991_vm0, %v3953_v47 }
  0xf5   : > { %744 = vst.msk [vmem:[#allocation3 + $0xf] sm:$0x1] %vm741_vm15, %v698_v44 }
  0xf6   : > { %669 = vrot.lane.b32.xlu0 %v3887_v14, %s3388_s28  ;;  %407 = vst.msk [vmem:[#allocation3 + $0x27] sm:$0x1] %vm398_vm5, %v367_v45  ;;  %717 = vrot.lane.b32.xlu1 %v3919_v31, %s3389_s10 }
  0xf8   : > { %v365_v46 = vpop.permute.xlu0 %364  ;;  %v538_v49 = vpop.permute.xlu1 %537 }
  0xf9   : > { %406 = vst.msk [vmem:[#allocation3 + $0x1f] sm:$0xfe] %vm396_vm4, %v365_v46 }
  0xfa   : > { %715 = vrot.lane.b32.xlu0 %v3887_v14, %s3389_s10  ;;  %580 = vst.msk [vmem:[#allocation3 + $0x1f] sm:$0x1] %vm573_vm10, %v538_v49  ;;  %721 = vrot.lane.b32.xlu1 %v3961_v48, %s3389_s10 }
  0xfc   : > { %v536_v50 = vpop.permute.xlu0 %535  ;;  %v758_v51 = vld [vmem:[#allocation3 + $0x8] sm:$0xff]  ;;  %v602_v53 = vpop.permute.xlu1 %601 }
  0xfd   : > { %579 = vst.msk [vmem:[#allocation3 + $0x17] sm:$0xfe] %vm571_vm9, %v536_v50  ;;  %3189 = vmatmul.mubr.msk.f32.vlgmr.msra.gmra.mrb[0].mxu0 %vm765_vm1, %v758_v51 }
  0xfe   : > { %993 = vst.msk [vmem:[#allocation3 + $0x2] sm:$0xc0] %vm989_vm2, %v3625_v15  ;;  %719 = vrot.lane.b32.xlu0 %v3933_v36, %s3389_s10  ;;  %1017 = vrot.lane.b32.xlu1 %v3963_v52, %s3383_s19  ;;  %v3982_v15 = vld [vmem:[#allocation2 + $0xa0] sm:$0xff] }
  0xff   : > { %994 = vst.msk [vmem:[#allocation3 + $0xa] sm:$0x3f] %vm991_vm0, %v3963_v52 }
 0x100   : > { %v600_v55 = vpop.permute.xlu0 %599  ;;  %646 = vst.msk [vmem:[#allocation3 + $0x11] sm:$0x7f] %vm641_vm11, %v602_v53  ;;  %v371_v56 = vpop.permute.xlu1 %370 }
 0x101   : > { %645 = vst.msk [vmem:[#allocation3 + $0x9] sm:$0x80] %vm639_vm12, %v600_v55 }
 0x102   : > { %1015 = vrot.lane.b32.xlu0 %v3953_v47, %s3383_s19  ;;  %409 = vst.msk [vmem:[#allocation3 + $0x2f] sm:$0x1] %vm398_vm5, %v371_v56  ;;  %1057 = vrot.lane.b32.xlu1 %v3982_v15, %s3382_s18 }
 0x104   : > { %v369_v57 = vpop.permute.xlu0 %368  ;;  %v442_v58 = vpop.permute.xlu1 %441 }
 0x105   : > { %408 = vst.msk [vmem:[#allocation3 + $0x27] sm:$0xfe] %vm396_vm4, %v369_v57 }
 0x106   : > { %1055 = vrot.lane.b32.xlu0 %v3953_v47, %s3382_s18  ;;  %482 = vst.msk [vmem:[#allocation3 + $0x21] sm:$0x7f] %vm473_vm7, %v442_v58  ;;  %1061 = vrot.lane.b32.xlu1 %v3592_v7, %s3382_s18 }
 0x108   : > { %v440_v59 = vpop.permute.xlu0 %439  ;;  %v606_v60 = vpop.permute.xlu1 %605 }
 0x109   : > { %481 = vst.msk [vmem:[#allocation3 + $0x19] sm:$0x80] %vm471_vm6, %v440_v59 }
 0x10a   : > { %1059 = vrot.lane.b32.xlu0 %v3963_v52, %s3382_s18  ;;  %648 = vst.msk [vmem:[#allocation3 + $0x19] sm:$0x7f] %vm641_vm11, %v606_v60  ;;  %1065 = vrot.lane.b32.xlu1 %v3628_v17, %s3382_s18 }
 0x10c   : > { %v604_v62 = vpop.permute.xlu0 %603  ;;  %v444_v63 = vpop.permute.xlu1 %443 }
 0x10d   : > { %647 = vst.msk [vmem:[#allocation3 + $0x11] sm:$0x80] %vm639_vm12, %v604_v62 }
 0x10e   : > { %1131 = vrot.lane.b32.xlu0 %v3574_v5, %s3384_s20  ;;  %483 = vst.msk [vmem:[#allocation3 + $0x21] sm:$0x80] %vm471_vm6, %v444_v63  ;;  %1237 = vrot.lane.b32.xlu1 %v3690_v27, %s3386_s22 }
 0x110   : > { %v662_v0 = vpop.permute.xlu0 %661  ;;  %v498_v7 = vpop.permute.xlu1 %497 }
 0x111   : > { %684 = vst.msk [vmem:[#allocation3 + $0x10] sm:$0xff] %vm681_vm13, %v662_v0 }
 0x112   : > { %1135 = vrot.lane.b32.xlu0 %v3590_v6, %s3384_s20  ;;  %518 = vst.msk [vmem:[#allocation3 + $0x20] sm:$0xff] %vm513_vm8, %v498_v7  ;;  %1069 = vrot.lane.b32.xlu1 %v3690_v27, %s3382_s18 }
 0x114   : > { %v446_v1 = vpop.permute.xlu0 %445  ;;  %v700_v2 = vpop.permute.xlu1 %699 }
 0x115   : > { %484 = vst.msk [vmem:[#allocation3 + $0x29] sm:$0x7f] %vm473_vm7, %v446_v1 }
 0x116   : > { %1233 = vrot.lane.b32.xlu0 %v3628_v17, %s3386_s22  ;;  %745 = vst.msk [vmem:[#allocation3 + $0xf] sm:$0xfe] %vm739_vm14, %v700_v2  ;;  %1143 = vrot.lane.b32.xlu1 %v3598_v9, %s3384_s20 }
 0x118   : > { %v664_v3 = vpop.permute.xlu0 %663  ;;  %v320_v10 = vpop.permute.xlu1 %319 }
 0x119   : > { %685 = vst.msk [vmem:[#allocation3 + $0x18] sm:$0xff] %vm681_vm13, %v664_v3 }
 0x11a   : > { %1301 = vrot.lane.b32.xlu0 %v3596_v8, %s3387_s23  ;;  %338 = vst.msk [vmem:[#allocation3 + $0x30] sm:$0xff] %vm331_vm3, %v320_v10  ;;  %1073 = vrot.lane.b32.xlu1 %v3704_v28, %s3382_s18 }
 0x11c   : > { %v702_v11 = vpop.permute.xlu0 %701  ;;  %v540_v17 = vpop.permute.xlu1 %539 }
 0x11d   : > { %746 = vst.msk [vmem:[#allocation3 + $0x17] sm:$0x1] %vm741_vm15, %v702_v11 }
 0x11e   : > { %1139 = vrot.lane.b32.xlu0 %v3596_v8, %s3384_s20  ;;  %581 = vst.msk [vmem:[#allocation3 + $0x1f] sm:$0xfe] %vm571_vm9, %v540_v17  ;;  %1245 = vrot.lane.b32.xlu1 %v3773_v42, %s3386_s22 }
 0x120   : > { %v500_v27 = vpop.permute.xlu0 %499  ;;  %v704_v14 = vpop.permute.xlu1 %703 }
 0x121   : > { %519 = vst.msk [vmem:[#allocation3 + $0x28] sm:$0xff] %vm513_vm8, %v500_v27 }
 0x122   : > { %1305 = vrot.lane.b32.xlu0 %v3598_v9, %s3387_s23  ;;  %747 = vst.msk [vmem:[#allocation3 + $0x17] sm:$0xfe] %vm739_vm14, %v704_v14  ;;  %1077 = vrot.lane.b32.xlu1 %v3773_v42, %s3382_s18 }
 0x124   : > { %v542_v16 = vpop.permute.xlu0 %541  ;;  %v759_v18 = vld [vmem:[#allocation3 + $0x10] sm:$0xff]  ;;  %v322_v19 = vpop.permute.xlu1 %321 }
 0x125   : > { %582 = vst.msk [vmem:[#allocation3 + $0x27] sm:$0x1] %vm573_vm10, %v542_v16  ;;  %3191 = vmatprep.mubr.msk.f32.mxu0 %vm765_vm1, %v759_v18 }
 0x126   : > { %995 = vst.msk [vmem:[#allocation3 + $0xa] sm:$0xc0] %vm989_vm2, %v3574_v5  ;;  %1403 = vrot.lane.b32.xlu0 %v3704_v28, %s3389_s10  ;;  %1151 = vrot.lane.b32.xlu1 %v3614_v13, %s3384_s20 }
 0x127   : > { %339 = vst.msk [vmem:[#allocation3 + $0x38] sm:$0xff] %vm331_vm3, %v322_v19 }
 0x128   : > { %v706_v20 = vpop.permute.xlu0 %705  ;;  %v375_v21 = vpop.permute.xlu1 %374 }
 0x129   : > { %748 = vst.msk [vmem:[#allocation3 + $0x1f] sm:$0x1] %vm741_vm15, %v706_v20 }
 0x12a   : > { %1241 = vrot.lane.b32.xlu0 %v3704_v28, %s3386_s22  ;;  %411 = vst.msk [vmem:[#allocation3 + $0x37] sm:$0x1] %vm398_vm5, %v375_v21  ;;  %1081 = vrot.lane.b32.xlu1 %v3787_v43, %s3382_s18 }
 0x12c   : > { %v373_v5 = vpop.permute.xlu0 %372  ;;  %v546_v22 = vpop.permute.xlu1 %545 }
 0x12d   : > { %410 = vst.msk [vmem:[#allocation3 + $0x2f] sm:$0xfe] %vm396_vm4, %v373_v5 }
 0x12e   : > { %1407 = vrot.lane.b32.xlu0 %v3773_v42, %s3389_s10  ;;  %584 = vst.msk [vmem:[#allocation3 + $0x2f] sm:$0x1] %vm573_vm10, %v546_v22  ;;  %1253 = vrot.lane.b32.xlu1 %v3839_v54, %s3386_s22 }
 0x130   : > { %v544_v26 = vpop.permute.xlu0 %543  ;;  %v760_v29 = vld [vmem:[#allocation3 + $0x18] sm:$0xff]  ;;  %v610_v28 = vpop.permute.xlu1 %609 }
 0x131   : > { %583 = vst.msk [vmem:[#allocation3 + $0x27] sm:$0xfe] %vm571_vm9, %v544_v26  ;;  %3192 = vmatmul.mubr.msk.f32.gmra.mrb[2].mxu0 %vm765_vm1, %v760_v29 }
 0x132   : > { %997 = vst.msk [vmem:[#allocation3 + $0x12] sm:$0xc0] %vm989_vm2, %v3590_v6  ;;  %1309 = vrot.lane.b32.xlu0 %v3612_v12, %s3387_s23  ;;  %1085 = vrot.lane.b32.xlu1 %v3839_v54, %s3382_s18 }
 0x133   : > { %650 = vst.msk [vmem:[#allocation3 + $0x21] sm:$0x7f] %vm641_vm11, %v610_v28 }
 0x134   : > { %v608_v42 = vpop.permute.xlu0 %607  ;;  %v379_v23 = vpop.permute.xlu1 %378 }
 0x135   : > { %649 = vst.msk [vmem:[#allocation3 + $0x19] sm:$0x80] %vm639_vm12, %v608_v42 }
 0x136   : > { %1147 = vrot.lane.b32.xlu0 %v3612_v12, %s3384_s20  ;;  %413 = vst.msk [vmem:[#allocation3 + $0x3f] sm:$0x1] %vm398_vm5, %v379_v23  ;;  %1159 = vrot.lane.b32.xlu1 %v3879_v4, %s3384_s20  ;;  %vm1179_vm5 = vcmask 261318  }
 0x138   : > { %v377_v6 = vpop.permute.xlu0 %376  ;;  %v450_v30 = vpop.permute.xlu1 %449 }
 0x139   : > { %412 = vst.msk [vmem:[#allocation3 + $0x37] sm:$0xfe] %vm396_vm4, %v377_v6  ;;  %vm1103_vm4 = vcmask 195714   ;;  %v3047_v6 = vld [vmem:[%s5401_s1 + $0x48] sm:$0xff] }
 0x13a   : > { %1313 = vrot.lane.b32.xlu0 %v3614_v13, %s3387_s23  ;;  %486 = vst.msk [vmem:[#allocation3 + $0x31] sm:$0x7f] %vm473_vm7, %v450_v30  ;;  %v3048_v30 = vld [vmem:[%s5401_s1 + $0x50] sm:$0xff] }
 0x13c   : > { %v448_v32 = vpop.permute.xlu0 %447  ;;  %v614_v33 = vpop.permute.xlu1 %613 }
 0x13d   : > { %485 = vst.msk [vmem:[#allocation3 + $0x29] sm:$0x80] %vm471_vm6, %v448_v32 }
 0x13e   : > { %1411 = vrot.lane.b32.xlu0 %v3787_v43, %s3389_s10  ;;  %652 = vst.msk [vmem:[#allocation3 + $0x29] sm:$0x7f] %vm641_vm11, %v614_v33  ;;  %v3306_v33 = vpack.c.bf16 %v3048_v30, %v3047_v6 }
 0x140   : > { %v612_v34 = vpop.permute.xlu0 %611  ;;  %v452_v35 = vpop.permute.xlu1 %451  ;;  %3307 = vmatprep.subr.bf16.mxu1 %v3306_v33 }
 0x141   : > { %651 = vst.msk [vmem:[#allocation3 + $0x21] sm:$0x80] %vm639_vm12, %v612_v34  ;;  %3309 = vmatpush3.bf16.msra.mxu1 %v3306_v33 }
 0x142   : > { %1249 = vrot.lane.b32.xlu0 %v3787_v43, %s3386_s22  ;;  %487 = vst.msk [vmem:[#allocation3 + $0x31] sm:$0x80] %vm471_vm6, %v452_v35  ;;  %vm1105_vm6 = vcmask 189568  }
 0x144   : > { %v666_v24 = vpop.permute.xlu0 %665  ;;  %v502_v38 = vpop.permute.xlu1 %501 }
 0x145   : > { %686 = vst.msk [vmem:[#allocation3 + $0x20] sm:$0xff] %vm681_vm13, %v666_v24  ;;  %v3049_v24 = vld [vmem:[%s5401_s1 + $0x58] sm:$0xff] }
 0x146   : > { %1415 = vrot.lane.b32.xlu0 %v3839_v54, %s3389_s10  ;;  %520 = vst.msk [vmem:[#allocation3 + $0x30] sm:$0xff] %vm513_vm8, %v502_v38  ;;  %v3050_v38 = vld [vmem:[%s5401_s1 + $0x60] sm:$0xff] }
 0x148   : > { %v454_v39 = vpop.permute.xlu0 %453  ;;  %v708_v40 = vpop.permute.xlu1 %707 }
 0x149   : > { %488 = vst.msk [vmem:[#allocation3 + $0x39] sm:$0x7f] %vm473_vm7, %v454_v39  ;;  %vm5423_vm7 = vcmask 64512   ;;  %v3310_v39 = vpack.c.bf16 %v3050_v38, %v3049_v24  ;;  %v4356_v24 = vld [vmem:[#allocation2 + $0x1a0] sm:$0xff] }
 0x14a   : > { %1317 = vrot.lane.b32.xlu0 %v3675_v25, %s3387_s23  ;;  %749 = vst.msk [vmem:[#allocation3 + $0x1f] sm:$0xfe] %vm739_vm14, %v708_v40  ;;  %v3051_v40 = vld [vmem:[%s5401_s1 + $0x68] sm:$0xff] }
 0x14b   : > { %3311 = vmatprep.subr.bf16.mxu1 %v3310_v39 }
 0x14c   : > { %v668_v43 = vpop.permute.xlu0 %667  ;;  %v504_v41 = vpop.permute.xlu1 %503  ;;  %3313 = vmatpush3.bf16.msra.mxu1 %v3310_v39 }
 0x14d   : > { %687 = vst.msk [vmem:[#allocation3 + $0x28] sm:$0xff] %vm681_vm13, %v668_v43  ;;  %v3052_v43 = vld [vmem:[%s5401_s1 + $0x70] sm:$0xff] }
 0x14e   : > { %1155 = vrot.lane.b32.xlu0 %v3675_v25, %s3384_s20  ;;  %521 = vst.msk [vmem:[#allocation3 + $0x38] sm:$0xff] %vm513_vm8, %v504_v41 }
 0x150   : > { %v710_v54 = vpop.permute.xlu0 %709  ;;  %v550_v44 = vpop.permute.xlu1 %549 }
 0x151   : > { %750 = vst.msk [vmem:[#allocation3 + $0x27] sm:$0x1] %vm741_vm15, %v710_v54 }
 0x152   : > { %1321 = vrot.lane.b32.xlu0 %v3879_v4, %s3387_s23  ;;  %586 = vst.msk [vmem:[#allocation3 + $0x37] sm:$0x1] %vm573_vm10, %v550_v44  ;;  %v3314_v44 = vpack.c.bf16 %v3052_v43, %v3051_v40 }
 0x154   : > { %v548_v45 = vpop.permute.xlu0 %547  ;;  %v714_v46 = vpop.permute.xlu1 %713  ;;  %3315 = vmatprep.subr.bf16.mxu1 %v3314_v44 }
 0x155   : > { %585 = vst.msk [vmem:[#allocation3 + $0x2f] sm:$0xfe] %vm571_vm9, %v548_v45  ;;  %3317 = vmatpush3.bf16.msra.mxu1 %v3314_v44  ;;  %v3053_v45 = vld [vmem:[%s5401_s1 + $0x78] sm:$0xff] }
 0x156   : > { %752 = vst.msk [vmem:[#allocation3 + $0x2f] sm:$0x1] %vm741_vm15, %v714_v46  ;;  %v3054_v46 = vld [vmem:[%s5401_s1 + $0x80] sm:$0xff] }
 0x158   : > { %v712_v49 = vpop.permute.xlu0 %711  ;;  %v761_v50 = vld [vmem:[#allocation3 + $0x20] sm:$0xff]  ;;  %v554_v25 = vpop.permute.xlu1 %553 }
 0x159   : > { %751 = vst.msk [vmem:[#allocation3 + $0x27] sm:$0xfe] %vm739_vm14, %v712_v49  ;;  %3194 = vmatprep.mubr.msk.f32.mxu0 %vm765_vm1, %v761_v50  ;;  %v3318_v49 = vpack.c.bf16 %v3054_v46, %v3053_v45  ;;  %v4398_v46 = vld [vmem:[#allocation2 + $0x1a8] sm:$0xff] }
 0x15a   : > { %999 = vst.msk [vmem:[#allocation3 + $0x1a] sm:$0xc0] %vm989_vm2, %v3596_v8 }
 0x15b   : > { %588 = vst.msk [vmem:[#allocation3 + $0x3f] sm:$0x1] %vm573_vm10, %v554_v25  ;;  %vm5427_vm10 = vmmov %vm5423_vm7  ;;  %3319 = vmatprep.subr.bf16.mxu1 %v3318_v49 }
 0x15c   : > { %v552_v4 = vpop.permute.xlu0 %551  ;;  %v618_v53 = vpop.permute.xlu1 %617  ;;  %3321 = vmatpush3.bf16.msra.mxu1 %v3318_v49  ;;  %v4400_v49 = vld [vmem:[#allocation2 + $0xc0] sm:$0xff] }
 0x15d   : > { %587 = vst.msk [vmem:[#allocation3 + $0x37] sm:$0xfe] %vm571_vm9, %v552_v4  ;;  %vm5425_vm9 = vmmov %vm5423_vm7  ;;  %v3055_v4 = vld [vmem:[%s5401_s1 + $0x88] sm:$0xff] }
 0x15e   : > { %654 = vst.msk [vmem:[#allocation3 + $0x31] sm:$0x7f] %vm641_vm11, %v618_v53  ;;  %3216 = vmatprep.subr.mxu1 %v3055_v4 }
 0x160   : > { %v762_v51 = vld [vmem:[#allocation3 + $0x28] sm:$0xff]  ;;  %v616_v55 = vpop.permute.xlu0 %615  ;;  %v622_v56 = vpop.permute.xlu1 %621  ;;  %3217 = vmatpush3.msra.mxu1 %v3055_v4 }
 0x161   : > { %3195 = vmatmul.mubr.msk.f32.gmra.mrb[4].mxu0 %vm765_vm1, %v762_v51  ;;  %653 = vst.msk [vmem:[#allocation3 + $0x29] sm:$0x80] %vm639_vm12, %v616_v55 }
 0x162   : > { %1001 = vst.msk [vmem:[#allocation3 + $0x22] sm:$0xc0] %vm989_vm2, %v3598_v9 }
 0x163   : > { %656 = vst.msk [vmem:[#allocation3 + $0x39] sm:$0x7f] %vm641_vm11, %v622_v56  ;;  %vm5429_vm11 = vmmov %vm5423_vm7 }
 0x164   : > { %v620_v8 = vpop.permute.xlu0 %619  ;;  %v672_v57 = vpop.permute.xlu1 %671 }
 0x165   : > { %655 = vst.msk [vmem:[#allocation3 + $0x31] sm:$0x80] %vm639_vm12, %v620_v8  ;;  %vm5431_vm12 = vmmov %vm5423_vm7 }
 0x166   : > { %689 = vst.msk [vmem:[#allocation3 + $0x38] sm:$0xff] %vm681_vm13, %v672_v57 }
 0x168   : > { %v670_v58 = vpop.permute.xlu0 %669  ;;  %v718_v59 = vpop.permute.xlu1 %717 }
 0x169   : > { %688 = vst.msk [vmem:[#allocation3 + $0x30] sm:$0xff] %vm681_vm13, %v670_v58 }
 0x16a   : > { %754 = vst.msk [vmem:[#allocation3 + $0x37] sm:$0x1] %vm741_vm15, %v718_v59 }
 0x16c   : > { %v716_v60 = vpop.permute.xlu0 %715  ;;  %v722_v62 = vpop.permute.xlu1 %721 }
 0x16d   : > { %753 = vst.msk [vmem:[#allocation3 + $0x2f] sm:$0xfe] %vm739_vm14, %v716_v60 }
 0x16e   : > { %756 = vst.msk [vmem:[#allocation3 + $0x3f] sm:$0x1] %vm741_vm15, %v722_v62  ;;  %vm1281_vm15 = vcmask 386368  }
 0x170   : > { %v720_v9 = vpop.permute.xlu0 %719  ;;  %v1018_v10 = vpop.permute.xlu1 %1017 }
 0x171   : > { %755 = vst.msk [vmem:[#allocation3 + $0x37] sm:$0xfe] %vm739_vm14, %v720_v9  ;;  %vm5433_vm14 = vmmov %vm5423_vm7 }
 0x172   : > { %1040 = vst.msk [vmem:[#allocation3 + $0x8] sm:$0xff] %vm331_vm3, %v1018_v10 }
 0x174   : > { %v763_v63 = vld [vmem:[#allocation3 + $0x30] sm:$0xff]  ;;  %v1016_v0 = vpop.permute.xlu0 %1015  ;;  %v1058_v11 = vpop.permute.xlu1 %1057 }
 0x175   : > { %3197 = vmatprep.mubr.msk.f32.mxu0 %vm765_vm1, %v763_v63  ;;  %1003 = vst.msk [vmem:[#allocation3 + $0x2a] sm:$0xc0] %vm989_vm2, %v3612_v12 }
 0x176   : > { %1039 = vst.msk [vmem:[#allocation3] sm:$0xff] %vm331_vm3, %v1016_v0 }
 0x177   : > { %1106 = vst.msk [vmem:[#allocation3 + $0x6] sm:$0x3] %vm1105_vm6, %v1058_v11 }
 0x178   : > { %v764_v7 = vld [vmem:[#allocation3 + $0x38] sm:$0xff]  ;;  %v1056_v1 = vpop.permute.xlu0 %1055 }
 0x179   : > { %3198 = vmatmul.mubr.msk.f32.gmra.mrb[6].mxu0 %vm765_vm1, %v764_v7  ;;  %1005 = vst.msk [vmem:[#allocation3 + $0x32] sm:$0xc0] %vm989_vm2, %v3614_v13  ;;  %v1062_v13 = vpop.permute.xlu1 %1061  ;;  %vm1279_vm2 = vcmask 392514  }
 0x17a   : > { %1104 = vst.msk [vmem:[#allocation3 - $0x2] sm:$0xfc] %vm1103_vm4, %v1056_v1 }
 0x17b   : > { %1108 = vst.msk [vmem:[#allocation3 + $0xe] sm:$0x3] %vm1105_vm6, %v1062_v13 }
 0x17c   : > { %v1060_v2 = vpop.permute.xlu0 %1059 }
 0x17d   : > { %1107 = vst.msk [vmem:[#allocation3 + $0x6] sm:$0xfc] %vm1103_vm4, %v1060_v2  ;;  %v4162_v5 = vpop.permute.xlu1 %1065 }
 0x180   : > { %v1132_v3 = vpop.permute.xlu0 %1131 }
 0x181   : > { %1180 = vst.msk [vmem:[#allocation3 - $0x6] sm:$0xc0] %vm1179_vm5, %v1132_v3  ;;  %v4174_v28 = vpop.permute.xlu1 %1237 }
 0x184   : > { %v1136_v12 = vpop.permute.xlu0 %1135 }
 0x185   : > { %1183 = vst.msk [vmem:[#allocation3 + $0x2] sm:$0xc0] %vm1179_vm5, %v1136_v12  ;;  %v4188_v34 = vpop.permute.xlu1 %1069 }
 0x188   : > { %v4154_v18 = vpop.permute.xlu0 %1233 }
 0x189   : > { %v4208_v41 = vpop.permute.xlu1 %1143 }
 0x18c   : > { %v4156_v19 = vpop.permute.xlu0 %1301 }
 0x18d   : > { %v4220_v50 = vpop.permute.xlu1 %1073 }
 0x190   : > { %v4158_v20 = vpop.permute.xlu0 %1139 }
 0x191   : > { %v4231_v51 = vpop.permute.xlu1 %1245 }
 0x194   : > { %v4160_v21 = vpop.permute.xlu0 %1305 }
 0x195   : > { %v4237_v55 = vpop.permute.xlu1 %1077 }
 0x198   : > { %v4164_v22 = vpop.permute.xlu0 %1403 }
 0x199   : > { %v4243_v8 = vpop.permute.xlu1 %1151 }
 0x19c   : > { %v4176_v42 = vpop.permute.xlu0 %1241 }
 0x19d   : > { %v4247_v58 = vpop.permute.xlu1 %1081 }
 0x1a0   : > { %v4190_v35 = vpop.permute.xlu0 %1407 }
 0x1a1   : > { %v4259_v9 = vpop.permute.xlu1 %1253 }
 0x1a4   : > { %v4210_v54 = vpop.permute.xlu0 %1309 }
 0x1a5   : > { %v4267_v1 = vpop.permute.xlu1 %1085 }
 0x1a8   : > { %v4222_v25 = vpop.permute.xlu0 %1147 }
 0x1a9   : > { %v4275_v3 = vpop.permute.xlu1 %1159 }
 0x1ac   : > { %v4233_v53 = vpop.permute.xlu0 %1313 }
 0x1b0   : > { %v4239_v56 = vpop.permute.xlu0 %1411 }
 0x1b4   : > { %v4245_v57 = vpop.permute.xlu0 %1249 }
 0x1b8   : > { %v4249_v59 = vpop.permute.xlu0 %1415 }
 0x1bc   : > { %v4261_v63 = vpop.permute.xlu0 %1317 }
 0x1c0   : > { %v4269_v2 = vpop.permute.xlu0 %1155 }
 0x1c4   : > { %v4277_v10 = vpop.permute.xlu0 %1321 }
 0x1d0   : > { %v4134_v17 = vpop.f32.mrb[0].mxu0 }
 0x1d1   : > { %5422 = vst [vmem:[#allocation4_spill] sm:$0xff] %v4134_v17  ;;  %936 = vst.msk [vmem:[#allocation2 + $0xe0] sm:$0xff] %vm5423_vm7, %v4134_v17  ;;  %v4138_v27 = vpop.f32.mrb[1].mxu0 }
 0x1d2   : > { %5424 = vst [vmem:[#allocation5_spill] sm:$0xff] %v4138_v27  ;;  %935 = vst.msk [vmem:[#allocation2 + $0xc8] sm:$0xff] %vm5425_vm9, %v4138_v27  ;;  %vm1349_vm9 = vcmask 458118  }
 0x1d8   : > { %v963_v14 = vld [vmem:[#allocation2 + $0xe0] sm:$0xff] }
 0x1d9   : > { %1199 = vrot.lane.b32.xlu0 %v963_v14, %s3385_s21  ;;  %998 = vst.msk [vmem:[#allocation3 + $0x1a] sm:$0x3f] %vm991_vm0, %v963_v14  ;;  %1137 = vrot.lane.b32.xlu1 %v963_v14, %s3384_s20  ;;  %v960_v16 = vld [vmem:[#allocation2 + $0xc8] sm:$0xff] }
 0x1da   : > { %996 = vst.msk [vmem:[#allocation3 + $0x12] sm:$0x3f] %vm991_vm0, %v960_v16 }
 0x1dd   : > { %1235 = vrot.lane.b32.xlu0 %v963_v14, %s3386_s22  ;;  %1021 = vrot.lane.b32.xlu1 %v963_v14, %s3383_s19 }
 0x1e1   : > { %1067 = vrot.lane.b32.xlu0 %v963_v14, %s3382_s18  ;;  %1133 = vrot.lane.b32.xlu1 %v960_v16, %s3384_s20 }
 0x1e5   : > { %1197 = vrot.lane.b32.xlu0 %v960_v16, %s3385_s21  ;;  %1019 = vrot.lane.b32.xlu1 %v960_v16, %s3383_s19 }
 0x1e9   : > { %1063 = vrot.lane.b32.xlu0 %v960_v16, %s3382_s18  ;;  %1231 = vrot.lane.b32.xlu1 %v960_v16, %s3386_s22 }
 0x204   : > { %v4166_v26 = vpop.f32.mrb[2].mxu0 }
 0x205   : > { %5426 = vst [vmem:[#allocation6_spill] sm:$0xff] %v4166_v26  ;;  %938 = vst.msk [vmem:[#allocation2 + $0x110] sm:$0xff] %vm5427_vm10, %v4166_v26  ;;  %v4170_v29 = vpop.f32.mrb[3].mxu0  ;;  %v3065_v26 = vld [vmem:[%s5401_s1 + $0x98] sm:$0xff] }
 0x206   : > { %5428 = vst [vmem:[#allocation7_spill] sm:$0xff] %v4170_v29  ;;  %937 = vst.msk [vmem:[#allocation2 + $0xf8] sm:$0xff] %vm5429_vm11, %v4170_v29  ;;  %vm1351_vm11 = vcmask 456064   ;;  %v3067_v29 = vld [vmem:[%s5401_s1 + $0xa8] sm:$0xff] }
 0x207   : > { %vm5436_vm10 = vmmov %vm5423_vm7 }
 0x20c   : > { %v969_v23 = vld [vmem:[#allocation2 + $0x110] sm:$0xff] }
 0x20d   : > { %1145 = vrot.lane.b32.xlu0 %v969_v23, %s3384_s20  ;;  %1002 = vst.msk [vmem:[#allocation3 + $0x2a] sm:$0x3f] %vm991_vm0, %v969_v23  ;;  %1307 = vrot.lane.b32.xlu1 %v969_v23, %s3387_s23  ;;  %v966_v32 = vld [vmem:[#allocation2 + $0xf8] sm:$0xff] }
 0x20e   : > { %1000 = vst.msk [vmem:[#allocation3 + $0x22] sm:$0x3f] %vm991_vm0, %v966_v32 }
 0x211   : > { %1369 = vrot.lane.b32.xlu0 %v969_v23, %s3388_s28  ;;  %1405 = vrot.lane.b32.xlu1 %v969_v23, %s3389_s10 }
 0x215   : > { %1203 = vrot.lane.b32.xlu0 %v969_v23, %s3385_s21  ;;  %1025 = vrot.lane.b32.xlu1 %v969_v23, %s3383_s19 }
 0x219   : > { %1243 = vrot.lane.b32.xlu0 %v969_v23, %s3386_s22  ;;  %1303 = vrot.lane.b32.xlu1 %v966_v32, %s3387_s23 }
 0x21d   : > { %1075 = vrot.lane.b32.xlu0 %v969_v23, %s3382_s18  ;;  %1141 = vrot.lane.b32.xlu1 %v966_v32, %s3384_s20 }
 0x221   : > { %1367 = vrot.lane.b32.xlu0 %v966_v32, %s3388_s28  ;;  %1201 = vrot.lane.b32.xlu1 %v966_v32, %s3385_s21 }
 0x225   : > { %1071 = vrot.lane.b32.xlu0 %v966_v32, %s3382_s18  ;;  %1401 = vrot.lane.b32.xlu1 %v966_v32, %s3389_s10 }
 0x229   : > { %1023 = vrot.lane.b32.xlu1 %v966_v32, %s3383_s19 }
 0x22d   : > { %1239 = vrot.lane.b32.xlu1 %v966_v32, %s3386_s22 }
 0x234   : > { %v4251_v60 = vpop.f32.mrb[4].mxu0 }
 0x235   : > { %5430 = vst [vmem:[#allocation8_spill] sm:$0xff] %v4251_v60  ;;  %940 = vst.msk [vmem:[#allocation2 + $0x140] sm:$0xff] %vm5431_vm12, %v4251_v60  ;;  %v4255_v62 = vpop.f32.mrb[5].mxu0  ;;  %vm1451_vm12 = vcmask 583168  }
 0x236   : > { %5432 = vst [vmem:[#allocation9_spill] sm:$0xff] %v4255_v62  ;;  %939 = vst.msk [vmem:[#allocation2 + $0x128] sm:$0xff] %vm5433_vm14, %v4255_v62  ;;  %vm1449_vm14 = vcmask 589314  }
 0x23c   : > { %v975_v0 = vld [vmem:[#allocation2 + $0x140] sm:$0xff] }
 0x23d   : > { %1153 = vrot.lane.b32.xlu0 %v975_v0, %s3384_s20  ;;  %1006 = vst.msk [vmem:[#allocation3 + $0x3a] sm:$0x3f] %vm991_vm0, %v975_v0  ;;  %1315 = vrot.lane.b32.xlu1 %v975_v0, %s3387_s23  ;;  %v972_v7 = vld [vmem:[#allocation2 + $0x128] sm:$0xff] }
 0x23e   : > { %1004 = vst.msk [vmem:[#allocation3 + $0x32] sm:$0x3f] %vm991_vm0, %v972_v7  ;;  %vm1181_vm0 = vcmask 259264  }
 0x241   : > { %1373 = vrot.lane.b32.xlu0 %v975_v0, %s3388_s28  ;;  %1413 = vrot.lane.b32.xlu1 %v975_v0, %s3389_s10 }
 0x245   : > { %1207 = vrot.lane.b32.xlu0 %v975_v0, %s3385_s21  ;;  %1029 = vrot.lane.b32.xlu1 %v975_v0, %s3383_s19 }
 0x249   : > { %1251 = vrot.lane.b32.xlu0 %v975_v0, %s3386_s22  ;;  %1311 = vrot.lane.b32.xlu1 %v972_v7, %s3387_s23 }
 0x24b   : > { %v1200_v12 = vpop.permute.xlu0 %1199  ;;  %v1138_v11 = vpop.permute.xlu1 %1137 }
 0x24c   : > { %1184 = vst.msk [vmem:[#allocation3 + $0xa] sm:$0x3f] %vm1181_vm0, %v1138_v11  ;;  %v4282_v13 = vpop.f32.mrb[6].mxu0  ;;  %v4433_v11 = vld [vmem:[#allocation2 + $0x88] sm:$0xff] }
 0x24d   : > { %5434 = vst [vmem:[#allocation10_spill] sm:$0xff] %v4282_v13  ;;  %1222 = vst.msk [vmem:[#allocation3 + $0x8] sm:$0xff] %vm513_vm8, %v1200_v12  ;;  %1083 = vrot.lane.b32.xlu0 %v975_v0, %s3382_s18  ;;  %1149 = vrot.lane.b32.xlu1 %v972_v7, %s3384_s20  ;;  %v4289_v14 = vpop.f32.mrb[7].mxu0  ;;  %v1663_v0 = vld [vmem:[#allocation2 + $0x60] sm:$0xff] }
 0x24e   : > { %942 = vst.msk [vmem:[#allocation2 + $0x170] sm:$0xff] %vm5423_vm7, %v4282_v13  ;;  %5435 = vst [vmem:[#allocation11_spill] sm:$0xff] %v4289_v14  ;;  %vm1711_vm7 = vcmask 64516  }
 0x24f   : > { %1284 = vst.msk [vmem:[#allocation3 + $0xe] sm:$0x3] %vm1281_vm15, %v4174_v28  ;;  %v1236_v16 = vpop.permute.xlu0 %1235  ;;  %v1022_v23 = vpop.permute.xlu1 %1021 }
 0x250   : > { %941 = vst.msk [vmem:[#allocation2 + $0x158] sm:$0xff] %vm5436_vm10, %v4289_v14  ;;  %vm1713_vm10 = vcmask 60416  }
 0x251   : > { %1283 = vst.msk [vmem:[#allocation3 + $0x6] sm:$0xfc] %vm1279_vm2, %v1236_v16  ;;  %1371 = vrot.lane.b32.xlu0 %v972_v7, %s3388_s28  ;;  %1205 = vrot.lane.b32.xlu1 %v972_v7, %s3385_s21 }
 0x252   : > { %1042 = vst.msk [vmem:[#allocation3 + $0x18] sm:$0xff] %vm331_vm3, %v1022_v23 }
 0x253   : > { %1353 = vst.msk [vmem:[#allocation3 + $0x2] sm:$0xc0] %vm1349_vm9, %v4160_v21  ;;  %v1068_v28 = vpop.permute.xlu0 %1067  ;;  %v1134_v6 = vpop.permute.xlu1 %1133 }
 0x254   : > { %1112 = vst.msk [vmem:[#allocation3 + $0x1e] sm:$0x3] %vm1105_vm6, %v4188_v34 }
 0x255   : > { %1111 = vst.msk [vmem:[#allocation3 + $0x16] sm:$0xfc] %vm1103_vm4, %v1068_v28  ;;  %1079 = vrot.lane.b32.xlu0 %v972_v7, %s3382_s18  ;;  %1409 = vrot.lane.b32.xlu1 %v972_v7, %s3389_s10  ;;  %v981_v21 = vld [vmem:[#allocation2 + $0x170] sm:$0xff]  ;;  %v4465_v28 = vld [vmem:[#allocation2 + $0xe8] sm:$0xff] }
 0x256   : > { %1182 = vst.msk [vmem:[#allocation3 + $0x2] sm:$0x3f] %vm1181_vm0, %v1134_v6  ;;  %v4473_v6 = vld [vmem:[#allocation2 + $0x130] sm:$0xff] }
 0x257   : > { %1187 = vst.msk [vmem:[#allocation3 + $0x12] sm:$0xc0] %vm1179_vm5, %v4208_v41  ;;  %v1198_v30 = vpop.permute.xlu0 %1197  ;;  %v1020_v32 = vpop.permute.xlu1 %1019  ;;  %v4379_v41 = vld [vmem:[#allocation2 + $0x80] sm:$0xff] }
 0x258   : > { %1221 = vst.msk [vmem:[#allocation3] sm:$0xff] %vm513_vm8, %v1198_v30  ;;  %v4475_v30 = vld [vmem:[#allocation2 + $0xb8] sm:$0xff] }
 0x259   : > { %1041 = vst.msk [vmem:[#allocation3 + $0x10] sm:$0xff] %vm331_vm3, %v1020_v32  ;;  %1027 = vrot.lane.b32.xlu1 %v972_v7, %s3383_s19  ;;  %1161 = vrot.lane.b32.xlu0 %v981_v21, %s3384_s20  ;;  %v4485_v32 = vld [vmem:[#allocation2 + $0x100] sm:$0xff] }
 0x25a   : > { %1282 = vst.msk [vmem:[#allocation3 + $0x6] sm:$0x3] %vm1281_vm15, %v4154_v18  ;;  %v978_v18 = vld [vmem:[#allocation2 + $0x158] sm:$0xff] }
 0x25b   : > { %1110 = vst.msk [vmem:[#allocation3 + $0x16] sm:$0x3] %vm1105_vm6, %v4162_v5  ;;  %v1064_v33 = vpop.permute.xlu0 %1063  ;;  %v1232_v34 = vpop.permute.xlu1 %1231 }
 0x25c   : > { %1109 = vst.msk [vmem:[#allocation3 + $0xe] sm:$0xfc] %vm1103_vm4, %v1064_v33 }
 0x25d   : > { %1280 = vst.msk [vmem:[#allocation3 - $0x2] sm:$0xfc] %vm1279_vm2, %v1232_v34  ;;  %1247 = vrot.lane.b32.xlu1 %v972_v7, %s3386_s22  ;;  %1377 = vrot.lane.b32.xlu0 %v981_v21, %s3388_s28 }
 0x25e   : > { %1185 = vst.msk [vmem:[#allocation3 + $0xa] sm:$0xc0] %vm1179_vm5, %v4158_v20 }
 0x25f   : > { %1350 = vst.msk [vmem:[#allocation3 - $0x6] sm:$0xc0] %vm1349_vm9, %v4156_v19  ;;  %v4339_v19 = vld [vmem:[#allocation2 + $0x198] sm:$0xff] }
 0x261   : > { %1323 = vrot.lane.b32.xlu1 %v981_v21, %s3387_s23  ;;  %1375 = vrot.lane.b32.xlu0 %v978_v18, %s3388_s28 }
 0x265   : > { %1419 = vrot.lane.b32.xlu0 %v3859_v61, %s3389_s10  ;;  %1319 = vrot.lane.b32.xlu1 %v978_v18, %s3387_s23 }
 0x269   : > { %1255 = vrot.lane.b32.xlu0 %v978_v18, %s3386_s22  ;;  %1157 = vrot.lane.b32.xlu1 %v978_v18, %s3384_s20 }
 0x26d   : > { %1421 = vrot.lane.b32.xlu0 %v981_v21, %s3389_s10  ;;  %1209 = vrot.lane.b32.xlu1 %v978_v18, %s3385_s21 }
 0x271   : > { %1259 = vrot.lane.b32.xlu0 %v981_v21, %s3386_s22  ;;  %1417 = vrot.lane.b32.xlu1 %v978_v18, %s3389_s10  ;;  %v4487_v18 = vld [vmem:[#allocation2 + $0x108] sm:$0xff] }
 0x275   : > { %1211 = vrot.lane.b32.xlu1 %v981_v21, %s3385_s21  ;;  %1325 = vrot.lane.b32.xlu0 %v3935_v37, %s3387_s23 }
 0x279   : > { %1257 = vrot.lane.b32.xlu1 %v3859_v61, %s3386_s22  ;;  %1329 = vrot.lane.b32.xlu0 %v4339_v19, %s3387_s23 }
 0x27d   : > { %1423 = vrot.lane.b32.xlu1 %v3919_v31, %s3389_s10  ;;  %1379 = vrot.lane.b32.xlu0 %v3933_v36, %s3388_s28 }
 0x27f   : > { %v1146_v20 = vpop.permute.xlu0 %1145  ;;  %v1308_v5 = vpop.permute.xlu1 %1307 }
 0x280   : > { %1188 = vst.msk [vmem:[#allocation3 + $0x1a] sm:$0x3f] %vm1181_vm0, %v1146_v20  ;;  %v4499_v20 = vld [vmem:[#allocation2 + $0x148] sm:$0xff] }
 0x281   : > { %1354 = vst.msk [vmem:[#allocation3 + $0xa] sm:$0x3f] %vm1351_vm11, %v1308_v5  ;;  %1261 = vrot.lane.b32.xlu1 %v3919_v31, %s3386_s22  ;;  %1425 = vrot.lane.b32.xlu0 %v3933_v36, %s3389_s10  ;;  %v4365_v31 = vld [vmem:[#allocation2 + $0x68] sm:$0xff] }
 0x283   : > { %v1370_v61 = vpop.permute.xlu0 %1369  ;;  %v1406_v37 = vpop.permute.xlu1 %1405 }
 0x284   : > { %1392 = vst.msk [vmem:[#allocation3 + $0x8] sm:$0xff] %vm681_vm13, %v1370_v61 }
 0x285   : > { %1454 = vst.msk [vmem:[#allocation3 + $0xe] sm:$0x3] %vm1451_vm12, %v4190_v35  ;;  %1327 = vrot.lane.b32.xlu1 %v3933_v36, %s3387_s23  ;;  %1429 = vrot.lane.b32.xlu0 %v4356_v24, %s3389_s10  ;;  %v1666_v36 = vld [vmem:[#allocation2 + $0x78] sm:$0xff] }
 0x286   : > { %1453 = vst.msk [vmem:[#allocation3 + $0x6] sm:$0xfc] %vm1449_vm14, %v1406_v37 }
 0x287   : > { %v1204_v38 = vpop.permute.xlu0 %1203  ;;  %v1026_v39 = vpop.permute.xlu1 %1025 }
 0x288   : > { %1224 = vst.msk [vmem:[#allocation3 + $0x18] sm:$0xff] %vm513_vm8, %v1204_v38 }
 0x289   : > { %1044 = vst.msk [vmem:[#allocation3 + $0x28] sm:$0xff] %vm331_vm3, %v1026_v39  ;;  %1331 = vrot.lane.b32.xlu1 %v4356_v24, %s3387_s23  ;;  %1737 = vrot.lane.b32.xlu0 %v4365_v31, %s3383_s19  ;;  %v4514_v39 = vld [vmem:[#allocation2 + $0x118] sm:$0xff] }
 0x28a   : > { %1288 = vst.msk [vmem:[#allocation3 + $0x1e] sm:$0x3] %vm1281_vm15, %v4231_v51 }
 0x28b   : > { %1116 = vst.msk [vmem:[#allocation3 + $0x2e] sm:$0x3] %vm1105_vm6, %v4237_v55  ;;  %v1244_v35 = vpop.permute.xlu0 %1243  ;;  %v1304_v40 = vpop.permute.xlu1 %1303 }
 0x28c   : > { %1287 = vst.msk [vmem:[#allocation3 + $0x16] sm:$0xfc] %vm1279_vm2, %v1244_v35 }
 0x28d   : > { %1352 = vst.msk [vmem:[#allocation3 + $0x2] sm:$0x3f] %vm1351_vm11, %v1304_v40  ;;  %v1468_v43 = vld [vmem:[#allocation3 + $0x8] sm:$0xff]  ;;  %1381 = vrot.lane.b32.xlu1 %v4356_v24, %s3388_s28  ;;  %1777 = vrot.lane.b32.xlu0 %v4365_v31, %s3382_s18 }
 0x28e   : > { %1357 = vst.msk [vmem:[#allocation3 + $0x12] sm:$0xc0] %vm1349_vm9, %v4233_v53 }
 0x28f   : > { %1715 = vst.msk [vmem:[#allocation3 + $0x4] sm:$0xf0] %vm1711_vm7, %v1666_v36  ;;  %v1076_v44 = vpop.permute.xlu0 %1075  ;;  %v1142_v45 = vpop.permute.xlu1 %1141 }
 0x290   : > { %1716 = vst.msk [vmem:[#allocation3 + $0xc] sm:$0xf] %vm1713_vm10, %v4379_v41 }
 0x291   : > { %1115 = vst.msk [vmem:[#allocation3 + $0x26] sm:$0xfc] %vm1103_vm4, %v1076_v44  ;;  %1427 = vrot.lane.b32.xlu1 %v3961_v48, %s3389_s10  ;;  %1781 = vrot.lane.b32.xlu0 %v4379_v41, %s3382_s18  ;;  %v4412_v48 = vld [vmem:[#allocation2 + $0xd8] sm:$0xff] }
 0x292   : > { %1186 = vst.msk [vmem:[#allocation3 + $0x12] sm:$0x3f] %vm1181_vm0, %v1142_v45 }
 0x293   : > { %1191 = vst.msk [vmem:[#allocation3 + $0x22] sm:$0xc0] %vm1179_vm5, %v4243_v8  ;;  %v1368_v4 = vpop.permute.xlu0 %1367  ;;  %v1202_v51 = vpop.permute.xlu1 %1201 }
 0x294   : > { %1391 = vst.msk [vmem:[#allocation3] sm:$0xff] %vm681_vm13, %v1368_v4 }
 0x295   : > { %1223 = vst.msk [vmem:[#allocation3 + $0x10] sm:$0xff] %vm513_vm8, %v1202_v51  ;;  %1431 = vrot.lane.b32.xlu1 %v4398_v46, %s3389_s10  ;;  %1855 = vrot.lane.b32.xlu0 %v4400_v49, %s3384_s20 }
 0x296   : > { %1452 = vst.msk [vmem:[#allocation3 + $0x6] sm:$0x3] %vm1451_vm12, %v4164_v22  ;;  %v4419_v22 = vld [vmem:[#allocation2 + $0xd0] sm:$0xff] }
 0x297   : > { %1286 = vst.msk [vmem:[#allocation3 + $0x16] sm:$0x3] %vm1281_vm15, %v4176_v42  ;;  %v1402_v53 = vpop.permute.xlu1 %1401  ;;  %v4421_v42 = vld [vmem:[#allocation2 + $0x70] sm:$0xff]  ;;  %v1072_v8 = vpop.permute.xlu0 %1071 }
 0x298   : > { %1450 = vst.msk [vmem:[#allocation3 - $0x2] sm:$0xfc] %vm1449_vm14, %v1402_v53  ;;  %v4565_v53 = vld [vmem:[#allocation2 + $0x188] sm:$0xff] }
 0x299   : > { %1859 = vrot.lane.b32.xlu0 %v4412_v48, %s3384_s20  ;;  %1739 = vrot.lane.b32.xlu1 %v4379_v41, %s3383_s19 }
 0x29b   : > { %v1024_v55 = vpop.permute.xlu1 %1023 }
 0x29c   : > { %1043 = vst.msk [vmem:[#allocation3 + $0x20] sm:$0xff] %vm331_vm3, %v1024_v55 }
 0x29d   : > { %1113 = vst.msk [vmem:[#allocation3 + $0x1e] sm:$0xfc] %vm1103_vm4, %v1072_v8  ;;  %1959 = vrot.lane.b32.xlu0 %v4419_v22, %s3386_s22  ;;  %1779 = vrot.lane.b32.xlu1 %v4421_v42, %s3382_s18 }
 0x29e   : > { %1114 = vst.msk [vmem:[#allocation3 + $0x26] sm:$0x3] %vm1105_vm6, %v4220_v50  ;;  %v4447_v50 = vld [vmem:[#allocation2 + $0x120] sm:$0xff] }
 0x29f   : > { %1189 = vst.msk [vmem:[#allocation3 + $0x1a] sm:$0xc0] %vm1179_vm5, %v4222_v25  ;;  %v1240_v7 = vpop.permute.xlu1 %1239  ;;  %v1467_v12 = vld [vmem:[#allocation3] sm:$0xff]  ;;  %v4463_v25 = vld [vmem:[#allocation2 + $0x138] sm:$0xff] }
 0x2a0   : > { %1285 = vst.msk [vmem:[#allocation3 + $0xe] sm:$0xfc] %vm1279_vm2, %v1240_v7  ;;  %3218 = vmatprep.mubr.msk.f32.mxu1 %vm765_vm1, %v1467_v12 }
 0x2a1   : > { %1712 = vst.msk [vmem:[#allocation3 - $0x4] sm:$0xf0] %vm1711_vm7, %v1663_v0  ;;  %3219 = vmatmul.mubr.msk.f32.vlgmr.msra.gmra.mrb[0].mxu1 %vm765_vm1, %v1468_v43  ;;  %1785 = vrot.lane.b32.xlu0 %v3953_v47, %s3382_s18  ;;  %v1669_v43 = vld [vmem:[#allocation2 + $0x90] sm:$0xff] }
 0x2a2   : > { %1714 = vst.msk [vmem:[#allocation3 + $0x4] sm:$0xf] %vm1713_vm10, %v4365_v31  ;;  %1783 = vrot.lane.b32.xlu1 %v4433_v11, %s3382_s18 }
 0x2a3   : > { %1355 = vst.msk [vmem:[#allocation3 + $0xa] sm:$0xc0] %vm1349_vm9, %v4210_v54  ;;  %v4457_v54 = vld [vmem:[#allocation2 + $0xf0] sm:$0xff] }
 0x2a5   : > { %2031 = vrot.lane.b32.xlu0 %v4447_v50, %s3387_s23 }
 0x2a6   : > { %1741 = vrot.lane.b32.xlu1 %v3953_v47, %s3383_s19 }
 0x2a9   : > { %1789 = vrot.lane.b32.xlu0 %v3963_v52, %s3382_s18 }
 0x2aa   : > { %1743 = vrot.lane.b32.xlu1 %v3963_v52, %s3383_s19 }
 0x2ad   : > { %1863 = vrot.lane.b32.xlu0 %v4457_v54, %s3384_s20 }
 0x2ae   : > { %1787 = vrot.lane.b32.xlu1 %v3982_v15, %s3382_s18 }
 0x2af   : > { %v1154_v16 = vpop.permute.xlu0 %1153  ;;  %v1316_v23 = vpop.permute.xlu1 %1315 }
 0x2b0   : > { %1192 = vst.msk [vmem:[#allocation3 + $0x2a] sm:$0x3f] %vm1181_vm0, %v1154_v16 }
 0x2b1   : > { %1358 = vst.msk [vmem:[#allocation3 + $0x1a] sm:$0x3f] %vm1351_vm11, %v1316_v23  ;;  %2035 = vrot.lane.b32.xlu0 %v4463_v25, %s3387_s23 }
 0x2b2   : > { %1963 = vrot.lane.b32.xlu1 %v4465_v28, %s3386_s22 }
 0x2b3   : > { %v1374_v21 = vpop.permute.xlu0 %1373  ;;  %v1414_v15 = vpop.permute.xlu1 %1413 }
 0x2b4   : > { %1394 = vst.msk [vmem:[#allocation3 + $0x18] sm:$0xff] %vm681_vm13, %v1374_v21 }
 0x2b5   : > { %1458 = vst.msk [vmem:[#allocation3 + $0x1e] sm:$0x3] %vm1451_vm12, %v4249_v59  ;;  %2135 = vrot.lane.b32.xlu0 %v4473_v6, %s3389_s10  ;;  %v1672_v59 = vld [vmem:[#allocation2 + $0xa8] sm:$0xff] }
 0x2b6   : > { %1457 = vst.msk [vmem:[#allocation3 + $0x16] sm:$0xfc] %vm1449_vm14, %v1414_v15  ;;  %1791 = vrot.lane.b32.xlu1 %v4475_v30, %s3382_s18 }
 0x2b7   : > { %v1208_v33 = vpop.permute.xlu0 %1207  ;;  %v1030_v34 = vpop.permute.xlu1 %1029 }
 0x2b8   : > { %1226 = vst.msk [vmem:[#allocation3 + $0x28] sm:$0xff] %vm513_vm8, %v1208_v33 }
 0x2b9   : > { %1046 = vst.msk [vmem:[#allocation3 + $0x38] sm:$0xff] %vm331_vm3, %v1030_v34  ;;  %1967 = vrot.lane.b32.xlu0 %v4485_v32, %s3386_s22 }
 0x2ba   : > { %1292 = vst.msk [vmem:[#allocation3 + $0x2e] sm:$0x3] %vm1281_vm15, %v4259_v9  ;;  %1867 = vrot.lane.b32.xlu1 %v4487_v18, %s3384_s20  ;;  %v4512_v9 = vld [vmem:[#allocation2 + $0x150] sm:$0xff] }
 0x2bb   : > { %1120 = vst.msk [vmem:[#allocation3 + $0x3e] sm:$0x3] %vm1105_vm6, %v4267_v1  ;;  %v1252_v5 = vpop.permute.xlu0 %1251  ;;  %v1312_v61 = vpop.permute.xlu1 %1311 }
 0x2bc   : > { %1291 = vst.msk [vmem:[#allocation3 + $0x26] sm:$0xfc] %vm1279_vm2, %v1252_v5 }
 0x2bd   : > { %1356 = vst.msk [vmem:[#allocation3 + $0x12] sm:$0x3f] %vm1351_vm11, %v1312_v61  ;;  %v1470_v37 = vld [vmem:[#allocation3 + $0x18] sm:$0xff]  ;;  %2139 = vrot.lane.b32.xlu0 %v4499_v20, %s3389_s10 }
 0x2be   : > { %1361 = vst.msk [vmem:[#allocation3 + $0x22] sm:$0xc0] %vm1349_vm9, %v4277_v10  ;;  %1795 = vrot.lane.b32.xlu1 %v4419_v22, %s3382_s18 }
 0x2bf   : > { %1719 = vst.msk [vmem:[#allocation3 + $0x14] sm:$0xf0] %vm1711_vm7, %v1672_v59  ;;  %v1084_v1 = vpop.permute.xlu0 %1083  ;;  %v1150_v38 = vpop.permute.xlu1 %1149 }
 0x2c0   : > { %1720 = vst.msk [vmem:[#allocation3 + $0x1c] sm:$0xf] %vm1713_vm10, %v3963_v52 }
 0x2c1   : > { %1119 = vst.msk [vmem:[#allocation3 + $0x36] sm:$0xfc] %vm1103_vm4, %v1084_v1  ;;  %2039 = vrot.lane.b32.xlu0 %v4512_v9, %s3387_s23 }
 0x2c2   : > { %1190 = vst.msk [vmem:[#allocation3 + $0x22] sm:$0x3f] %vm1181_vm0, %v1150_v38  ;;  %1971 = vrot.lane.b32.xlu1 %v4514_v39, %s3386_s22  ;;  %v4623_v38 = vld [vmem:[#allocation2 + $0x1b8] sm:$0xff] }
 0x2c3   : > { %1195 = vst.msk [vmem:[#allocation3 + $0x32] sm:$0xc0] %vm1179_vm5, %v4275_v3  ;;  %v1372_v52 = vpop.permute.xlu0 %1371  ;;  %v1206_v10 = vpop.permute.xlu1 %1205  ;;  %v4534_v3 = vld [vmem:[#allocation2 + $0x168] sm:$0xff] }
 0x2c4   : > { %1393 = vst.msk [vmem:[#allocation3 + $0x10] sm:$0xff] %vm681_vm13, %v1372_v52  ;;  %5437 = vst [vmem:[#allocation12_spill] sm:$0xff] %v4534_v3 }
 0x2c5   : > { %1225 = vst.msk [vmem:[#allocation3 + $0x20] sm:$0xff] %vm513_vm8, %v1206_v10  ;;  %1871 = vrot.lane.b32.xlu0 %v4447_v50, %s3384_s20 }
 0x2c6   : > { %1456 = vst.msk [vmem:[#allocation3 + $0x16] sm:$0x3] %vm1451_vm12, %v4239_v56  ;;  %1799 = vrot.lane.b32.xlu1 %v4465_v28, %s3382_s18  ;;  %v1695_v56 = vld [vmem:[#allocation2 + $0x160] sm:$0xff] }
 0x2c7   : > { %1290 = vst.msk [vmem:[#allocation3 + $0x26] sm:$0x3] %vm1281_vm15, %v4245_v57  ;;  %v1080_v36 = vpop.permute.xlu0 %1079  ;;  %v1410_v35 = vpop.permute.xlu1 %1409 }
 0x2c8   : > { %1455 = vst.msk [vmem:[#allocation3 + $0xe] sm:$0xfc] %vm1449_vm14, %v1410_v35 }
 0x2c9   : > { %2043 = vrot.lane.b32.xlu0 %v4534_v3, %s3387_s23 }
 0x2ca   : > { %1875 = vrot.lane.b32.xlu1 %v4463_v25, %s3384_s20 }
 0x2cb   : > { %v1028_v57 = vpop.permute.xlu1 %1027  ;;  %v1162_v40 = vpop.permute.xlu0 %1161 }
 0x2cc   : > { %1045 = vst.msk [vmem:[#allocation3 + $0x30] sm:$0xff] %vm331_vm3, %v1028_v57 }
 0x2cd   : > { %1196 = vst.msk [vmem:[#allocation3 + $0x3a] sm:$0x3f] %vm1181_vm0, %v1162_v40  ;;  %2143 = vrot.lane.b32.xlu0 %v1695_v56, %s3389_s10 }
 0x2ce   : > { %1117 = vst.msk [vmem:[#allocation3 + $0x2e] sm:$0xfc] %vm1103_vm4, %v1080_v36  ;;  %1803 = vrot.lane.b32.xlu1 %v4485_v32, %s3382_s18  ;;  %v4632_v36 = vld [vmem:[#allocation2 + $0x1d0] sm:$0xff]  ;;  %vm1825_vm4 = vcmask 195716  }
 0x2cf   : > { %1118 = vst.msk [vmem:[#allocation3 + $0x36] sm:$0x3] %vm1105_vm6, %v4247_v58  ;;  %v1248_v44 = vpop.permute.xlu1 %1247  ;;  %v1378_v45 = vpop.permute.xlu0 %1377  ;;  %v1469_v4 = vld [vmem:[#allocation3 + $0x10] sm:$0xff]  ;;  %v4563_v58 = vld [vmem:[#allocation2 + $0x178] sm:$0xff]  ;;  %vm1827_vm6 = vcmask 191616  }
 0x2d0   : > { %1193 = vst.msk [vmem:[#allocation3 + $0x2a] sm:$0xc0] %vm1179_vm5, %v4269_v2  ;;  %3221 = vmatprep.mubr.msk.f32.mxu1 %vm765_vm1, %v1469_v4  ;;  %5438 = vst [vmem:[#allocation13_spill] sm:$0xff] %v4563_v58  ;;  %vm1903_vm5 = vcmask 261316  }
 0x2d1   : > { %1289 = vst.msk [vmem:[#allocation3 + $0x1e] sm:$0xfc] %vm1279_vm2, %v1248_v44  ;;  %3222 = vmatmul.mubr.msk.f32.gmra.mrb[2].mxu1 %vm765_vm1, %v1470_v37  ;;  %1975 = vrot.lane.b32.xlu0 %v4473_v6, %s3386_s22  ;;  %v4621_v37 = vld [vmem:[#allocation2 + $0x1b0] sm:$0xff] }
 0x2d2   : > { %1717 = vst.msk [vmem:[#allocation3 + $0xc] sm:$0xf0] %vm1711_vm7, %v1669_v43  ;;  %1979 = vrot.lane.b32.xlu1 %v4499_v20, %s3386_s22 }
 0x2d3   : > { %1718 = vst.msk [vmem:[#allocation3 + $0x14] sm:$0xf] %vm1713_vm10, %v3953_v47  ;;  %v1324_v2 = vpop.permute.xlu1 %1323  ;;  %v1376_v51 = vpop.permute.xlu0 %1375  ;;  %v4573_v47 = vld [vmem:[#allocation2 + $0x180] sm:$0xff] }
 0x2d4   : > { %1359 = vst.msk [vmem:[#allocation3 + $0x1a] sm:$0xc0] %vm1349_vm9, %v4261_v63 }
 0x2d5   : > { %1362 = vst.msk [vmem:[#allocation3 + $0x2a] sm:$0x3f] %vm1351_vm11, %v1324_v2  ;;  %2147 = vrot.lane.b32.xlu0 %v4563_v58, %s3389_s10 }
 0x2d6   : > { %1396 = vst.msk [vmem:[#allocation3 + $0x28] sm:$0xff] %vm681_vm13, %v1378_v45  ;;  %2049 = vrot.lane.b32.xlu1 %v4565_v53, %s3387_s23 }
 0x2d7   : > { %v1420_v63 = vpop.permute.xlu0 %1419  ;;  %v1320_v55 = vpop.permute.xlu1 %1319 }
 0x2d8   : > { %1360 = vst.msk [vmem:[#allocation3 + $0x22] sm:$0x3f] %vm1351_vm11, %v1320_v55 }
 0x2d9   : > { %1395 = vst.msk [vmem:[#allocation3 + $0x20] sm:$0xff] %vm681_vm13, %v1376_v51  ;;  %2047 = vrot.lane.b32.xlu0 %v4573_v47, %s3387_s23 }
 0x2da   : > { %1460 = vst.msk [vmem:[#allocation3 + $0x26] sm:$0x3] %vm1451_vm12, %v1420_v63  ;;  %1807 = vrot.lane.b32.xlu1 %v4514_v39, %s3382_s18 }
 0x2db   : > { %v1256_v8 = vpop.permute.xlu0 %1255  ;;  %v1158_v0 = vpop.permute.xlu1 %1157 }
 0x2dc   : > { %1194 = vst.msk [vmem:[#allocation3 + $0x32] sm:$0x3f] %vm1181_vm0, %v1158_v0  ;;  %vm5440_vm0 = vcmask 64512  }
 0x2dd   : > { %1879 = vrot.lane.b32.xlu0 %v4512_v9, %s3384_s20 }
 0x2de   : > { %2053 = vrot.lane.b32.xlu1 %v4356_v24, %s3387_s23 }
 0x2df   : > { %v1422_v7 = vpop.permute.xlu0 %1421  ;;  %v1210_v12 = vpop.permute.xlu1 %1209 }
 0x2e0   : > { %1461 = vst.msk [vmem:[#allocation3 + $0x26] sm:$0xfc] %vm1449_vm14, %v1422_v7 }
 0x2e1   : > { %1227 = vst.msk [vmem:[#allocation3 + $0x30] sm:$0xff] %vm513_vm8, %v1210_v12  ;;  %2051 = vrot.lane.b32.xlu0 %v4339_v19, %s3387_s23  ;;  %v4605_v19 = vld [vmem:[#allocation2 + $0x190] sm:$0xff] }
 0x2e2   : > { %1293 = vst.msk [vmem:[#allocation3 + $0x2e] sm:$0xfc] %vm1279_vm2, %v1256_v8  ;;  %1883 = vrot.lane.b32.xlu1 %v4534_v3, %s3384_s20  ;;  %v3072_v3 = vld [vmem:[%s5401_s1 + $0xd0] sm:$0xff] }
 0x2e3   : > { %v1260_v16 = vpop.permute.xlu0 %1259  ;;  %v1418_v23 = vpop.permute.xlu1 %1417 }
 0x2e4   : > { %1459 = vst.msk [vmem:[#allocation3 + $0x1e] sm:$0xfc] %vm1449_vm14, %v1418_v23 }
 0x2e5   : > { %2105 = vrot.lane.b32.xlu0 %v4565_v53, %s3388_s28 }
 0x2e6   : > { %2149 = vrot.lane.b32.xlu1 %v4565_v53, %s3389_s10 }
 0x2e7   : > { %v1212_v21 = vpop.permute.xlu1 %1211  ;;  %v1326_v15 = vpop.permute.xlu0 %1325 }
 0x2e8   : > { %1228 = vst.msk [vmem:[#allocation3 + $0x38] sm:$0xff] %vm513_vm8, %v1212_v21 }
 0x2e9   : > { %1363 = vst.msk [vmem:[#allocation3 + $0x2a] sm:$0xc0] %vm1349_vm9, %v1326_v15  ;;  %2107 = vrot.lane.b32.xlu0 %v4356_v24, %s3388_s28 }
 0x2ea   : > { %1295 = vst.msk [vmem:[#allocation3 + $0x36] sm:$0xfc] %vm1279_vm2, %v1260_v16  ;;  %1983 = vrot.lane.b32.xlu1 %v1695_v56, %s3386_s22  ;;  %vm5445_vm2 = vmmov %vm5440_vm0 }
 0x2eb   : > { %v1258_v33 = vpop.permute.xlu1 %1257  ;;  %v1471_v34 = vld [vmem:[#allocation3 + $0x20] sm:$0xff]  ;;  %v1330_v59 = vpop.permute.xlu0 %1329 }
 0x2ec   : > { %1294 = vst.msk [vmem:[#allocation3 + $0x36] sm:$0x3] %vm1281_vm15, %v1258_v33  ;;  %3224 = vmatprep.mubr.msk.f32.mxu1 %vm765_vm1, %v1471_v34 }
 0x2ed   : > { %1365 = vst.msk [vmem:[#allocation3 + $0x32] sm:$0xc0] %vm1349_vm9, %v1330_v59  ;;  %2151 = vrot.lane.b32.xlu0 %v4605_v19, %s3389_s10  ;;  %vm5447_vm9 = vmmov %vm5440_vm0 }
 0x2ee   : > { %1721 = vst.msk [vmem:[#allocation3 + $0x1c] sm:$0xf0] %vm1711_vm7, %v4400_v49  ;;  %2155 = vrot.lane.b32.xlu1 %v4398_v46, %s3389_s10  ;;  %v4630_v46 = vld [vmem:[#allocation2 + $0x1c8] sm:$0xff] }
 0x2ef   : > { %v1424_v5 = vpop.permute.xlu1 %1423  ;;  %v1380_v61 = vpop.permute.xlu0 %1379 }
 0x2f0   : > { %1462 = vst.msk [vmem:[#allocation3 + $0x2e] sm:$0x3] %vm1451_vm12, %v1424_v5 }
 0x2f1   : > { %2153 = vrot.lane.b32.xlu0 %v4356_v24, %s3389_s10 }
 0x2f2   : > { %1987 = vrot.lane.b32.xlu1 %v4563_v58, %s3386_s22 }
 0x2f3   : > { %v1262_v9 = vpop.permute.xlu1 %1261  ;;  %v1426_v1 = vpop.permute.xlu0 %1425 }
 0x2f4   : > { %1296 = vst.msk [vmem:[#allocation3 + $0x3e] sm:$0x3] %vm1281_vm15, %v1262_v9  ;;  %vm5442_vm15 = vmmov %vm5440_vm0 }
 0x2f5   : > { %2055 = vrot.lane.b32.xlu0 %v4621_v37, %s3387_s23 }
 0x2f6   : > { %2057 = vrot.lane.b32.xlu1 %v4623_v38, %s3387_s23 }
 0x2f7   : > { %v1328_v24 = vpop.permute.xlu1 %1327  ;;  %v1472_v52 = vld [vmem:[#allocation3 + $0x28] sm:$0xff]  ;;  %v1430_v10 = vpop.permute.xlu0 %1429 }
 0x2f8   : > { %1364 = vst.msk [vmem:[#allocation3 + $0x32] sm:$0x3f] %vm1351_vm11, %v1328_v24  ;;  %3225 = vmatmul.mubr.msk.f32.gmra.mrb[4].mxu1 %vm765_vm1, %v1472_v52 }
 0x2f9   : > { %1723 = vst.msk [vmem:[#allocation3 + $0x24] sm:$0xf0] %vm1711_vm7, %v4412_v48  ;;  %2059 = vrot.lane.b32.xlu0 %v4630_v46, %s3387_s23 }
 0x2fa   : > { %1397 = vst.msk [vmem:[#allocation3 + $0x30] sm:$0xff] %vm681_vm13, %v1380_v61  ;;  %2061 = vrot.lane.b32.xlu1 %v4632_v36, %s3387_s23 }
 0x2fb   : > { %1463 = vst.msk [vmem:[#allocation3 + $0x2e] sm:$0xfc] %vm1449_vm14, %v1426_v1  ;;  %v1332_v35 = vpop.permute.xlu1 %1331  ;;  %v1738_v56 = vpop.permute.xlu0 %1737 }
 0x2fc   : > { %1366 = vst.msk [vmem:[#allocation3 + $0x3a] sm:$0x3f] %vm1351_vm11, %v1332_v35  ;;  %vm5450_vm11 = vmmov %vm5440_vm0 }
 0x2fd   : > { %1761 = vst.msk [vmem:[#allocation3] sm:$0xff] %vm331_vm3, %v1738_v56  ;;  %2109 = vrot.lane.b32.xlu0 %v4623_v38, %s3388_s28 }
 0x2fe   : > { %2111 = vrot.lane.b32.xlu1 %v4632_v36, %s3388_s28 }
 0x2ff   : > { %v1382_v57 = vpop.permute.xlu1 %1381  ;;  %v1778_v40 = vpop.permute.xlu0 %1777 }
 0x300   : > { %1398 = vst.msk [vmem:[#allocation3 + $0x38] sm:$0xff] %vm681_vm13, %v1382_v57 }
 0x301   : > { %1826 = vst.msk [vmem:[#allocation3 - $0x4] sm:$0xf0] %vm1825_vm4, %v1778_v40 }
 0x302   : > { %1465 = vst.msk [vmem:[#allocation3 + $0x36] sm:$0xfc] %vm1449_vm14, %v1430_v10  ;;  %vm5457_vm14 = vmmov %vm5440_vm0 }
 0x303   : > { %v1428_v43 = vpop.permute.xlu1 %1427  ;;  %v1782_v44 = vpop.permute.xlu0 %1781 }
 0x304   : > { %1464 = vst.msk [vmem:[#allocation3 + $0x36] sm:$0x3] %vm1451_vm12, %v1428_v43 }
 0x307   : > { %v1432_v45 = vpop.permute.xlu1 %1431  ;;  %v1856_v4 = vpop.permute.xlu0 %1855 }
 0x308   : > { %1466 = vst.msk [vmem:[#allocation3 + $0x3e] sm:$0x3] %vm1451_vm12, %v1432_v45  ;;  %vm5452_vm12 = vmmov %vm5440_vm0 }
 0x309   : > { %1904 = vst.msk [vmem:[#allocation3 - $0x4] sm:$0xf0] %vm1903_vm5, %v1856_v4 }
 0x30b   : > { %v1473_v2 = vld [vmem:[#allocation3 + $0x30] sm:$0xff]  ;;  %v1860_v51 = vpop.permute.xlu0 %1859  ;;  %v1740_v63 = vpop.permute.xlu1 %1739 }
 0x30c   : > { %3227 = vmatprep.mubr.msk.f32.mxu1 %vm765_vm1, %v1473_v2  ;;  %1725 = vst.msk [vmem:[#allocation3 + $0x2c] sm:$0xf0] %vm1711_vm7, %v4457_v54 }
 0x30d   : > { %1762 = vst.msk [vmem:[#allocation3 + $0x8] sm:$0xff] %vm331_vm3, %v1740_v63 }
 0x30e   : > { %1829 = vst.msk [vmem:[#allocation3 + $0x4] sm:$0xf0] %vm1825_vm4, %v1782_v44 }
 0x30f   : > { %1907 = vst.msk [vmem:[#allocation3 + $0x4] sm:$0xf0] %vm1903_vm5, %v1860_v51  ;;  %v1474_v55 = vld [vmem:[#allocation3 + $0x38] sm:$0xff]  ;;  %v4662_v8 = vpop.permute.xlu0 %1959  ;;  %v1780_v0 = vpop.permute.xlu1 %1779 }
 0x310   : > { %3228 = vmatmul.mubr.msk.f32.gmra.mrb[6].mxu1 %vm765_vm1, %v1474_v55  ;;  %1727 = vst.msk [vmem:[#allocation3 + $0x34] sm:$0xf0] %vm1711_vm7, %v4487_v18  ;;  %vm5459_vm7 = vmmov %vm5440_vm0 }
 0x311   : > { %1828 = vst.msk [vmem:[#allocation3 + $0x4] sm:$0xf] %vm1827_vm6, %v1780_v0 }
 0x313   : > { %v1786_v7 = vpop.permute.xlu0 %1785 }
 0x314   : > { %v1784_v12 = vpop.permute.xlu1 %1783 }
 0x315   : > { %1830 = vst.msk [vmem:[#allocation3 + $0xc] sm:$0xf] %vm1827_vm6, %v1784_v12 }
 0x317   : > { %v4669_v16 = vpop.permute.xlu0 %2031 }
 0x318   : > { %v1742_v23 = vpop.permute.xlu1 %1741 }
 0x319   : > { %1763 = vst.msk [vmem:[#allocation3 + $0x10] sm:$0xff] %vm331_vm3, %v1742_v23 }
 0x31a   : > { %1831 = vst.msk [vmem:[#allocation3 + $0xc] sm:$0xf0] %vm1825_vm4, %v1786_v7 }
 0x31b   : > { %v1790_v21 = vpop.permute.xlu0 %1789 }
 0x31c   : > { %v1744_v15 = vpop.permute.xlu1 %1743 }
 0x31d   : > { %1764 = vst.msk [vmem:[#allocation3 + $0x18] sm:$0xff] %vm331_vm3, %v1744_v15 }
 0x31e   : > { %1833 = vst.msk [vmem:[#allocation3 + $0x14] sm:$0xf0] %vm1825_vm4, %v1790_v21 }
 0x31f   : > { %v1864_v33 = vpop.permute.xlu0 %1863 }
 0x320   : > { %1909 = vst.msk [vmem:[#allocation3 + $0xc] sm:$0xf0] %vm1903_vm5, %v1864_v33  ;;  %v1788_v34 = vpop.permute.xlu1 %1787 }
 0x321   : > { %1832 = vst.msk [vmem:[#allocation3 + $0x14] sm:$0xf] %vm1827_vm6, %v1788_v34 }
 0x323   : > { %v4689_v24 = vpop.permute.xlu0 %2035 }
 0x324   : > { %v4677_v59 = vpop.permute.xlu1 %1963 }
 0x327   : > { %v4691_v10 = vpop.permute.xlu0 %2135 }
 0x328   : > { %v1792_v5 = vpop.permute.xlu1 %1791 }
 0x329   : > { %1834 = vst.msk [vmem:[#allocation3 + $0x1c] sm:$0xf] %vm1827_vm6, %v1792_v5 }
 0x32b   : > { %v4699_v56 = vpop.permute.xlu0 %1967 }
 0x32c   : > { %v1868_v61 = vpop.permute.xlu1 %1867 }
 0x32d   : > { %1911 = vst.msk [vmem:[#allocation3 + $0x14] sm:$0xf0] %vm1903_vm5, %v1868_v61 }
 0x32f   : > { %v4703_v57 = vpop.permute.xlu0 %2139 }
 0x330   : > { %v4707_v40 = vpop.permute.xlu1 %1795 }
 0x333   : > { %v4711_v43 = vpop.permute.xlu0 %2039 }
 0x334   : > { %v4713_v44 = vpop.permute.xlu1 %1971 }
 0x337   : > { %v4715_v45 = vpop.permute.xlu0 %1871 }
 0x338   : > { %v4717_v4 = vpop.permute.xlu1 %1799 }
 0x33b   : > { %v4719_v2 = vpop.permute.xlu0 %2043 }
 0x33c   : > { %v4721_v51 = vpop.permute.xlu1 %1875 }
 0x33f   : > { %v4723_v63 = vpop.permute.xlu0 %2143 }
 0x340   : > { %5443 = vst [vmem:[#allocation16_spill] sm:$0xff] %v4723_v63  ;;  %v4725_v55 = vpop.permute.xlu1 %1803 }
 0x343   : > { %v4735_v12 = vpop.permute.xlu0 %1975 }
 0x344   : > { %v4737_v23 = vpop.permute.xlu1 %1979 }
 0x347   : > { %v4739_v15 = vpop.permute.xlu0 %2147 }
 0x348   : > { %v4744_v34 = vpop.permute.xlu1 %2049 }
 0x34b   : > { %v4749_v5 = vpop.permute.xlu0 %2047 }
 0x34c   : > { %v4751_v61 = vpop.permute.xlu1 %1807 }
 0x374   : > { %v4681_v9 = vpop.f32.mrb[0].mxu1 }
 0x375   : > { %5439 = vst [vmem:[#allocation14_spill] sm:$0xff] %v4681_v9  ;;  %1646 = vst.msk [vmem:[#allocation2 + $0xe0] sm:$0xff] %vm5440_vm0, %v4681_v9  ;;  %v4685_v1 = vpop.f32.mrb[1].mxu1  ;;  %vm2007_vm0 = vcmask 388416  }
 0x376   : > { %5441 = vst [vmem:[#allocation15_spill] sm:$0xff] %v4685_v1  ;;  %1645 = vst.msk [vmem:[#allocation2 + $0xc8] sm:$0xff] %vm5442_vm15, %v4685_v1  ;;  %vm2005_vm15 = vcmask 392516  }
 0x37c   : > { %v1679_v52 = vld [vmem:[#allocation2 + $0xe0] sm:$0xff] }
 0x37d   : > { %1923 = vrot.lane.b32.xlu0 %v1679_v52, %s3385_s21  ;;  %1724 = vst.msk [vmem:[#allocation3 + $0x2c] sm:$0xf] %vm1713_vm10, %v1679_v52  ;;  %1861 = vrot.lane.b32.xlu1 %v1679_v52, %s3384_s20  ;;  %v1676_v35 = vld [vmem:[#allocation2 + $0xc8] sm:$0xff] }
 0x37e   : > { %1722 = vst.msk [vmem:[#allocation3 + $0x24] sm:$0xf] %vm1713_vm10, %v1676_v35 }
 0x381   : > { %1961 = vrot.lane.b32.xlu0 %v1679_v52, %s3386_s22  ;;  %1747 = vrot.lane.b32.xlu1 %v1679_v52, %s3383_s19 }
 0x385   : > { %1797 = vrot.lane.b32.xlu0 %v1679_v52, %s3382_s18  ;;  %1857 = vrot.lane.b32.xlu1 %v1676_v35, %s3384_s20  ;;  %v4755_v52 = vpop.permute.xlu0 %1879 }
 0x389   : > { %1921 = vrot.lane.b32.xlu0 %v1676_v35, %s3385_s21  ;;  %1957 = vrot.lane.b32.xlu1 %v1676_v35, %s3386_s22 }
 0x38d   : > { %1793 = vrot.lane.b32.xlu0 %v1676_v35, %s3382_s18  ;;  %1745 = vrot.lane.b32.xlu1 %v1676_v35, %s3383_s19  ;;  %v4759_v35 = vpop.permute.xlu1 %2053 }
 0x391   : > { %v4765_v9 = vpop.permute.xlu1 %1883 }
 0x395   : > { %v4769_v13 = vpop.permute.xlu1 %2149 }
 0x3a4   : > { %v4727_v0 = vpop.f32.mrb[2].mxu1 }
 0x3a5   : > { %5444 = vst [vmem:[#allocation17_spill] sm:$0xff] %v4727_v0  ;;  %1648 = vst.msk [vmem:[#allocation2 + $0x110] sm:$0xff] %vm5445_vm2, %v4727_v0  ;;  %v4731_v7 = vpop.f32.mrb[3].mxu1  ;;  %v4763_v0 = vpop.permute.xlu0 %2051  ;;  %vm2079_vm2 = vcmask 458116  }
 0x3a6   : > { %5446 = vst [vmem:[#allocation18_spill] sm:$0xff] %v4731_v7  ;;  %1647 = vst.msk [vmem:[#allocation2 + $0xf8] sm:$0xff] %vm5447_vm9, %v4731_v7 }
 0x3a7   : > { %vm5468_vm9 = vmmov %vm5459_vm7 }
 0x3a9   : > { %v4767_v7 = vpop.permute.xlu0 %2105 }
 0x3ac   : > { %v1685_v21 = vld [vmem:[#allocation2 + $0x110] sm:$0xff] }
 0x3ad   : > { %1869 = vrot.lane.b32.xlu0 %v1685_v21, %s3384_s20  ;;  %1728 = vst.msk [vmem:[#allocation3 + $0x3c] sm:$0xf] %vm1713_vm10, %v1685_v21  ;;  %1751 = vrot.lane.b32.xlu1 %v1685_v21, %s3383_s19  ;;  %v1682_v33 = vld [vmem:[#allocation2 + $0xf8] sm:$0xff]  ;;  %v4771_v1 = vpop.permute.xlu0 %2107 }
 0x3ae   : > { %1726 = vst.msk [vmem:[#allocation3 + $0x34] sm:$0xf] %vm1713_vm10, %v1682_v33  ;;  %vm1905_vm10 = vcmask 257216  }
 0x3b1   : > { %1927 = vrot.lane.b32.xlu0 %v1685_v21, %s3385_s21  ;;  %1865 = vrot.lane.b32.xlu1 %v1682_v33, %s3384_s20  ;;  %v4789_v17 = vpop.permute.xlu0 %2151 }
 0x3b5   : > { %1969 = vrot.lane.b32.xlu0 %v1685_v21, %s3386_s22  ;;  %1925 = vrot.lane.b32.xlu1 %v1682_v33, %s3385_s21 }
 0x3b9   : > { %1805 = vrot.lane.b32.xlu0 %v1685_v21, %s3382_s18  ;;  %1965 = vrot.lane.b32.xlu1 %v1682_v33, %s3386_s22  ;;  %v4775_v21 = vpop.permute.xlu1 %1983 }
 0x3ba   : > { %5449 = vst [vmem:[#allocation20_spill] sm:$0xff] %v4775_v21 }
 0x3bd   : > { %1801 = vrot.lane.b32.xlu0 %v1682_v33, %s3382_s18  ;;  %1749 = vrot.lane.b32.xlu1 %v1682_v33, %s3383_s19  ;;  %v3064_v33 = vld [vmem:[%s5401_s1 + $0x90] sm:$0xff]  ;;  %v4797_v27 = vpop.permute.xlu1 %2155 }
 0x3be   : > { %v3322_v62 = vpack.c.bf16 %v3065_v26, %v3064_v33  ;;  %v3068_v26 = vld [vmem:[%s5401_s1 + $0xb0] sm:$0xff] }
 0x3c0   : > { %3323 = vmatprep.subr.bf16.mxu0 %v3322_v62 }
 0x3c1   : > { %3325 = vmatpush3.bf16.msra.mxu0 %v3322_v62  ;;  %v3069_v62 = vld [vmem:[%s5401_s1 + $0xb8] sm:$0xff]  ;;  %v4809_v63 = vpop.permute.xlu1 %1987 }
 0x3c2   : > { %v3330_v33 = vpack.c.bf16 %v3069_v62, %v3068_v26  ;;  %5453 = vst [vmem:[#allocation22_spill] sm:$0xff] %v4809_v63 }
 0x3c5   : > { %v4823_v63 = vpop.permute.xlu1 %2057 }
 0x3c6   : > { %5455 = vst [vmem:[#allocation24_spill] sm:$0xff] %v4823_v63 }
 0x3cb   : > { %v4773_v60 = vpop.f32.mrb[4].mxu1 }
 0x3cc   : > { %5448 = vst [vmem:[#allocation19_spill] sm:$0xff] %v4773_v60  ;;  %1650 = vst.msk [vmem:[#allocation2 + $0x140] sm:$0xff] %vm5450_vm11, %v4773_v60  ;;  %v4779_v14 = vpop.f32.mrb[5].mxu1  ;;  %v3066_v60 = vld [vmem:[%s5401_s1 + $0xa0] sm:$0xff]  ;;  %vm1636_vm11 = vcmask 195712  }
 0x3cd   : > { %5451 = vst [vmem:[#allocation21_spill] sm:$0xff] %v4779_v14  ;;  %1649 = vst.msk [vmem:[#allocation2 + $0x128] sm:$0xff] %vm5452_vm12, %v4779_v14  ;;  %v3326_v58 = vpack.c.bf16 %v3067_v29, %v3066_v60  ;;  %v4807_v14 = vpop.permute.xlu0 %2153  ;;  %v3070_v29 = vld [vmem:[%s5401_s1 + $0xc0] sm:$0xff]  ;;  %v3071_v60 = vld [vmem:[%s5401_s1 + $0xc8] sm:$0xff]  ;;  %vm2368_vm12 = vcmask 261312  }
 0x3cf   : > { %3327 = vmatprep.subr.bf16.mxu0 %v3326_v58 }
 0x3d0   : > { %3329 = vmatpush3.bf16.msra.mxu0 %v3326_v58  ;;  %v3334_v58 = vpack.c.bf16 %v3071_v60, %v3070_v29  ;;  %v4834_v60 = vpop.permute.xlu1 %2061 }
 0x3d1   : > { %3331 = vmatprep.subr.bf16.mxu0 %v3330_v33  ;;  %v4821_v62 = vpop.permute.xlu0 %2055 }
 0x3d2   : > { %5454 = vst [vmem:[#allocation23_spill] sm:$0xff] %v4821_v62 }
 0x3d3   : > { %v1691_v21 = vld [vmem:[#allocation2 + $0x140] sm:$0xff] }
 0x3d4   : > { %2099 = vrot.lane.b32.xlu0 %v1691_v21, %s3388_s28  ;;  %2037 = vrot.lane.b32.xlu1 %v1691_v21, %s3387_s23  ;;  %v1688_v26 = vld [vmem:[#allocation2 + $0x128] sm:$0xff] }
 0x3d5   : > { %3333 = vmatpush3.bf16.msra.mxu0 %v3330_v33  ;;  %v4830_v33 = vpop.permute.xlu0 %2059 }
 0x3d6   : > { %3335 = vmatprep.subr.bf16.mxu0 %v3334_v58 }
 0x3d8   : > { %1877 = vrot.lane.b32.xlu0 %v1691_v21, %s3384_s20  ;;  %2137 = vrot.lane.b32.xlu1 %v1691_v21, %s3389_s10 }
 0x3d9   : > { %3337 = vmatpush3.bf16.msra.mxu0 %v3334_v58 }
 0x3da   : > { %3246 = vmatprep.subr.mxu0 %v3072_v3 }
 0x3dc   : > { %1931 = vrot.lane.b32.xlu0 %v1691_v21, %s3385_s21  ;;  %2033 = vrot.lane.b32.xlu1 %v1688_v26, %s3387_s23 }
 0x3dd   : > { %3247 = vmatpush3.msra.mxu0 %v3072_v3  ;;  %v4845_v3 = vpop.permute.xlu0 %2109 }
 0x3de   : > { %5460 = vst [vmem:[#allocation27_spill] sm:$0xff] %v4845_v3 }
 0x3e0   : > { %1977 = vrot.lane.b32.xlu0 %v1691_v21, %s3386_s22  ;;  %2133 = vrot.lane.b32.xlu1 %v1688_v26, %s3389_s10  ;;  %v4847_v21 = vpop.permute.xlu1 %2111 }
 0x3e3   : > { %v4832_v29 = vpop.f32.mrb[6].mxu1 }
 0x3e4   : > { %5456 = vst [vmem:[#allocation25_spill] sm:$0xff] %v4832_v29  ;;  %1652 = vst.msk [vmem:[#allocation2 + $0x170] sm:$0xff] %vm5457_vm14, %v4832_v29  ;;  %2097 = vrot.lane.b32.xlu0 %v1688_v26, %s3388_s28  ;;  %1873 = vrot.lane.b32.xlu1 %v1688_v26, %s3384_s20  ;;  %v4840_v58 = vpop.f32.mrb[7].mxu1 }
 0x3e5   : > { %5458 = vst [vmem:[#allocation26_spill] sm:$0xff] %v4840_v58  ;;  %1651 = vst.msk [vmem:[#allocation2 + $0x158] sm:$0xff] %vm5459_vm7, %v4840_v58 }
 0x3e6   : > { %vm5470_vm14 = vmmov %vm5459_vm7 }
 0x3e8   : > { %1929 = vrot.lane.b32.xlu1 %v1688_v26, %s3385_s21 }
 0x3eb   : > { %v1697_v63 = vld [vmem:[#allocation2 + $0x170] sm:$0xff] }
 0x3ec   : > { %1973 = vrot.lane.b32.xlu1 %v1688_v26, %s3386_s22  ;;  %2103 = vrot.lane.b32.xlu0 %v1697_v63, %s3388_s28  ;;  %v1694_v3 = vld [vmem:[#allocation2 + $0x158] sm:$0xff] }
 0x3ef   : > { %v1924_v29 = vpop.permute.xlu0 %1923  ;;  %v1862_v62 = vpop.permute.xlu1 %1861 }
 0x3f0   : > { %1908 = vst.msk [vmem:[#allocation3 + $0xc] sm:$0xf] %vm1905_vm10, %v1862_v62  ;;  %1885 = vrot.lane.b32.xlu0 %v1697_v63, %s3384_s20  ;;  %2045 = vrot.lane.b32.xlu1 %v1697_v63, %s3387_s23 }
 0x3f1   : > { %1946 = vst.msk [vmem:[#allocation3 + $0x8] sm:$0xff] %vm513_vm8, %v1924_v29 }
 0x3f2   : > { %2010 = vst.msk [vmem:[#allocation3 + $0xc] sm:$0xf] %vm2007_vm0, %v4677_v59 }
 0x3f3   : > { %v1962_v26 = vpop.permute.xlu0 %1961  ;;  %v1748_v58 = vpop.permute.xlu1 %1747 }
 0x3f4   : > { %2009 = vst.msk [vmem:[#allocation3 + $0x4] sm:$0xf0] %vm2005_vm15, %v1962_v26  ;;  %1985 = vrot.lane.b32.xlu0 %v1697_v63, %s3386_s22  ;;  %2145 = vrot.lane.b32.xlu1 %v1697_v63, %s3389_s10  ;;  %v2406_v26 = vld [vmem:[#allocation2 + $0x58] sm:$0xff] }
 0x3f5   : > { %1766 = vst.msk [vmem:[#allocation3 + $0x28] sm:$0xff] %vm331_vm3, %v1748_v58 }
 0x3f6   : > { %2083 = vst.msk [vmem:[#allocation3 + $0x4] sm:$0xf0] %vm2079_vm2, %v4689_v24 }
 0x3f7   : > { %1838 = vst.msk [vmem:[#allocation3 + $0x2c] sm:$0xf] %vm1827_vm6, %v4717_v4  ;;  %v1798_v62 = vpop.permute.xlu0 %1797  ;;  %v1858_v29 = vpop.permute.xlu1 %1857 }
 0x3f8   : > { %1837 = vst.msk [vmem:[#allocation3 + $0x24] sm:$0xf0] %vm1825_vm4, %v1798_v62  ;;  %1935 = vrot.lane.b32.xlu1 %v1697_v63, %s3385_s21  ;;  %2101 = vrot.lane.b32.xlu0 %v1694_v3, %s3388_s28  ;;  %v2405_v63 = vld [vmem:[#allocation2 + $0x50] sm:$0xff]  ;;  %v2402_v62 = vld [vmem:[#allocation2 + $0x38] sm:$0xff] }
 0x3f9   : > { %1906 = vst.msk [vmem:[#allocation3 + $0x4] sm:$0xf] %vm1905_vm10, %v1858_v29 }
 0x3fa   : > { %1915 = vst.msk [vmem:[#allocation3 + $0x24] sm:$0xf0] %vm1903_vm5, %v4721_v51  ;;  %v4897_v51 = vld [vmem:[#allocation2 + $0x1d8] sm:$0xff] }
 0x3fb   : > { %v1922_v59 = vpop.permute.xlu0 %1921  ;;  %v1958_v58 = vpop.permute.xlu1 %1957 }
 0x3fc   : > { %1945 = vst.msk [vmem:[#allocation3] sm:$0xff] %vm513_vm8, %v1922_v59  ;;  %2157 = vrot.lane.b32.xlu0 %v4623_v38, %s3389_s10  ;;  %2041 = vrot.lane.b32.xlu1 %v1694_v3, %s3387_s23 }
 0x3fd   : > { %2006 = vst.msk [vmem:[#allocation3 - $0x4] sm:$0xf0] %vm2005_vm15, %v1958_v58 }
 0x3fe   : > { %2008 = vst.msk [vmem:[#allocation3 + $0x4] sm:$0xf] %vm2007_vm0, %v4662_v8  ;;  %v4892_v8 = vld [vmem:[#allocation2 + $0x1c0] sm:$0xff] }
 0x3ff   : > { %2080 = vst.msk [vmem:[#allocation3 - $0x4] sm:$0xf0] %vm2079_vm2, %v4669_v16  ;;  %v1794_v24 = vpop.permute.xlu0 %1793  ;;  %v1746_v4 = vpop.permute.xlu1 %1745  ;;  %v2396_v16 = vld [vmem:[#allocation2 + $0x8] sm:$0xff] }
 0x400   : > { %1765 = vst.msk [vmem:[#allocation3 + $0x20] sm:$0xff] %vm331_vm3, %v1746_v4  ;;  %1981 = vrot.lane.b32.xlu0 %v1694_v3, %s3386_s22  ;;  %2141 = vrot.lane.b32.xlu1 %v1694_v3, %s3389_s10 }
 0x401   : > { %1835 = vst.msk [vmem:[#allocation3 + $0x1c] sm:$0xf0] %vm1825_vm4, %v1794_v24 }
 0x402   : > { %1836 = vst.msk [vmem:[#allocation3 + $0x24] sm:$0xf] %vm1827_vm6, %v4707_v40  ;;  %v2397_v40 = vld [vmem:[#allocation2 + $0x10] sm:$0xff] }
 0x403   : > { %1913 = vst.msk [vmem:[#allocation3 + $0x1c] sm:$0xf0] %vm1903_vm5, %v4715_v45  ;;  %v2399_v45 = vld [vmem:[#allocation2 + $0x20] sm:$0xff] }
 0x404   : > { %1881 = vrot.lane.b32.xlu1 %v1694_v3, %s3384_s20  ;;  %2161 = vrot.lane.b32.xlu0 %v4632_v36, %s3389_s10 }
 0x408   : > { %1933 = vrot.lane.b32.xlu1 %v1694_v3, %s3385_s21  ;;  %2483 = vrot.lane.b32.xlu0 %v2396_v16, %s3383_s19  ;;  %v2400_v3 = vld [vmem:[#allocation2 + $0x28] sm:$0xff] }
 0x40c   : > { %2159 = vrot.lane.b32.xlu1 %v4892_v8, %s3389_s10  ;;  %2523 = vrot.lane.b32.xlu0 %v2397_v40, %s3382_s18 }
 0x410   : > { %2163 = vrot.lane.b32.xlu1 %v4897_v51, %s3389_s10  ;;  %2563 = vrot.lane.b32.xlu0 %v4400_v49, %s3384_s20  ;;  %v2446_v49 = vld [vmem:[#allocation2 + $0x198] sm:$0xff] }
 0x414   : > { %2485 = vrot.lane.b32.xlu1 %v2399_v45, %s3383_s19  ;;  %2489 = vrot.lane.b32.xlu0 %v2405_v63, %s3383_s19  ;;  %v2459_v63 = vld [vmem:[#allocation2 + $0x200] sm:$0xff] }
 0x418   : > { %2525 = vrot.lane.b32.xlu1 %v2400_v3, %s3382_s18  ;;  %2645 = vrot.lane.b32.xlu0 %v4465_v28, %s3386_s22  ;;  %v2415_v3 = vld [vmem:[#allocation2 + $0xa0] sm:$0xff] }
 0x41c   : > { %2565 = vrot.lane.b32.xlu1 %v4412_v48, %s3384_s20  ;;  %2529 = vrot.lane.b32.xlu0 %v2406_v26, %s3382_s18  ;;  %v2403_v48 = vld [vmem:[#allocation2 + $0x40] sm:$0xff]  ;;  %v2460_v26 = vld [vmem:[#allocation2 + $0x208] sm:$0xff] }
 0x41f   : > { %v1870_v29 = vpop.permute.xlu0 %1869  ;;  %v1752_v59 = vpop.permute.xlu1 %1751 }
 0x420   : > { %1912 = vst.msk [vmem:[#allocation3 + $0x1c] sm:$0xf] %vm1905_vm10, %v1870_v29  ;;  %2487 = vrot.lane.b32.xlu1 %v2402_v62, %s3383_s19  ;;  %2686 = vrot.lane.b32.xlu0 %v2446_v49, %s3387_s23  ;;  %v2455_v62 = vld [vmem:[#allocation2 + $0x1e0] sm:$0xff]  ;;  %v3371_v29 = vld [vmem:[#allocation2 + $0x150] sm:$0xff] }
 0x421   : > { %1768 = vst.msk [vmem:[#allocation3 + $0x38] sm:$0xff] %vm331_vm3, %v1752_v59  ;;  %v2456_v59 = vld [vmem:[#allocation2 + $0x1e8] sm:$0xff]  ;;  %v2395_v49 = vld [vmem:[#allocation2] sm:$0xff] }
 0x422   : > { %1842 = vst.msk [vmem:[#allocation3 + $0x3c] sm:$0xf] %vm1827_vm6, %v4751_v61 }
 0x423   : > { %v1928_v28 = vpop.permute.xlu0 %1927  ;;  %v1866_v58 = vpop.permute.xlu1 %1865 }
 0x424   : > { %1948 = vst.msk [vmem:[#allocation3 + $0x18] sm:$0xff] %vm513_vm8, %v1928_v28  ;;  %2643 = vrot.lane.b32.xlu1 %v4419_v22, %s3386_s22  ;;  %2569 = vrot.lane.b32.xlu0 %v4487_v18, %s3384_s20  ;;  %v2447_v22 = vld [vmem:[#allocation2 + $0x1a0] sm:$0xff] }
 0x425   : > { %1910 = vst.msk [vmem:[#allocation3 + $0x14] sm:$0xf] %vm1905_vm10, %v1866_v58  ;;  %v2457_v58 = vld [vmem:[#allocation2 + $0x1f0] sm:$0xff] }
 0x426   : > { %2014 = vst.msk [vmem:[#allocation3 + $0x1c] sm:$0xf] %vm2007_vm0, %v4713_v44 }
 0x427   : > { %v1970_v24 = vpop.permute.xlu0 %1969  ;;  %v1926_v4 = vpop.permute.xlu1 %1925 }
 0x428   : > { %2013 = vst.msk [vmem:[#allocation3 + $0x14] sm:$0xf0] %vm2005_vm15, %v1970_v24  ;;  %2527 = vrot.lane.b32.xlu1 %v2403_v48, %s3382_s18  ;;  %2727 = vrot.lane.b32.xlu0 %v2447_v22, %s3388_s28  ;;  %v5469_v22 = vld [vmem:[#allocation13_spill] sm:$0xff] }
 0x429   : > { %1947 = vst.msk [vmem:[#allocation3 + $0x10] sm:$0xff] %vm513_vm8, %v1926_v4  ;;  %v3372_v4 = vld [vmem:[#allocation2 + $0x160] sm:$0xff] }
 0x42a   : > { %2087 = vst.msk [vmem:[#allocation3 + $0x14] sm:$0xf0] %vm2079_vm2, %v4719_v2 }
 0x42b   : > { %2012 = vst.msk [vmem:[#allocation3 + $0x14] sm:$0xf] %vm2007_vm0, %v4699_v56  ;;  %v1806_v44 = vpop.permute.xlu0 %1805  ;;  %v1966_v61 = vpop.permute.xlu1 %1965 }
 0x42c   : > { %1841 = vst.msk [vmem:[#allocation3 + $0x34] sm:$0xf0] %vm1825_vm4, %v1806_v44  ;;  %2684 = vrot.lane.b32.xlu1 %v4573_v47, %s3387_s23  ;;  %2491 = vrot.lane.b32.xlu0 %v4365_v31, %s3383_s19  ;;  %v2448_v31 = vld [vmem:[#allocation2 + $0x1a8] sm:$0xff]  ;;  %v2417_v47 = vld [vmem:[#allocation2 + $0xb0] sm:$0xff] }
 0x42d   : > { %2011 = vst.msk [vmem:[#allocation3 + $0xc] sm:$0xf0] %vm2005_vm15, %v1966_v61  ;;  %v2404_v44 = vld [vmem:[#allocation2 + $0x48] sm:$0xff] }
 0x42e   : > { %1919 = vst.msk [vmem:[#allocation3 + $0x34] sm:$0xf0] %vm1903_vm5, %v4765_v9 }
 0x42f   : > { %2085 = vst.msk [vmem:[#allocation3 + $0xc] sm:$0xf0] %vm2079_vm2, %v4711_v43  ;;  %v1802_v18 = vpop.permute.xlu0 %1801  ;;  %v1750_v56 = vpop.permute.xlu1 %1749 }
 0x430   : > { %1767 = vst.msk [vmem:[#allocation3 + $0x30] sm:$0xff] %vm331_vm3, %v1750_v56  ;;  %2567 = vrot.lane.b32.xlu1 %v4457_v54, %s3384_s20  ;;  %2647 = vrot.lane.b32.xlu0 %v4485_v32, %s3386_s22  ;;  %v2414_v32 = vld [vmem:[#allocation2 + $0x98] sm:$0xff] }
 0x431   : > { %1839 = vst.msk [vmem:[#allocation3 + $0x2c] sm:$0xf0] %vm1825_vm4, %v1802_v18  ;;  %vm2081_vm4 = vcmask 454016   ;;  %v2464_v18 = vld [vmem:[#allocation2 + $0x228] sm:$0xff] }
 0x432   : > { %1840 = vst.msk [vmem:[#allocation3 + $0x34] sm:$0xf] %vm1827_vm6, %v4725_v55  ;;  %vm2181_vm6 = vcmask 589316   ;;  %v5463_v55 = vld [vmem:[#allocation16_spill] sm:$0xff] }
 0x433   : > { %1917 = vst.msk [vmem:[#allocation3 + $0x2c] sm:$0xf0] %vm1903_vm5, %v4755_v52  ;;  %vm2183_vm5 = vcmask 585216   ;;  %v5464_v52 = vld [vmem:[#allocation20_spill] sm:$0xff] }
 0x434   : > { %2725 = vrot.lane.b32.xlu1 %v4565_v53, %s3388_s28  ;;  %2493 = vrot.lane.b32.xlu0 %v4379_v41, %s3383_s19 }
 0x438   : > { %2765 = vrot.lane.b32.xlu1 %v4605_v19, %s3389_s10  ;;  %2649 = vrot.lane.b32.xlu0 %v4514_v39, %s3386_s22 }
 0x43c   : > { %2767 = vrot.lane.b32.xlu1 %v2448_v31, %s3389_s10  ;;  %2533 = vrot.lane.b32.xlu0 %v4433_v11, %s3382_s18 }
 0x440   : > { %2531 = vrot.lane.b32.xlu1 %v4421_v42, %s3382_s18  ;;  %2690 = vrot.lane.b32.xlu0 %v4630_v46, %s3387_s23 }
 0x444   : > { %2688 = vrot.lane.b32.xlu1 %v4621_v37, %s3387_s23  ;;  %2573 = vrot.lane.b32.xlu0 %v4463_v25, %s3384_s20 }
 0x446   : > { %v2100_v41 = vpop.permute.xlu0 %2099  ;;  %v2038_v54 = vpop.permute.xlu1 %2037 }
 0x447   : > { %2084 = vst.msk [vmem:[#allocation3 + $0xc] sm:$0xf] %vm2081_vm4, %v2038_v54 }
 0x448   : > { %2122 = vst.msk [vmem:[#allocation3 + $0x8] sm:$0xff] %vm681_vm13, %v2100_v41  ;;  %2571 = vrot.lane.b32.xlu1 %v4447_v50, %s3384_s20  ;;  %2731 = vrot.lane.b32.xlu0 %v4632_v36, %s3388_s28 }
 0x449   : > { %2186 = vst.msk [vmem:[#allocation3 + $0xc] sm:$0xf] %vm2183_vm5, %v4703_v57  ;;  %v5462_v57 = vld [vmem:[#allocation22_spill] sm:$0xff] }
 0x44a   : > { %v1878_v42 = vpop.permute.xlu0 %1877  ;;  %v2138_v11 = vpop.permute.xlu1 %2137 }
 0x44b   : > { %1916 = vst.msk [vmem:[#allocation3 + $0x2c] sm:$0xf] %vm1905_vm10, %v1878_v42  ;;  %v2398_v42 = vld [vmem:[#allocation2 + $0x18] sm:$0xff] }
 0x44c   : > { %2185 = vst.msk [vmem:[#allocation3 + $0x4] sm:$0xf0] %vm2181_vm6, %v2138_v11  ;;  %2729 = vrot.lane.b32.xlu1 %v4623_v38, %s3388_s28  ;;  %2495 = vrot.lane.b32.xlu0 %v2414_v32, %s3383_s19 }
 0x44e   : > { %v1932_v25 = vpop.permute.xlu0 %1931  ;;  %v2034_v39 = vpop.permute.xlu1 %2033 }
 0x44f   : > { %1950 = vst.msk [vmem:[#allocation3 + $0x28] sm:$0xff] %vm513_vm8, %v1932_v25 }
 0x450   : > { %2082 = vst.msk [vmem:[#allocation3 + $0x4] sm:$0xf] %vm2081_vm4, %v2034_v39  ;;  %2769 = vrot.lane.b32.xlu1 %v4892_v8, %s3389_s10  ;;  %2651 = vrot.lane.b32.xlu0 %v4473_v6, %s3386_s22  ;;  %v2407_v39 = vld [vmem:[#allocation2 + $0x60] sm:$0xff] }
 0x451   : > { %2018 = vst.msk [vmem:[#allocation3 + $0x2c] sm:$0xf] %vm2007_vm0, %v4737_v23 }
 0x452   : > { %2092 = vst.msk [vmem:[#allocation3 + $0x2c] sm:$0xf] %vm2081_vm4, %v4759_v35  ;;  %v1978_v50 = vpop.permute.xlu0 %1977  ;;  %v2134_v53 = vpop.permute.xlu1 %2133 }
 0x453   : > { %2017 = vst.msk [vmem:[#allocation3 + $0x24] sm:$0xf0] %vm2005_vm15, %v1978_v50  ;;  %v2200_v46 = vld [vmem:[#allocation3 + $0x8] sm:$0xff] }
 0x454   : > { %2091 = vst.msk [vmem:[#allocation3 + $0x24] sm:$0xf0] %vm2079_vm2, %v4763_v0  ;;  %2771 = vrot.lane.b32.xlu1 %v4897_v51, %s3389_s10  ;;  %2497 = vrot.lane.b32.xlu0 %v2417_v47, %s3383_s19 }
 0x455   : > { %2126 = vst.msk [vmem:[#allocation3 + $0x28] sm:$0xff] %vm681_vm13, %v4771_v1 }
 0x456   : > { %2193 = vst.msk [vmem:[#allocation3 + $0x24] sm:$0xf0] %vm2181_vm6, %v4807_v14  ;;  %v2098_v19 = vpop.permute.xlu0 %2097  ;;  %v1874_v37 = vpop.permute.xlu1 %1873 }
 0x457   : > { %2194 = vst.msk [vmem:[#allocation3 + $0x2c] sm:$0xf] %vm2183_vm5, %v4797_v27 }
 0x458   : > { %2121 = vst.msk [vmem:[#allocation3] sm:$0xff] %vm681_vm13, %v2098_v19  ;;  %2653 = vrot.lane.b32.xlu0 %v4499_v20, %s3386_s22  ;;  %v2458_v20 = vld [vmem:[#allocation2 + $0x1f8] sm:$0xff]  ;;  %2535 = vrot.lane.b32.xlu1 %v2415_v3, %s3382_s18  ;;  %v2401_v19 = vld [vmem:[#allocation2 + $0x30] sm:$0xff] }
 0x459   : > { %1914 = vst.msk [vmem:[#allocation3 + $0x24] sm:$0xf] %vm1905_vm10, %v1874_v37  ;;  %v3084_v3 = vld [vmem:[%s5401_s1 + $0xf0] sm:$0xff] }
 0x45a   : > { %2182 = vst.msk [vmem:[#allocation3 - $0x4] sm:$0xf0] %vm2181_vm6, %v2134_v53  ;;  %v1930_v6 = vpop.permute.xlu1 %1929 }
 0x45b   : > { %2184 = vst.msk [vmem:[#allocation3 + $0x4] sm:$0xf] %vm2183_vm5, %v4691_v10 }
 0x45c   : > { %1949 = vst.msk [vmem:[#allocation3 + $0x20] sm:$0xff] %vm513_vm8, %v1930_v6  ;;  %2537 = vrot.lane.b32.xlu0 %v4475_v30, %s3382_s18  ;;  %2692 = vrot.lane.b32.xlu1 %v2455_v62, %s3387_s23  ;;  %v2410_v6 = vld [vmem:[#allocation2 + $0x78] sm:$0xff] }
 0x45d   : > { %2016 = vst.msk [vmem:[#allocation3 + $0x24] sm:$0xf] %vm2007_vm0, %v4735_v12 }
 0x45e   : > { %2090 = vst.msk [vmem:[#allocation3 + $0x24] sm:$0xf] %vm2081_vm4, %v4744_v34  ;;  %v2104_v27 = vpop.permute.xlu0 %2103  ;;  %v1974_v14 = vpop.permute.xlu1 %1973  ;;  %v2204_v16 = vld [vmem:[#allocation3 + $0x28] sm:$0xff] }
 0x45f   : > { %2015 = vst.msk [vmem:[#allocation3 + $0x1c] sm:$0xf0] %vm2005_vm15, %v1974_v14 }
 0x460   : > { %2089 = vst.msk [vmem:[#allocation3 + $0x1c] sm:$0xf0] %vm2079_vm2, %v4749_v5  ;;  %2694 = vrot.lane.b32.xlu0 %v2458_v20, %s3387_s23  ;;  %2575 = vrot.lane.b32.xlu1 %v3371_v29, %s3384_s20 }
 0x461   : > { %2125 = vst.msk [vmem:[#allocation3 + $0x20] sm:$0xff] %vm681_vm13, %v4767_v7 }
 0x462   : > { %v2199_v38 = vld [vmem:[#allocation3] sm:$0xff]  ;;  %2191 = vst.msk [vmem:[#allocation3 + $0x1c] sm:$0xf0] %vm2181_vm6, %v4769_v13  ;;  %v1886_v36 = vpop.permute.xlu0 %1885  ;;  %v2046_v9 = vpop.permute.xlu1 %2045 }
 0x463   : > { %3248 = vmatprep.mubr.msk.f32.mxu0 %vm765_vm1, %v2199_v38  ;;  %2192 = vst.msk [vmem:[#allocation3 + $0x24] sm:$0xf] %vm2183_vm5, %v4789_v17  ;;  %v5461_v13 = vld [vmem:[#allocation12_spill] sm:$0xff] }
 0x464   : > { %3249 = vmatmul.mubr.msk.f32.vlgmr.msra.gmra.mrb[8].mxu0 %vm765_vm1, %v2200_v46  ;;  %1920 = vst.msk [vmem:[#allocation3 + $0x3c] sm:$0xf] %vm1905_vm10, %v1886_v36  ;;  %2577 = vrot.lane.b32.xlu0 %v5461_v13, %s3384_s20 }
 0x465   : > { %2088 = vst.msk [vmem:[#allocation3 + $0x1c] sm:$0xf] %vm2081_vm4, %v2046_v9  ;;  %2733 = vrot.lane.b32.xlu1 %v2456_v59, %s3388_s28  ;;  %v3085_v59 = vld [vmem:[%s5401_s1 + $0xf8] sm:$0xff] }
 0x466   : > { %2124 = vst.msk [vmem:[#allocation3 + $0x18] sm:$0xff] %vm681_vm13, %v2104_v27  ;;  %v1986_v30 = vpop.permute.xlu0 %1985  ;;  %v2146_v1 = vpop.permute.xlu1 %2145 }
 0x467   : > { %2190 = vst.msk [vmem:[#allocation3 + $0x1c] sm:$0xf] %vm2183_vm5, %v4739_v15 }
 0x468   : > { %2189 = vst.msk [vmem:[#allocation3 + $0x14] sm:$0xf0] %vm2181_vm6, %v2146_v1  ;;  %2735 = vrot.lane.b32.xlu0 %v2459_v63, %s3388_s28  ;;  %v3083_v63 = vld [vmem:[%s5401_s1 + $0xe8] sm:$0xff] }
 0x469   : > { %2467 = vst.msk [vmem:[#allocation3] sm:$0xff] %vm5468_vm9, %v2395_v49  ;;  %2773 = vrot.lane.b32.xlu1 %v2457_v58, %s3389_s10  ;;  %v3086_v49 = vld [vmem:[%s5401_s1 + $0x100] sm:$0xff] }
 0x46a   : > { %v2102_v17 = vpop.permute.xlu0 %2101  ;;  %v1936_v10 = vpop.permute.xlu1 %1935  ;;  %v2203_v35 = vld [vmem:[#allocation3 + $0x20] sm:$0xff]  ;;  %2468 = vst.msk [vmem:[#allocation3 + $0x8] sm:$0xff] %vm5459_vm7, %v2398_v42  ;;  %v3346_v58 = vpack.c.bf16 %v3086_v49, %v3085_v59 }
 0x46b   : > { %1952 = vst.msk [vmem:[#allocation3 + $0x38] sm:$0xff] %vm513_vm8, %v1936_v10 }
 0x46c   : > { %2021 = vst.msk [vmem:[#allocation3 + $0x34] sm:$0xf0] %vm2005_vm15, %v1986_v30  ;;  %2775 = vrot.lane.b32.xlu0 %v2460_v26, %s3389_s10  ;;  %v3342_v26 = vpack.c.bf16 %v3084_v3, %v3083_v63  ;;  %v5495_v63 = vld [vmem:[#allocation17_spill] sm:$0xff]  ;;  %v5496_v3 = vld [vmem:[#allocation26_spill] sm:$0xff] }
 0x46d   : > { %2022 = vst.msk [vmem:[#allocation3 + $0x3c] sm:$0xf] %vm2007_vm0, %v5462_v57  ;;  %2655 = vrot.lane.b32.xlu1 %v3372_v4, %s3386_s22  ;;  %v2413_v57 = vld [vmem:[#allocation2 + $0x90] sm:$0xff] }
 0x46e   : > { %2095 = vst.msk [vmem:[#allocation3 + $0x34] sm:$0xf0] %vm2079_vm2, %v4830_v33  ;;  %v2158_v43 = vpop.permute.xlu0 %2157  ;;  %v2042_v2 = vpop.permute.xlu1 %2041  ;;  %v5465_v33 = vld [vmem:[#allocation23_spill] sm:$0xff] }
 0x46f   : > { %2096 = vst.msk [vmem:[#allocation3 + $0x3c] sm:$0xf] %vm2081_vm4, %v4834_v60  ;;  %2086 = vst.msk [vmem:[#allocation3 + $0x14] sm:$0xf] %vm2081_vm4, %v2042_v2  ;;  %v2202_v5 = vld [vmem:[#allocation3 + $0x18] sm:$0xff]  ;;  %v5466_v60 = vld [vmem:[#allocation24_spill] sm:$0xff] }
 0x470   : > { %2128 = vst.msk [vmem:[#allocation3 + $0x38] sm:$0xff] %vm681_vm13, %v4847_v21  ;;  %2123 = vst.msk [vmem:[#allocation3 + $0x10] sm:$0xff] %vm681_vm13, %v2102_v17  ;;  %v5467_v21 = vld [vmem:[#allocation27_spill] sm:$0xff] }
 0x471   : > { %2188 = vst.msk [vmem:[#allocation3 + $0x14] sm:$0xf] %vm2183_vm5, %v5463_v55  ;;  %2657 = vrot.lane.b32.xlu1 %v5469_v22, %s3386_s22  ;;  %v3089_v22 = vld [vmem:[%s5401_s1 + $0x118] sm:$0xff] }
 0x472   : > { %v1982_v0 = vpop.permute.xlu0 %1981  ;;  %v2142_v7 = vpop.permute.xlu1 %2141  ;;  %2470 = vst.msk [vmem:[#allocation3 + $0x18] sm:$0xff] %vm5470_vm14, %v2404_v44 }
 0x473   : > { %2187 = vst.msk [vmem:[#allocation3 + $0xc] sm:$0xf0] %vm2181_vm6, %v2142_v7  ;;  %v2416_v7 = vld [vmem:[#allocation2 + $0xa8] sm:$0xff] }
 0x475   : > { %2698 = vrot.lane.b32.xlu1 %v2464_v18, %s3387_s23  ;;  %v2461_v18 = vld [vmem:[#allocation2 + $0x210] sm:$0xff] }
 0x476   : > { %v1882_v12 = vpop.permute.xlu1 %1881  ;;  %v2162_v23 = vpop.permute.xlu0 %2161 }
 0x477   : > { %1918 = vst.msk [vmem:[#allocation3 + $0x34] sm:$0xf] %vm1905_vm10, %v1882_v12  ;;  %vm5471_vm10 = vmmov %vm5459_vm7 }
 0x478   : > { %2197 = vst.msk [vmem:[#allocation3 + $0x34] sm:$0xf0] %vm2181_vm6, %v2162_v23 }
 0x479   : > { %2471 = vst.msk [vmem:[#allocation3 + $0x20] sm:$0xff] %vm5471_vm10, %v2407_v39 }
 0x47a   : > { %v1934_v15 = vpop.permute.xlu1 %1933  ;;  %v2201_v34 = vld [vmem:[#allocation3 + $0x10] sm:$0xff]  ;;  %v2484_v28 = vpop.permute.xlu0 %2483 }
 0x47b   : > { %1951 = vst.msk [vmem:[#allocation3 + $0x30] sm:$0xff] %vm513_vm8, %v1934_v15  ;;  %3251 = vmatprep.mubr.msk.f32.mxu0 %vm765_vm1, %v2201_v34 }
 0x47c   : > { %2019 = vst.msk [vmem:[#allocation3 + $0x2c] sm:$0xf0] %vm2005_vm15, %v1982_v0  ;;  %3252 = vmatmul.mubr.msk.f32.gmra.mrb[10].mxu0 %vm765_vm1, %v2202_v5 }
 0x47d   : > { %2020 = vst.msk [vmem:[#allocation3 + $0x34] sm:$0xf] %vm2007_vm0, %v5464_v52  ;;  %3254 = vmatprep.mubr.msk.f32.mxu0 %vm765_vm1, %v2203_v35  ;;  %vm5472_vm0 = vmmov %vm5459_vm7 }
 0x47e   : > { %2093 = vst.msk [vmem:[#allocation3 + $0x2c] sm:$0xf0] %vm2079_vm2, %v5465_v33  ;;  %v2160_v8 = vpop.permute.xlu1 %2159  ;;  %v2524_v48 = vpop.permute.xlu0 %2523  ;;  %vm5473_vm15 = vmmov %vm5472_vm0 }
 0x47f   : > { %2094 = vst.msk [vmem:[#allocation3 + $0x34] sm:$0xf] %vm2081_vm4, %v5466_v60  ;;  %vm5474_vm2 = vmmov %vm5472_vm0  ;;  %v3081_v60 = vld [vmem:[%s5401_s1 + $0xd8] sm:$0xff] }
 0x480   : > { %2127 = vst.msk [vmem:[#allocation3 + $0x30] sm:$0xff] %vm681_vm13, %v5467_v21  ;;  %3255 = vmatmul.mubr.msk.f32.gmra.mrb[12].mxu0 %vm765_vm1, %v2204_v16  ;;  %vm5475_vm4 = vmmov %vm5472_vm0  ;;  %v3082_v21 = vld [vmem:[%s5401_s1 + $0xe0] sm:$0xff] }
 0x481   : > { %2195 = vst.msk [vmem:[#allocation3 + $0x2c] sm:$0xf0] %vm2181_vm6, %v2158_v43  ;;  %vm5477_vm6 = vmmov %vm5472_vm0 }
 0x482   : > { %2196 = vst.msk [vmem:[#allocation3 + $0x34] sm:$0xf] %vm2183_vm5, %v2160_v8  ;;  %v2164_v51 = vpop.permute.xlu1 %2163  ;;  %v2564_v24 = vpop.permute.xlu0 %2563  ;;  %v3338_v8 = vpack.c.bf16 %v3082_v21, %v3081_v60  ;;  %vm5478_vm9 = vmmov %vm5472_vm0  ;;  %v5490_v60 = vld [vmem:[#allocation15_spill] sm:$0xff]  ;;  %v5491_v21 = vld [vmem:[#allocation10_spill] sm:$0xff] }
 0x483   : > { %2198 = vst.msk [vmem:[#allocation3 + $0x3c] sm:$0xf] %vm2183_vm5, %v2164_v51  ;;  %vm5476_vm5 = vmmov %vm5472_vm0 }
 0x484   : > { %2507 = vst.msk [vmem:[#allocation3] sm:$0xff] %vm331_vm3, %v2484_v28  ;;  %3339 = vmatprep.subr.bf16.mxu1 %v3338_v8  ;;  %vm5479_vm14 = vmmov %vm5472_vm0 }
 0x485   : > { %2547 = vst.msk [vmem:[#allocation3] sm:$0xff] %vm1636_vm11, %v2524_v48  ;;  %3341 = vmatpush3.bf16.msra.mxu1 %v3338_v8  ;;  %v3087_v48 = vld [vmem:[%s5401_s1 + $0x108] sm:$0xff]  ;;  %vm5480_vm7 = vmmov %vm5472_vm0  ;;  %v5492_v8 = vld [vmem:[#allocation18_spill] sm:$0xff] }
 0x486   : > { %2587 = vst.msk [vmem:[#allocation3] sm:$0xff] %vm2368_vm12, %v2564_v24  ;;  %v2490_v61 = vpop.permute.xlu0 %2489  ;;  %v2486_v11 = vpop.permute.xlu1 %2485  ;;  %3343 = vmatprep.subr.bf16.mxu1 %v3342_v26  ;;  %v3088_v24 = vld [vmem:[%s5401_s1 + $0x110] sm:$0xff]  ;;  %vm5481_vm10 = vmmov %vm5472_vm0 }
 0x487   : > { %2510 = vst.msk [vmem:[#allocation3 + $0x18] sm:$0xff] %vm331_vm3, %v2490_v61  ;;  %2508 = vst.msk [vmem:[#allocation3 + $0x8] sm:$0xff] %vm331_vm3, %v2486_v11  ;;  %v3350_v4 = vpack.c.bf16 %v3088_v24, %v3087_v48 }
 0x488   : > { %2469 = vst.msk [vmem:[#allocation3 + $0x10] sm:$0xff] %vm5472_vm0, %v2401_v19 }
 0x489   : > { %v2205_v40 = vld [vmem:[#allocation3 + $0x30] sm:$0xff]  ;;  %2472 = vst.msk [vmem:[#allocation3 + $0x28] sm:$0xff] %vm5473_vm15, %v2410_v6  ;;  %3345 = vmatpush3.bf16.msra.mxu1 %v3342_v26  ;;  %vm5482_vm15 = vmmov %vm5472_vm0  ;;  %v5497_v26 = vld [vmem:[#allocation19_spill] sm:$0xff] }
 0x48a   : > { %3257 = vmatprep.mubr.msk.f32.mxu0 %vm765_vm1, %v2205_v40  ;;  %v2206_v45 = vld [vmem:[#allocation3 + $0x38] sm:$0xff]  ;;  %v5095_v56 = vpop.permute.xlu0 %2645  ;;  %v2526_v25 = vpop.permute.xlu1 %2525  ;;  %2473 = vst.msk [vmem:[#allocation3 + $0x30] sm:$0xff] %vm5474_vm2, %v2413_v57  ;;  %3347 = vmatprep.subr.bf16.mxu1 %v3346_v58  ;;  %v5483_v57 = vld [vmem:[#allocation5_spill] sm:$0xff]  ;;  %vm2667_vm2 = vcmask 392512  }
 0x48b   : > { %3258 = vmatmul.mubr.msk.f32.gmra.mrb[14].mxu0 %vm765_vm1, %v2206_v45  ;;  %2548 = vst.msk [vmem:[#allocation3 + $0x8] sm:$0xff] %vm1636_vm11, %v2526_v25 }
 0x48c   : > { %2474 = vst.msk [vmem:[#allocation3 + $0x38] sm:$0xff] %vm5475_vm4, %v2416_v7  ;;  %v5486_v7 = vld [vmem:[#allocation9_spill] sm:$0xff]  ;;  %vm2708_vm4 = vcmask 458112  }
 0x48d   : > { %3349 = vmatpush3.bf16.msra.mxu1 %v3346_v58 }
 0x48e   : > { %v2530_v31 = vpop.permute.xlu0 %2529  ;;  %v2566_v53 = vpop.permute.xlu1 %2565  ;;  %3351 = vmatprep.subr.bf16.mxu1 %v3350_v4 }
 0x48f   : > { %2550 = vst.msk [vmem:[#allocation3 + $0x18] sm:$0xff] %vm1636_vm11, %v2530_v31  ;;  %v2462_v31 = vld [vmem:[#allocation2 + $0x218] sm:$0xff] }
 0x490   : > { %2588 = vst.msk [vmem:[#allocation3 + $0x8] sm:$0xff] %vm2368_vm12, %v2566_v53 }
 0x491   : > { %3353 = vmatpush3.bf16.msra.mxu1 %v3350_v4 }
 0x492   : > { %v5098_v41 = vpop.permute.xlu0 %2686  ;;  %v2488_v37 = vpop.permute.xlu1 %2487  ;;  %3276 = vmatprep.subr.mxu1 %v3089_v22 }
 0x493   : > { %2509 = vst.msk [vmem:[#allocation3 + $0x10] sm:$0xff] %vm331_vm3, %v2488_v37 }
 0x495   : > { %3277 = vmatpush3.msra.mxu1 %v3089_v22 }
 0x496   : > { %v2570_v54 = vpop.permute.xlu0 %2569  ;;  %v5115_v14 = vpop.permute.xlu1 %2643 }
 0x497   : > { %2590 = vst.msk [vmem:[#allocation3 + $0x18] sm:$0xff] %vm2368_vm12, %v2570_v54 }
 0x49a   : > { %v5103_v32 = vpop.permute.xlu0 %2727  ;;  %v2528_v46 = vpop.permute.xlu1 %2527 }
 0x49b   : > { %2549 = vst.msk [vmem:[#allocation3 + $0x10] sm:$0xff] %vm1636_vm11, %v2528_v46 }
 0x49e   : > { %v2492_v50 = vpop.permute.xlu0 %2491  ;;  %v5121_v36 = vpop.permute.xlu1 %2684 }
 0x49f   : > { %2511 = vst.msk [vmem:[#allocation3 + $0x20] sm:$0xff] %vm331_vm3, %v2492_v50 }
 0x4a2   : > { %v5109_v47 = vpop.permute.xlu0 %2647  ;;  %v2568_v30 = vpop.permute.xlu1 %2567 }
 0x4a3   : > { %2589 = vst.msk [vmem:[#allocation3 + $0x10] sm:$0xff] %vm2368_vm12, %v2568_v30  ;;  %v2465_v30 = vld [vmem:[#allocation2 + $0x230] sm:$0xff] }
 0x4a6   : > { %v2494_v27 = vpop.permute.xlu0 %2493  ;;  %v5127_v13 = vpop.permute.xlu1 %2725 }
 0x4a7   : > { %2512 = vst.msk [vmem:[#allocation3 + $0x28] sm:$0xff] %vm331_vm3, %v2494_v27 }
 0x4aa   : > { %v5117_v38 = vpop.permute.xlu0 %2649  ;;  %v5131_v10 = vpop.permute.xlu1 %2765 }
 0x4ae   : > { %v2534_v20 = vpop.permute.xlu0 %2533  ;;  %v5135_v2 = vpop.permute.xlu1 %2767 }
 0x4af   : > { %2552 = vst.msk [vmem:[#allocation3 + $0x28] sm:$0xff] %vm1636_vm11, %v2534_v20  ;;  %v2463_v20 = vld [vmem:[#allocation2 + $0x220] sm:$0xff] }
 0x4b2   : > { %v5123_v9 = vpop.permute.xlu0 %2690  ;;  %v2532_v0 = vpop.permute.xlu1 %2531 }
 0x4b3   : > { %2551 = vst.msk [vmem:[#allocation3 + $0x20] sm:$0xff] %vm1636_vm11, %v2532_v0  ;;  %v5485_v0 = vld [vmem:[#allocation4_spill] sm:$0xff] }
 0x4b6   : > { %v2574_v1 = vpop.permute.xlu0 %2573  ;;  %v5142_v23 = vpop.permute.xlu1 %2688 }
 0x4b7   : > { %2592 = vst.msk [vmem:[#allocation3 + $0x28] sm:$0xff] %vm2368_vm12, %v2574_v1  ;;  %v2466_v1 = vld [vmem:[#allocation2 + $0x238] sm:$0xff] }
 0x4ba   : > { %v5129_v17 = vpop.permute.xlu0 %2731  ;;  %v2572_v34 = vpop.permute.xlu1 %2571 }
 0x4bb   : > { %2591 = vst.msk [vmem:[#allocation3 + $0x20] sm:$0xff] %vm2368_vm12, %v2572_v34  ;;  %v5488_v34 = vld [vmem:[#allocation11_spill] sm:$0xff] }
 0x4be   : > { %v2496_v43 = vpop.permute.xlu0 %2495  ;;  %v5148_v52 = vpop.permute.xlu1 %2729 }
 0x4bf   : > { %2513 = vst.msk [vmem:[#allocation3 + $0x30] sm:$0xff] %vm331_vm3, %v2496_v43  ;;  %v5484_v43 = vld [vmem:[#allocation7_spill] sm:$0xff] }
 0x4c2   : > { %v5137_v55 = vpop.permute.xlu0 %2651  ;;  %v5152_v33 = vpop.permute.xlu1 %2769 }
 0x4c6   : > { %v2498_v12 = vpop.permute.xlu0 %2497  ;;  %v5161_v51 = vpop.permute.xlu1 %2771 }
 0x4c7   : > { %2514 = vst.msk [vmem:[#allocation3 + $0x38] sm:$0xff] %vm331_vm3, %v2498_v12  ;;  %v5487_v12 = vld [vmem:[#allocation6_spill] sm:$0xff] }
 0x4ca   : > { %v5144_v15 = vpop.permute.xlu0 %2653  ;;  %v2536_v40 = vpop.permute.xlu1 %2535 }
 0x4cb   : > { %2553 = vst.msk [vmem:[#allocation3 + $0x30] sm:$0xff] %vm1636_vm11, %v2536_v40  ;;  %v5494_v40 = vld [vmem:[#allocation21_spill] sm:$0xff] }
 0x4ce   : > { %v2538_v5 = vpop.permute.xlu0 %2537  ;;  %v5164_v45 = vpop.permute.xlu1 %2692 }
 0x4cf   : > { %2554 = vst.msk [vmem:[#allocation3 + $0x38] sm:$0xff] %vm1636_vm11, %v2538_v5  ;;  %v5489_v5 = vld [vmem:[#allocation8_spill] sm:$0xff] }
 0x4d2   : > { %v5150_v35 = vpop.permute.xlu0 %2694  ;;  %v2576_v62 = vpop.permute.xlu1 %2575 }
 0x4d3   : > { %2593 = vst.msk [vmem:[#allocation3 + $0x30] sm:$0xff] %vm2368_vm12, %v2576_v62  ;;  %v5498_v62 = vld [vmem:[#allocation25_spill] sm:$0xff] }
 0x4d6   : > { %v2578_v16 = vpop.permute.xlu0 %2577 }
 0x4d7   : > { %2594 = vst.msk [vmem:[#allocation3 + $0x38] sm:$0xff] %vm2368_vm12, %v2578_v16  ;;  %v5493_v16 = vld [vmem:[#allocation14_spill] sm:$0xff] }
 0x4da   : > { %v2736_v59 = vpop.permute.xlu0 %2735 }
 0x4de   : > { %v2776_v49 = vpop.permute.xlu0 %2775 }
 0x537   : > { %v5173_v29 = vpop.f32.mrb[8].mxu0 }
 0x538   : > { %2378 = vst.msk [vmem:[#allocation2 + $0xe0] sm:$0xff] %vm5476_vm5, %v5173_v29  ;;  %v5183_v28 = vpop.f32.mrb[9].mxu0  ;;  %vm2789_vm5 = vcmask 589312  }
 0x539   : > { %2377 = vst.msk [vmem:[#allocation2 + $0xc8] sm:$0xff] %vm5477_vm6, %v5183_v28 }
 0x53f   : > { %v2423_v44 = vld [vmem:[#allocation2 + $0xe0] sm:$0xff] }
 0x540   : > { %2605 = vrot.lane.b32.xlu0 %v2423_v44, %s3385_s21  ;;  %v2420_v61 = vld [vmem:[#allocation2 + $0xc8] sm:$0xff] }
 0x544   : > { %2603 = vrot.lane.b32.xlu0 %v2420_v61, %s3385_s21 }
 0x548   : > { %2696 = vrot.lane.b32.xlu0 %v2461_v18, %s3387_s23 }
 0x54c   : > { %2737 = vrot.lane.b32.xlu0 %v2462_v31, %s3388_s28 }
 0x54f   : > { %v3253_v54 = vpop.f32.mrb[10].mxu0 }
 0x550   : > { %2380 = vst.msk [vmem:[#allocation2 + $0x110] sm:$0xff] %vm5478_vm9, %v3253_v54  ;;  %v2307_v42 = vpop.f32.mrb[11].mxu0 }
 0x551   : > { %2379 = vst.msk [vmem:[#allocation2 + $0xf8] sm:$0xff] %vm5479_vm14, %v2307_v42 }
 0x553   : > { %v3256_v11 = vpop.f32.mrb[12].mxu0 }
 0x554   : > { %2382 = vst.msk [vmem:[#allocation2 + $0x140] sm:$0xff] %vm5480_vm7, %v3256_v11  ;;  %v2317_v25 = vpop.f32.mrb[13].mxu0 }
 0x555   : > { %2381 = vst.msk [vmem:[#allocation2 + $0x128] sm:$0xff] %vm5481_vm10, %v2317_v25 }
 0x557   : > { %v2429_v39 = vld [vmem:[#allocation2 + $0x110] sm:$0xff] }
 0x558   : > { %2609 = vrot.lane.b32.xlu1 %v2429_v39, %s3385_s21  ;;  %v2426_v50 = vld [vmem:[#allocation2 + $0xf8] sm:$0xff] }
 0x55b   : > { %v2435_v37 = vld [vmem:[#allocation2 + $0x140] sm:$0xff] }
 0x55c   : > { %2607 = vrot.lane.b32.xlu1 %v2426_v50, %s3385_s21  ;;  %v2432_v6 = vld [vmem:[#allocation2 + $0x128] sm:$0xff] }
 0x55e   : > { %v3259_v53 = vpop.f32.mrb[14].mxu0 }
 0x55f   : > { %2384 = vst.msk [vmem:[#allocation2 + $0x170] sm:$0xff] %vm5472_vm0, %v3259_v53  ;;  %v2327_v19 = vpop.f32.mrb[15].mxu0 }
 0x560   : > { %2383 = vst.msk [vmem:[#allocation2 + $0x158] sm:$0xff] %vm5482_vm15, %v2327_v19  ;;  %2613 = vrot.lane.b32.xlu1 %v2435_v37, %s3385_s21 }
 0x564   : > { %2611 = vrot.lane.b32.xlu1 %v2432_v6, %s3385_s21 }
 0x566   : > { %v2441_v27 = vld [vmem:[#allocation2 + $0x170] sm:$0xff] }
 0x567   : > { %2617 = vrot.lane.b32.xlu0 %v2441_v27, %s3385_s21  ;;  %v2438_v46 = vld [vmem:[#allocation2 + $0x158] sm:$0xff] }
 0x568   : > { %2615 = vrot.lane.b32.xlu1 %v2438_v46, %s3385_s21 }
 0x56b   : > { %2777 = vrot.lane.b32.xlu0 %v2463_v20, %s3389_s10 }
 0x56c   : > { %2739 = vrot.lane.b32.xlu1 %v2465_v30, %s3388_s28 }
 0x56f   : > { %903 = vrot.lane.b32.xlu0 %v5483_v57, %s3383_s19 }
 0x570   : > { %2779 = vrot.lane.b32.xlu1 %v2466_v1, %s3389_s10 }
 0x573   : > { %907 = vrot.lane.b32.xlu0 %v5484_v43, %s3383_s19 }
 0x574   : > { %905 = vrot.lane.b32.xlu1 %v5485_v0, %s3383_s19 }
 0x577   : > { %911 = vrot.lane.b32.xlu0 %v5486_v7, %s3383_s19 }
 0x578   : > { %909 = vrot.lane.b32.xlu1 %v5487_v12, %s3383_s19 }
 0x57b   : > { %915 = vrot.lane.b32.xlu0 %v5488_v34, %s3383_s19 }
 0x57c   : > { %913 = vrot.lane.b32.xlu1 %v5489_v5, %s3383_s19 }
 0x57f   : > { %1612 = vrot.lane.b32.xlu0 %v5490_v60, %s3382_s18 }
 0x580   : > { %917 = vrot.lane.b32.xlu1 %v5491_v21, %s3383_s19 }
 0x583   : > { %1616 = vrot.lane.b32.xlu0 %v5492_v8, %s3382_s18 }
 0x584   : > { %1614 = vrot.lane.b32.xlu1 %v5493_v16, %s3382_s18 }
 0x587   : > { %1620 = vrot.lane.b32.xlu0 %v5494_v40, %s3382_s18 }
 0x588   : > { %1618 = vrot.lane.b32.xlu1 %v5495_v63, %s3382_s18 }
 0x58b   : > { %1624 = vrot.lane.b32.xlu0 %v5496_v3, %s3382_s18 }
 0x58c   : > { %1622 = vrot.lane.b32.xlu1 %v5497_v26, %s3382_s18 }
 0x58f   : > { %2344 = vrot.lane.b32.xlu0 %v5183_v28, %s3384_s20  ;;  %v2734_v28 = vpop.permute.xlu1 %2733 }
 0x590   : > { %1626 = vrot.lane.b32.xlu1 %v5498_v62, %s3382_s18 }
 0x593   : > { %2348 = vrot.lane.b32.xlu0 %v2307_v42, %s3384_s20 }
 0x594   : > { %2346 = vrot.lane.b32.xlu1 %v5173_v29, %s3384_s20  ;;  %v2774_v29 = vpop.permute.xlu1 %2773 }
 0x597   : > { %2352 = vrot.lane.b32.xlu0 %v2317_v25, %s3384_s20 }
 0x598   : > { %2350 = vrot.lane.b32.xlu1 %v3253_v54, %s3384_s20 }
 0x59b   : > { %2356 = vrot.lane.b32.xlu0 %v2327_v19, %s3384_s20 }
 0x59c   : > { %2354 = vrot.lane.b32.xlu1 %v3256_v11, %s3384_s20 }
 0x5a0   : > { %2358 = vrot.lane.b32.xlu1 %v3259_v53, %s3384_s20 }
 0x5b2   : > { %v2606_v58 = vpop.permute.xlu0 %2605 }
 0x5b3   : > { %2628 = vst.msk [vmem:[#allocation3 + $0x8] sm:$0xff] %vm513_vm8, %v2606_v58 }
 0x5b4   : > { %2669 = vst.msk [vmem:[#allocation3 + $0x8] sm:$0xff] %vm2667_vm2, %v5095_v56  ;;  %v2656_v56 = vpop.permute.xlu1 %2655 }
 0x5b5   : > { %2710 = vst.msk [vmem:[#allocation3 + $0x8] sm:$0xff] %vm2708_vm4, %v5098_v41 }
 0x5b6   : > { %2750 = vst.msk [vmem:[#allocation3 + $0x8] sm:$0xff] %vm681_vm13, %v5103_v32  ;;  %v2604_v48 = vpop.permute.xlu0 %2603 }
 0x5b7   : > { %2791 = vst.msk [vmem:[#allocation3 + $0x8] sm:$0xff] %vm2789_vm5, %v5135_v2 }
 0x5b8   : > { %2627 = vst.msk [vmem:[#allocation3] sm:$0xff] %vm513_vm8, %v2604_v48  ;;  %v2658_v41 = vpop.permute.xlu1 %2657 }
 0x5b9   : > { %2668 = vst.msk [vmem:[#allocation3] sm:$0xff] %vm2667_vm2, %v5115_v14 }
 0x5ba   : > { %2709 = vst.msk [vmem:[#allocation3] sm:$0xff] %vm2708_vm4, %v5121_v36  ;;  %v2697_v14 = vpop.permute.xlu0 %2696 }
 0x5bb   : > { %2749 = vst.msk [vmem:[#allocation3] sm:$0xff] %vm681_vm13, %v5127_v13 }
 0x5bc   : > { %2790 = vst.msk [vmem:[#allocation3] sm:$0xff] %vm2789_vm5, %v5131_v10  ;;  %v2699_v24 = vpop.permute.xlu1 %2698 }
 0x5be   : > { %v2799_v2 = vld [vmem:[#allocation3 + $0x8] sm:$0xff] }
 0x5c3   : > { %v2798_v32 = vld [vmem:[#allocation3] sm:$0xff] }
 0x5c4   : > { %3278 = vmatprep.mubr.msk.f32.mxu1 %vm765_vm1, %v2798_v32 }
 0x5c5   : > { %3279 = vmatmul.mubr.msk.f32.vlgmr.msra.gmra.mrb[8].mxu1 %vm765_vm1, %v2799_v2 }
 0x5ca   : > { %v2610_v4 = vpop.permute.xlu1 %2609 }
 0x5cb   : > { %2630 = vst.msk [vmem:[#allocation3 + $0x18] sm:$0xff] %vm513_vm8, %v2610_v4 }
 0x5cc   : > { %2671 = vst.msk [vmem:[#allocation3 + $0x18] sm:$0xff] %vm2667_vm2, %v5117_v38 }
 0x5cd   : > { %2712 = vst.msk [vmem:[#allocation3 + $0x18] sm:$0xff] %vm2708_vm4, %v5123_v9  ;;  %v2738_v9 = vpop.permute.xlu0 %2737 }
 0x5ce   : > { %2752 = vst.msk [vmem:[#allocation3 + $0x18] sm:$0xff] %vm681_vm13, %v5129_v17  ;;  %v2608_v36 = vpop.permute.xlu1 %2607 }
 0x5cf   : > { %2793 = vst.msk [vmem:[#allocation3 + $0x18] sm:$0xff] %vm2789_vm5, %v5161_v51 }
 0x5d0   : > { %2629 = vst.msk [vmem:[#allocation3 + $0x10] sm:$0xff] %vm513_vm8, %v2608_v36 }
 0x5d1   : > { %2670 = vst.msk [vmem:[#allocation3 + $0x10] sm:$0xff] %vm2667_vm2, %v5109_v47 }
 0x5d2   : > { %2711 = vst.msk [vmem:[#allocation3 + $0x10] sm:$0xff] %vm2708_vm4, %v5142_v23  ;;  %v2614_v38 = vpop.permute.xlu1 %2613 }
 0x5d3   : > { %2751 = vst.msk [vmem:[#allocation3 + $0x10] sm:$0xff] %vm681_vm13, %v5148_v52 }
 0x5d4   : > { %2792 = vst.msk [vmem:[#allocation3 + $0x10] sm:$0xff] %vm2789_vm5, %v5152_v33 }
 0x5d5   : > { %2632 = vst.msk [vmem:[#allocation3 + $0x28] sm:$0xff] %vm513_vm8, %v2614_v38 }
 0x5d6   : > { %2673 = vst.msk [vmem:[#allocation3 + $0x28] sm:$0xff] %vm2667_vm2, %v5144_v15  ;;  %v2612_v47 = vpop.permute.xlu1 %2611 }
 0x5d7   : > { %2714 = vst.msk [vmem:[#allocation3 + $0x28] sm:$0xff] %vm2708_vm4, %v5150_v35 }
 0x5d8   : > { %2754 = vst.msk [vmem:[#allocation3 + $0x28] sm:$0xff] %vm681_vm13, %v2736_v59 }
 0x5d9   : > { %2795 = vst.msk [vmem:[#allocation3 + $0x28] sm:$0xff] %vm2789_vm5, %v2776_v49  ;;  %v2618_v13 = vpop.permute.xlu0 %2617 }
 0x5da   : > { %2631 = vst.msk [vmem:[#allocation3 + $0x20] sm:$0xff] %vm513_vm8, %v2612_v47  ;;  %2634 = vst.msk [vmem:[#allocation3 + $0x38] sm:$0xff] %vm513_vm8, %v2618_v13  ;;  %v2616_v17 = vpop.permute.xlu1 %2615 }
 0x5db   : > { %2672 = vst.msk [vmem:[#allocation3 + $0x20] sm:$0xff] %vm2667_vm2, %v5137_v55  ;;  %v2800_v10 = vld [vmem:[#allocation3 + $0x10] sm:$0xff]  ;;  %2675 = vst.msk [vmem:[#allocation3 + $0x38] sm:$0xff] %vm2667_vm2, %v2658_v41  ;;  %v2801_v55 = vld [vmem:[#allocation3 + $0x18] sm:$0xff] }
 0x5dc   : > { %2713 = vst.msk [vmem:[#allocation3 + $0x20] sm:$0xff] %vm2708_vm4, %v5164_v45  ;;  %3281 = vmatprep.mubr.msk.f32.mxu1 %vm765_vm1, %v2800_v10  ;;  %2716 = vst.msk [vmem:[#allocation3 + $0x38] sm:$0xff] %vm2708_vm4, %v2699_v24 }
 0x5dd   : > { %2753 = vst.msk [vmem:[#allocation3 + $0x20] sm:$0xff] %vm681_vm13, %v2734_v28  ;;  %3282 = vmatmul.mubr.msk.f32.gmra.mrb[10].mxu1 %vm765_vm1, %v2801_v55  ;;  %v2778_v23 = vpop.permute.xlu0 %2777 }
 0x5de   : > { %2794 = vst.msk [vmem:[#allocation3 + $0x20] sm:$0xff] %vm2789_vm5, %v2774_v29  ;;  %v2740_v15 = vpop.permute.xlu1 %2739 }
 0x5df   : > { %2633 = vst.msk [vmem:[#allocation3 + $0x30] sm:$0xff] %vm513_vm8, %v2616_v17 }
 0x5e0   : > { %2674 = vst.msk [vmem:[#allocation3 + $0x30] sm:$0xff] %vm2667_vm2, %v2656_v56  ;;  %v2803_v51 = vld [vmem:[#allocation3 + $0x28] sm:$0xff] }
 0x5e1   : > { %2715 = vst.msk [vmem:[#allocation3 + $0x30] sm:$0xff] %vm2708_vm4, %v2697_v14  ;;  %v904_v52 = vpop.permute.xlu0 %903 }
 0x5e2   : > { %2755 = vst.msk [vmem:[#allocation3 + $0x30] sm:$0xff] %vm681_vm13, %v2738_v9  ;;  %2756 = vst.msk [vmem:[#allocation3 + $0x38] sm:$0xff] %vm681_vm13, %v2740_v15  ;;  %v2780_v35 = vpop.permute.xlu1 %2779 }
 0x5e3   : > { %2796 = vst.msk [vmem:[#allocation3 + $0x30] sm:$0xff] %vm2789_vm5, %v2778_v23  ;;  %2797 = vst.msk [vmem:[#allocation3 + $0x38] sm:$0xff] %vm2789_vm5, %v2780_v35 }
 0x5e4   : > { %927 = vst.msk [vmem:[%s3569_s17] sm:$0xff] %vm331_vm3, %v904_v52 }
 0x5e5   : > { %v2802_v33 = vld [vmem:[#allocation3 + $0x20] sm:$0xff]  ;;  %v908_v45 = vpop.permute.xlu0 %907 }
 0x5e6   : > { %3284 = vmatprep.mubr.msk.f32.mxu1 %vm765_vm1, %v2802_v33  ;;  %929 = vst.msk [vmem:[%s3569_s17 + $0x10] sm:$0xff] %vm331_vm3, %v908_v45  ;;  %v906_v22 = vpop.permute.xlu1 %905 }
 0x5e7   : > { %3285 = vmatmul.mubr.msk.f32.gmra.mrb[12].mxu1 %vm765_vm1, %v2803_v51  ;;  %928 = vst.msk [vmem:[%s3569_s17 + $0x8] sm:$0xff] %vm331_vm3, %v906_v22 }
 0x5e9   : > { %v912_v61 = vpop.permute.xlu0 %911 }
 0x5ea   : > { %v2804_v44 = vld [vmem:[#allocation3 + $0x30] sm:$0xff]  ;;  %931 = vst.msk [vmem:[%s3569_s17 + $0x20] sm:$0xff] %vm331_vm3, %v912_v61  ;;  %v910_v18 = vpop.permute.xlu1 %909  ;;  %v2805_v31 = vld [vmem:[#allocation3 + $0x38] sm:$0xff] }
 0x5eb   : > { %3287 = vmatprep.mubr.msk.f32.mxu1 %vm765_vm1, %v2804_v44  ;;  %930 = vst.msk [vmem:[%s3569_s17 + $0x18] sm:$0xff] %vm331_vm3, %v910_v18 }
 0x5ec   : > { %3288 = vmatmul.mubr.msk.f32.gmra.mrb[14].mxu1 %vm765_vm1, %v2805_v31 }
 0x5ed   : > { %v916_v54 = vpop.permute.xlu0 %915 }
 0x5ee   : > { %933 = vst.msk [vmem:[%s3569_s17 + $0x30] sm:$0xff] %vm331_vm3, %v916_v54  ;;  %v914_v42 = vpop.permute.xlu1 %913 }
 0x5ef   : > { %932 = vst.msk [vmem:[%s3569_s17 + $0x28] sm:$0xff] %vm331_vm3, %v914_v42 }
 0x5f1   : > { %v1613_v11 = vpop.permute.xlu0 %1612 }
 0x5f2   : > { %1637 = vst.msk [vmem:[%s3569_s17] sm:$0xff] %vm1636_vm11, %v1613_v11  ;;  %v918_v25 = vpop.permute.xlu1 %917 }
 0x5f3   : > { %934 = vst.msk [vmem:[%s3569_s17 + $0x38] sm:$0xff] %vm331_vm3, %v918_v25 }
 0x5f5   : > { %v1617_v39 = vpop.permute.xlu0 %1616 }
 0x5f6   : > { %1639 = vst.msk [vmem:[%s3569_s17 + $0x10] sm:$0xff] %vm1636_vm11, %v1617_v39  ;;  %v1615_v50 = vpop.permute.xlu1 %1614 }
 0x5f7   : > { %1638 = vst.msk [vmem:[%s3569_s17 + $0x8] sm:$0xff] %vm1636_vm11, %v1615_v50 }
 0x5f9   : > { %v1621_v53 = vpop.permute.xlu0 %1620 }
 0x5fa   : > { %1641 = vst.msk [vmem:[%s3569_s17 + $0x20] sm:$0xff] %vm1636_vm11, %v1621_v53  ;;  %v1619_v19 = vpop.permute.xlu1 %1618 }
 0x5fb   : > { %1640 = vst.msk [vmem:[%s3569_s17 + $0x18] sm:$0xff] %vm1636_vm11, %v1619_v19 }
 0x5fd   : > { %v1625_v37 = vpop.permute.xlu0 %1624 }
 0x5fe   : > { %1643 = vst.msk [vmem:[%s3569_s17 + $0x30] sm:$0xff] %vm1636_vm11, %v1625_v37  ;;  %v1623_v6 = vpop.permute.xlu1 %1622 }
 0x5ff   : > { %1642 = vst.msk [vmem:[%s3569_s17 + $0x28] sm:$0xff] %vm1636_vm11, %v1623_v6 }
 0x601   : > { %v2345_v27 = vpop.permute.xlu0 %2344 }
 0x602   : > { %2369 = vst.msk [vmem:[%s3569_s17] sm:$0xff] %vm2368_vm12, %v2345_v27  ;;  %v1627_v46 = vpop.permute.xlu1 %1626 }
 0x603   : > { %1644 = vst.msk [vmem:[%s3569_s17 + $0x38] sm:$0xff] %vm1636_vm11, %v1627_v46 }
 0x605   : > { %v2349_v20 = vpop.permute.xlu0 %2348 }
 0x606   : > { %2371 = vst.msk [vmem:[%s3569_s17 + $0x10] sm:$0xff] %vm2368_vm12, %v2349_v20  ;;  %v2347_v30 = vpop.permute.xlu1 %2346 }
 0x607   : > { %2370 = vst.msk [vmem:[%s3569_s17 + $0x8] sm:$0xff] %vm2368_vm12, %v2347_v30 }
 0x609   : > { %v2353_v1 = vpop.permute.xlu0 %2352 }
 0x60a   : > { %2373 = vst.msk [vmem:[%s3569_s17 + $0x20] sm:$0xff] %vm2368_vm12, %v2353_v1  ;;  %v2351_v57 = vpop.permute.xlu1 %2350 }
 0x60b   : > { %2372 = vst.msk [vmem:[%s3569_s17 + $0x18] sm:$0xff] %vm2368_vm12, %v2351_v57 }
 0x60d   : > { %v2357_v43 = vpop.permute.xlu0 %2356 }
 0x60e   : > { %2375 = vst.msk [vmem:[%s3569_s17 + $0x30] sm:$0xff] %vm2368_vm12, %v2357_v43  ;;  %v2355_v0 = vpop.permute.xlu1 %2354 }
 0x60f   : > { %2374 = vst.msk [vmem:[%s3569_s17 + $0x28] sm:$0xff] %vm2368_vm12, %v2355_v0 }
 0x612   : > { %v2359_v7 = vpop.permute.xlu1 %2358 }
 0x613   : > { %2376 = vst.msk [vmem:[%s3569_s17 + $0x38] sm:$0xff] %vm2368_vm12, %v2359_v7 }
 0x698   : > { %v3280_v12 = vpop.f32.mrb[8].mxu1 }
 0x699   : > { %2945 = vrot.lane.b32.xlu1 %v3280_v12, %s3385_s21  ;;  %v2896_v34 = vpop.f32.mrb[9].mxu1 }
 0x69a   : > { %2943 = vrot.lane.b32.xlu0 %v2896_v34, %s3385_s21 }
 0x6b0   : > { %v3283_v5 = vpop.f32.mrb[10].mxu1 }
 0x6b1   : > { %2949 = vrot.lane.b32.xlu1 %v3283_v5, %s3385_s21  ;;  %v2906_v60 = vpop.f32.mrb[11].mxu1 }
 0x6b2   : > { %2947 = vrot.lane.b32.xlu0 %v2906_v60, %s3385_s21 }
 0x6ba   : > { %v3286_v21 = vpop.f32.mrb[12].mxu1 }
 0x6bb   : > { %2953 = vrot.lane.b32.xlu1 %v3286_v21, %s3385_s21  ;;  %v2916_v8 = vpop.f32.mrb[13].mxu1 }
 0x6bc   : > { %2951 = vrot.lane.b32.xlu0 %v2916_v8, %s3385_s21 }
 0x6bf   : > { %v3289_v16 = vpop.f32.mrb[14].mxu1 }
 0x6c0   : > { %2957 = vrot.lane.b32.xlu1 %v3289_v16, %s3385_s21  ;;  %v2926_v40 = vpop.f32.mrb[15].mxu1 }
 0x6c1   : > { %2955 = vrot.lane.b32.xlu0 %v2926_v40, %s3385_s21 }
 0x70b   : > { %v2946_v63 = vpop.permute.xlu1 %2945 }
 0x70c   : > { %2968 = vst.msk [vmem:[%s3569_s17 + $0x8] sm:$0xff] %vm513_vm8, %v2946_v63  ;;  %v2944_v3 = vpop.permute.xlu0 %2943 }
 0x70d   : > { %2967 = vst.msk [vmem:[%s3569_s17] sm:$0xff] %vm513_vm8, %v2944_v3 }
 0x723   : > { %v2950_v26 = vpop.permute.xlu1 %2949 }
 0x724   : > { %2970 = vst.msk [vmem:[%s3569_s17 + $0x18] sm:$0xff] %vm513_vm8, %v2950_v26  ;;  %v2948_v62 = vpop.permute.xlu0 %2947 }
 0x725   : > { %2969 = vst.msk [vmem:[%s3569_s17 + $0x10] sm:$0xff] %vm513_vm8, %v2948_v62 }
 0x72d   : > { %v2954_v59 = vpop.permute.xlu1 %2953 }
 0x72e   : > { %2972 = vst.msk [vmem:[%s3569_s17 + $0x28] sm:$0xff] %vm513_vm8, %v2954_v59  ;;  %v2952_v49 = vpop.permute.xlu0 %2951 }
 0x72f   : > { %2971 = vst.msk [vmem:[%s3569_s17 + $0x20] sm:$0xff] %vm513_vm8, %v2952_v49 }
 0x732   : > { %v2958_v28 = vpop.permute.xlu1 %2957 }
 0x733   : > { %2974 = vst.msk [vmem:[%s3569_s17 + $0x38] sm:$0xff] %vm513_vm8, %v2958_v28  ;;  %v2956_v58 = vpop.permute.xlu0 %2955 }
 0x734   : > { %2973 = vst.msk [vmem:[%s3569_s17 + $0x30] sm:$0xff] %vm513_vm8, %v2956_v58 }
 0x735 PF: > { %s12_s9 = sadd.s32 1, %s3379_s9  }
 0x736   : > { %p9_p4 = scmp.ge.s32.totalorder %s12_s9, 4  }
 0x738   :  { %11 = sbr.rel (!%p9_p4) target bundleno = 1 (0x1), region = 62 }

// kernel: dam_criss_forward.5
= control target key start
LH: loop header
LB: loop body
LE: loop exit
PB: predicated region body
PF: predicated region fallthrough
CT: control target
= control target key end

     0   :  { %s4994_s29 = smov 0   ;;  %s5830_s0 = inlined_call_operand.vmem [shape: f32[2,8,8,40], index: 0, kind: input, shape index: {}]   ;;  %s5831_s1 = inlined_call_operand.vmem [shape: f32[40,5], index: 1, kind: input, shape index: {}]   ;;  %s5832_s2 = inlined_call_operand.vmem [shape: f32[1,5], index: 2, kind: input, shape index: {}]   ;;  %s5833_s3 = inlined_call_operand.vmem [shape: f32[40,5], index: 3, kind: input, shape index: {}]   ;;  %s5834_s4 = inlined_call_operand.vmem [shape: f32[1,5], index: 4, kind: input, shape index: {}]   ;;  %s5835_s5 = inlined_call_operand.vmem [shape: f32[40,40], index: 5, kind: input, shape index: {}]   ;;  %s5836_s6 = inlined_call_operand.vmem [shape: f32[1,40], index: 6, kind: input, shape index: {}]   ;;  %s5837_s7 = inlined_call_operand.<no memory space> [shape: f32[1], index: 7, kind: input, shape index: {}]   ;;  %s5838_s8 = inlined_call_operand.vmem [shape: f32[2,8,8,40], index: 8, kind: output, shape index: {}]  }
   0x1   :  { %13 = sst [smem:[#allocation2]] %s5837_s7 }
   0x2 LB: > { %s4439_s30 = sadd.s32 4294967295, %s4940_s29   ;;  %p4443_p0 = scmp.ge.s32.totalorder %s4940_s29, 1  ;;  %s4940_s29 = sphi %s4994_s29, %s19_s29  }
   0x3   : > { %p263_p1 = scmp.lt.s32.totalorder %s4940_s29, 3 }
   0x5   : > { %p264_p2 = pnand %p4443_p0, %p263_p1 }
   0x6   : > { %v457_v0 = vld [vmem:[%s5833_s3] sm:$0xff] (!%p264_p2)  ;;  %v458_v1 = vld [vmem:[%s5833_s3 + $0x8] sm:$0xff] (!%p264_p2)  ;;  %p297_p3 = scmp.lt.s32.totalorder (!%p264_p2), %s4439_s30, 1  ;;  %v459_v5 = vld [vmem:[%s5833_s3 + $0x10] sm:$0xff] (!%p264_p2)  ;;  %vm327_vm0 = vcmask (!%p264_p2), 326656   ;;  %v4942_v29 = vmov (!%p264_p2), 0.0   ;;  %v696_v32 = vlaneseq (!%p264_p2) }
   0x7   : > { %267 = sbr.rel (%p264_p2) target bundleno = 1838 (0x72e), region = 52  ;;  %v315_v2 = vld [vmem:[%s5831_s1] sm:$0xff] (!%p264_p2)  ;;  %v4864_v3 = vpack.c.bf16 (!%p264_p2), %v458_v1, %v457_v0  ;;  %v316_v4 = vld [vmem:[%s5831_s1 + $0x8] sm:$0xff] (!%p264_p2)  ;;  %v460_v6 = vld [vmem:[%s5833_s3 + $0x18] sm:$0xff] (!%p264_p2)  ;;  %vm4943_vm1 = vmmov (!%p264_p2), 0   ;;  %vm1099_vm2 = vcmask (!%p264_p2), 39936  }
   0x8   : > { %v4856_v7 = vpack.c.bf16 (!%p264_p2), %v316_v4, %v315_v2  ;;  %v4868_v8 = vpack.c.bf16 (!%p264_p2), %v460_v6, %v459_v5  ;;  %v317_v9 = vld [vmem:[%s5831_s1 + $0x10] sm:$0xff] (!%p264_p2)  ;;  %v318_v10 = vld [vmem:[%s5831_s1 + $0x18] sm:$0xff] (!%p264_p2)  ;;  %v461_v12 = vld [vmem:[%s5833_s3 + $0x20] sm:$0xff] (!%p264_p2)  ;;  %v4944_v30 = vmov (!%p264_p2), 1983009808   ;;  %v5096_v36 = vshrl.u32 (!%p264_p2), %v696_v32, 7 }
   0x9   : > { %4865 = vmatprep.subr.bf16.mxu1 (!%p264_p2), %v4864_v3  ;;  %v4860_v11 = vpack.c.bf16 (!%p264_p2), %v318_v10, %v317_v9  ;;  %v319_v14 = vld [vmem:[%s5831_s1 + $0x20] sm:$0xff] (!%p264_p2)  ;;  %v575_v23 = vld [vmem:[%s5835_s5 + $0x8] sm:$0xff] (!%p264_p2)  ;;  %v576_v25 = vld [vmem:[%s5835_s5 + $0x10] sm:$0xff] (!%p264_p2)  ;;  %v694_v31 = vunpack.c.l.s4 (!%p264_p2), %v4944_v30  ;;  %v4945_v40 = vmov (!%p264_p2), 1934713408   ;;  %vm2331_vm4 = vcmask (!%p264_p2), 64512  }
   0xa   : > { %4867 = vmatpush3.bf16.msra.mxu1 (!%p264_p2), %v4864_v3  ;;  %4857 = vmatprep.subr.bf16.mxu0 (!%p264_p2), %v4856_v7  ;;  %v574_v22 = vld [vmem:[%s5835_s5] sm:$0xff] (!%p264_p2)  ;;  %v577_v26 = vld [vmem:[%s5835_s5 + $0x18] sm:$0xff] (!%p264_p2)  ;;  %v758_v41 = vunpack.c.l.s4 (!%p264_p2), %v4945_v40  ;;  %vm2420_vm5 = vcmask (!%p264_p2), 1041409   ;;  %vm2422_vm6 = vcmask (!%p264_p2), 1042434   ;;  %vm2424_vm7 = vcmask (!%p264_p2), 1043459   ;;  %s4350_s9 = sld [smem:[#allocation2]] (!%p264_p2) }
   0xb   : > { %4859 = vmatpush3.bf16.msra.mxu0 (!%p264_p2), %v4856_v7  ;;  %4869 = vmatprep.subr.bf16.mxu1 (!%p264_p2), %v4868_v8  ;;  %v4872_v24 = vpack.c.bf16 (!%p264_p2), %v575_v23, %v574_v22  ;;  %v4876_v27 = vpack.c.bf16 (!%p264_p2), %v577_v26, %v576_v25  ;;  %v578_v28 = vld [vmem:[%s5835_s5 + $0x20] sm:$0xff] (!%p264_p2)  ;;  %v695_v35 = vunpack.c.0.s8 (!%p264_p2), %v694_v31  ;;  %vm2426_vm8 = vcmask (!%p264_p2), 1044484  }
   0xc   : > { %4861 = vmatprep.subr.bf16.mxu0 (!%p264_p2), %v4860_v11  ;;  %v5101_v38 = vld [vmem:[%s5832_s2] ss:$0 sm:$0xff] (!%p264_p2)  ;;  %v759_v52 = vunpack.c.0.s8 (!%p264_p2), %v758_v41  ;;  %vm2428_vm9 = vcmask (!%p264_p2), 1045509   ;;  %vm2430_vm10 = vcmask (!%p264_p2), 1046534   ;;  %vm2432_vm11 = vcmask (!%p264_p2), 1047559  }
   0xd   : > { %v4457_v39 = vld [vmem:[%s5834_s4] ss:$0 sm:$0xff] (!%p264_p2)  ;;  %v5114_v47 = vsub.s32 (!%p264_p2), %v695_v35, %v5096_v36 }
   0xe   : > { %s5842_s30 = smov (!%p297_p3, %s4439_s30), 1  ;;  %4871 = vmatpush3.bf16.msra.mxu1 %v4868_v8  ;;  %v5146_v5 = vsub.s32 %v759_v52, %v5096_v36 }
   0xf   : > { %s4525_s24 = sshll.u32 %s5842_s30, 6  ;;  %4863 = vmatpush3.bf16.msra.mxu0 %v4860_v11  ;;  %4660 = vmatprep.subr.mxu1 %v461_v12 }
  0x10   : > { %s5034_s27 = scalar_lea.vmem %s5830_s0, %s4525_s24  ;;  %4638 = vmatprep.subr.mxu0 %v319_v14  ;;  %s5801_s11 = scalar_lea.vmem %s5838_s8, %s4525_s24 }
  0x11   : > { %v307_v13 = vld [vmem:[%s5034_s27] sm:$0xff]  ;;  %v308_v15 = vld [vmem:[%s5034_s27 + $0x8] sm:$0xff]  ;;  %v309_v16 = vld [vmem:[%s5034_s27 + $0x10] sm:$0xff] }
  0x12   : > { %4662 = vmatprep.mubr.msk.f32.mxu1 %vm327_vm0, %v307_v13  ;;  %4640 = vmatprep.mubr.msk.f32.mxu0 %vm327_vm0, %v307_v13  ;;  %v310_v17 = vld [vmem:[%s5034_s27 + $0x18] sm:$0xff]  ;;  %v311_v18 = vld [vmem:[%s5034_s27 + $0x20] sm:$0xff]  ;;  %v312_v19 = vld [vmem:[%s5034_s27 + $0x28] sm:$0xff] }
  0x13   : > { %4661 = vmatpush3.msra.mxu1 %v461_v12  ;;  %4639 = vmatpush3.msra.mxu0 %v319_v14  ;;  %v313_v20 = vld [vmem:[%s5034_s27 + $0x30] sm:$0xff]  ;;  %v314_v21 = vld [vmem:[%s5034_s27 + $0x38] sm:$0xff] }
  0x14   : > { %4663 = vmatmul.mubr.msk.f32.vlgmr.msra.gmra.mrb[0].mxu1 %vm327_vm0, %v308_v15  ;;  %4641 = vmatmul.mubr.msk.f32.vlgmr.msra.gmra.mrb[0].mxu0 %vm327_vm0, %v308_v15 }
  0x15   : > { %4665 = vmatprep.mubr.msk.f32.mxu1 %vm327_vm0, %v309_v16  ;;  %4643 = vmatprep.mubr.msk.f32.mxu0 %vm327_vm0, %v309_v16 }
  0x16   : > { %4873 = vmatprep.subr.bf16.mxu0 %v4872_v24  ;;  %4696 = vmatprep.subr.mxu1 %v4942_v29 }
  0x17   : > { %4875 = vmatpush3.bf16.msra.mxu0 %v4872_v24 }
  0x18   : > { %4666 = vmatmul.mubr.msk.f32.gmra.mrb[2].mxu1 %vm327_vm0, %v310_v17  ;;  %4644 = vmatmul.mubr.msk.f32.gmra.mrb[2].mxu0 %vm327_vm0, %v310_v17 }
  0x19   : > { %4668 = vmatprep.mubr.msk.f32.mxu1 %vm327_vm0, %v311_v18  ;;  %4646 = vmatprep.mubr.msk.f32.mxu0 %vm327_vm0, %v311_v18 }
  0x1a   : > { %4877 = vmatprep.subr.bf16.mxu0 %v4876_v27 }
  0x1b   : > { %4879 = vmatpush3.bf16.msra.mxu0 %v4876_v27 }
  0x1c   : > { %4669 = vmatmul.mubr.msk.f32.gmra.mrb[4].mxu1 %vm327_vm0, %v312_v19  ;;  %4647 = vmatmul.mubr.msk.f32.gmra.mrb[4].mxu0 %vm327_vm0, %v312_v19 }
  0x1d   : > { %4671 = vmatprep.mubr.msk.f32.mxu1 %vm327_vm0, %v313_v20  ;;  %4649 = vmatprep.mubr.msk.f32.mxu0 %vm327_vm0, %v313_v20 }
  0x1e   : > { %4682 = vmatprep.subr.mxu0 %v578_v28 }
  0x1f   : > { %4683 = vmatpush3.msra.mxu0 %v578_v28 }
  0x20   : > { %4672 = vmatmul.mubr.msk.f32.gmra.mrb[6].mxu1 %vm327_vm0, %v314_v21  ;;  %4650 = vmatmul.mubr.msk.f32.gmra.mrb[6].mxu0 %vm327_vm0, %v314_v21 }
  0x21   : > { %4684 = vmatprep.mubr.msk.f32.mxu0 %vm327_vm0, %v307_v13  ;;  %4716 = vmatprep.subr.mxu0 %v4942_v29 }
  0x22   : > { %4698 = vmatprep.mubr.msk.f32.mxu1 %vm4943_vm1, %v4942_v29 }
  0x24   : > { %4685 = vmatmul.mubr.msk.f32.vlgmr.msra.gmra.mrb[8].mxu0 %vm327_vm0, %v308_v15 }
  0x25   : > { %4687 = vmatprep.mubr.msk.f32.mxu0 %vm327_vm0, %v309_v16 }
  0x28   : > { %4688 = vmatmul.mubr.msk.f32.gmra.mrb[10].mxu0 %vm327_vm0, %v310_v17 }
  0x29   : > { %4690 = vmatprep.mubr.msk.f32.mxu0 %vm327_vm0, %v311_v18 }
  0x2c   : > { %4691 = vmatmul.mubr.msk.f32.gmra.mrb[12].mxu0 %vm327_vm0, %v312_v19 }
  0x2d   : > { %4693 = vmatprep.mubr.msk.f32.mxu0 %vm327_vm0, %v313_v20 }
  0x30   : > { %4694 = vmatmul.mubr.msk.f32.gmra.mrb[14].mxu0 %vm327_vm0, %v314_v21 }
  0x31   : > { %4718 = vmatprep.mubr.msk.f32.mxu0 %vm4943_vm1, %v4942_v29 }
  0xe7   : > { %v4664_v33 = vpop.f32.mrb[0].mxu1  ;;  %v4642_v37 = vpop.f32.mrb[0].mxu0 }
  0xe8   : > { %v535_v34 = vpop.f32.mrb[1].mxu1  ;;  %v418_v42 = vpop.f32.mrb[1].mxu0  ;;  %v5107_v44 = vadd.f32 %v4642_v37, %v5101_v38  ;;  %v5109_v45 = vadd.f32 %v4664_v33, %v4457_v39 }
  0xe9   : > { %v5116_v50 = vadd.f32 %v4457_v39, %v535_v34  ;;  %v5128_v57 = vadd.f32 %v5101_v38, %v418_v42 }
  0xeb   : > { %v4667_v43 = vpop.f32.mrb[2].mxu1  ;;  %v4645_v49 = vpop.f32.mrb[2].mxu0 }
  0xec   : > { %v5111_v46 = vadd.f32 %v4667_v43, %v4457_v39  ;;  %v545_v48 = vpop.f32.mrb[3].mxu1  ;;  %v5121_v53 = vadd.f32 %v4645_v49, %v5101_v38  ;;  %v428_v54 = vpop.f32.mrb[3].mxu0 }
  0xed   : > { %v5118_v51 = vadd.f32 %v4457_v39, %v545_v48  ;;  %v5131_v58 = vadd.f32 %v5101_v38, %v428_v54 }
  0xee   : > { %v843_v55 = vcombine.low %v5109_v45, %v5111_v46  ;;  %v844_v56 = vcombine.high %v5109_v45, %v5111_v46  ;;  %v707_v62 = vcombine.low %v5107_v44, %v5121_v53  ;;  %v708_v63 = vcombine.high %v5107_v44, %v5121_v53 }
  0xef   : > { %v827_v59 = vcombine.low %v5116_v50, %v5118_v51  ;;  %v828_v60 = vcombine.high %v5116_v50, %v5118_v51  ;;  %v4670_v61 = vpop.f32.mrb[4].mxu1  ;;  %v691_v3 = vcombine.low %v5128_v57, %v5131_v58  ;;  %v4648_v4 = vpop.f32.mrb[4].mxu0  ;;  %v692_v12 = vcombine.high %v5128_v57, %v5131_v58 }
  0xf0   : > { %v851_v0 = vrot.slane %v843_v55, %v5114_v47  ;;  %v858_v1 = vrot.slane %v844_v56, %v5114_v47  ;;  %v555_v2 = vpop.f32.mrb[5].mxu1  ;;  %v715_v8 = vrot.slane %v707_v62, %v5114_v47  ;;  %v438_v9 = vpop.f32.mrb[5].mxu0  ;;  %v5151_v10 = vadd.f32 %v4670_v61, %v4457_v39 }
  0xf1   : > { %v835_v6 = vrot.slane %v827_v59, %v5114_v47  ;;  %v842_v7 = vrot.slane %v828_v60, %v5114_v47  ;;  %v722_v11 = vrot.slane %v708_v63, %v5114_v47  ;;  %v699_v13 = vrot.slane %v691_v3, %v5114_v47 }
  0xf2   : > { %v706_v19 = vrot.slane %v692_v12, %v5114_v47  ;;  %v5166_v27 = vadd.f32 %v4457_v39, %v555_v2  ;;  %v5169_v28 = vadd.f32 %v4648_v4, %v5101_v38  ;;  %v5190_v48 = vadd.f32 %v5101_v38, %v438_v9 }
  0xf3   : > { %v891_v14 = vcombine.low %v835_v6, %v851_v0  ;;  %v892_v15 = vcombine.high %v835_v6, %v851_v0  ;;  %v907_v16 = vcombine.low %v842_v7, %v858_v1  ;;  %v908_v17 = vcombine.high %v842_v7, %v858_v1  ;;  %v4673_v18 = vpop.f32.mrb[6].mxu1  ;;  %v4651_v24 = vpop.f32.mrb[6].mxu0 }
  0xf4   : > { %v755_v20 = vcombine.low %v699_v13, %v715_v8  ;;  %v756_v21 = vcombine.high %v699_v13, %v715_v8  ;;  %v5158_v22 = vadd.f32 %v4673_v18, %v4457_v39  ;;  %v565_v23 = vpop.f32.mrb[7].mxu1  ;;  %v448_v30 = vpop.f32.mrb[7].mxu0  ;;  %v771_v34 = vcombine.low %v706_v19, %v722_v11 }
  0xf5   : > { %v5161_v25 = vrot.slane %v891_v14, %v5146_v5  ;;  %v5164_v26 = vrot.slane %v892_v15, %v5146_v5  ;;  %v5172_v31 = vrot.slane %v907_v16, %v5146_v5  ;;  %v5175_v33 = vrot.slane %v908_v17, %v5146_v5 }
  0xf6   : > { %v772_v35 = vcombine.high %v706_v19, %v722_v11  ;;  %v5178_v37 = vrot.slane %v755_v20, %v5146_v5  ;;  %v875_v40 = vcombine.low %v5151_v10, %v5158_v22  ;;  %v876_v41 = vcombine.high %v5151_v10, %v5158_v22 }
  0xf7   : > { %v5184_v42 = vadd.f32 %v4457_v39, %v565_v23  ;;  %v5187_v43 = vrot.slane %v756_v21, %v5146_v5  ;;  %v5193_v49 = vadd.f32 %v4651_v24, %v5101_v38  ;;  %v5196_v52 = vadd.f32 %v5101_v38, %v448_v30 }
  0xf8   : > { %v883_v54 = vrot.slane %v875_v40, %v5114_v47  ;;  %v890_v55 = vrot.slane %v876_v41, %v5114_v47  ;;  %v5213_v62 = vrot.slane %v771_v34, %v5146_v5  ;;  %v5216_v63 = vrot.slane %v772_v35, %v5146_v5 }
  0xf9   : > { %v859_v39 = vcombine.low %v5166_v27, %v5184_v42  ;;  %v860_v56 = vcombine.high %v5166_v27, %v5184_v42  ;;  %v739_v59 = vcombine.low %v5169_v28, %v5193_v49  ;;  %v740_v60 = vcombine.high %v5169_v28, %v5193_v49 }
  0xfa   : > { %v723_v38 = vcombine.low %v5190_v48, %v5196_v52  ;;  %v724_v61 = vcombine.high %v5190_v48, %v5196_v52 }
  0xfb   : > { %v867_v0 = vrot.slane %v859_v39, %v5114_v47  ;;  %v874_v1 = vrot.slane %v860_v56, %v5114_v47  ;;  %v747_v2 = vrot.slane %v739_v59, %v5114_v47  ;;  %v754_v3 = vrot.slane %v740_v60, %v5114_v47 }
  0xfc   : > { %v731_v4 = vrot.slane %v723_v38, %v5114_v47  ;;  %v738_v6 = vrot.slane %v724_v61, %v5114_v47 }
  0xfd   : > { %v923_v7 = vcombine.low %v867_v0, %v883_v54  ;;  %v924_v8 = vcombine.high %v867_v0, %v883_v54  ;;  %v939_v9 = vcombine.low %v874_v1, %v890_v55  ;;  %v940_v11 = vcombine.high %v874_v1, %v890_v55 }
  0xfe   : > { %v787_v12 = vcombine.low %v731_v4, %v747_v2  ;;  %v788_v13 = vcombine.high %v731_v4, %v747_v2  ;;  %v803_v14 = vcombine.low %v738_v6, %v754_v3  ;;  %v804_v15 = vcombine.high %v738_v6, %v754_v3 }
  0xff   : > { %v931_v16 = vrot.slane %v923_v7, %v5146_v5  ;;  %v938_v17 = vrot.slane %v924_v8, %v5146_v5  ;;  %v947_v18 = vrot.slane %v939_v9, %v5146_v5  ;;  %v954_v19 = vrot.slane %v940_v11, %v5146_v5 }
 0x100   : > { %v795_v20 = vrot.slane %v787_v12, %v5146_v5  ;;  %v802_v21 = vrot.slane %v788_v13, %v5146_v5  ;;  %v811_v23 = vrot.slane %v803_v14, %v5146_v5  ;;  %v818_v24 = vrot.slane %v804_v15, %v5146_v5 }
 0x101   : > { %v955_v30 = vcombine.low %v5161_v25, %v931_v16  ;;  %v959_v34 = vcombine.low %v5172_v31, %v947_v18  ;;  %v956_v35 = vcombine.high %v5161_v25, %v931_v16  ;;  %v961_v40 = vcombine.low %v5175_v33, %v954_v19 }
 0x102   : > { %v819_v41 = vcombine.low %v5178_v37, %v795_v20  ;;  %v823_v54 = vcombine.low %v5213_v62, %v811_v23  ;;  %v820_v55 = vcombine.high %v5178_v37, %v795_v20  ;;  %v825_v39 = vcombine.low %v5216_v63, %v818_v24 }
 0x103   : > { %4697 = vmatpush3.xpose.msk.msra.mxu1 %vm1099_vm2, %v955_v30  ;;  %4717 = vmatpush3.xpose.msk.msra.mxu0 %vm1099_vm2, %v959_v34  ;;  %v957_v56 = vcombine.low %v5164_v26, %v938_v17  ;;  %v821_v59 = vcombine.low %v5187_v43, %v802_v21  ;;  %v958_v25 = vcombine.high %v5164_v26, %v938_v17 }
 0x104   : > { %4701 = vmatprep.subr.mxu1 %v4942_v29  ;;  %4726 = vmatprep.subr.mxu0 %v4942_v29  ;;  %v822_v60 = vcombine.high %v5187_v43, %v802_v21  ;;  %v960_v37 = vcombine.high %v5172_v31, %v947_v18  ;;  %v824_v38 = vcombine.high %v5213_v62, %v811_v23  ;;  %v5390_v18 = vand.u32 127, %v696_v32 }
 0x105   : > { %v962_v61 = vcombine.high %v5175_v33, %v954_v19  ;;  %v826_v0 = vcombine.high %v5216_v63, %v818_v24 }
 0x106   : > { %4699 = vmatmul.mubr.msk.f32.vlgmr.msra.gmra.mrb[8].mxu1 %vm1099_vm2, %v819_v41  ;;  %4719 = vmatmul.mubr.msk.f32.vlgmr.msra.gmra.mrb[16].mxu0 %vm1099_vm2, %v823_v54  ;;  %vm5394_vm3 = vcmp.eq.s32.totalorder %v5096_v36, %v5390_v18 }
 0x107   : > { %4702 = vmatpush3.xpose.msk.msra.mxu1 %vm1099_vm2, %v956_v35  ;;  %4727 = vmatpush3.xpose.msk.msra.mxu0 %vm1099_vm2, %v961_v40 }
 0x108   : > { %4703 = vmatprep.mubr.msk.f32.mxu1 %vm4943_vm1, %v4942_v29  ;;  %4728 = vmatprep.mubr.msk.f32.mxu0 %vm4943_vm1, %v4942_v29 }
 0x109   : > { %4706 = vmatprep.subr.mxu1 %v4942_v29  ;;  %4736 = vmatprep.subr.mxu0 %v4942_v29 }
 0x10a   : > { %4704 = vmatmul.mubr.msk.f32.vlgmr.msra.gmra.mrb[10].mxu1 %vm1099_vm2, %v820_v55  ;;  %4729 = vmatmul.mubr.msk.f32.vlgmr.msra.gmra.mrb[18].mxu0 %vm1099_vm2, %v825_v39 }
 0x10b   : > { %4707 = vmatpush3.xpose.msk.msra.mxu1 %vm1099_vm2, %v957_v56  ;;  %4737 = vmatpush3.xpose.msk.msra.mxu0 %vm1099_vm2, %v5116_v50 }
 0x10c   : > { %4708 = vmatprep.mubr.msk.f32.mxu1 %vm4943_vm1, %v4942_v29  ;;  %4738 = vmatprep.mubr.msk.f32.mxu0 %vm4943_vm1, %v4942_v29 }
 0x10d   : > { %4711 = vmatprep.subr.mxu1 %v4942_v29  ;;  %4746 = vmatprep.subr.mxu0 %v4942_v29 }
 0x10e   : > { %4709 = vmatmul.mubr.msk.f32.vlgmr.msra.gmra.mrb[12].mxu1 %vm1099_vm2, %v821_v59  ;;  %4739 = vmatmul.mubr.msk.f32.vlgmr.msra.gmra.mrb[20].mxu0 %vm1099_vm2, %v5128_v57 }
 0x10f   : > { %4712 = vmatpush3.xpose.msk.msra.mxu1 %vm1099_vm2, %v958_v25  ;;  %4747 = vmatpush3.xpose.msk.msra.mxu0 %vm1099_vm2, %v5118_v51 }
 0x110   : > { %4713 = vmatprep.mubr.msk.f32.mxu1 %vm4943_vm1, %v4942_v29  ;;  %4748 = vmatprep.mubr.msk.f32.mxu0 %vm4943_vm1, %v4942_v29 }
 0x111   : > { %4721 = vmatprep.subr.mxu1 %v4942_v29  ;;  %4756 = vmatprep.subr.mxu0 %v4942_v29 }
 0x112   : > { %4714 = vmatmul.mubr.msk.f32.vlgmr.msra.gmra.mrb[14].mxu1 %vm1099_vm2, %v822_v60  ;;  %4749 = vmatmul.mubr.msk.f32.vlgmr.msra.gmra.mrb[22].mxu0 %vm1099_vm2, %v5131_v58 }
 0x113   : > { %4722 = vmatpush3.xpose.msk.msra.mxu1 %vm1099_vm2, %v960_v37  ;;  %4757 = vmatpush3.xpose.msk.msra.mxu0 %vm1099_vm2, %v5166_v27 }
 0x114   : > { %4723 = vmatprep.mubr.msk.f32.mxu1 %vm4943_vm1, %v4942_v29  ;;  %4758 = vmatprep.mubr.msk.f32.mxu0 %vm4943_vm1, %v4942_v29 }
 0x115   : > { %4731 = vmatprep.subr.mxu1 %v4942_v29  ;;  %4766 = vmatprep.subr.mxu0 %v4942_v29 }
 0x116   : > { %4724 = vmatmul.mubr.msk.f32.vlgmr.msra.gmra.mrb[16].mxu1 %vm1099_vm2, %v824_v38  ;;  %4759 = vmatmul.mubr.msk.f32.vlgmr.msra.gmra.mrb[24].mxu0 %vm1099_vm2, %v5190_v48 }
 0x117   : > { %4732 = vmatpush3.xpose.msk.msra.mxu1 %vm1099_vm2, %v962_v61  ;;  %4767 = vmatpush3.xpose.msk.msra.mxu0 %vm1099_vm2, %v5184_v42 }
 0x118   : > { %4733 = vmatprep.mubr.msk.f32.mxu1 %vm4943_vm1, %v4942_v29  ;;  %4768 = vmatprep.mubr.msk.f32.mxu0 %vm4943_vm1, %v4942_v29 }
 0x119   : > { %4741 = vmatprep.subr.mxu1 %v4942_v29  ;;  %4776 = vmatprep.subr.mxu0 %v4942_v29 }
 0x11a   : > { %4734 = vmatmul.mubr.msk.f32.vlgmr.msra.gmra.mrb[18].mxu1 %vm1099_vm2, %v826_v0  ;;  %4769 = vmatmul.mubr.msk.f32.vlgmr.msra.gmra.mrb[26].mxu0 %vm1099_vm2, %v5196_v52 }
 0x11b   : > { %4742 = vmatpush3.xpose.msk.msra.mxu1 %vm1099_vm2, %v5109_v45  ;;  %4743 = vmatprep.mubr.msk.f32.mxu1 %vm4943_vm1, %v4942_v29  ;;  %v4466_v45 = vld [vmem:[%s5836_s6] ss:$0 sm:$0xff] }
 0x11c   : > { %4751 = vmatprep.subr.mxu1 %v4942_v29  ;;  %4778 = vmatprep.mubr.msk.f32.mxu0 %vm4943_vm1, %v4942_v29 }
 0x11e   : > { %4744 = vmatmul.mubr.msk.f32.vlgmr.msra.gmra.mrb[20].mxu1 %vm1099_vm2, %v5107_v44  ;;  %v4686_v44 = vpop.f32.mrb[8].mxu0 }
 0x11f   : > { %4752 = vmatpush3.xpose.msk.msra.mxu1 %vm1099_vm2, %v5111_v46  ;;  %4753 = vmatprep.mubr.msk.f32.mxu1 %vm4943_vm1, %v4942_v29  ;;  %v652_v46 = vpop.f32.mrb[9].mxu0  ;;  %v5347_v50 = vadd.f32 %v4686_v44, %v4466_v45 }
 0x120   : > { %4761 = vmatprep.subr.mxu1 %v4942_v29  ;;  %v5349_v51 = vadd.f32 %v4466_v45, %v652_v46 }
 0x122   : > { %4754 = vmatmul.mubr.msk.f32.vlgmr.msra.gmra.mrb[22].mxu1 %vm1099_vm2, %v5121_v53  ;;  %v4689_v53 = vpop.f32.mrb[10].mxu0 }
 0x123   : > { %4762 = vmatpush3.xpose.msk.msra.mxu1 %vm1099_vm2, %v5151_v10  ;;  %4763 = vmatprep.mubr.msk.f32.mxu1 %vm4943_vm1, %v4942_v29  ;;  %v5351_v57 = vadd.f32 %v4689_v53, %v4466_v45  ;;  %v662_v58 = vpop.f32.mrb[11].mxu0 }
 0x124   : > { %4771 = vmatprep.subr.mxu1 %v4942_v29  ;;  %v5353_v10 = vadd.f32 %v4466_v45, %v662_v58  ;;  %v4692_v27 = vpop.f32.mrb[12].mxu0 }
 0x125   : > { %v672_v31 = vpop.f32.mrb[13].mxu0  ;;  %v5361_v42 = vadd.f32 %v4692_v27, %v4466_v45 }
 0x126   : > { %4764 = vmatmul.mubr.msk.f32.vlgmr.msra.gmra.mrb[24].mxu1 %vm1099_vm2, %v5169_v28  ;;  %v963_v26 = vcombine.low %v5349_v51, %v5353_v10  ;;  %v5363_v48 = vadd.f32 %v4466_v45, %v672_v31 }
 0x127   : > { %4772 = vmatpush3.xpose.msk.msra.mxu1 %vm1099_vm2, %v5158_v22  ;;  %4773 = vmatprep.mubr.msk.f32.mxu1 %vm4943_vm1, %v4942_v29  ;;  %v979_v22 = vcombine.low %v5347_v50, %v5351_v57 }
 0x128   : > { %4781 = vmatprep.subr.mxu1 %v4942_v29  ;;  %v971_v33 = vrot.slane %v963_v26, %v5114_v47 }
 0x129   : > { %v987_v28 = vrot.slane %v979_v22, %v5114_v47 }
 0x12a   : > { %4774 = vmatmul.mubr.msk.f32.vlgmr.msra.gmra.mrb[26].mxu1 %vm1099_vm2, %v5193_v49  ;;  %v4695_v49 = vpop.f32.mrb[14].mxu0 }
 0x12b   : > { %4783 = vmatprep.mubr.msk.f32.mxu1 %vm4943_vm1, %v4942_v29  ;;  %v1028_v43 = vcombine.high %v971_v33, %v987_v28  ;;  %v5365_v52 = vadd.f32 %v4695_v49, %v4466_v45  ;;  %v682_v62 = vpop.f32.mrb[15].mxu0  ;;  %v1027_v7 = vcombine.low %v971_v33, %v987_v28 }
 0x12c   : > { %v5367_v63 = vadd.f32 %v4466_v45, %v682_v62 }
 0x12d   : > { %v1011_v1 = vcombine.low %v5361_v42, %v5365_v52  ;;  %v1035_v9 = vrot.slane %v1027_v7, %v5146_v5  ;;  %v5378_v12 = vrot.slane %v1028_v43, %v5146_v5 }
 0x12e   : > { %v995_v2 = vcombine.low %v5363_v48, %v5367_v63 }
 0x12f   : > { %v1019_v3 = vrot.slane %v1011_v1, %v5114_v47 }
 0x130   : > { %v1003_v4 = vrot.slane %v995_v2, %v5114_v47 }
 0x132   : > { %v1060_v6 = vcombine.high %v1003_v4, %v1019_v3  ;;  %v1059_v8 = vcombine.low %v1003_v4, %v1019_v3 }
 0x134   : > { %v1067_v11 = vrot.slane %v1059_v8, %v5146_v5  ;;  %v5381_v13 = vrot.slane %v1060_v6, %v5146_v5 }
 0x136   : > { %v1091_v14 = vcombine.low %v1035_v9, %v1067_v11  ;;  %v1092_v15 = vcombine.high %v1035_v9, %v1067_v11  ;;  %v1093_v16 = vcombine.low %v5378_v12, %v5381_v13  ;;  %v1094_v17 = vcombine.high %v5378_v12, %v5381_v13 }
 0x138   : > { %4777 = vmatpush3.msra.mxu0 %v1091_v14  ;;  %4782 = vmatpush3.msra.mxu1 %v1092_v15 }
 0x139   : > { %4786 = vmatprep.subr.mxu0 %v4942_v29  ;;  %4791 = vmatprep.subr.mxu1 %v4942_v29 }
 0x1d9   : > { %v1172_v20 = vpop.f32.mrb[8].mxu1  ;;  %v1476_v21 = vpop.f32.mrb[16].mxu0 }
 0x1da   : > { %v5400_v23 = vsel %vm5394_vm3, -inf, %v1172_v20  ;;  %v4700_v24 = vpop.f32.mrb[9].mxu1  ;;  %v4720_v30 = vpop.f32.mrb[17].mxu0  ;;  %v5412_v39 = vsel %vm5394_vm3, -inf, %v1476_v21 }
 0x1db   : > { %v2332_v34 = vsel %vm2331_vm4, %v5400_v23, -inf  ;;  %v2344_v38 = vsel %vm2331_vm4, %v5412_v39, -inf }
 0x1dc   : > { %2333 = vmax.xlane.f32.xlu0 %v2332_v34 }
 0x1dd   : > { %v1248_v32 = vpop.f32.mrb[10].mxu1  ;;  %v1628_v35 = vpop.f32.mrb[18].mxu0 }
 0x1de   : > { %v5406_v40 = vsel %vm5394_vm3, -inf, %v1248_v32  ;;  %v4705_v41 = vpop.f32.mrb[11].mxu1  ;;  %v4730_v54 = vpop.f32.mrb[19].mxu0  ;;  %v5426_v0 = vsel %vm5394_vm3, -inf, %v1628_v35 }
 0x1df   : > { %v2335_v55 = vsel %vm2331_vm4, %v5406_v40, -inf  ;;  %v2350_v22 = vsel %vm2331_vm4, %v5426_v0, -inf }
 0x1e0   : > { %2336 = vmax.xlane.f32.xlu0 %v2335_v55 }
 0x1e1   : > { %v1324_v56 = vpop.f32.mrb[12].mxu1  ;;  %v5414_v59 = vpop.f32.mrb[20].mxu0 }
 0x1e2   : > { %v5418_v25 = vsel %vm5394_vm3, -inf, %v1324_v56  ;;  %v4710_v60 = vpop.f32.mrb[13].mxu1  ;;  %v4740_v37 = vpop.f32.mrb[21].mxu0  ;;  %v2356_v49 = vsel %vm2331_vm4, %v5414_v59, -inf }
 0x1e3   : > { %v2338_v61 = vsel %vm2331_vm4, %v5418_v25, -inf  ;;  %v5480_v60 = vsub.s32 %v5390_v18, %v5096_v36 }
 0x1e4   : > { %2345 = vmax.xlane.f32.xlu0 %v2344_v38  ;;  %2339 = vmax.xlane.f32.xlu1 %v2338_v61 }
 0x1e5   : > { %v1400_v44 = vpop.f32.mrb[14].mxu1  ;;  %v5428_v45 = vpop.f32.mrb[22].mxu0 }
 0x1e6   : > { %v5432_v46 = vsel %vm5394_vm3, -inf, %v1400_v44  ;;  %v4715_v53 = vpop.f32.mrb[15].mxu1  ;;  %v4750_v58 = vpop.f32.mrb[23].mxu0  ;;  %v2362_v7 = vsel %vm2331_vm4, %v5428_v45, -inf }
 0x1e7   : > { %v2341_v26 = vsel %vm2331_vm4, %v5432_v46, -inf }
 0x1e8   : > { %2351 = vmax.xlane.f32.xlu0 %v2350_v22  ;;  %2342 = vmax.xlane.f32.xlu1 %v2341_v26 }
 0x1e9   : > { %v1552_v27 = vpop.f32.mrb[16].mxu1  ;;  %v5438_v28 = vpop.f32.mrb[24].mxu0 }
 0x1ea   : > { %v5442_v31 = vsel %vm5394_vm3, -inf, %v1552_v27  ;;  %v4725_v33 = vpop.f32.mrb[17].mxu1  ;;  %v4760_v43 = vpop.f32.mrb[25].mxu0  ;;  %v2368_v15 = vsel %vm2331_vm4, %v5438_v28, -inf }
 0x1eb   : > { %v2347_v62 = vsel %vm2331_vm4, %v5442_v31, -inf }
 0x1ec   : > { %2357 = vmax.xlane.f32.xlu0 %v2356_v49  ;;  %2348 = vmax.xlane.f32.xlu1 %v2347_v62 }
 0x1ed   : > { %v1704_v1 = vpop.f32.mrb[18].mxu1  ;;  %v5448_v2 = vpop.f32.mrb[26].mxu0 }
 0x1ee   : > { %v5452_v3 = vsel %vm5394_vm3, -inf, %v1704_v1  ;;  %v4735_v4 = vpop.f32.mrb[19].mxu1  ;;  %v4770_v6 = vpop.f32.mrb[27].mxu0  ;;  %v2374_v24 = vsel %vm2331_vm4, %v5448_v2, -inf }
 0x1ef   : > { %v2353_v8 = vsel %vm2331_vm4, %v5452_v3, -inf }
 0x1f0   : > { %2363 = vmax.xlane.f32.xlu0 %v2362_v7  ;;  %2354 = vmax.xlane.f32.xlu1 %v2353_v8 }
 0x1f1   : > { %v5458_v9 = vpop.f32.mrb[20].mxu1 }
 0x1f2   : > { %v4745_v11 = vpop.f32.mrb[21].mxu1  ;;  %v2359_v14 = vsel %vm2331_vm4, %v5458_v9, -inf }
 0x1f4   : > { %2369 = vmax.xlane.f32.xlu0 %v2368_v15  ;;  %2360 = vmax.xlane.f32.xlu1 %v2359_v14 }
 0x1f5   : > { %v5464_v19 = vpop.f32.mrb[22].mxu1 }
 0x1f6   : > { %v4755_v20 = vpop.f32.mrb[23].mxu1  ;;  %v2365_v21 = vsel %vm2331_vm4, %v5464_v19, -inf }
 0x1f8   : > { %2375 = vmax.xlane.f32.xlu0 %v2374_v24  ;;  %2366 = vmax.xlane.f32.xlu1 %v2365_v21 }
 0x1f9   : > { %v5470_v30 = vpop.f32.mrb[24].mxu1 }
 0x1fa   : > { %v4765_v34 = vpop.f32.mrb[25].mxu1  ;;  %v2371_v32 = vsel %vm2331_vm4, %v5470_v30, -inf }
 0x1fc   : > { %2372 = vmax.xlane.f32.xlu1 %v2371_v32 }
 0x1fd   : > { %v5474_v35 = vpop.f32.mrb[26].mxu1 }
 0x1fe   : > { %v4775_v41 = vpop.f32.mrb[27].mxu1  ;;  %v2377_v54 = vsel %vm2331_vm4, %v5474_v35, -inf }
 0x200   : > { %2378 = vmax.xlane.f32.xlu1 %v2377_v54 }
 0x269   : > { %v2334_v55 = vpop.xlane.xlu0 %2333 }
 0x26a   : > { %v2391_v44 = vrot.slane %v2334_v55, %v5480_v60 }
 0x26d   : > { %v2337_v56 = vpop.xlane.xlu0 %2336 }
 0x26e   : > { %v2395_v38 = vrot.slane %v2337_v56, %v5480_v60 }
 0x270   : > { %v2421_v22 = vsel %vm2420_vm5, %v2395_v38, %v2391_v44 }
 0x271   : > { %v2340_v37 = vpop.xlane.xlu1 %2339  ;;  %v2346_v53 = vpop.xlane.xlu0 %2345 }
 0x272   : > { %v2399_v61 = vrot.slane %v2340_v37, %v5480_v60  ;;  %v2407_v33 = vrot.slane %v2346_v53, %v5480_v60 }
 0x274   : > { %v2423_v27 = vsel %vm2422_vm6, %v2399_v61, %v2421_v22 }
 0x275   : > { %v2343_v58 = vpop.xlane.xlu1 %2342  ;;  %v2352_v49 = vpop.xlane.xlu0 %2351 }
 0x276   : > { %v2403_v26 = vrot.slane %v2343_v58, %v5480_v60  ;;  %v2415_v6 = vrot.slane %v2352_v49, %v5480_v60 }
 0x278   : > { %v2425_v18 = vsel %vm2424_vm7, %v2403_v26, %v2423_v27 }
 0x279   : > { %v2349_v43 = vpop.xlane.xlu1 %2348  ;;  %v2427_v1 = vsel %vm2426_vm8, %v2407_v33, %v2425_v18  ;;  %v2358_v20 = vpop.xlane.xlu0 %2357 }
 0x27a   : > { %v2411_v62 = vrot.slane %v2349_v43, %v5480_v60  ;;  %v2478_v32 = vrot.slane %v2358_v20, %v5480_v60 }
 0x27c   : > { %v2429_v4 = vsel %vm2428_vm9, %v2411_v62, %v2427_v1 }
 0x27d   : > { %v2355_v7 = vpop.xlane.xlu1 %2354  ;;  %v2431_v11 = vsel %vm2430_vm10, %v2415_v6, %v2429_v4  ;;  %v2364_v24 = vpop.xlane.xlu0 %2363  ;;  %v5513_v4 = vsub.s32 1, %v5096_v36  ;;  %v5516_v6 = vsub.s32 0, %v5096_v36 }
 0x27e   : > { %v2419_v8 = vrot.slane %v2355_v7, %v5480_v60  ;;  %v2486_v37 = vrot.slane %v2364_v24, %v5480_v60  ;;  %v5529_v24 = vsub.s32 3, %v5096_v36 }
 0x280   : > { %v2433_v14 = vsel %vm2432_vm11, %v2419_v8, %v2431_v11 }
 0x281   : > { %2435 = vxpose.xlu0.b32.start.end [1/1] (short) (narrow) %v2433_v14, 8  ;;  %v2361_v15 = vpop.xlane.xlu1 %2360  ;;  %v2370_v54 = vpop.xlane.xlu0 %2369  ;;  %v5521_v14 = vsub.s32 2, %v5096_v36 }
 0x282   : > { %v2482_v34 = vrot.slane %v2361_v15, %v5480_v60  ;;  %v2494_v53 = vrot.slane %v2370_v54, %v5480_v60  ;;  %v5524_v15 = vsub.s32 4, %v5096_v36  ;;  %v5537_v54 = vsub.s32 5, %v5096_v36 }
 0x284   : > { %v2507_v55 = vsel %vm2420_vm5, %v2482_v34, %v2478_v32  ;;  %v5532_v34 = vsub.s32 6, %v5096_v36 }
 0x285   : > { %v2367_v21 = vpop.xlane.xlu1 %2366  ;;  %v2508_v38 = vsel %vm2422_vm6, %v2486_v37, %v2507_v55  ;;  %v2376_v22 = vpop.xlane.xlu0 %2375  ;;  %v5542_v37 = vsub.s32 7, %v5096_v36 }
 0x286   : > { %v2490_v56 = vrot.slane %v2367_v21, %v5480_v60  ;;  %v2502_v33 = vrot.slane %v2376_v22, %v5480_v60 }
 0x288   : > { %v2509_v61 = vsel %vm2424_vm7, %v2490_v56, %v2508_v38 }
 0x289   : > { %v2373_v41 = vpop.xlane.xlu1 %2372  ;;  %v2510_v26 = vsel %vm2426_vm8, %v2494_v53, %v2509_v61 }
 0x28a   : > { %v2498_v44 = vrot.slane %v2373_v41, %v5480_v60 }
 0x28c   : > { %v2511_v27 = vsel %vm2428_vm9, %v2498_v44, %v2510_v26 }
 0x28d   : > { %v2379_v58 = vpop.xlane.xlu1 %2378  ;;  %v2512_v43 = vsel %vm2430_vm10, %v2502_v33, %v2511_v27 }
 0x28e   : > { %v2506_v18 = vrot.slane %v2379_v58, %v5480_v60 }
 0x290   : > { %v2513_v62 = vsel %vm2432_vm11, %v2506_v18, %v2512_v43 }
 0x301   : > { %v2451_v49 = vpop.trf.xlu0 }
 0x302   : > { %v2515_v1 = vmax.f32 %v2451_v49, %v2513_v62 }
 0x304   : > { %2516 = vxpose.xlu1.b32.start.end [1/1] (short) (narrow) %v2515_v1, 8  ;;  %v2631_v56 = vrot.slane %v2515_v1, %v5516_v6  ;;  %v2645_v61 = vrot.slane %v2515_v1, %v5521_v14  ;;  %v2638_v44 = vrot.slane %v2515_v1, %v5513_v4  ;;  %v2659_v53 = vrot.slane %v2515_v1, %v5524_v15 }
 0x305   : > { %v2652_v58 = vrot.slane %v2515_v1, %v5529_v24  ;;  %v2673_v22 = vrot.slane %v2515_v1, %v5532_v34  ;;  %v2666_v36 = vrot.slane %v2515_v1, %v5537_v54  ;;  %v2680_v26 = vrot.slane %v2515_v1, %v5542_v37 }
 0x384   : > { %v2532_v7 = vpop.trf.xlu1 }
 0x385   : > { %v2558_v8 = vrot.slane %v2532_v7, %v5513_v4  ;;  %v2551_v11 = vrot.slane %v2532_v7, %v5516_v6  ;;  %v2565_v20 = vrot.slane %v2532_v7, %v5521_v14  ;;  %v2579_v21 = vrot.slane %v2532_v7, %v5524_v15 }
 0x386   : > { %v2572_v32 = vrot.slane %v2532_v7, %v5529_v24  ;;  %v2593_v41 = vrot.slane %v2532_v7, %v5532_v34  ;;  %v2586_v55 = vrot.slane %v2532_v7, %v5537_v54  ;;  %v2600_v38 = vrot.slane %v2532_v7, %v5542_v37 }
 0x387   : > { %2560 = vbcast.lane.b32.xlu1 %v2558_v8, 256  ;;  %2553 = vbcast.lane.b32.xlu0 %v2551_v11, 256 }
 0x38b   : > { %2567 = vbcast.lane.b32.xlu1 %v2565_v20, 256  ;;  %2581 = vbcast.lane.b32.xlu0 %v2579_v21, 256 }
 0x38f   : > { %2574 = vbcast.lane.b32.xlu1 %v2572_v32, 256  ;;  %2595 = vbcast.lane.b32.xlu0 %v2593_v41, 256 }
 0x393   : > { %2588 = vbcast.lane.b32.xlu1 %v2586_v55, 256  ;;  %2633 = vbcast.lane.b32.xlu0 %v2631_v56, 256 }
 0x397   : > { %2602 = vbcast.lane.b32.xlu1 %v2600_v38, 256  ;;  %2647 = vbcast.lane.b32.xlu0 %v2645_v61, 256 }
 0x39b   : > { %2640 = vbcast.lane.b32.xlu1 %v2638_v44, 256  ;;  %2661 = vbcast.lane.b32.xlu0 %v2659_v53, 256 }
 0x39f   : > { %2654 = vbcast.lane.b32.xlu1 %v2652_v58, 256  ;;  %2675 = vbcast.lane.b32.xlu0 %v2673_v22, 256 }
 0x3a3   : > { %2668 = vbcast.lane.b32.xlu1 %v2666_v36, 256 }
 0x3a7   : > { %2682 = vbcast.lane.b32.xlu1 %v2680_v26, 256 }
 0x3f9   : > { %v2561_v27 = vpop.permute.xlu1 %2560  ;;  %v2554_v18 = vpop.permute.xlu0 %2553 }
 0x3fa   : > { %v2605_v33 = vsub.f32 %v5406_v40, %v2561_v27  ;;  %v2604_v43 = vsub.f32 %v5400_v23, %v2554_v18 }
 0x3fc   : > { %v2614_v49 = vmul.f32 1.442695, %v2605_v33  ;;  %v2612_v62 = vmul.f32 1.442695, %v2604_v43 }
 0x3fd   : > { %v2568_v7 = vpop.permute.xlu1 %2567  ;;  %v2582_v8 = vpop.permute.xlu0 %2581 }
 0x3fe   : > { %4892 = vpow2.f32 %v2614_v49  ;;  %v2606_v11 = vsub.f32 %v5418_v25, %v2568_v7  ;;  %v2608_v21 = vsub.f32 %v5412_v39, %v2582_v8 }
 0x3ff   : > { %4894 = vpow2.f32 %v2612_v62 }
 0x400   : > { %v2616_v20 = vmul.f32 1.442695, %v2606_v11  ;;  %v2620_v40 = vmul.f32 1.442695, %v2608_v21 }
 0x401   : > { %v2575_v32 = vpop.permute.xlu1 %2574  ;;  %v2596_v1 = vpop.permute.xlu0 %2595 }
 0x402   : > { %4896 = vpow2.f32 %v2616_v20  ;;  %v2607_v41 = vsub.f32 %v5432_v46, %v2575_v32  ;;  %v2610_v23 = vsub.f32 %v5426_v0, %v2596_v1 }
 0x404   : > { %v2618_v55 = vmul.f32 1.442695, %v2607_v41  ;;  %v2624_v39 = vmul.f32 1.442695, %v2610_v23 }
 0x405   : > { %v2589_v56 = vpop.permute.xlu1 %2588  ;;  %v2634_v38 = vpop.permute.xlu0 %2633 }
 0x406   : > { %4898 = vpow2.f32 %v2618_v55  ;;  %v2609_v61 = vsub.f32 %v5442_v31, %v2589_v56  ;;  %v2684_v58 = vsub.f32 %v5414_v59, %v2634_v38 }
 0x407   : > { %4900 = vpow2.f32 %v2620_v40 }
 0x408   : > { %v5559_v44 = vpop.eup %4892  ;;  %v2622_v25 = vmul.f32 1.442695, %v2609_v61  ;;  %v2692_v18 = vmul.f32 1.442695, %v2684_v58 }
 0x409   : > { %v5561_v53 = vpop.eup %4894  ;;  %v2603_v22 = vpop.permute.xlu1 %2602  ;;  %v2711_v36 = vsel %vm2331_vm4, %v5559_v44, 0.0 }
 0x40a   : > { %v2648_v46 = vpop.permute.xlu0 %2647  ;;  %4902 = vpow2.f32 %v2622_v25  ;;  %v2611_v0 = vsub.f32 %v5452_v3, %v2603_v22  ;;  %2712 = vadd.xlane.f32.xlu1 %v2711_v36  ;;  %v2708_v31 = vsel %vm2331_vm4, %v5561_v53, 0.0 }
 0x40b   : > { %2709 = vadd.xlane.f32.xlu0 %v2708_v31  ;;  %4904 = vpow2.f32 %v2624_v39  ;;  %v2686_v59 = vsub.f32 %v5428_v45, %v2648_v46 }
 0x40c   : > { %v5569_v26 = vpop.eup %4896  ;;  %v2626_v27 = vmul.f32 1.442695, %v2611_v0 }
 0x40d   : > { %v2641_v33 = vpop.permute.xlu1 %2640  ;;  %v2714_v49 = vsel %vm2331_vm4, %v5569_v26, 0.0  ;;  %v2696_v8 = vmul.f32 1.442695, %v2686_v59 }
 0x40e   : > { %v2662_v43 = vpop.permute.xlu0 %2661  ;;  %4906 = vpow2.f32 %v2626_v27  ;;  %v2685_v3 = vsub.f32 %v5458_v9, %v2641_v33 }
 0x40f   : > { %2715 = vadd.xlane.f32.xlu0 %v2714_v49  ;;  %4908 = vpow2.f32 %v2692_v18  ;;  %v2688_v11 = vsub.f32 %v5438_v28, %v2662_v43 }
 0x410   : > { %v5575_v62 = vpop.eup %4898  ;;  %v2694_v7 = vmul.f32 1.442695, %v2685_v3 }
 0x411   : > { %v2655_v20 = vpop.permute.xlu1 %2654  ;;  %v2717_v45 = vsel %vm2331_vm4, %v5575_v62, 0.0  ;;  %v5581_v1 = vpop.eup %4900  ;;  %v2700_v55 = vmul.f32 1.442695, %v2688_v11 }
 0x412   : > { %4910 = vpow2.f32 %v2694_v7  ;;  %v2687_v21 = vsub.f32 %v5464_v19, %v2655_v20  ;;  %v2676_v32 = vpop.permute.xlu0 %2675  ;;  %v2720_v19 = vsel %vm2331_vm4, %v5581_v1, 0.0 }
 0x413   : > { %2718 = vadd.xlane.f32.xlu0 %v2717_v45  ;;  %4912 = vpow2.f32 %v2696_v8  ;;  %v2690_v40 = vsub.f32 %v5448_v2, %v2676_v32 }
 0x414   : > { %v5583_v9 = vpop.eup %4902  ;;  %v2698_v41 = vmul.f32 1.442695, %v2687_v21 }
 0x415   : > { %v2669_v23 = vpop.permute.xlu1 %2668  ;;  %v2723_v28 = vsel %vm2331_vm4, %v5583_v9, 0.0  ;;  %v5591_v38 = vpop.eup %4904  ;;  %v2704_v39 = vmul.f32 1.442695, %v2690_v40 }
 0x416   : > { %4914 = vpow2.f32 %v2698_v41  ;;  %v2689_v56 = vsub.f32 %v5470_v30, %v2669_v23  ;;  %2724 = vadd.xlane.f32.xlu1 %v2723_v28  ;;  %v2726_v30 = vsel %vm2331_vm4, %v5591_v38, 0.0 }
 0x417   : > { %2721 = vadd.xlane.f32.xlu0 %v2720_v19  ;;  %4916 = vpow2.f32 %v2700_v55 }
 0x418   : > { %v5593_v61 = vpop.eup %4906  ;;  %v2702_v25 = vmul.f32 1.442695, %v2689_v56 }
 0x419   : > { %v2683_v2 = vpop.permute.xlu1 %2682  ;;  %v2729_v58 = vsel %vm2331_vm4, %v5593_v61, 0.0  ;;  %v5600_v46 = vpop.eup %4908 }
 0x41a   : > { %4918 = vpow2.f32 %v2702_v25  ;;  %v2691_v22 = vsub.f32 %v5474_v35, %v2683_v2  ;;  %2730 = vadd.xlane.f32.xlu1 %v2729_v58  ;;  %v2812_v27 = vsel %vm2331_vm4, %v5600_v46, 0.0 }
 0x41b   : > { %2727 = vadd.xlane.f32.xlu0 %v2726_v30  ;;  %4920 = vpow2.f32 %v2704_v39 }
 0x41c   : > { %v5602_v36 = vpop.eup %4910  ;;  %v2706_v0 = vmul.f32 1.442695, %v2691_v22 }
 0x41d   : > { %v2815_v31 = vsel %vm2331_vm4, %v5602_v36, 0.0  ;;  %v5608_v35 = vpop.eup %4912 }
 0x41e   : > { %4922 = vpow2.f32 %v2706_v0  ;;  %2816 = vadd.xlane.f32.xlu1 %v2815_v31  ;;  %v2818_v33 = vsel %vm2331_vm4, %v5608_v35, 0.0 }
 0x41f   : > { %2813 = vadd.xlane.f32.xlu0 %v2812_v27 }
 0x420   : > { %v5610_v18 = vpop.eup %4914 }
 0x421   : > { %v2821_v59 = vsel %vm2331_vm4, %v5610_v18, 0.0  ;;  %v5616_v43 = vpop.eup %4916 }
 0x422   : > { %2822 = vadd.xlane.f32.xlu1 %v2821_v59  ;;  %v2824_v7 = vsel %vm2331_vm4, %v5616_v43, 0.0 }
 0x423   : > { %2819 = vadd.xlane.f32.xlu0 %v2818_v33 }
 0x424   : > { %v5618_v49 = vpop.eup %4918 }
 0x425   : > { %v2827_v3 = vsel %vm2331_vm4, %v5618_v49, 0.0  ;;  %v5624_v8 = vpop.eup %4920 }
 0x426   : > { %2828 = vadd.xlane.f32.xlu1 %v2827_v3  ;;  %v2830_v45 = vsel %vm2331_vm4, %v5624_v8, 0.0 }
 0x427   : > { %2825 = vadd.xlane.f32.xlu0 %v2824_v7 }
 0x428   : > { %v5626_v11 = vpop.eup %4922 }
 0x429   : > { %v2833_v20 = vsel %vm2331_vm4, %v5626_v11, 0.0 }
 0x42a   : > { %2834 = vadd.xlane.f32.xlu1 %v2833_v20 }
 0x42b   : > { %2831 = vadd.xlane.f32.xlu0 %v2830_v45 }
 0x497   : > { %v2713_v41 = vpop.xlane.xlu1 %2712 }
 0x498   : > { %v2710_v21 = vpop.xlane.xlu0 %2709  ;;  %v2747_v55 = vrot.slane %v2713_v41, %v5480_v60 }
 0x499   : > { %v2743_v40 = vrot.slane %v2710_v21, %v5480_v60 }
 0x49b   : > { %v2772_v25 = vsel %vm2420_vm5, %v2747_v55, %v2743_v40 }
 0x49c   : > { %v2716_v32 = vpop.xlane.xlu0 %2715 }
 0x49d   : > { %v2751_v28 = vrot.slane %v2716_v32, %v5480_v60 }
 0x49f   : > { %v2773_v2 = vsel %vm2422_vm6, %v2751_v28, %v2772_v25 }
 0x4a0   : > { %v2719_v23 = vpop.xlane.xlu0 %2718 }
 0x4a1   : > { %v2755_v56 = vrot.slane %v2719_v23, %v5480_v60 }
 0x4a3   : > { %v2725_v19 = vpop.xlane.xlu1 %2724  ;;  %v2774_v22 = vsel %vm2424_vm7, %v2755_v56, %v2773_v2 }
 0x4a4   : > { %v2722_v39 = vpop.xlane.xlu0 %2721  ;;  %v2763_v30 = vrot.slane %v2725_v19, %v5480_v60 }
 0x4a5   : > { %v2759_v58 = vrot.slane %v2722_v39, %v5480_v60 }
 0x4a7   : > { %v2775_v0 = vsel %vm2426_vm8, %v2759_v58, %v2774_v22  ;;  %v2731_v31 = vpop.xlane.xlu1 %2730 }
 0x4a8   : > { %v2771_v27 = vrot.slane %v2731_v31, %v5480_v60  ;;  %v2728_v59 = vpop.xlane.xlu0 %2727  ;;  %v2776_v3 = vsel %vm2428_vm9, %v2763_v30, %v2775_v0 }
 0x4a9   : > { %v2767_v33 = vrot.slane %v2728_v59, %v5480_v60 }
 0x4ab   : > { %v2777_v7 = vsel %vm2430_vm10, %v2767_v33, %v2776_v3  ;;  %v2817_v21 = vpop.xlane.xlu1 %2816 }
 0x4ac   : > { %v2778_v20 = vsel %vm2432_vm11, %v2771_v27, %v2777_v7  ;;  %v2814_v45 = vpop.xlane.xlu0 %2813  ;;  %v2851_v55 = vrot.slane %v2817_v21, %v5480_v60 }
 0x4ad   : > { %2780 = vxpose.xlu0.b32.start.end [1/1] (short) (narrow) %v2778_v20, 8  ;;  %v2847_v40 = vrot.slane %v2814_v45, %v5480_v60 }
 0x4af   : > { %v2823_v41 = vpop.xlane.xlu1 %2822  ;;  %v2876_v19 = vsel %vm2420_vm5, %v2851_v55, %v2847_v40 }
 0x4b0   : > { %v2820_v32 = vpop.xlane.xlu0 %2819  ;;  %v2859_v25 = vrot.slane %v2823_v41, %v5480_v60 }
 0x4b1   : > { %v2855_v28 = vrot.slane %v2820_v32, %v5480_v60 }
 0x4b3   : > { %v2829_v56 = vpop.xlane.xlu1 %2828  ;;  %v2877_v39 = vsel %vm2422_vm6, %v2855_v28, %v2876_v19 }
 0x4b4   : > { %v2826_v23 = vpop.xlane.xlu0 %2825  ;;  %v2867_v22 = vrot.slane %v2829_v56, %v5480_v60  ;;  %v2878_v30 = vsel %vm2424_vm7, %v2859_v25, %v2877_v39 }
 0x4b5   : > { %v2863_v2 = vrot.slane %v2826_v23, %v5480_v60 }
 0x4b7   : > { %v2879_v0 = vsel %vm2426_vm8, %v2863_v2, %v2878_v30  ;;  %v2835_v31 = vpop.xlane.xlu1 %2834 }
 0x4b8   : > { %v2832_v58 = vpop.xlane.xlu0 %2831  ;;  %v2875_v59 = vrot.slane %v2835_v31, %v5480_v60  ;;  %v2880_v33 = vsel %vm2428_vm9, %v2867_v22, %v2879_v0 }
 0x4b9   : > { %v2871_v27 = vrot.slane %v2832_v58, %v5480_v60 }
 0x4bb   : > { %v2881_v3 = vsel %vm2430_vm10, %v2871_v27, %v2880_v33 }
 0x4bc   : > { %v2882_v7 = vsel %vm2432_vm11, %v2875_v59, %v2881_v3 }
 0x52d   : > { %v2796_v20 = vpop.trf.xlu0 }
 0x52e   : > { %v2884_v45 = vadd.f32 %v2882_v7, %v2796_v20 }
 0x530   : > { %4924 = vrcp.f32 %v2884_v45 }
 0x53a   : > { %v4925_v21 = vpop.eup %4924 }
 0x53b   : > { %2886 = vxpose.xlu1.b32.start.end [1/1] (short) (narrow) %v4925_v21, 8  ;;  %v2985_v19 = vrot.slane %v4925_v21, %v5516_v6  ;;  %v2999_v39 = vrot.slane %v4925_v21, %v5521_v14  ;;  %v2992_v2 = vrot.slane %v4925_v21, %v5513_v4  ;;  %v3013_v58 = vrot.slane %v4925_v21, %v5524_v15 }
 0x53c   : > { %v3006_v22 = vrot.slane %v4925_v21, %v5529_v24  ;;  %v3027_v30 = vrot.slane %v4925_v21, %v5532_v34  ;;  %v3034_v0 = vrot.slane %v4925_v21, %v5542_v37 }
 0x5bb   : > { %v2902_v32 = vpop.trf.xlu1 }
 0x5bc   : > { %v2928_v41 = vrot.slane %v2902_v32, %v5513_v4  ;;  %v2921_v55 = vrot.slane %v2902_v32, %v5516_v6  ;;  %v2935_v60 = vrot.slane %v2902_v32, %v5521_v14  ;;  %v2949_v40 = vrot.slane %v2902_v32, %v5524_v15 }
 0x5bd   : > { %v2942_v23 = vrot.slane %v2902_v32, %v5529_v24  ;;  %v2963_v28 = vrot.slane %v2902_v32, %v5532_v34  ;;  %v2956_v56 = vrot.slane %v2902_v32, %v5537_v54  ;;  %v2970_v25 = vrot.slane %v2902_v32, %v5542_v37 }
 0x5be   : > { %2930 = vbcast.lane.b32.xlu1 %v2928_v41, 256  ;;  %2923 = vbcast.lane.b32.xlu0 %v2921_v55, 256  ;;  %v3020_v6 = vrot.slane %v4925_v21, %v5537_v54  ;;  %v980_v14 = vcombine.high %v5347_v50, %v5351_v57  ;;  %v964_v4 = vcombine.high %v5349_v51, %v5353_v10 }
 0x5bf   : > { %v1012_v15 = vcombine.high %v5361_v42, %v5365_v52  ;;  %v996_v24 = vcombine.high %v5363_v48, %v5367_v63 }
 0x5c0   : > { %v994_v34 = vrot.slane %v980_v14, %v5114_v47  ;;  %v978_v54 = vrot.slane %v964_v4, %v5114_v47 }
 0x5c1   : > { %v1026_v31 = vrot.slane %v1012_v15, %v5114_v47  ;;  %v1010_v37 = vrot.slane %v996_v24, %v5114_v47 }
 0x5c2   : > { %2937 = vbcast.lane.b32.xlu1 %v2935_v60, 256  ;;  %2951 = vbcast.lane.b32.xlu0 %v2949_v40, 256  ;;  %v1043_v27 = vcombine.low %v978_v54, %v994_v34  ;;  %v1044_v45 = vcombine.high %v978_v54, %v994_v34 }
 0x5c3   : > { %v1075_v59 = vcombine.low %v1010_v37, %v1026_v31  ;;  %v1076_v21 = vcombine.high %v1010_v37, %v1026_v31 }
 0x5c4   : > { %v1051_v32 = vrot.slane %v1043_v27, %v5146_v5 }
 0x5c5   : > { %v1083_v41 = vrot.slane %v1075_v59, %v5146_v5  ;;  %v1090_v12 = vrot.slane %v1076_v21, %v5146_v5 }
 0x5c6   : > { %2944 = vbcast.lane.b32.xlu1 %v2942_v23, 256  ;;  %2965 = vbcast.lane.b32.xlu0 %v2963_v28, 256 }
 0x5c7   : > { %v1095_v60 = vcombine.low %v1051_v32, %v1083_v41  ;;  %v1096_v23 = vcombine.high %v1051_v32, %v1083_v41 }
 0x5ca   : > { %2958 = vbcast.lane.b32.xlu1 %v2956_v56, 256  ;;  %2987 = vbcast.lane.b32.xlu0 %v2985_v19, 256 }
 0x5ce   : > { %2972 = vbcast.lane.b32.xlu1 %v2970_v25, 256  ;;  %3001 = vbcast.lane.b32.xlu0 %v2999_v39, 256 }
 0x5d2   : > { %2994 = vbcast.lane.b32.xlu1 %v2992_v2, 256  ;;  %3015 = vbcast.lane.b32.xlu0 %v3013_v58, 256 }
 0x5d6   : > { %3008 = vbcast.lane.b32.xlu1 %v3006_v22, 256  ;;  %3029 = vbcast.lane.b32.xlu0 %v3027_v30, 256 }
 0x5da   : > { %3022 = vbcast.lane.b32.xlu1 %v3020_v6, 256 }
 0x5de   : > { %3036 = vbcast.lane.b32.xlu1 %v3034_v0, 256 }
 0x630   : > { %v2931_v33 = vpop.permute.xlu1 %2930  ;;  %v2924_v3 = vpop.permute.xlu0 %2923 }
 0x631   : > { %v2975_v7 = vmul.f32 %v5559_v44, %v2931_v33  ;;  %v2974_v20 = vmul.f32 %v5561_v53, %v2924_v3 }
 0x633   : > { %4779 = vmatmul.mubr.msk.f32.vlgmr.msra.gmra.mrb[28].mxu0 %vm2331_vm4, %v2974_v20  ;;  %4784 = vmatmul.mubr.msk.f32.vlgmr.msra.gmra.mrb[28].mxu1 %vm2331_vm4, %v2975_v7 }
 0x634   : > { %4787 = vmatpush3.msra.mxu0 %v1093_v16  ;;  %4792 = vmatpush3.msra.mxu1 %v1094_v17  ;;  %v2938_v44 = vpop.permute.xlu1 %2937  ;;  %v2952_v53 = vpop.permute.xlu0 %2951  ;;  %v1058_v16 = vrot.slane %v1044_v45, %v5146_v5 }
 0x635   : > { %v2976_v55 = vmul.f32 %v5569_v26, %v2938_v44  ;;  %4788 = vmatprep.mubr.msk.f32.mxu0 %vm4943_vm1, %v4942_v29  ;;  %4796 = vmatprep.subr.mxu0 %v4942_v29  ;;  %v2978_v26 = vmul.f32 %v5581_v1, %v2952_v53 }
 0x636   : > { %4793 = vmatprep.mubr.msk.f32.mxu1 %vm4943_vm1, %v4942_v29  ;;  %4801 = vmatprep.subr.mxu1 %v4942_v29  ;;  %v1097_v28 = vcombine.low %v1058_v16, %v1090_v12 }
 0x637   : > { %4789 = vmatmul.mubr.msk.f32.vlgmr.msra.gmra.mrb[30].mxu0 %vm2331_vm4, %v2976_v55 }
 0x638   : > { %4797 = vmatpush3.msra.mxu0 %v1095_v60  ;;  %v2945_v13 = vpop.permute.xlu1 %2944  ;;  %v2966_v17 = vpop.permute.xlu0 %2965  ;;  %4798 = vmatprep.mubr.msk.f32.mxu0 %vm4943_vm1, %v4942_v29 }
 0x639   : > { %v2977_v40 = vmul.f32 %v5575_v62, %v2945_v13  ;;  %4806 = vmatprep.subr.mxu0 %v4942_v29  ;;  %v2980_v25 = vmul.f32 %v5591_v38, %v2966_v17  ;;  %v1098_v62 = vcombine.high %v1058_v16, %v1090_v12 }
 0x63b   : > { %4794 = vmatmul.mubr.msk.f32.vlgmr.msra.gmra.mrb[30].mxu1 %vm2331_vm4, %v2977_v40  ;;  %4799 = vmatmul.mubr.msk.f32.vlgmr.msra.gmra.mrb[32].mxu0 %vm2331_vm4, %v2978_v26 }
 0x63c   : > { %4802 = vmatpush3.msra.mxu1 %v1096_v23  ;;  %4807 = vmatpush3.msra.mxu0 %v1097_v28  ;;  %v2959_v56 = vpop.permute.xlu1 %2958  ;;  %v2988_v19 = vpop.permute.xlu0 %2987 }
 0x63d   : > { %v2979_v39 = vmul.f32 %v5583_v9, %v2959_v56  ;;  %4803 = vmatprep.mubr.msk.f32.mxu1 %vm4943_vm1, %v4942_v29  ;;  %4808 = vmatprep.mubr.msk.f32.mxu0 %vm4943_vm1, %v4942_v29  ;;  %v3038_v38 = vmul.f32 %v5600_v46, %v2988_v19 }
 0x63e   : > { %4811 = vmatprep.subr.mxu1 %v4942_v29  ;;  %4816 = vmatprep.subr.mxu0 %v4942_v29 }
 0x63f   : > { %4804 = vmatmul.mubr.msk.f32.vlgmr.msra.gmra.mrb[32].mxu1 %vm2331_vm4, %v2979_v39  ;;  %4809 = vmatmul.mubr.msk.f32.vlgmr.msra.gmra.mrb[34].mxu0 %vm2331_vm4, %v2980_v25 }
 0x640   : > { %4812 = vmatpush3.msra.mxu1 %v1098_v62  ;;  %4817 = vmatpush3.msra.mxu0 %v5349_v51  ;;  %v2973_v1 = vpop.permute.xlu1 %2972  ;;  %v3002_v9 = vpop.permute.xlu0 %3001 }
 0x641   : > { %v2981_v2 = vmul.f32 %v5593_v61, %v2973_v1  ;;  %4813 = vmatprep.mubr.msk.f32.mxu1 %vm4943_vm1, %v4942_v29  ;;  %4818 = vmatprep.mubr.msk.f32.mxu0 %vm4943_vm1, %v4942_v29  ;;  %v3040_v46 = vmul.f32 %v5608_v35, %v3002_v9 }
 0x642   : > { %4821 = vmatprep.subr.mxu1 %v4942_v29  ;;  %4826 = vmatprep.subr.mxu0 %v4942_v29 }
 0x643   : > { %4814 = vmatmul.mubr.msk.f32.vlgmr.msra.gmra.mrb[34].mxu1 %vm2331_vm4, %v2981_v2  ;;  %4819 = vmatmul.mubr.msk.f32.vlgmr.msra.gmra.mrb[36].mxu0 %vm2331_vm4, %v3038_v38 }
 0x644   : > { %4822 = vmatpush3.msra.mxu1 %v5347_v50  ;;  %4827 = vmatpush3.msra.mxu0 %v5353_v10  ;;  %v2995_v51 = vpop.permute.xlu1 %2994  ;;  %v3016_v61 = vpop.permute.xlu0 %3015 }
 0x645   : > { %v3039_v58 = vmul.f32 %v5602_v36, %v2995_v51  ;;  %4823 = vmatprep.mubr.msk.f32.mxu1 %vm4943_vm1, %v4942_v29  ;;  %4828 = vmatprep.mubr.msk.f32.mxu0 %vm4943_vm1, %v4942_v29  ;;  %v3042_v10 = vmul.f32 %v5616_v43, %v3016_v61 }
 0x646   : > { %4831 = vmatprep.subr.mxu1 %v4942_v29  ;;  %4836 = vmatprep.subr.mxu0 %v4942_v29 }
 0x647   : > { %4824 = vmatmul.mubr.msk.f32.vlgmr.msra.gmra.mrb[36].mxu1 %vm2331_vm4, %v3039_v58  ;;  %4829 = vmatmul.mubr.msk.f32.vlgmr.msra.gmra.mrb[38].mxu0 %vm2331_vm4, %v3040_v46  ;;  %v4359_v46 = vstv %s4350_s9 }
 0x648   : > { %4832 = vmatpush3.msra.mxu1 %v5351_v57  ;;  %4837 = vmatpush3.msra.mxu0 %v5363_v48  ;;  %v3009_v50 = vpop.permute.xlu1 %3008  ;;  %v3030_v35 = vpop.permute.xlu0 %3029 }
 0x649   : > { %v3041_v36 = vmul.f32 %v5610_v18, %v3009_v50  ;;  %4833 = vmatprep.mubr.msk.f32.mxu1 %vm4943_vm1, %v4942_v29  ;;  %4838 = vmatprep.mubr.msk.f32.mxu0 %vm4943_vm1, %v4942_v29  ;;  %v3044_v48 = vmul.f32 %v5624_v8, %v3030_v35 }
 0x64a   : > { %4841 = vmatprep.subr.mxu1 %v4942_v29  ;;  %4846 = vmatprep.subr.mxu0 %v4942_v29 }
 0x64b   : > { %4834 = vmatmul.mubr.msk.f32.vlgmr.msra.gmra.mrb[38].mxu1 %vm2331_vm4, %v3041_v36  ;;  %4839 = vmatmul.mubr.msk.f32.vlgmr.msra.gmra.mrb[40].mxu0 %vm2331_vm4, %v3042_v10 }
 0x64c   : > { %4842 = vmatpush3.msra.mxu1 %v5361_v42  ;;  %4847 = vmatpush3.msra.mxu0 %v5367_v63  ;;  %v3023_v57 = vpop.permute.xlu1 %3022 }
 0x64d   : > { %v3043_v18 = vmul.f32 %v5618_v49, %v3023_v57  ;;  %4843 = vmatprep.mubr.msk.f32.mxu1 %vm4943_vm1, %v4942_v29  ;;  %4848 = vmatprep.mubr.msk.f32.mxu0 %vm4943_vm1, %v4942_v29 }
 0x64e   : > { %4851 = vmatprep.subr.mxu1 %v4942_v29 }
 0x64f   : > { %4844 = vmatmul.mubr.msk.f32.vlgmr.msra.gmra.mrb[40].mxu1 %vm2331_vm4, %v3043_v18  ;;  %4849 = vmatmul.mubr.msk.f32.vlgmr.msra.gmra.mrb[42].mxu0 %vm2331_vm4, %v3044_v48 }
 0x650   : > { %4852 = vmatpush3.msra.mxu1 %v5365_v52  ;;  %v3037_v42 = vpop.permute.xlu1 %3036  ;;  %4853 = vmatprep.mubr.msk.f32.mxu1 %vm4943_vm1, %v4942_v29 }
 0x651   : > { %v3045_v63 = vmul.f32 %v5626_v11, %v3037_v42 }
 0x653   : > { %4854 = vmatmul.mubr.msk.f32.vlgmr.msra.gmra.mrb[42].mxu1 %vm2331_vm4, %v3045_v63 }
 0x706   : > { %v3115_v43 = vpop.f32.mrb[28].mxu0  ;;  %v3188_v49 = vpop.f32.mrb[28].mxu1 }
 0x707   : > { %v4780_v8 = vpop.f32.mrb[29].mxu0  ;;  %v4785_v22 = vpop.f32.mrb[29].mxu1 }
 0x70a   : > { %v3261_v30 = vpop.f32.mrb[30].mxu0 }
 0x70b   : > { %v4214_v6 = vcombine.low %v3115_v43, %v3261_v30  ;;  %v4215_v0 = vcombine.high %v3115_v43, %v3261_v30  ;;  %v4790_v14 = vpop.f32.mrb[31].mxu0 }
 0x70d   : > { %v4222_v29 = vrot.slane %v4214_v6, %v5114_v47  ;;  %v4229_v11 = vrot.slane %v4215_v0, %v5114_v47 }
 0x70e   : > { %v3334_v4 = vpop.f32.mrb[30].mxu1  ;;  %v3407_v15 = vpop.f32.mrb[32].mxu0 }
 0x70f   : > { %v4230_v24 = vcombine.low %v3188_v49, %v3334_v4  ;;  %v4231_v52 = vcombine.high %v3188_v49, %v3334_v4  ;;  %v4795_v34 = vpop.f32.mrb[31].mxu1  ;;  %v4800_v54 = vpop.f32.mrb[33].mxu0 }
 0x711   : > { %v4238_v31 = vrot.slane %v4230_v24, %v5114_v47  ;;  %v4245_v37 = vrot.slane %v4231_v52, %v5114_v47 }
 0x712   : > { %v3480_v27 = vpop.f32.mrb[32].mxu1  ;;  %v3553_v59 = vpop.f32.mrb[34].mxu0 }
 0x713   : > { %v4278_v33 = vcombine.low %v4222_v29, %v4238_v31  ;;  %v4279_v3 = vcombine.high %v4222_v29, %v4238_v31  ;;  %v4294_v7 = vcombine.low %v4229_v11, %v4245_v37  ;;  %v4295_v20 = vcombine.high %v4229_v11, %v4245_v37  ;;  %v4805_v45 = vpop.f32.mrb[33].mxu1  ;;  %v4810_v21 = vpop.f32.mrb[35].mxu0 }
 0x714   : > { %v4246_v32 = vcombine.low %v3407_v15, %v3553_v59  ;;  %v4247_v41 = vcombine.high %v3407_v15, %v3553_v59  ;;  %v4926_v59 = vld [vmem:[%s5034_s27] sm:$0xff]  ;;  %v4929_v21 = vld [vmem:[%s5034_s27 + $0x18] sm:$0xff] }
 0x715   : > { %v4286_v9 = vrot.slane %v4278_v33, %v5146_v5  ;;  %v4293_v38 = vrot.slane %v4279_v3, %v5146_v5  ;;  %v4302_v10 = vrot.slane %v4294_v7, %v5146_v5  ;;  %v4309_v36 = vrot.slane %v4295_v20, %v5146_v5  ;;  %v4927_v3 = vld [vmem:[%s5034_s27 + $0x8] sm:$0xff]  ;;  %v4928_v20 = vld [vmem:[%s5034_s27 + $0x10] sm:$0xff] }
 0x716   : > { %v3626_v44 = vpop.f32.mrb[34].mxu1  ;;  %v3699_v53 = vpop.f32.mrb[36].mxu0  ;;  %v4254_v13 = vrot.slane %v4246_v32, %v5114_v47  ;;  %v4261_v17 = vrot.slane %v4247_v41, %v5114_v47  ;;  %v4930_v41 = vld [vmem:[%s5034_s27 + $0x20] sm:$0xff] }
 0x717   : > { %v4262_v55 = vcombine.low %v3480_v27, %v3626_v44  ;;  %v4263_v60 = vcombine.high %v3480_v27, %v3626_v44  ;;  %v4815_v16 = vpop.f32.mrb[35].mxu1  ;;  %v4820_v12 = vpop.f32.mrb[37].mxu0 }
 0x719   : > { %v4270_v26 = vrot.slane %v4262_v55, %v5114_v47  ;;  %v4277_v40 = vrot.slane %v4263_v60, %v5114_v47 }
 0x71a   : > { %v3772_v23 = vpop.f32.mrb[36].mxu1  ;;  %v3845_v28 = vpop.f32.mrb[38].mxu0 }
 0x71b   : > { %v4310_v56 = vcombine.low %v4254_v13, %v4270_v26  ;;  %v4311_v19 = vcombine.high %v4254_v13, %v4270_v26  ;;  %v4326_v25 = vcombine.low %v4261_v17, %v4277_v40  ;;  %v4327_v39 = vcombine.high %v4261_v17, %v4277_v40  ;;  %v4825_v62 = vpop.f32.mrb[37].mxu1  ;;  %v4830_v1 = vpop.f32.mrb[39].mxu0  ;;  %v4931_v13 = vld [vmem:[%s5034_s27 + $0x28] sm:$0xff]  ;;  %v4932_v26 = vld [vmem:[%s5034_s27 + $0x30] sm:$0xff] }
 0x71d   : > { %v4318_v2 = vrot.slane %v4310_v56, %v5146_v5  ;;  %v4325_v51 = vrot.slane %v4311_v19, %v5146_v5  ;;  %v4334_v61 = vrot.slane %v4326_v25, %v5146_v5  ;;  %v4341_v47 = vrot.slane %v4327_v39, %v5146_v5 }
 0x71e   : > { %v3918_v58 = vpop.f32.mrb[38].mxu1  ;;  %v3991_v50 = vpop.f32.mrb[40].mxu0 }
 0x71f   : > { %v4342_v35 = vcombine.low %v4286_v9, %v4318_v2  ;;  %v4343_v57 = vcombine.high %v4286_v9, %v4318_v2  ;;  %v4344_v48 = vcombine.low %v4293_v38, %v4325_v51  ;;  %v4345_v18 = vcombine.high %v4293_v38, %v4325_v51  ;;  %v4835_v42 = vpop.f32.mrb[39].mxu1  ;;  %v4840_v63 = vpop.f32.mrb[41].mxu0 }
 0x720   : > { %v4346_v43 = vcombine.low %v4302_v10, %v4334_v61  ;;  %v4347_v49 = vcombine.high %v4302_v10, %v4334_v61  ;;  %v4348_v8 = vcombine.low %v4309_v36, %v4341_v47  ;;  %v4349_v22 = vcombine.high %v4309_v36, %v4341_v47 }
 0x721   : > { %v4351_v30 = vadd.f32 %v4342_v35, %v3699_v53  ;;  %v4352_v6 = vadd.f32 %v4343_v57, %v3772_v23  ;;  %v4353_v0 = vadd.f32 %v4344_v48, %v3845_v28  ;;  %v4354_v14 = vadd.f32 %v4345_v18, %v3918_v58  ;;  %v4933_v28 = vld [vmem:[%s5034_s27 + $0x38] sm:$0xff] }
 0x722   : > { %v4355_v4 = vadd.f32 %v4346_v43, %v3991_v50  ;;  %v4064_v15 = vpop.f32.mrb[40].mxu1  ;;  %v4137_v5 = vpop.f32.mrb[42].mxu0 }
 0x723   : > { %v4360_v24 = vmul.f32 %v4359_v46, %v4351_v30  ;;  %v4361_v52 = vmul.f32 %v4359_v46, %v4352_v6  ;;  %v4362_v34 = vmul.f32 %v4359_v46, %v4353_v0  ;;  %v4363_v54 = vmul.f32 %v4359_v46, %v4354_v14  ;;  %v4845_v29 = vpop.f32.mrb[41].mxu1  ;;  %v4850_v11 = vpop.f32.mrb[43].mxu0 }
 0x724   : > { %v4364_v31 = vmul.f32 %v4359_v46, %v4355_v4  ;;  %v4356_v37 = vadd.f32 %v4347_v49, %v4064_v15  ;;  %v4357_v27 = vadd.f32 %v4348_v8, %v4137_v5 }
 0x725   : > { %v4368_v33 = vadd.f32 %v4926_v59, %v4360_v24  ;;  %v4369_v7 = vadd.f32 %v4927_v3, %v4361_v52  ;;  %v4370_v45 = vadd.f32 %v4928_v20, %v4362_v34  ;;  %v4371_v32 = vadd.f32 %v4929_v21, %v4363_v54 }
 0x726   : > { %v4372_v44 = vadd.f32 %v4930_v41, %v4364_v31  ;;  %v4365_v53 = vmul.f32 %v4359_v46, %v4356_v37  ;;  %v4366_v55 = vmul.f32 %v4359_v46, %v4357_v27  ;;  %v4210_v60 = vpop.f32.mrb[42].mxu1 }
 0x727   : > { %4376 = vst.msk [vmem:[%s5801_s11] sm:$0xff] %vm327_vm0, %v4368_v33  ;;  %4377 = vst.msk [vmem:[%s5801_s11 + $0x8] sm:$0xff] %vm327_vm0, %v4369_v7  ;;  %v4358_v16 = vadd.f32 %v4349_v22, %v4210_v60  ;;  %v4855_v12 = vpop.f32.mrb[43].mxu1 }
 0x728   : > { %4378 = vst.msk [vmem:[%s5801_s11 + $0x10] sm:$0xff] %vm327_vm0, %v4370_v45  ;;  %4379 = vst.msk [vmem:[%s5801_s11 + $0x18] sm:$0xff] %vm327_vm0, %v4371_v32  ;;  %v4373_v17 = vadd.f32 %v4931_v13, %v4365_v53  ;;  %v4374_v40 = vadd.f32 %v4932_v26, %v4366_v55 }
 0x729   : > { %4380 = vst.msk [vmem:[%s5801_s11 + $0x20] sm:$0xff] %vm327_vm0, %v4372_v44  ;;  %v4367_v23 = vmul.f32 %v4359_v46, %v4358_v16 }
 0x72a   : > { %4381 = vst.msk [vmem:[%s5801_s11 + $0x28] sm:$0xff] %vm327_vm0, %v4373_v17  ;;  %4382 = vst.msk [vmem:[%s5801_s11 + $0x30] sm:$0xff] %vm327_vm0, %v4374_v40 }
 0x72b   : > { %v4375_v56 = vadd.f32 %v4933_v28, %v4367_v23 }
 0x72d   : > { %4383 = vst.msk [vmem:[%s5801_s11 + $0x38] sm:$0xff] %vm327_vm0, %v4375_v56 }
 0x72e PF: > { %s19_s29 = sadd.s32 1, %s4940_s29  }
 0x72f   : > { %p16_p4 = scmp.ge.s32.totalorder %s19_s29, 4  }
 0x731   :  { %18 = sbr.rel (!%p16_p4) target bundleno = 2 (0x2), region = 82 }

</bundles_post_ra>
